<compile_context>
chip_gen: v5e
topology: v5e:2x2
jax: 0.10.0
libtpu: 0.0.40
codegen_flags: <defaults>
</compile_context>

<pallas_src>
from functools import partial

import jax
import jax.numpy as jnp
from jax.experimental import pallas as pl
from jax.experimental.pallas import tpu as pltpu


# ----------------------------------------------------------------------------
# helpers
# ----------------------------------------------------------------------------
def _round_up(x, m):
    return ((x + m - 1) // m) * m


def _pick_tm(m):
    """Row-tile size: big tiles for big M, >=2 blocks when possible (v7x 2 TCs)."""
    mr = _round_up(m, 8)
    if mr > 512:
        return 512
    if mr >= 256 and mr % 16 == 0:
        return mr // 2
    return mr


# ----------------------------------------------------------------------------
# Pallas kernels
# ----------------------------------------------------------------------------
def _matmul_fused_kernel(a_ref, b_ref, scale_ref, shift_ref, o_ref, *, act):
    """o = act((A @ B) * scale + shift); bf16 dot, f32 epilogue."""
    a = a_ref[...].astype(jnp.bfloat16)
    acc = jnp.dot(a, b_ref[...], preferred_element_type=jnp.float32)
    y = acc * scale_ref[...] + shift_ref[...]
    if act == "relu":
        y = jnp.maximum(y, 0.0)
    elif act == "tanh":
        y = jnp.tanh(y)
    o_ref[...] = y


def _resblock_kernel(a_ref, w3_ref, s3_ref, sh3_ref, w1_ref, sp_ref, shp_ref,
                     res_ref, o_ref):
    """Fused ResBlock (+ optional trailing BN folded into sp/shp):

        h = relu((relu(patches) @ W3) * s3 + sh3)      # conv3x3 + b3 + BN + ReLU
        o = (h @ W1 + residual) * sp + shp             # conv1x1 (+b1) + x (+post-BN)

    Intermediate h never leaves VMEM. Dots in bf16, epilogues in f32.
    """
    a = jnp.maximum(a_ref[...], 0.0).astype(jnp.bfloat16)      # leading ReLU prologue
    acc1 = jnp.dot(a, w3_ref[...], preferred_element_type=jnp.float32)
    h = jnp.maximum(acc1 * s3_ref[...] + sh3_ref[...], 0.0)
    acc2 = jnp.dot(h.astype(jnp.bfloat16), w1_ref[...],
                   preferred_element_type=jnp.float32)
    o_ref[...] = (acc2 + res_ref[...]) * sp_ref[...] + shp_ref[...]


# ----------------------------------------------------------------------------
# Pallas wrappers
# ----------------------------------------------------------------------------
def pallas_matmul_fused(a, w_p, scale_p, shift_p, act):
    """a:[M,K] f32 @ w_p:[Kp,Np] bf16 (pre-packed), fused scale/shift/act."""
    M, K = a.shape
    Kp, Np = w_p.shape
    tm = _pick_tm(M)
    Mp = _round_up(M, tm)
    a_p = jnp.zeros((Mp, Kp), jnp.float32).at[:M, :K].set(a)

    out = pl.pallas_call(
        partial(_matmul_fused_kernel, act=act),
        out_shape=jax.ShapeDtypeStruct((Mp, Np), jnp.float32),
        grid=(Mp // tm,),
        in_specs=[
            pl.BlockSpec((tm, Kp), lambda i: (i, 0)),
            pl.BlockSpec((Kp, Np), lambda i: (0, 0)),
            pl.BlockSpec((1, Np), lambda i: (0, 0)),
            pl.BlockSpec((1, Np), lambda i: (0, 0)),
        ],
        out_specs=pl.BlockSpec((tm, Np), lambda i: (i, 0)),
        compiler_params=pltpu.CompilerParams(dimension_semantics=("parallel",)),
    )(a_p, w_p, scale_p, shift_p)
    return out[:M]


def pallas_resblock(a, res, rp):
    """Whole ResBlock (incl. biases, inner BN, optional trailing BN) in one call."""
    M, K = a.shape
    Kp, Cp = rp["w3"].shape
    C = res.shape[1]
    tm = _pick_tm(M)
    Mp = _round_up(M, tm)
    a_p = jnp.zeros((Mp, Kp), jnp.float32).at[:M, :K].set(a)
    res_p = jnp.zeros((Mp, Cp), jnp.float32).at[:M, :C].set(res)

    out = pl.pallas_call(
        _resblock_kernel,
        out_shape=jax.ShapeDtypeStruct((Mp, Cp), jnp.float32),
        grid=(Mp // tm,),
        in_specs=[
            pl.BlockSpec((tm, Kp), lambda i: (i, 0)),
            pl.BlockSpec((Kp, Cp), lambda i: (0, 0)),
            pl.BlockSpec((1, Cp), lambda i: (0, 0)),
            pl.BlockSpec((1, Cp), lambda i: (0, 0)),
            pl.BlockSpec((Cp, Cp), lambda i: (0, 0)),
            pl.BlockSpec((1, Cp), lambda i: (0, 0)),
            pl.BlockSpec((1, Cp), lambda i: (0, 0)),
            pl.BlockSpec((tm, Cp), lambda i: (i, 0)),
        ],
        out_specs=pl.BlockSpec((tm, Cp), lambda i: (i, 0)),
        compiler_params=pltpu.CompilerParams(dimension_semantics=("parallel",)),
    )(a_p, rp["w3"], rp["s3"], rp["sh3"], rp["w1"], rp["sp"], rp["shp"], res_p)
    return out[:M]


# ----------------------------------------------------------------------------
# XLA glue: im2col + layer wrappers (all math goes through the Pallas kernels)
# ----------------------------------------------------------------------------
def im2col(x_nhwc, kh, kw, stride, padding):
    N, H, W, C = x_nhwc.shape
    xp = jnp.pad(x_nhwc, ((0, 0), (padding, padding), (padding, padding), (0, 0)))
    Ho = (H + 2 * padding - kh) // stride + 1
    Wo = (W + 2 * padding - kw) // stride + 1
    patches = []
    for i in range(kh):
        for j in range(kw):
            patches.append(xp[:, i:i + stride * Ho:stride, j:j + stride * Wo:stride, :])
    p = jnp.stack(patches, axis=3)                 # [N, Ho, Wo, kh*kw, C]
    return p.reshape(N * Ho * Wo, kh * kw * C), (N, Ho, Wo)


def conv_layer(x_nhwc, lp, kh, kw, stride, padding, cout, act):
    a, (N, Ho, Wo) = im2col(x_nhwc, kh, kw, stride, padding)
    y = pallas_matmul_fused(a, lp["w"], lp["s"], lp["sh"], act)
    return y[:, :cout].reshape(N, Ho, Wo, cout)


def deconv_layer(x_nhwc, lp, kh, kw, stride, padding, cout, act):
    # ConvTranspose2d(k,s,p) == zero-insertion upsample by s, then stride-1 conv
    # with the spatially flipped kernel and padding k-1-p.
    # TODO(synk): only exact for output_padding=0 (matches CVAE's k=4, s=2, p=1).
    N, H, W, C = x_nhwc.shape
    up = jnp.zeros((N, (H - 1) * stride + 1, (W - 1) * stride + 1, C), x_nhwc.dtype)
    up = up.at[:, ::stride, ::stride, :].set(x_nhwc)
    return conv_layer(up, lp, kh, kw, 1, kh - 1 - padding, cout, act)


def res_block(x_nhwc, rp):
    N, H, W, C = x_nhwc.shape
    a, _ = im2col(x_nhwc, 3, 3, 1, 1)              # leading ReLU applied in-kernel
    res = x_nhwc.reshape(N * H * W, C)
    y = pallas_resblock(a, res, rp)
    return y[:, :C].reshape(N, H, W, C)


# ----------------------------------------------------------------------------
# CVAE forward (takes PRE-PACKED params)
# ----------------------------------------------------------------------------
def cvae_forward(pp, x_nchw, *, d, num_channels):
    f = 8
    D = d * f * f
    x = jnp.transpose(x_nchw, (0, 2, 3, 1))                    # NCHW -> NHWC

    # ---- encoder ----
    h = conv_layer(x, pp["enc1"], 4, 4, 2, 1, d // 2, "relu")  # [N,16,16,d//2]
    h = conv_layer(h, pp["enc2"], 4, 4, 2, 1, d, "relu")       # [N, 8, 8, d]
    h = res_block(h, pp["enc_res1"])                           # ResBlock + enc_bn3 fused
    h = res_block(h, pp["enc_res2"])                           # ResBlock (no trailing BN)

    N = h.shape[0]
    h1 = jnp.transpose(h, (0, 3, 1, 2)).reshape(N, D)          # torch .view on NCHW

    # merged fc11|fc12 matmul
    fc = pallas_matmul_fused(h1, pp["fc"]["w"], pp["fc"]["s"], pp["fc"]["sh"], "none")
    mu, logvar = fc[:, :D], fc[:, D:2 * D]

    # reparameterize (inference mode): z = mu
    # TODO(synk): training-mode forward (batch-stat BN + gaussian eps) not implemented.
    z = mu

    # ---- decoder ----
    h = jnp.transpose(z.reshape(N, d, f, f), (0, 2, 3, 1))     # NHWC [N,8,8,d]
    h = res_block(h, pp["dec_res1"])                           # ResBlock + dec_bn1 fused
    h = res_block(h, pp["dec_res2"])                           # ResBlock + dec_bn2 fused
    h = deconv_layer(h, pp["dec1"], 4, 4, 2, 1, d // 2, "relu")        # [N,16,16,d//2]
    h = deconv_layer(h, pp["dec2"], 4, 4, 2, 1, num_channels, "tanh")  # [N,32,32,nc]

    recon = jnp.transpose(h, (0, 3, 1, 2))                     # NHWC -> NCHW
    return recon, mu, logvar


# ----------------------------------------------------------------------------
# One-time parameter packing: BN folding, kernel flip/transpose, 128-pad, bf16
# ----------------------------------------------------------------------------
def prepare_params(p, d, num_channels, eps=1e-5):
    f = 8
    D = d * f * f

    def fold(bn, bias=None):
        gamma, beta, mean, var = bn
        inv = gamma / jnp.sqrt(var + eps)
        b = 0.0 if bias is None else bias
        return inv, (b - mean) * inv + beta

    def conv_mat(w_oihw):
        cout, cin, kh, kw = w_oihw.shape
        return jnp.transpose(w_oihw, (2, 3, 1, 0)).reshape(kh * kw * cin, cout)

    def deconv_mat(w_iohw):
        w_eq = jnp.transpose(jnp.flip(w_iohw, axis=(2, 3)), (1, 0, 2, 3))  # OIHW
        return conv_mat(w_eq)

    def pad_w(w2d):
        K, Nn = w2d.shape
        Kp, Np = _round_up(K, 128), _round_up(Nn, 128)
        return jnp.zeros((Kp, Np), jnp.bfloat16).at[:K, :Nn].set(w2d.astype(jnp.bfloat16))

    def pad_row(v):
        n = v.shape[0]
        return jnp.zeros((1, _round_up(n, 128)), jnp.float32).at[0, :n].set(v)

    def conv_pack(w_mat, bn):
        s, sh = fold(bn)
        return {"w": pad_w(w_mat), "s": pad_row(s), "sh": pad_row(sh)}

    def resblock_pack(rp, post_bn):
        C = rp["conv1_b"].shape[0]
        s3, sh3 = fold(rp["bn"], bias=rp["conv3_b"])
        if post_bn is None:
            sp = jnp.ones((C,), jnp.float32)
            shp = rp["conv1_b"]
        else:
            sp, shpb = fold(post_bn)
            shp = rp["conv1_b"] * sp + shpb
        return {"w3": pad_w(conv_mat(rp["conv3_w"])),
                "s3": pad_row(s3), "sh3": pad_row(sh3),
                "w1": pad_w(conv_mat(rp["conv1_w"])),
                "sp": pad_row(sp), "shp": pad_row(shp)}

    wcat = jnp.concatenate([p["fc11_w"].T, p["fc12_w"].T], axis=1)   # [D, 2D]
    bcat = jnp.concatenate([p["fc11_b"], p["fc12_b"]])

    return {
        "enc1": conv_pack(conv_mat(p["enc_conv1_w"]), p["enc_bn1"]),
        "enc2": conv_pack(conv_mat(p["enc_conv2_w"]), p["enc_bn2"]),
        "enc_res1": resblock_pack(p["enc_res1"], p["enc_bn3"]),
        "enc_res2": resblock_pack(p["enc_res2"], None),
        "fc": {"w": wcat.astype(jnp.bfloat16),
               "s": jnp.ones((1, 2 * D), jnp.float32),
               "sh": bcat.reshape(1, 2 * D).astype(jnp.float32)},
        "dec_res1": resblock_pack(p["dec_res1"], p["dec_bn1"]),
        "dec_res2": resblock_pack(p["dec_res2"], p["dec_bn2"]),
        "dec1": conv_pack(deconv_mat(p["dec_deconv1_w"]), p["dec_bn3"]),
        "dec2": {"w": pad_w(deconv_mat(p["dec_deconv2_w"])),
                 "s": pad_row(jnp.ones((num_channels,), jnp.float32)),
                 "sh": pad_row(jnp.zeros((num_channels,), jnp.float32))},
    }


# ----------------------------------------------------------------------------
# Deterministic synthetic parameters (shapes match CVAE.__init__)
# ----------------------------------------------------------------------------
def make_params(d=16, num_channels=3, seed=42):
    keys = iter(jax.random.split(jax.random.PRNGKey(seed), 128))

    def w(shape, scale=0.05):
        return scale * jax.random.normal(next(keys), shape, jnp.float32)

    def bn(c):
        gamma = 1.0 + 0.1 * jax.random.normal(next(keys), (c,), jnp.float32)
        beta = 0.1 * jax.random.normal(next(keys), (c,), jnp.float32)
        mean = 0.1 * jax.random.normal(next(keys), (c,), jnp.float32)
        var = 1.0 + 0.1 * jnp.abs(jax.random.normal(next(keys), (c,), jnp.float32))
        return (gamma, beta, mean, var)

    def resblock(c):
        return {"conv3_w": w((c, c, 3, 3)), "conv3_b": w((c,)),
                "bn": bn(c),
                "conv1_w": w((c, c, 1, 1)), "conv1_b": w((c,))}

    f = 8
    D = d * f * f
    return {
        "enc_conv1_w": w((d // 2, num_channels, 4, 4)),
        "enc_bn1": bn(d // 2),
        "enc_conv2_w": w((d, d // 2, 4, 4)),
        "enc_bn2": bn(d),
        "enc_res1": resblock(d),
        "enc_bn3": bn(d),
        "enc_res2": resblock(d),
        "fc11_w": w((D, D)), "fc11_b": w((D,)),
        "fc12_w": w((D, D)), "fc12_b": w((D,)),
        "dec_res1": resblock(d),
        "dec_bn1": bn(d),
        "dec_res2": resblock(d),
        "dec_bn2": bn(d),
        "dec_deconv1_w": w((d, d // 2, 4, 4)),   # ConvTranspose2d weight: (in, out, kH, kW)
        "dec_bn3": bn(d // 2),
        "dec_deconv2_w": w((d // 2, num_channels, 4, 4)),
    }


# ----------------------------------------------------------------------------
if __name__ == "__main__":
    d, num_channels, batch = 16, 3, 2
    raw = make_params(d=d, num_channels=num_channels)
    packed = prepare_params(raw, d, num_channels)   # one-time fold/transpose/pad/bf16

    # f = 8 with two stride-2 downsamples implies 32x32 spatial input.
    x = jax.random.normal(jax.random.PRNGKey(0),
                          (batch, num_channels, 32, 32), jnp.float32)

    fwd = jax.jit(partial(cvae_forward, d=d, num_channels=num_channels))
    recon, mu, logvar = fwd(packed, x)
    jax.block_until_ready((recon, mu, logvar))

    assert recon.shape == (batch, num_channels, 32, 32)
    assert mu.shape == (batch, d * 64) and logvar.shape == (batch, d * 64)
    assert bool(jnp.all(jnp.isfinite(recon)))
    assert bool(jnp.all(jnp.isfinite(mu))) and bool(jnp.all(jnp.isfinite(logvar)))
    print("KERNEL_OK")
</pallas_src>

<mosaic_0001>
module attributes {stable_mosaic.version = 11 : i64} {
  func.func @_matmul_fused_kernel(%arg0: i32, %arg1: memref<256x128xf32, #tpu.memory_space<vmem>>, %arg2: memref<128x128xbf16, #tpu.memory_space<vmem>>, %arg3: memref<1x128xf32, #tpu.memory_space<vmem>>, %arg4: memref<1x128xf32, #tpu.memory_space<vmem>>, %arg5: memref<256x128xf32, #tpu.memory_space<vmem>>) attributes {dimension_semantics = [#tpu.dimension_semantics<parallel>], iteration_bounds = array<i64: 2>, scalar_prefetch = 0 : i64, scratch_operands = 0 : i64, tpu.core_type = #tpu.core_type<tc>, window_params = [{transform_indices = @transform_0, window_bounds = array<i64: 256, 128>}, {pipeline_mode = #tpu.pipeline_mode<synchronous>, transform_indices = @transform_1, window_bounds = array<i64: 128, 128>}, {pipeline_mode = #tpu.pipeline_mode<synchronous>, transform_indices = @transform_2, window_bounds = array<i64: 1, 128>}, {pipeline_mode = #tpu.pipeline_mode<synchronous>, transform_indices = @transform_3, window_bounds = array<i64: 1, 128>}, {transform_indices = @transform_4, window_bounds = array<i64: 256, 128>}]} {
    %c0 = arith.constant 0 : index
    %c0_0 = arith.constant 0 : index
    %0 = vector.load %arg1[%c0, %c0_0] : memref<256x128xf32, #tpu.memory_space<vmem>>, vector<256x128xf32>
    %1 = arith.truncf %0 : vector<256x128xf32> to vector<256x128xbf16>
    %c0_1 = arith.constant 0 : index
    %c0_2 = arith.constant 0 : index
    %2 = vector.load %arg2[%c0_1, %c0_2] : memref<128x128xbf16, #tpu.memory_space<vmem>>, vector<128x128xbf16>
    %cst = arith.constant dense<0.000000e+00> : vector<256x128xf32>
    %3 = tpu.matmul %1, %2, %cst {dimension_numbers = #tpu.dot_dimension_numbers<[1], [0], [0], [1], [0, 0, 1, 1], [], []>} : vector<256x128xbf16>, vector<128x128xbf16>, vector<256x128xf32> -> vector<256x128xf32>
    %c0_3 = arith.constant 0 : index
    %c0_4 = arith.constant 0 : index
    %4 = vector.load %arg3[%c0_3, %c0_4] : memref<1x128xf32, #tpu.memory_space<vmem>>, vector<1x128xf32>
    %5 = vector.broadcast %4 : vector<1x128xf32> to vector<256x128xf32>
    %6 = arith.mulf %3, %5 : vector<256x128xf32>
    %c0_5 = arith.constant 0 : index
    %c0_6 = arith.constant 0 : index
    %7 = vector.load %arg4[%c0_5, %c0_6] : memref<1x128xf32, #tpu.memory_space<vmem>>, vector<1x128xf32>
    %8 = vector.broadcast %7 : vector<1x128xf32> to vector<256x128xf32>
    %9 = arith.addf %6, %8 : vector<256x128xf32>
    %cst_7 = arith.constant 0.000000e+00 : f32
    %10 = vector.broadcast %cst_7 : f32 to vector<256x128xf32>
    %11 = arith.maximumf %9, %10 : vector<256x128xf32>
    %c0_8 = arith.constant 0 : index
    %c0_9 = arith.constant 0 : index
    %12 = vector.load %arg5[%c0_8, %c0_9] : memref<256x128xf32, #tpu.memory_space<vmem>>, vector<256x128xf32>
    tpu.vector_store %arg5[%c0_8, %c0_9], %11 {strides = array<i32>} : memref<256x128xf32, #tpu.memory_space<vmem>>, vector<256x128xf32>,
    return
  }
  func.func @transform_0(%arg0: i32) -> (i32, i32) {
    %c0_i32 = arith.constant 0 : i32
    %c0_i32_0 = arith.constant 0 : i32
    return %arg0, %c0_i32 : i32, i32
  }
  func.func @transform_1(%arg0: i32) -> (i32, i32) {
    %c0_i32 = arith.constant 0 : i32
    %c0_i32_0 = arith.constant 0 : i32
    %c0_i32_1 = arith.constant 0 : i32
    return %c0_i32, %c0_i32_0 : i32, i32
  }
  func.func @transform_2(%arg0: i32) -> (i32, i32) {
    %c0_i32 = arith.constant 0 : i32
    %c0_i32_0 = arith.constant 0 : i32
    %c0_i32_1 = arith.constant 0 : i32
    return %c0_i32, %c0_i32_0 : i32, i32
  }
  func.func @transform_3(%arg0: i32) -> (i32, i32) {
    %c0_i32 = arith.constant 0 : i32
    %c0_i32_0 = arith.constant 0 : i32
    %c0_i32_1 = arith.constant 0 : i32
    return %c0_i32, %c0_i32_0 : i32, i32
  }
  func.func @transform_4(%arg0: i32) -> (i32, i32) {
    %c0_i32 = arith.constant 0 : i32
    %c0_i32_0 = arith.constant 0 : i32
    return %arg0, %c0_i32 : i32, i32
  }
}

module attributes {stable_mosaic.version = 11 : i64} {
  func.func @_matmul_fused_kernel(%arg0: i32, %arg1: memref<128x128xf32, #tpu.memory_space<vmem>>, %arg2: memref<128x128xbf16, #tpu.memory_space<vmem>>, %arg3: memref<1x128xf32, #tpu.memory_space<vmem>>, %arg4: memref<1x128xf32, #tpu.memory_space<vmem>>, %arg5: memref<128x128xf32, #tpu.memory_space<vmem>>) attributes {dimension_semantics = [#tpu.dimension_semantics<parallel>], iteration_bounds = array<i64: 1>, scalar_prefetch = 0 : i64, scratch_operands = 0 : i64, tpu.core_type = #tpu.core_type<tc>, window_params = [{transform_indices = @transform_0, window_bounds = array<i64: 128, 128>}, {pipeline_mode = #tpu.pipeline_mode<synchronous>, transform_indices = @transform_1, window_bounds = array<i64: 128, 128>}, {pipeline_mode = #tpu.pipeline_mode<synchronous>, transform_indices = @transform_2, window_bounds = array<i64: 1, 128>}, {pipeline_mode = #tpu.pipeline_mode<synchronous>, transform_indices = @transform_3, window_bounds = array<i64: 1, 128>}, {transform_indices = @transform_4, window_bounds = array<i64: 128, 128>}]} {
    %c0 = arith.constant 0 : index
    %c0_0 = arith.constant 0 : index
    %0 = vector.load %arg1[%c0, %c0_0] : memref<128x128xf32, #tpu.memory_space<vmem>>, vector<128x128xf32>
    %1 = arith.truncf %0 : vector<128x128xf32> to vector<128x128xbf16>
    %c0_1 = arith.constant 0 : index
    %c0_2 = arith.constant 0 : index
    %2 = vector.load %arg2[%c0_1, %c0_2] : memref<128x128xbf16, #tpu.memory_space<vmem>>, vector<128x128xbf16>
    %cst = arith.constant dense<0.000000e+00> : vector<128x128xf32>
    %3 = tpu.matmul %1, %2, %cst {dimension_numbers = #tpu.dot_dimension_numbers<[1], [0], [0], [1], [0, 0, 1, 1], [], []>} : vector<128x128xbf16>, vector<128x128xbf16>, vector<128x128xf32> -> vector<128x128xf32>
    %c0_3 = arith.constant 0 : index
    %c0_4 = arith.constant 0 : index
    %4 = vector.load %arg3[%c0_3, %c0_4] : memref<1x128xf32, #tpu.memory_space<vmem>>, vector<1x128xf32>
    %5 = vector.broadcast %4 : vector<1x128xf32> to vector<128x128xf32>
    %6 = arith.mulf %3, %5 : vector<128x128xf32>
    %c0_5 = arith.constant 0 : index
    %c0_6 = arith.constant 0 : index
    %7 = vector.load %arg4[%c0_5, %c0_6] : memref<1x128xf32, #tpu.memory_space<vmem>>, vector<1x128xf32>
    %8 = vector.broadcast %7 : vector<1x128xf32> to vector<128x128xf32>
    %9 = arith.addf %6, %8 : vector<128x128xf32>
    %cst_7 = arith.constant 0.000000e+00 : f32
    %10 = vector.broadcast %cst_7 : f32 to vector<128x128xf32>
    %11 = arith.maximumf %9, %10 : vector<128x128xf32>
    %c0_8 = arith.constant 0 : index
    %c0_9 = arith.constant 0 : index
    %12 = vector.load %arg5[%c0_8, %c0_9] : memref<128x128xf32, #tpu.memory_space<vmem>>, vector<128x128xf32>
    tpu.vector_store %arg5[%c0_8, %c0_9], %11 {strides = array<i32>} : memref<128x128xf32, #tpu.memory_space<vmem>>, vector<128x128xf32>,
    return
  }
  func.func @transform_0(%arg0: i32) -> (i32, i32) {
    %c0_i32 = arith.constant 0 : i32
    %c0_i32_0 = arith.constant 0 : i32
    return %arg0, %c0_i32 : i32, i32
  }
  func.func @transform_1(%arg0: i32) -> (i32, i32) {
    %c0_i32 = arith.constant 0 : i32
    %c0_i32_0 = arith.constant 0 : i32
    %c0_i32_1 = arith.constant 0 : i32
    return %c0_i32, %c0_i32_0 : i32, i32
  }
  func.func @transform_2(%arg0: i32) -> (i32, i32) {
    %c0_i32 = arith.constant 0 : i32
    %c0_i32_0 = arith.constant 0 : i32
    %c0_i32_1 = arith.constant 0 : i32
    return %c0_i32, %c0_i32_0 : i32, i32
  }
  func.func @transform_3(%arg0: i32) -> (i32, i32) {
    %c0_i32 = arith.constant 0 : i32
    %c0_i32_0 = arith.constant 0 : i32
    %c0_i32_1 = arith.constant 0 : i32
    return %c0_i32, %c0_i32_0 : i32, i32
  }
  func.func @transform_4(%arg0: i32) -> (i32, i32) {
    %c0_i32 = arith.constant 0 : i32
    %c0_i32_0 = arith.constant 0 : i32
    return %arg0, %c0_i32 : i32, i32
  }
}

module attributes {stable_mosaic.version = 11 : i64} {
  func.func @_resblock_kernel(%arg0: i32, %arg1: memref<128x256xf32, #tpu.memory_space<vmem>>, %arg2: memref<256x128xbf16, #tpu.memory_space<vmem>>, %arg3: memref<1x128xf32, #tpu.memory_space<vmem>>, %arg4: memref<1x128xf32, #tpu.memory_space<vmem>>, %arg5: memref<128x128xbf16, #tpu.memory_space<vmem>>, %arg6: memref<1x128xf32, #tpu.memory_space<vmem>>, %arg7: memref<1x128xf32, #tpu.memory_space<vmem>>, %arg8: memref<128x128xf32, #tpu.memory_space<vmem>>, %arg9: memref<128x128xf32, #tpu.memory_space<vmem>>) attributes {dimension_semantics = [#tpu.dimension_semantics<parallel>], iteration_bounds = array<i64: 1>, scalar_prefetch = 0 : i64, scratch_operands = 0 : i64, tpu.core_type = #tpu.core_type<tc>, window_params = [{transform_indices = @transform_0, window_bounds = array<i64: 128, 256>}, {pipeline_mode = #tpu.pipeline_mode<synchronous>, transform_indices = @transform_1, window_bounds = array<i64: 256, 128>}, {pipeline_mode = #tpu.pipeline_mode<synchronous>, transform_indices = @transform_2, window_bounds = array<i64: 1, 128>}, {pipeline_mode = #tpu.pipeline_mode<synchronous>, transform_indices = @transform_3, window_bounds = array<i64: 1, 128>}, {pipeline_mode = #tpu.pipeline_mode<synchronous>, transform_indices = @transform_4, window_bounds = array<i64: 128, 128>}, {pipeline_mode = #tpu.pipeline_mode<synchronous>, transform_indices = @transform_5, window_bounds = array<i64: 1, 128>}, {pipeline_mode = #tpu.pipeline_mode<synchronous>, transform_indices = @transform_6, window_bounds = array<i64: 1, 128>}, {transform_indices = @transform_7, window_bounds = array<i64: 128, 128>}, {transform_indices = @transform_8, window_bounds = array<i64: 128, 128>}]} {
    %c0 = arith.constant 0 : index
    %c0_0 = arith.constant 0 : index
    %0 = vector.load %arg1[%c0, %c0_0] : memref<128x256xf32, #tpu.memory_space<vmem>>, vector<128x256xf32>
    %cst = arith.constant 0.000000e+00 : f32
    %1 = vector.broadcast %cst : f32 to vector<128x256xf32>
    %2 = arith.maximumf %0, %1 : vector<128x256xf32>
    %3 = arith.truncf %2 : vector<128x256xf32> to vector<128x256xbf16>
    %c0_1 = arith.constant 0 : index
    %c0_2 = arith.constant 0 : index
    %4 = vector.load %arg2[%c0_1, %c0_2] : memref<256x128xbf16, #tpu.memory_space<vmem>>, vector<256x128xbf16>
    %cst_3 = arith.constant dense<0.000000e+00> : vector<128x128xf32>
    %5 = tpu.matmul %3, %4, %cst_3 {dimension_numbers = #tpu.dot_dimension_numbers<[1], [0], [0], [1], [0, 0, 1, 1], [], []>} : vector<128x256xbf16>, vector<256x128xbf16>, vector<128x128xf32> -> vector<128x128xf32>
    %c0_4 = arith.constant 0 : index
    %c0_5 = arith.constant 0 : index
    %6 = vector.load %arg3[%c0_4, %c0_5] : memref<1x128xf32, #tpu.memory_space<vmem>>, vector<1x128xf32>
    %7 = vector.broadcast %6 : vector<1x128xf32> to vector<128x128xf32>
    %8 = arith.mulf %5, %7 : vector<128x128xf32>
    %c0_6 = arith.constant 0 : index
    %c0_7 = arith.constant 0 : index
    %9 = vector.load %arg4[%c0_6, %c0_7] : memref<1x128xf32, #tpu.memory_space<vmem>>, vector<1x128xf32>
    %10 = vector.broadcast %9 : vector<1x128xf32> to vector<128x128xf32>
    %11 = arith.addf %8, %10 : vector<128x128xf32>
    %cst_8 = arith.constant 0.000000e+00 : f32
    %12 = vector.broadcast %cst_8 : f32 to vector<128x128xf32>
    %13 = arith.maximumf %11, %12 : vector<128x128xf32>
    %14 = arith.truncf %13 : vector<128x128xf32> to vector<128x128xbf16>
    %c0_9 = arith.constant 0 : index
    %c0_10 = arith.constant 0 : index
    %15 = vector.load %arg5[%c0_9, %c0_10] : memref<128x128xbf16, #tpu.memory_space<vmem>>, vector<128x128xbf16>
    %cst_11 = arith.constant dense<0.000000e+00> : vector<128x128xf32>
    %16 = tpu.matmul %14, %15, %cst_11 {dimension_numbers = #tpu.dot_dimension_numbers<[1], [0], [0], [1], [0, 0, 1, 1], [], []>} : vector<128x128xbf16>, vector<128x128xbf16>, vector<128x128xf32> -> vector<128x128xf32>
    %c0_12 = arith.constant 0 : index
    %c0_13 = arith.constant 0 : index
    %17 = vector.load %arg8[%c0_12, %c0_13] : memref<128x128xf32, #tpu.memory_space<vmem>>, vector<128x128xf32>
    %18 = arith.addf %16, %17 : vector<128x128xf32>
    %c0_14 = arith.constant 0 : index
    %c0_15 = arith.constant 0 : index
    %19 = vector.load %arg6[%c0_14, %c0_15] : memref<1x128xf32, #tpu.memory_space<vmem>>, vector<1x128xf32>
    %20 = vector.broadcast %19 : vector<1x128xf32> to vector<128x128xf32>
    %21 = arith.mulf %18, %20 : vector<128x128xf32>
    %c0_16 = arith.constant 0 : index
    %c0_17 = arith.constant 0 : index
    %22 = vector.load %arg7[%c0_16, %c0_17] : memref<1x128xf32, #tpu.memory_space<vmem>>, vector<1x128xf32>
    %23 = vector.broadcast %22 : vector<1x128xf32> to vector<128x128xf32>
    %24 = arith.addf %21, %23 : vector<128x128xf32>
    %c0_18 = arith.constant 0 : index
    %c0_19 = arith.constant 0 : index
    %25 = vector.load %arg9[%c0_18, %c0_19] : memref<128x128xf32, #tpu.memory_space<vmem>>, vector<128x128xf32>
    tpu.vector_store %arg9[%c0_18, %c0_19], %24 {strides = array<i32>} : memref<128x128xf32, #tpu.memory_space<vmem>>, vector<128x128xf32>,
    return
  }
  func.func @transform_0(%arg0: i32) -> (i32, i32) {
    %c0_i32 = arith.constant 0 : i32
    %c0_i32_0 = arith.constant 0 : i32
    return %arg0, %c0_i32 : i32, i32
  }
  func.func @transform_1(%arg0: i32) -> (i32, i32) {
    %c0_i32 = arith.constant 0 : i32
    %c0_i32_0 = arith.constant 0 : i32
    %c0_i32_1 = arith.constant 0 : i32
    return %c0_i32, %c0_i32_0 : i32, i32
  }
  func.func @transform_2(%arg0: i32) -> (i32, i32) {
    %c0_i32 = arith.constant 0 : i32
    %c0_i32_0 = arith.constant 0 : i32
    %c0_i32_1 = arith.constant 0 : i32
    return %c0_i32, %c0_i32_0 : i32, i32
  }
  func.func @transform_3(%arg0: i32) -> (i32, i32) {
    %c0_i32 = arith.constant 0 : i32
    %c0_i32_0 = arith.constant 0 : i32
    %c0_i32_1 = arith.constant 0 : i32
    return %c0_i32, %c0_i32_0 : i32, i32
  }
  func.func @transform_4(%arg0: i32) -> (i32, i32) {
    %c0_i32 = arith.constant 0 : i32
    %c0_i32_0 = arith.constant 0 : i32
    %c0_i32_1 = arith.constant 0 : i32
    return %c0_i32, %c0_i32_0 : i32, i32
  }
  func.func @transform_5(%arg0: i32) -> (i32, i32) {
    %c0_i32 = arith.constant 0 : i32
    %c0_i32_0 = arith.constant 0 : i32
    %c0_i32_1 = arith.constant 0 : i32
    return %c0_i32, %c0_i32_0 : i32, i32
  }
  func.func @transform_6(%arg0: i32) -> (i32, i32) {
    %c0_i32 = arith.constant 0 : i32
    %c0_i32_0 = arith.constant 0 : i32
    %c0_i32_1 = arith.constant 0 : i32
    return %c0_i32, %c0_i32_0 : i32, i32
  }
  func.func @transform_7(%arg0: i32) -> (i32, i32) {
    %c0_i32 = arith.constant 0 : i32
    %c0_i32_0 = arith.constant 0 : i32
    return %arg0, %c0_i32 : i32, i32
  }
  func.func @transform_8(%arg0: i32) -> (i32, i32) {
    %c0_i32 = arith.constant 0 : i32
    %c0_i32_0 = arith.constant 0 : i32
    return %arg0, %c0_i32 : i32, i32
  }
}

module attributes {stable_mosaic.version = 11 : i64} {
  func.func @_matmul_fused_kernel(%arg0: i32, %arg1: memref<8x1024xf32, #tpu.memory_space<vmem>>, %arg2: memref<1024x2048xbf16, #tpu.memory_space<vmem>>, %arg3: memref<1x2048xf32, #tpu.memory_space<vmem>>, %arg4: memref<1x2048xf32, #tpu.memory_space<vmem>>, %arg5: memref<8x2048xf32, #tpu.memory_space<vmem>>) attributes {dimension_semantics = [#tpu.dimension_semantics<parallel>], iteration_bounds = array<i64: 1>, scalar_prefetch = 0 : i64, scratch_operands = 0 : i64, tpu.core_type = #tpu.core_type<tc>, window_params = [{transform_indices = @transform_0, window_bounds = array<i64: 8, 1024>}, {pipeline_mode = #tpu.pipeline_mode<synchronous>, transform_indices = @transform_1, window_bounds = array<i64: 1024, 2048>}, {pipeline_mode = #tpu.pipeline_mode<synchronous>, transform_indices = @transform_2, window_bounds = array<i64: 1, 2048>}, {pipeline_mode = #tpu.pipeline_mode<synchronous>, transform_indices = @transform_3, window_bounds = array<i64: 1, 2048>}, {transform_indices = @transform_4, window_bounds = array<i64: 8, 2048>}]} {
    %c0 = arith.constant 0 : index
    %c0_0 = arith.constant 0 : index
    %0 = vector.load %arg1[%c0, %c0_0] : memref<8x1024xf32, #tpu.memory_space<vmem>>, vector<8x1024xf32>
    %1 = arith.truncf %0 : vector<8x1024xf32> to vector<8x1024xbf16>
    %c0_1 = arith.constant 0 : index
    %c0_2 = arith.constant 0 : index
    %2 = vector.load %arg2[%c0_1, %c0_2] : memref<1024x2048xbf16, #tpu.memory_space<vmem>>, vector<1024x2048xbf16>
    %cst = arith.constant dense<0.000000e+00> : vector<8x2048xf32>
    %3 = tpu.matmul %1, %2, %cst {dimension_numbers = #tpu.dot_dimension_numbers<[1], [0], [0], [1], [0, 0, 1, 1], [], []>} : vector<8x1024xbf16>, vector<1024x2048xbf16>, vector<8x2048xf32> -> vector<8x2048xf32>
    %c0_3 = arith.constant 0 : index
    %c0_4 = arith.constant 0 : index
    %4 = vector.load %arg3[%c0_3, %c0_4] : memref<1x2048xf32, #tpu.memory_space<vmem>>, vector<1x2048xf32>
    %5 = vector.broadcast %4 : vector<1x2048xf32> to vector<8x2048xf32>
    %6 = arith.mulf %3, %5 : vector<8x2048xf32>
    %c0_5 = arith.constant 0 : index
    %c0_6 = arith.constant 0 : index
    %7 = vector.load %arg4[%c0_5, %c0_6] : memref<1x2048xf32, #tpu.memory_space<vmem>>, vector<1x2048xf32>
    %8 = vector.broadcast %7 : vector<1x2048xf32> to vector<8x2048xf32>
    %9 = arith.addf %6, %8 : vector<8x2048xf32>
    %c0_7 = arith.constant 0 : index
    %c0_8 = arith.constant 0 : index
    %10 = vector.load %arg5[%c0_7, %c0_8] : memref<8x2048xf32, #tpu.memory_space<vmem>>, vector<8x2048xf32>
    tpu.vector_store %arg5[%c0_7, %c0_8], %9 {strides = array<i32>} : memref<8x2048xf32, #tpu.memory_space<vmem>>, vector<8x2048xf32>,
    return
  }
  func.func @transform_0(%arg0: i32) -> (i32, i32) {
    %c0_i32 = arith.constant 0 : i32
    %c0_i32_0 = arith.constant 0 : i32
    return %arg0, %c0_i32 : i32, i32
  }
  func.func @transform_1(%arg0: i32) -> (i32, i32) {
    %c0_i32 = arith.constant 0 : i32
    %c0_i32_0 = arith.constant 0 : i32
    %c0_i32_1 = arith.constant 0 : i32
    return %c0_i32, %c0_i32_0 : i32, i32
  }
  func.func @transform_2(%arg0: i32) -> (i32, i32) {
    %c0_i32 = arith.constant 0 : i32
    %c0_i32_0 = arith.constant 0 : i32
    %c0_i32_1 = arith.constant 0 : i32
    return %c0_i32, %c0_i32_0 : i32, i32
  }
  func.func @transform_3(%arg0: i32) -> (i32, i32) {
    %c0_i32 = arith.constant 0 : i32
    %c0_i32_0 = arith.constant 0 : i32
    %c0_i32_1 = arith.constant 0 : i32
    return %c0_i32, %c0_i32_0 : i32, i32
  }
  func.func @transform_4(%arg0: i32) -> (i32, i32) {
    %c0_i32 = arith.constant 0 : i32
    %c0_i32_0 = arith.constant 0 : i32
    return %arg0, %c0_i32 : i32, i32
  }
}

module attributes {stable_mosaic.version = 11 : i64} {
  func.func @_matmul_fused_kernel(%arg0: i32, %arg1: memref<256x256xf32, #tpu.memory_space<vmem>>, %arg2: memref<256x128xbf16, #tpu.memory_space<vmem>>, %arg3: memref<1x128xf32, #tpu.memory_space<vmem>>, %arg4: memref<1x128xf32, #tpu.memory_space<vmem>>, %arg5: memref<256x128xf32, #tpu.memory_space<vmem>>) attributes {dimension_semantics = [#tpu.dimension_semantics<parallel>], iteration_bounds = array<i64: 2>, scalar_prefetch = 0 : i64, scratch_operands = 0 : i64, tpu.core_type = #tpu.core_type<tc>, window_params = [{transform_indices = @transform_0, window_bounds = array<i64: 256, 256>}, {pipeline_mode = #tpu.pipeline_mode<synchronous>, transform_indices = @transform_1, window_bounds = array<i64: 256, 128>}, {pipeline_mode = #tpu.pipeline_mode<synchronous>, transform_indices = @transform_2, window_bounds = array<i64: 1, 128>}, {pipeline_mode = #tpu.pipeline_mode<synchronous>, transform_indices = @transform_3, window_bounds = array<i64: 1, 128>}, {transform_indices = @transform_4, window_bounds = array<i64: 256, 128>}]} {
    %c0 = arith.constant 0 : index
    %c0_0 = arith.constant 0 : index
    %0 = vector.load %arg1[%c0, %c0_0] : memref<256x256xf32, #tpu.memory_space<vmem>>, vector<256x256xf32>
    %1 = arith.truncf %0 : vector<256x256xf32> to vector<256x256xbf16>
    %c0_1 = arith.constant 0 : index
    %c0_2 = arith.constant 0 : index
    %2 = vector.load %arg2[%c0_1, %c0_2] : memref<256x128xbf16, #tpu.memory_space<vmem>>, vector<256x128xbf16>
    %cst = arith.constant dense<0.000000e+00> : vector<256x128xf32>
    %3 = tpu.matmul %1, %2, %cst {dimension_numbers = #tpu.dot_dimension_numbers<[1], [0], [0], [1], [0, 0, 1, 1], [], []>} : vector<256x256xbf16>, vector<256x128xbf16>, vector<256x128xf32> -> vector<256x128xf32>
    %c0_3 = arith.constant 0 : index
    %c0_4 = arith.constant 0 : index
    %4 = vector.load %arg3[%c0_3, %c0_4] : memref<1x128xf32, #tpu.memory_space<vmem>>, vector<1x128xf32>
    %5 = vector.broadcast %4 : vector<1x128xf32> to vector<256x128xf32>
    %6 = arith.mulf %3, %5 : vector<256x128xf32>
    %c0_5 = arith.constant 0 : index
    %c0_6 = arith.constant 0 : index
    %7 = vector.load %arg4[%c0_5, %c0_6] : memref<1x128xf32, #tpu.memory_space<vmem>>, vector<1x128xf32>
    %8 = vector.broadcast %7 : vector<1x128xf32> to vector<256x128xf32>
    %9 = arith.addf %6, %8 : vector<256x128xf32>
    %cst_7 = arith.constant 0.000000e+00 : f32
    %10 = vector.broadcast %cst_7 : f32 to vector<256x128xf32>
    %11 = arith.maximumf %9, %10 : vector<256x128xf32>
    %c0_8 = arith.constant 0 : index
    %c0_9 = arith.constant 0 : index
    %12 = vector.load %arg5[%c0_8, %c0_9] : memref<256x128xf32, #tpu.memory_space<vmem>>, vector<256x128xf32>
    tpu.vector_store %arg5[%c0_8, %c0_9], %11 {strides = array<i32>} : memref<256x128xf32, #tpu.memory_space<vmem>>, vector<256x128xf32>,
    return
  }
  func.func @transform_0(%arg0: i32) -> (i32, i32) {
    %c0_i32 = arith.constant 0 : i32
    %c0_i32_0 = arith.constant 0 : i32
    return %arg0, %c0_i32 : i32, i32
  }
  func.func @transform_1(%arg0: i32) -> (i32, i32) {
    %c0_i32 = arith.constant 0 : i32
    %c0_i32_0 = arith.constant 0 : i32
    %c0_i32_1 = arith.constant 0 : i32
    return %c0_i32, %c0_i32_0 : i32, i32
  }
  func.func @transform_2(%arg0: i32) -> (i32, i32) {
    %c0_i32 = arith.constant 0 : i32
    %c0_i32_0 = arith.constant 0 : i32
    %c0_i32_1 = arith.constant 0 : i32
    return %c0_i32, %c0_i32_0 : i32, i32
  }
  func.func @transform_3(%arg0: i32) -> (i32, i32) {
    %c0_i32 = arith.constant 0 : i32
    %c0_i32_0 = arith.constant 0 : i32
    %c0_i32_1 = arith.constant 0 : i32
    return %c0_i32, %c0_i32_0 : i32, i32
  }
  func.func @transform_4(%arg0: i32) -> (i32, i32) {
    %c0_i32 = arith.constant 0 : i32
    %c0_i32_0 = arith.constant 0 : i32
    return %arg0, %c0_i32 : i32, i32
  }
}

module attributes {stable_mosaic.version = 11 : i64} {
  func.func @_matmul_fused_kernel(%arg0: i32, %arg1: memref<512x128xf32, #tpu.memory_space<vmem>>, %arg2: memref<128x128xbf16, #tpu.memory_space<vmem>>, %arg3: memref<1x128xf32, #tpu.memory_space<vmem>>, %arg4: memref<1x128xf32, #tpu.memory_space<vmem>>, %arg5: memref<512x128xf32, #tpu.memory_space<vmem>>) attributes {dimension_semantics = [#tpu.dimension_semantics<parallel>], iteration_bounds = array<i64: 4>, scalar_prefetch = 0 : i64, scratch_operands = 0 : i64, tpu.core_type = #tpu.core_type<tc>, window_params = [{transform_indices = @transform_0, window_bounds = array<i64: 512, 128>}, {pipeline_mode = #tpu.pipeline_mode<synchronous>, transform_indices = @transform_1, window_bounds = array<i64: 128, 128>}, {pipeline_mode = #tpu.pipeline_mode<synchronous>, transform_indices = @transform_2, window_bounds = array<i64: 1, 128>}, {pipeline_mode = #tpu.pipeline_mode<synchronous>, transform_indices = @transform_3, window_bounds = array<i64: 1, 128>}, {transform_indices = @transform_4, window_bounds = array<i64: 512, 128>}]} {
    %c0 = arith.constant 0 : index
    %c0_0 = arith.constant 0 : index
    %0 = vector.load %arg1[%c0, %c0_0] : memref<512x128xf32, #tpu.memory_space<vmem>>, vector<512x128xf32>
    %1 = arith.truncf %0 : vector<512x128xf32> to vector<512x128xbf16>
    %c0_1 = arith.constant 0 : index
    %c0_2 = arith.constant 0 : index
    %2 = vector.load %arg2[%c0_1, %c0_2] : memref<128x128xbf16, #tpu.memory_space<vmem>>, vector<128x128xbf16>
    %cst = arith.constant dense<0.000000e+00> : vector<512x128xf32>
    %3 = tpu.matmul %1, %2, %cst {dimension_numbers = #tpu.dot_dimension_numbers<[1], [0], [0], [1], [0, 0, 1, 1], [], []>} : vector<512x128xbf16>, vector<128x128xbf16>, vector<512x128xf32> -> vector<512x128xf32>
    %c0_3 = arith.constant 0 : index
    %c0_4 = arith.constant 0 : index
    %4 = vector.load %arg3[%c0_3, %c0_4] : memref<1x128xf32, #tpu.memory_space<vmem>>, vector<1x128xf32>
    %5 = vector.broadcast %4 : vector<1x128xf32> to vector<512x128xf32>
    %6 = arith.mulf %3, %5 : vector<512x128xf32>
    %c0_5 = arith.constant 0 : index
    %c0_6 = arith.constant 0 : index
    %7 = vector.load %arg4[%c0_5, %c0_6] : memref<1x128xf32, #tpu.memory_space<vmem>>, vector<1x128xf32>
    %8 = vector.broadcast %7 : vector<1x128xf32> to vector<512x128xf32>
    %9 = arith.addf %6, %8 : vector<512x128xf32>
    %10 = math.tanh %9 : vector<512x128xf32>
    %c0_7 = arith.constant 0 : index
    %c0_8 = arith.constant 0 : index
    %11 = vector.load %arg5[%c0_7, %c0_8] : memref<512x128xf32, #tpu.memory_space<vmem>>, vector<512x128xf32>
    tpu.vector_store %arg5[%c0_7, %c0_8], %10 {strides = array<i32>} : memref<512x128xf32, #tpu.memory_space<vmem>>, vector<512x128xf32>,
    return
  }
  func.func @transform_0(%arg0: i32) -> (i32, i32) {
    %c0_i32 = arith.constant 0 : i32
    %c0_i32_0 = arith.constant 0 : i32
    return %arg0, %c0_i32 : i32, i32
  }
  func.func @transform_1(%arg0: i32) -> (i32, i32) {
    %c0_i32 = arith.constant 0 : i32
    %c0_i32_0 = arith.constant 0 : i32
    %c0_i32_1 = arith.constant 0 : i32
    return %c0_i32, %c0_i32_0 : i32, i32
  }
  func.func @transform_2(%arg0: i32) -> (i32, i32) {
    %c0_i32 = arith.constant 0 : i32
    %c0_i32_0 = arith.constant 0 : i32
    %c0_i32_1 = arith.constant 0 : i32
    return %c0_i32, %c0_i32_0 : i32, i32
  }
  func.func @transform_3(%arg0: i32) -> (i32, i32) {
    %c0_i32 = arith.constant 0 : i32
    %c0_i32_0 = arith.constant 0 : i32
    %c0_i32_1 = arith.constant 0 : i32
    return %c0_i32, %c0_i32_0 : i32, i32
  }
  func.func @transform_4(%arg0: i32) -> (i32, i32) {
    %c0_i32 = arith.constant 0 : i32
    %c0_i32_0 = arith.constant 0 : i32
    return %arg0, %c0_i32 : i32, i32
  }
}

</mosaic_0001>

<bundles_post_ra>
// kernel: cvae_forward.9
= control target key start
LH: loop header
LB: loop body
LE: loop exit
PB: predicated region body
PF: predicated region fallthrough
CT: control target
= control target key end

     0   :  { %s712_s15 = smov 0   ;;  %s902_s0 = inlined_call_operand.vmem [shape: f32[512,128], index: 0, kind: input, shape index: {}]   ;;  %s903_s1 = inlined_call_operand.vmem [shape: bf16[128,128], index: 1, kind: input, shape index: {}]   ;;  %s904_s2 = inlined_call_operand.vmem [shape: f32[1,128], index: 2, kind: input, shape index: {}]   ;;  %s905_s3 = inlined_call_operand.vmem [shape: f32[1,128], index: 3, kind: input, shape index: {}]   ;;  %s906_s4 = inlined_call_operand.vmem [shape: f32[512,128], index: 4, kind: output, shape index: {}]  }
   0x1 LB: > { %s594_s16 = sadd.s32 4294967295, %s685_s15   ;;  %p598_p0 = scmp.ge.s32.totalorder %s685_s15, 1  ;;  %s685_s15 = sphi %s712_s15, %s14_s15  }
   0x2   : > { %p163_p1 = scmp.lt.s32.totalorder %s685_s15, 3 }
   0x4   : > { %p164_p2 = pnand %p598_p0, %p163_p1 }
   0x5   : > { %s599_s23 = sshll.u32 (!%p164_p2), %s594_s16, 5 }
   0x6   : > { %167 = sbr.rel (%p164_p2) target bundleno = 240 (0xf0), region = 36  ;;  %p190_p3 = scmp.lt.s32.totalorder (!%p164_p2), %s599_s23, 63 }
   0xb   : > { %v644_v0 = vld [vmem:[%s903_s1 + $0x38] sm:$0xff]  ;;  %v643_v1 = vld [vmem:[%s903_s1 + $0x30] sm:$0xff]  ;;  %v642_v2 = vld [vmem:[%s903_s1 + $0x28] sm:$0xff]  ;;  %s908_s23 = smov (!%p190_p3, %s599_s23), 63 }
   0xc   : > { %313 = vmatpush.bf16.msra.mxu0 %v644_v0  ;;  %645 = vmatpush.bf16.msra.mxu1 %v644_v0  ;;  %v641_v3 = vld [vmem:[%s903_s1 + $0x20] sm:$0xff]  ;;  %v640_v4 = vld [vmem:[%s903_s1 + $0x18] sm:$0xff]  ;;  %v639_v5 = vld [vmem:[%s903_s1 + $0x10] sm:$0xff]  ;;  %s600_s30 = sshll.u32 %s908_s23, 3 }
   0xd   : > { %646 = vmatpush.bf16.msra.mxu2 %v644_v0  ;;  %647 = vmatpush.bf16.msra.mxu3 %v644_v0  ;;  %v638_v6 = vld [vmem:[%s903_s1 + $0x8] sm:$0xff]  ;;  %s749_s9 = scalar_lea.vmem %s902_s0, %s600_s30  ;;  %v637_v7 = vld [vmem:[%s903_s1] sm:$0xff]  ;;  %s805_s19 = scalar_lea.vmem %s906_s4, %s600_s30 }
   0xe   : > { %v201_v8 = vld [vmem:[%s749_s9] sm:$0xff]  ;;  %v202_v9 = vld [vmem:[%s749_s9 + $0x8] sm:$0xff]  ;;  %v203_v20 = vld [vmem:[%s749_s9 + $0x10] sm:$0xff] }
   0xf   : > { %v209_v10 = vld [vmem:[%s749_s9 + $0x40] sm:$0xff]  ;;  %v210_v11 = vld [vmem:[%s749_s9 + $0x48] sm:$0xff]  ;;  %v233_v16 = vpack.c.bf16 %v202_v9, %v201_v8  ;;  %v204_v21 = vld [vmem:[%s749_s9 + $0x18] sm:$0xff] }
  0x10   : > { %314 = vmatpush.bf16.msra.mxu0 %v643_v1  ;;  %648 = vmatpush.bf16.msra.mxu1 %v643_v1  ;;  %v217_v12 = vld [vmem:[%s749_s9 + $0x80] sm:$0xff]  ;;  %v218_v13 = vld [vmem:[%s749_s9 + $0x88] sm:$0xff]  ;;  %v237_v17 = vpack.c.bf16 %v210_v11, %v209_v10  ;;  %v211_v22 = vld [vmem:[%s749_s9 + $0x50] sm:$0xff]  ;;  %v234_v28 = vpack.c.bf16 %v204_v21, %v203_v20 }
  0x11   : > { %649 = vmatpush.bf16.msra.mxu2 %v643_v1  ;;  %650 = vmatpush.bf16.msra.mxu3 %v643_v1  ;;  %v225_v14 = vld [vmem:[%s749_s9 + $0xc0] sm:$0xff]  ;;  %v226_v15 = vld [vmem:[%s749_s9 + $0xc8] sm:$0xff]  ;;  %v241_v18 = vpack.c.bf16 %v218_v13, %v217_v12  ;;  %v212_v23 = vld [vmem:[%s749_s9 + $0x58] sm:$0xff] }
  0x12   : > { %v245_v19 = vpack.c.bf16 %v226_v15, %v225_v14  ;;  %v219_v24 = vld [vmem:[%s749_s9 + $0x90] sm:$0xff]  ;;  %v220_v25 = vld [vmem:[%s749_s9 + $0x98] sm:$0xff]  ;;  %v238_v29 = vpack.c.bf16 %v212_v23, %v211_v22  ;;  %v205_v32 = vld [vmem:[%s749_s9 + $0x20] sm:$0xff] }
  0x13   : > { %v227_v26 = vld [vmem:[%s749_s9 + $0xd0] sm:$0xff]  ;;  %v228_v27 = vld [vmem:[%s749_s9 + $0xd8] sm:$0xff]  ;;  %v242_v30 = vpack.c.bf16 %v220_v25, %v219_v24  ;;  %v206_v33 = vld [vmem:[%s749_s9 + $0x28] sm:$0xff] }
  0x14   : > { %315 = vmatpush.bf16.msra.mxu0 %v642_v2  ;;  %651 = vmatpush.bf16.msra.mxu1 %v642_v2  ;;  %v246_v31 = vpack.c.bf16 %v228_v27, %v227_v26  ;;  %v213_v34 = vld [vmem:[%s749_s9 + $0x60] sm:$0xff]  ;;  %v214_v35 = vld [vmem:[%s749_s9 + $0x68] sm:$0xff]  ;;  %v235_v40 = vpack.c.bf16 %v206_v33, %v205_v32  ;;  %v207_v44 = vld [vmem:[%s749_s9 + $0x30] sm:$0xff] }
  0x15   : > { %652 = vmatpush.bf16.msra.mxu2 %v642_v2  ;;  %653 = vmatpush.bf16.msra.mxu3 %v642_v2  ;;  %v221_v36 = vld [vmem:[%s749_s9 + $0xa0] sm:$0xff]  ;;  %v222_v37 = vld [vmem:[%s749_s9 + $0xa8] sm:$0xff]  ;;  %v239_v41 = vpack.c.bf16 %v214_v35, %v213_v34  ;;  %v208_v45 = vld [vmem:[%s749_s9 + $0x38] sm:$0xff] }
  0x16   : > { %v229_v38 = vld [vmem:[%s749_s9 + $0xe0] sm:$0xff]  ;;  %v230_v39 = vld [vmem:[%s749_s9 + $0xe8] sm:$0xff]  ;;  %v243_v42 = vpack.c.bf16 %v222_v37, %v221_v36  ;;  %v215_v46 = vld [vmem:[%s749_s9 + $0x70] sm:$0xff]  ;;  %v236_v52 = vpack.c.bf16 %v208_v45, %v207_v44 }
  0x17   : > { %v247_v43 = vpack.c.bf16 %v230_v39, %v229_v38  ;;  %v216_v47 = vld [vmem:[%s749_s9 + $0x78] sm:$0xff]  ;;  %v223_v48 = vld [vmem:[%s749_s9 + $0xb0] sm:$0xff]  ;;  %v789_v56 = vld [vmem:[%s904_s2] ss:$0 sm:$0xff] }
  0x18   : > { %316 = vmatpush.bf16.msra.mxu0 %v641_v3  ;;  %654 = vmatpush.bf16.msra.mxu1 %v641_v3  ;;  %v224_v49 = vld [vmem:[%s749_s9 + $0xb8] sm:$0xff]  ;;  %v231_v50 = vld [vmem:[%s749_s9 + $0xf0] sm:$0xff]  ;;  %v240_v53 = vpack.c.bf16 %v216_v47, %v215_v46  ;;  %v794_v57 = vld [vmem:[%s905_s3] ss:$0 sm:$0xff] }
  0x19   : > { %655 = vmatpush.bf16.msra.mxu2 %v641_v3  ;;  %656 = vmatpush.bf16.msra.mxu3 %v641_v3  ;;  %v232_v51 = vld [vmem:[%s749_s9 + $0xf8] sm:$0xff]  ;;  %v244_v54 = vpack.c.bf16 %v224_v49, %v223_v48 }
  0x1a   : > { %v248_v55 = vpack.c.bf16 %v232_v51, %v231_v50 }
  0x1c   : > { %317 = vmatpush.bf16.msra.mxu0 %v640_v4  ;;  %657 = vmatpush.bf16.msra.mxu1 %v640_v4 }
  0x1d   : > { %658 = vmatpush.bf16.msra.mxu2 %v640_v4  ;;  %659 = vmatpush.bf16.msra.mxu3 %v640_v4 }
  0x20   : > { %318 = vmatpush.bf16.msra.mxu0 %v639_v5  ;;  %660 = vmatpush.bf16.msra.mxu1 %v639_v5 }
  0x21   : > { %661 = vmatpush.bf16.msra.mxu2 %v639_v5  ;;  %662 = vmatpush.bf16.msra.mxu3 %v639_v5 }
  0x24   : > { %319 = vmatpush.bf16.msra.mxu0 %v638_v6  ;;  %663 = vmatpush.bf16.msra.mxu1 %v638_v6 }
  0x25   : > { %664 = vmatpush.bf16.msra.mxu2 %v638_v6  ;;  %665 = vmatpush.bf16.msra.mxu3 %v638_v6 }
  0x28   : > { %320 = vmatpush.bf16.msra.mxu0 %v637_v7  ;;  %666 = vmatpush.bf16.msra.mxu1 %v637_v7 }
  0x29   : > { %667 = vmatpush.bf16.msra.mxu2 %v637_v7  ;;  %668 = vmatpush.bf16.msra.mxu3 %v637_v7 }
  0x2b   : > { %321 = vmatmul.bf16.vlgmr.msra.gmra.mxu0 %v233_v16  ;;  %341 = vmatmul.bf16.vlgmr.msra.gmra.mxu1 %v237_v17 }
  0x2c   : > { %361 = vmatmul.bf16.vlgmr.msra.gmra.mxu2 %v241_v18  ;;  %381 = vmatmul.bf16.vlgmr.msra.gmra.mxu3 %v245_v19 }
  0x3b   : > { %326 = vmatmul.bf16.gmra.mxu0 %v234_v28  ;;  %346 = vmatmul.bf16.gmra.mxu1 %v238_v29 }
  0x3c   : > { %366 = vmatmul.bf16.gmra.mxu2 %v242_v30  ;;  %386 = vmatmul.bf16.gmra.mxu3 %v246_v31 }
  0x4b   : > { %331 = vmatmul.bf16.gmra.mxu0 %v235_v40  ;;  %351 = vmatmul.bf16.gmra.mxu1 %v239_v41 }
  0x4c   : > { %371 = vmatmul.bf16.gmra.mxu2 %v243_v42  ;;  %391 = vmatmul.bf16.gmra.mxu3 %v247_v43 }
  0x5b   : > { %336 = vmatmul.bf16.gmra.mxu0 %v236_v52  ;;  %356 = vmatmul.bf16.gmra.mxu1 %v240_v53 }
  0x5c   : > { %376 = vmatmul.bf16.gmra.mxu2 %v244_v54  ;;  %396 = vmatmul.bf16.gmra.mxu3 %v248_v55 }
  0xa8   : > { %v322_v58 = vpop.f32.mrf.mxu0  ;;  %v342_v59 = vpop.f32.mrf.mxu1 }
  0xa9   : > { %v406_v60 = vmul.f32 %v789_v56, %v322_v58  ;;  %v414_v61 = vmul.f32 %v789_v56, %v342_v59 }
  0xab   : > { %v442_v62 = vadd.f32 %v794_v57, %v406_v60  ;;  %v450_v63 = vadd.f32 %v794_v57, %v414_v61 }
  0xad   : > { %v474_v0 = vmax.f32 %v442_v62, 0.0  ;;  %v482_v1 = vmax.f32 %v450_v63, 0.0 }
  0xaf   : > { %506 = vst [vmem:[%s805_s19] sm:$0xff] %v474_v0  ;;  %v362_v2 = vpop.f32.mrf.mxu2  ;;  %v382_v3 = vpop.f32.mrf.mxu3 }
  0xb0   : > { %514 = vst [vmem:[%s805_s19 + $0x40] sm:$0xff] %v482_v1  ;;  %v422_v4 = vmul.f32 %v789_v56, %v362_v2  ;;  %v430_v5 = vmul.f32 %v789_v56, %v382_v3  ;;  %v324_v6 = vpop.f32.mrf.mxu0  ;;  %v344_v7 = vpop.f32.mrf.mxu1 }
  0xb1   : > { %v407_v8 = vmul.f32 %v789_v56, %v324_v6  ;;  %v415_v9 = vmul.f32 %v789_v56, %v344_v7 }
  0xb2   : > { %v458_v10 = vadd.f32 %v794_v57, %v422_v4  ;;  %v466_v11 = vadd.f32 %v794_v57, %v430_v5 }
  0xb3   : > { %v443_v12 = vadd.f32 %v794_v57, %v407_v8  ;;  %v451_v13 = vadd.f32 %v794_v57, %v415_v9 }
  0xb4   : > { %v490_v14 = vmax.f32 %v458_v10, 0.0  ;;  %v498_v15 = vmax.f32 %v466_v11, 0.0 }
  0xb5   : > { %v475_v16 = vmax.f32 %v443_v12, 0.0  ;;  %v483_v17 = vmax.f32 %v451_v13, 0.0 }
  0xb6   : > { %522 = vst [vmem:[%s805_s19 + $0x80] sm:$0xff] %v490_v14 }
  0xb7   : > { %530 = vst [vmem:[%s805_s19 + $0xc0] sm:$0xff] %v498_v15  ;;  %v364_v18 = vpop.f32.mrf.mxu2  ;;  %v384_v19 = vpop.f32.mrf.mxu3 }
  0xb8   : > { %507 = vst [vmem:[%s805_s19 + $0x8] sm:$0xff] %v475_v16  ;;  %v423_v20 = vmul.f32 %v789_v56, %v364_v18  ;;  %v431_v21 = vmul.f32 %v789_v56, %v384_v19  ;;  %v327_v22 = vpop.f32.mrf.mxu0  ;;  %v347_v23 = vpop.f32.mrf.mxu1 }
  0xb9   : > { %515 = vst [vmem:[%s805_s19 + $0x48] sm:$0xff] %v483_v17  ;;  %v408_v24 = vmul.f32 %v789_v56, %v327_v22  ;;  %v416_v25 = vmul.f32 %v789_v56, %v347_v23 }
  0xba   : > { %v459_v26 = vadd.f32 %v794_v57, %v423_v20  ;;  %v467_v27 = vadd.f32 %v794_v57, %v431_v21 }
  0xbb   : > { %v444_v28 = vadd.f32 %v794_v57, %v408_v24  ;;  %v452_v29 = vadd.f32 %v794_v57, %v416_v25 }
  0xbc   : > { %v491_v30 = vmax.f32 %v459_v26, 0.0  ;;  %v499_v31 = vmax.f32 %v467_v27, 0.0 }
  0xbd   : > { %v476_v32 = vmax.f32 %v444_v28, 0.0  ;;  %v484_v33 = vmax.f32 %v452_v29, 0.0 }
  0xbe   : > { %523 = vst [vmem:[%s805_s19 + $0x88] sm:$0xff] %v491_v30 }
  0xbf   : > { %531 = vst [vmem:[%s805_s19 + $0xc8] sm:$0xff] %v499_v31  ;;  %v367_v34 = vpop.f32.mrf.mxu2  ;;  %v387_v35 = vpop.f32.mrf.mxu3 }
  0xc0   : > { %508 = vst [vmem:[%s805_s19 + $0x10] sm:$0xff] %v476_v32  ;;  %v424_v36 = vmul.f32 %v789_v56, %v367_v34  ;;  %v432_v37 = vmul.f32 %v789_v56, %v387_v35  ;;  %v329_v38 = vpop.f32.mrf.mxu0  ;;  %v349_v39 = vpop.f32.mrf.mxu1 }
  0xc1   : > { %516 = vst [vmem:[%s805_s19 + $0x50] sm:$0xff] %v484_v33  ;;  %v409_v40 = vmul.f32 %v789_v56, %v329_v38  ;;  %v417_v41 = vmul.f32 %v789_v56, %v349_v39 }
  0xc2   : > { %v460_v42 = vadd.f32 %v794_v57, %v424_v36  ;;  %v468_v43 = vadd.f32 %v794_v57, %v432_v37 }
  0xc3   : > { %v445_v44 = vadd.f32 %v794_v57, %v409_v40  ;;  %v453_v45 = vadd.f32 %v794_v57, %v417_v41 }
  0xc4   : > { %v492_v46 = vmax.f32 %v460_v42, 0.0  ;;  %v500_v47 = vmax.f32 %v468_v43, 0.0 }
  0xc5   : > { %v477_v48 = vmax.f32 %v445_v44, 0.0  ;;  %v485_v49 = vmax.f32 %v453_v45, 0.0 }
  0xc6   : > { %524 = vst [vmem:[%s805_s19 + $0x90] sm:$0xff] %v492_v46 }
  0xc7   : > { %532 = vst [vmem:[%s805_s19 + $0xd0] sm:$0xff] %v500_v47  ;;  %v369_v50 = vpop.f32.mrf.mxu2  ;;  %v389_v51 = vpop.f32.mrf.mxu3 }
  0xc8   : > { %509 = vst [vmem:[%s805_s19 + $0x18] sm:$0xff] %v477_v48  ;;  %v425_v52 = vmul.f32 %v789_v56, %v369_v50  ;;  %v433_v53 = vmul.f32 %v789_v56, %v389_v51  ;;  %v332_v54 = vpop.f32.mrf.mxu0  ;;  %v352_v55 = vpop.f32.mrf.mxu1 }
  0xc9   : > { %517 = vst [vmem:[%s805_s19 + $0x58] sm:$0xff] %v485_v49  ;;  %v410_v58 = vmul.f32 %v789_v56, %v332_v54  ;;  %v418_v59 = vmul.f32 %v789_v56, %v352_v55 }
  0xca   : > { %v461_v60 = vadd.f32 %v794_v57, %v425_v52  ;;  %v469_v61 = vadd.f32 %v794_v57, %v433_v53 }
  0xcb   : > { %v446_v62 = vadd.f32 %v794_v57, %v410_v58  ;;  %v454_v63 = vadd.f32 %v794_v57, %v418_v59 }
  0xcc   : > { %v493_v0 = vmax.f32 %v461_v60, 0.0  ;;  %v501_v1 = vmax.f32 %v469_v61, 0.0 }
  0xcd   : > { %v478_v2 = vmax.f32 %v446_v62, 0.0  ;;  %v486_v3 = vmax.f32 %v454_v63, 0.0 }
  0xce   : > { %525 = vst [vmem:[%s805_s19 + $0x98] sm:$0xff] %v493_v0 }
  0xcf   : > { %533 = vst [vmem:[%s805_s19 + $0xd8] sm:$0xff] %v501_v1  ;;  %v372_v4 = vpop.f32.mrf.mxu2  ;;  %v392_v5 = vpop.f32.mrf.mxu3 }
  0xd0   : > { %510 = vst [vmem:[%s805_s19 + $0x20] sm:$0xff] %v478_v2  ;;  %v426_v6 = vmul.f32 %v789_v56, %v372_v4  ;;  %v434_v7 = vmul.f32 %v789_v56, %v392_v5  ;;  %v334_v8 = vpop.f32.mrf.mxu0  ;;  %v354_v9 = vpop.f32.mrf.mxu1 }
  0xd1   : > { %518 = vst [vmem:[%s805_s19 + $0x60] sm:$0xff] %v486_v3  ;;  %v411_v10 = vmul.f32 %v789_v56, %v334_v8  ;;  %v419_v11 = vmul.f32 %v789_v56, %v354_v9 }
  0xd2   : > { %v462_v12 = vadd.f32 %v794_v57, %v426_v6  ;;  %v470_v13 = vadd.f32 %v794_v57, %v434_v7 }
  0xd3   : > { %v447_v14 = vadd.f32 %v794_v57, %v411_v10  ;;  %v455_v15 = vadd.f32 %v794_v57, %v419_v11 }
  0xd4   : > { %v494_v16 = vmax.f32 %v462_v12, 0.0  ;;  %v502_v17 = vmax.f32 %v470_v13, 0.0 }
  0xd5   : > { %v479_v18 = vmax.f32 %v447_v14, 0.0  ;;  %v487_v19 = vmax.f32 %v455_v15, 0.0 }
  0xd6   : > { %526 = vst [vmem:[%s805_s19 + $0xa0] sm:$0xff] %v494_v16 }
  0xd7   : > { %534 = vst [vmem:[%s805_s19 + $0xe0] sm:$0xff] %v502_v17  ;;  %v374_v20 = vpop.f32.mrf.mxu2  ;;  %v394_v21 = vpop.f32.mrf.mxu3 }
  0xd8   : > { %511 = vst [vmem:[%s805_s19 + $0x28] sm:$0xff] %v479_v18  ;;  %v427_v22 = vmul.f32 %v789_v56, %v374_v20  ;;  %v435_v23 = vmul.f32 %v789_v56, %v394_v21  ;;  %v337_v24 = vpop.f32.mrf.mxu0  ;;  %v357_v25 = vpop.f32.mrf.mxu1 }
  0xd9   : > { %519 = vst [vmem:[%s805_s19 + $0x68] sm:$0xff] %v487_v19  ;;  %v412_v26 = vmul.f32 %v789_v56, %v337_v24  ;;  %v420_v27 = vmul.f32 %v789_v56, %v357_v25 }
  0xda   : > { %v463_v28 = vadd.f32 %v794_v57, %v427_v22  ;;  %v471_v29 = vadd.f32 %v794_v57, %v435_v23 }
  0xdb   : > { %v448_v30 = vadd.f32 %v794_v57, %v412_v26  ;;  %v456_v31 = vadd.f32 %v794_v57, %v420_v27 }
  0xdc   : > { %v495_v32 = vmax.f32 %v463_v28, 0.0  ;;  %v503_v33 = vmax.f32 %v471_v29, 0.0 }
  0xdd   : > { %v480_v34 = vmax.f32 %v448_v30, 0.0  ;;  %v488_v35 = vmax.f32 %v456_v31, 0.0 }
  0xde   : > { %527 = vst [vmem:[%s805_s19 + $0xa8] sm:$0xff] %v495_v32 }
  0xdf   : > { %535 = vst [vmem:[%s805_s19 + $0xe8] sm:$0xff] %v503_v33  ;;  %v377_v36 = vpop.f32.mrf.mxu2  ;;  %v397_v37 = vpop.f32.mrf.mxu3 }
  0xe0   : > { %512 = vst [vmem:[%s805_s19 + $0x30] sm:$0xff] %v480_v34  ;;  %v428_v38 = vmul.f32 %v789_v56, %v377_v36  ;;  %v436_v39 = vmul.f32 %v789_v56, %v397_v37  ;;  %v339_v40 = vpop.f32.mrf.mxu0  ;;  %v359_v41 = vpop.f32.mrf.mxu1 }
  0xe1   : > { %520 = vst [vmem:[%s805_s19 + $0x70] sm:$0xff] %v488_v35  ;;  %v413_v42 = vmul.f32 %v789_v56, %v339_v40  ;;  %v421_v43 = vmul.f32 %v789_v56, %v359_v41 }
  0xe2   : > { %v464_v44 = vadd.f32 %v794_v57, %v428_v38  ;;  %v472_v45 = vadd.f32 %v794_v57, %v436_v39 }
  0xe3   : > { %v449_v46 = vadd.f32 %v794_v57, %v413_v42  ;;  %v457_v47 = vadd.f32 %v794_v57, %v421_v43 }
  0xe4   : > { %v496_v48 = vmax.f32 %v464_v44, 0.0  ;;  %v504_v49 = vmax.f32 %v472_v45, 0.0 }
  0xe5   : > { %v481_v50 = vmax.f32 %v449_v46, 0.0  ;;  %v489_v51 = vmax.f32 %v457_v47, 0.0 }
  0xe6   : > { %528 = vst [vmem:[%s805_s19 + $0xb0] sm:$0xff] %v496_v48 }
  0xe7   : > { %536 = vst [vmem:[%s805_s19 + $0xf0] sm:$0xff] %v504_v49  ;;  %v379_v52 = vpop.f32.mrf.mxu2  ;;  %v399_v53 = vpop.f32.mrf.mxu3 }
  0xe8   : > { %513 = vst [vmem:[%s805_s19 + $0x38] sm:$0xff] %v481_v50  ;;  %v429_v54 = vmul.f32 %v789_v56, %v379_v52  ;;  %v437_v55 = vmul.f32 %v789_v56, %v399_v53 }
  0xe9   : > { %521 = vst [vmem:[%s805_s19 + $0x78] sm:$0xff] %v489_v51 }
  0xea   : > { %v465_v58 = vadd.f32 %v794_v57, %v429_v54  ;;  %v473_v59 = vadd.f32 %v794_v57, %v437_v55 }
  0xec   : > { %v497_v60 = vmax.f32 %v465_v58, 0.0  ;;  %v505_v61 = vmax.f32 %v473_v59, 0.0 }
  0xee   : > { %529 = vst [vmem:[%s805_s19 + $0xb8] sm:$0xff] %v497_v60 }
  0xef   : > { %537 = vst [vmem:[%s805_s19 + $0xf8] sm:$0xff] %v505_v61 }
  0xf0 PF: > { %s14_s15 = sadd.s32 1, %s685_s15  }
  0xf1   : > { %p11_p4 = scmp.ge.s32.totalorder %s14_s15, 4  }
  0xf3   :  { %13 = sbr.rel (!%p11_p4) target bundleno = 1 (0x1), region = 66 }

// kernel: cvae_forward.10
= control target key start
LH: loop header
LB: loop body
LE: loop exit
PB: predicated region body
PF: predicated region fallthrough
CT: control target
= control target key end

     0   :  { %s483_s1 = inlined_call_operand.vmem [shape: bf16[128,128], index: 1, kind: input, shape index: {}]   ;;  %s484_s2 = inlined_call_operand.vmem [shape: f32[1,128], index: 2, kind: input, shape index: {}]   ;;  %s485_s3 = inlined_call_operand.vmem [shape: f32[1,128], index: 3, kind: input, shape index: {}]   ;;  %s486_s0 = inlined_call_operand.vmem [shape: f32[128,128], index: 0, kind: input, shape index: {}]   ;;  %s487_s4 = inlined_call_operand.vmem [shape: f32[128,128], index: 4, kind: output, shape index: {}]  }
   0x1   :  { %v269_v0 = vld [vmem:[%s483_s1 + $0x38] sm:$0xff]  ;;  %v268_v1 = vld [vmem:[%s483_s1 + $0x30] sm:$0xff]  ;;  %v267_v2 = vld [vmem:[%s483_s1 + $0x28] sm:$0xff] }
   0x2   :  { %105 = vmatpush.bf16.msra.mxu0 %v269_v0  ;;  %270 = vmatpush.bf16.msra.mxu1 %v269_v0  ;;  %v266_v3 = vld [vmem:[%s483_s1 + $0x20] sm:$0xff]  ;;  %v265_v4 = vld [vmem:[%s483_s1 + $0x18] sm:$0xff]  ;;  %v264_v5 = vld [vmem:[%s483_s1 + $0x10] sm:$0xff] }
   0x3   :  { %271 = vmatpush.bf16.msra.mxu2 %v269_v0  ;;  %272 = vmatpush.bf16.msra.mxu3 %v269_v0  ;;  %v263_v6 = vld [vmem:[%s483_s1 + $0x8] sm:$0xff]  ;;  %v262_v7 = vld [vmem:[%s483_s1] sm:$0xff]  ;;  %v19_v20 = vld [vmem:[%s486_s0 + $0x10] sm:$0xff] }
   0x4   :  { %v17_v8 = vld [vmem:[%s486_s0] sm:$0xff]  ;;  %v18_v9 = vld [vmem:[%s486_s0 + $0x8] sm:$0xff]  ;;  %v20_v21 = vld [vmem:[%s486_s0 + $0x18] sm:$0xff] }
   0x5   :  { %v21_v10 = vld [vmem:[%s486_s0 + $0x20] sm:$0xff]  ;;  %v22_v11 = vld [vmem:[%s486_s0 + $0x28] sm:$0xff]  ;;  %v33_v16 = vpack.c.bf16 %v18_v9, %v17_v8  ;;  %v23_v22 = vld [vmem:[%s486_s0 + $0x30] sm:$0xff]  ;;  %v34_v28 = vpack.c.bf16 %v20_v21, %v19_v20 }
   0x6   :  { %106 = vmatpush.bf16.msra.mxu0 %v268_v1  ;;  %273 = vmatpush.bf16.msra.mxu1 %v268_v1  ;;  %v25_v12 = vld [vmem:[%s486_s0 + $0x40] sm:$0xff]  ;;  %v26_v13 = vld [vmem:[%s486_s0 + $0x48] sm:$0xff]  ;;  %v35_v17 = vpack.c.bf16 %v22_v11, %v21_v10  ;;  %v24_v23 = vld [vmem:[%s486_s0 + $0x38] sm:$0xff] }
   0x7   :  { %274 = vmatpush.bf16.msra.mxu2 %v268_v1  ;;  %275 = vmatpush.bf16.msra.mxu3 %v268_v1  ;;  %v29_v14 = vld [vmem:[%s486_s0 + $0x60] sm:$0xff]  ;;  %v30_v15 = vld [vmem:[%s486_s0 + $0x68] sm:$0xff]  ;;  %v37_v18 = vpack.c.bf16 %v26_v13, %v25_v12  ;;  %v27_v24 = vld [vmem:[%s486_s0 + $0x50] sm:$0xff]  ;;  %v36_v29 = vpack.c.bf16 %v24_v23, %v23_v22 }
   0x8   :  { %v39_v19 = vpack.c.bf16 %v30_v15, %v29_v14  ;;  %v28_v25 = vld [vmem:[%s486_s0 + $0x58] sm:$0xff]  ;;  %v31_v26 = vld [vmem:[%s486_s0 + $0x70] sm:$0xff]  ;;  %v396_v32 = vld [vmem:[%s484_s2] ss:$0 sm:$0xff] }
   0x9   :  { %v32_v27 = vld [vmem:[%s486_s0 + $0x78] sm:$0xff]  ;;  %v38_v30 = vpack.c.bf16 %v28_v25, %v27_v24  ;;  %v401_v33 = vld [vmem:[%s485_s3] ss:$0 sm:$0xff] }
   0xa   :  { %107 = vmatpush.bf16.msra.mxu0 %v267_v2  ;;  %276 = vmatpush.bf16.msra.mxu1 %v267_v2  ;;  %v40_v31 = vpack.c.bf16 %v32_v27, %v31_v26 }
   0xb   :  { %277 = vmatpush.bf16.msra.mxu2 %v267_v2  ;;  %278 = vmatpush.bf16.msra.mxu3 %v267_v2 }
   0xe   :  { %108 = vmatpush.bf16.msra.mxu0 %v266_v3  ;;  %279 = vmatpush.bf16.msra.mxu1 %v266_v3 }
   0xf   :  { %280 = vmatpush.bf16.msra.mxu2 %v266_v3  ;;  %281 = vmatpush.bf16.msra.mxu3 %v266_v3 }
  0x12   :  { %109 = vmatpush.bf16.msra.mxu0 %v265_v4  ;;  %282 = vmatpush.bf16.msra.mxu1 %v265_v4 }
  0x13   :  { %283 = vmatpush.bf16.msra.mxu2 %v265_v4  ;;  %284 = vmatpush.bf16.msra.mxu3 %v265_v4 }
  0x16   :  { %110 = vmatpush.bf16.msra.mxu0 %v264_v5  ;;  %285 = vmatpush.bf16.msra.mxu1 %v264_v5 }
  0x17   :  { %286 = vmatpush.bf16.msra.mxu2 %v264_v5  ;;  %287 = vmatpush.bf16.msra.mxu3 %v264_v5 }
  0x1a   :  { %111 = vmatpush.bf16.msra.mxu0 %v263_v6  ;;  %288 = vmatpush.bf16.msra.mxu1 %v263_v6 }
  0x1b   :  { %289 = vmatpush.bf16.msra.mxu2 %v263_v6  ;;  %290 = vmatpush.bf16.msra.mxu3 %v263_v6 }
  0x1e   :  { %112 = vmatpush.bf16.msra.mxu0 %v262_v7  ;;  %291 = vmatpush.bf16.msra.mxu1 %v262_v7 }
  0x1f   :  { %292 = vmatpush.bf16.msra.mxu2 %v262_v7  ;;  %293 = vmatpush.bf16.msra.mxu3 %v262_v7 }
  0x21   :  { %113 = vmatmul.bf16.vlgmr.msra.gmra.mxu0 %v33_v16  ;;  %123 = vmatmul.bf16.vlgmr.msra.gmra.mxu1 %v35_v17 }
  0x22   :  { %133 = vmatmul.bf16.vlgmr.msra.gmra.mxu2 %v37_v18  ;;  %143 = vmatmul.bf16.vlgmr.msra.gmra.mxu3 %v39_v19 }
  0x31   :  { %118 = vmatmul.bf16.gmra.mxu0 %v34_v28  ;;  %128 = vmatmul.bf16.gmra.mxu1 %v36_v29 }
  0x32   :  { %138 = vmatmul.bf16.gmra.mxu2 %v38_v30  ;;  %148 = vmatmul.bf16.gmra.mxu3 %v40_v31 }
  0x9e   :  { %v114_v34 = vpop.f32.mrf.mxu0  ;;  %v124_v35 = vpop.f32.mrf.mxu1 }
  0x9f   :  { %v158_v36 = vmul.f32 %v396_v32, %v114_v34  ;;  %v162_v37 = vmul.f32 %v396_v32, %v124_v35 }
  0xa1   :  { %v178_v38 = vadd.f32 %v401_v33, %v158_v36  ;;  %v182_v39 = vadd.f32 %v401_v33, %v162_v37 }
  0xa3   :  { %v194_v40 = vmax.f32 %v178_v38, 0.0  ;;  %v198_v41 = vmax.f32 %v182_v39, 0.0 }
  0xa5   :  { %210 = vst [vmem:[%s487_s4] sm:$0xff] %v194_v40  ;;  %v134_v42 = vpop.f32.mrf.mxu2  ;;  %v144_v43 = vpop.f32.mrf.mxu3 }
  0xa6   :  { %214 = vst [vmem:[%s487_s4 + $0x20] sm:$0xff] %v198_v41  ;;  %v166_v44 = vmul.f32 %v396_v32, %v134_v42  ;;  %v170_v45 = vmul.f32 %v396_v32, %v144_v43  ;;  %v116_v46 = vpop.f32.mrf.mxu0  ;;  %v126_v47 = vpop.f32.mrf.mxu1 }
  0xa7   :  { %v159_v48 = vmul.f32 %v396_v32, %v116_v46  ;;  %v163_v49 = vmul.f32 %v396_v32, %v126_v47 }
  0xa8   :  { %v186_v50 = vadd.f32 %v401_v33, %v166_v44  ;;  %v190_v51 = vadd.f32 %v401_v33, %v170_v45 }
  0xa9   :  { %v179_v52 = vadd.f32 %v401_v33, %v159_v48  ;;  %v183_v53 = vadd.f32 %v401_v33, %v163_v49 }
  0xaa   :  { %v202_v54 = vmax.f32 %v186_v50, 0.0  ;;  %v206_v55 = vmax.f32 %v190_v51, 0.0 }
  0xab   :  { %v195_v56 = vmax.f32 %v179_v52, 0.0  ;;  %v199_v57 = vmax.f32 %v183_v53, 0.0 }
  0xac   :  { %218 = vst [vmem:[%s487_s4 + $0x40] sm:$0xff] %v202_v54 }
  0xad   :  { %222 = vst [vmem:[%s487_s4 + $0x60] sm:$0xff] %v206_v55  ;;  %v136_v58 = vpop.f32.mrf.mxu2  ;;  %v146_v59 = vpop.f32.mrf.mxu3 }
  0xae   :  { %211 = vst [vmem:[%s487_s4 + $0x8] sm:$0xff] %v195_v56  ;;  %v167_v60 = vmul.f32 %v396_v32, %v136_v58  ;;  %v171_v61 = vmul.f32 %v396_v32, %v146_v59  ;;  %v119_v62 = vpop.f32.mrf.mxu0  ;;  %v129_v63 = vpop.f32.mrf.mxu1 }
  0xaf   :  { %215 = vst [vmem:[%s487_s4 + $0x28] sm:$0xff] %v199_v57  ;;  %v160_v0 = vmul.f32 %v396_v32, %v119_v62  ;;  %v164_v1 = vmul.f32 %v396_v32, %v129_v63 }
  0xb0   :  { %v187_v2 = vadd.f32 %v401_v33, %v167_v60  ;;  %v191_v3 = vadd.f32 %v401_v33, %v171_v61 }
  0xb1   :  { %v180_v4 = vadd.f32 %v401_v33, %v160_v0  ;;  %v184_v5 = vadd.f32 %v401_v33, %v164_v1 }
  0xb2   :  { %v203_v6 = vmax.f32 %v187_v2, 0.0  ;;  %v207_v7 = vmax.f32 %v191_v3, 0.0 }
  0xb3   :  { %v196_v8 = vmax.f32 %v180_v4, 0.0  ;;  %v200_v9 = vmax.f32 %v184_v5, 0.0 }
  0xb4   :  { %219 = vst [vmem:[%s487_s4 + $0x48] sm:$0xff] %v203_v6 }
  0xb5   :  { %223 = vst [vmem:[%s487_s4 + $0x68] sm:$0xff] %v207_v7  ;;  %v139_v10 = vpop.f32.mrf.mxu2  ;;  %v149_v11 = vpop.f32.mrf.mxu3 }
  0xb6   :  { %212 = vst [vmem:[%s487_s4 + $0x10] sm:$0xff] %v196_v8  ;;  %v168_v12 = vmul.f32 %v396_v32, %v139_v10  ;;  %v172_v13 = vmul.f32 %v396_v32, %v149_v11  ;;  %v121_v14 = vpop.f32.mrf.mxu0  ;;  %v131_v15 = vpop.f32.mrf.mxu1 }
  0xb7   :  { %216 = vst [vmem:[%s487_s4 + $0x30] sm:$0xff] %v200_v9  ;;  %v161_v16 = vmul.f32 %v396_v32, %v121_v14  ;;  %v165_v17 = vmul.f32 %v396_v32, %v131_v15 }
  0xb8   :  { %v188_v18 = vadd.f32 %v401_v33, %v168_v12  ;;  %v192_v19 = vadd.f32 %v401_v33, %v172_v13 }
  0xb9   :  { %v181_v20 = vadd.f32 %v401_v33, %v161_v16  ;;  %v185_v21 = vadd.f32 %v401_v33, %v165_v17 }
  0xba   :  { %v204_v22 = vmax.f32 %v188_v18, 0.0  ;;  %v208_v23 = vmax.f32 %v192_v19, 0.0 }
  0xbb   :  { %v197_v24 = vmax.f32 %v181_v20, 0.0  ;;  %v201_v25 = vmax.f32 %v185_v21, 0.0 }
  0xbc   :  { %220 = vst [vmem:[%s487_s4 + $0x50] sm:$0xff] %v204_v22 }
  0xbd   :  { %224 = vst [vmem:[%s487_s4 + $0x70] sm:$0xff] %v208_v23  ;;  %v141_v26 = vpop.f32.mrf.mxu2  ;;  %v151_v27 = vpop.f32.mrf.mxu3 }
  0xbe   :  { %213 = vst [vmem:[%s487_s4 + $0x18] sm:$0xff] %v197_v24  ;;  %v169_v28 = vmul.f32 %v396_v32, %v141_v26  ;;  %v173_v29 = vmul.f32 %v396_v32, %v151_v27 }
  0xbf   :  { %217 = vst [vmem:[%s487_s4 + $0x38] sm:$0xff] %v201_v25 }
  0xc0   :  { %v189_v30 = vadd.f32 %v401_v33, %v169_v28  ;;  %v193_v31 = vadd.f32 %v401_v33, %v173_v29 }
  0xc2   :  { %v205_v34 = vmax.f32 %v189_v30, 0.0  ;;  %v209_v35 = vmax.f32 %v193_v31, 0.0 }
  0xc4   :  { %221 = vst [vmem:[%s487_s4 + $0x58] sm:$0xff] %v205_v34 }
  0xc5   :  { %225 = vst [vmem:[%s487_s4 + $0x78] sm:$0xff] %v209_v35 }

// kernel: cvae_forward.11
= control target key start
LH: loop header
LB: loop body
LE: loop exit
PB: predicated region body
PF: predicated region fallthrough
CT: control target
= control target key end

     0   :  { %s1129_s1 = inlined_call_operand.vmem [shape: bf16[256,128], index: 1, kind: input, shape index: {}]   ;;  %s1130_s0 = inlined_call_operand.vmem [shape: f32[128,256], index: 0, kind: input, shape index: {}]   ;;  %s1131_s2 = inlined_call_operand.vmem [shape: f32[1,128], index: 2, kind: input, shape index: {}]   ;;  %s1132_s3 = inlined_call_operand.vmem [shape: f32[1,128], index: 3, kind: input, shape index: {}]   ;;  %s1133_s4 = inlined_call_operand.vmem [shape: bf16[128,128], index: 4, kind: input, shape index: {}]   ;;  %s1134_s5 = inlined_call_operand.vmem [shape: f32[1,128], index: 5, kind: input, shape index: {}]   ;;  %s1135_s6 = inlined_call_operand.vmem [shape: f32[1,128], index: 6, kind: input, shape index: {}]   ;;  %s1136_s7 = inlined_call_operand.vmem [shape: f32[128,128], index: 7, kind: input, shape index: {}]   ;;  %s1137_s8 = inlined_call_operand.vmem [shape: f32[128,128], index: 8, kind: output, shape index: {}]  }
   0x1   :  { %v691_v0 = vld [vmem:[%s1129_s1 + $0x38] sm:$0xff]  ;;  %v690_v2 = vld [vmem:[%s1129_s1 + $0x30] sm:$0xff]  ;;  %v689_v4 = vld [vmem:[%s1129_s1 + $0x28] sm:$0xff] }
   0x2   :  { %v699_v1 = vld [vmem:[%s1129_s1 + $0x78] sm:$0xff]  ;;  %237 = vmatpush.bf16.msra.mxu0 %v691_v0  ;;  %708 = vmatpush.bf16.msra.mxu3 %v691_v0  ;;  %v698_v3 = vld [vmem:[%s1129_s1 + $0x70] sm:$0xff]  ;;  %v697_v5 = vld [vmem:[%s1129_s1 + $0x68] sm:$0xff] }
   0x3   :  { %286 = vmatpush.bf16.msra.mxu1 %v699_v1  ;;  %v688_v6 = vld [vmem:[%s1129_s1 + $0x20] sm:$0xff]  ;;  %v687_v8 = vld [vmem:[%s1129_s1 + $0x18] sm:$0xff]  ;;  %v686_v10 = vld [vmem:[%s1129_s1 + $0x10] sm:$0xff] }
   0x4   :  { %v696_v7 = vld [vmem:[%s1129_s1 + $0x60] sm:$0xff]  ;;  %v695_v9 = vld [vmem:[%s1129_s1 + $0x58] sm:$0xff]  ;;  %v694_v11 = vld [vmem:[%s1129_s1 + $0x50] sm:$0xff] }
   0x5   :  { %v685_v12 = vld [vmem:[%s1129_s1 + $0x8] sm:$0xff]  ;;  %v29_v13 = vld [vmem:[%s1130_s0] sm:$0xff]  ;;  %v31_v14 = vld [vmem:[%s1130_s0 + $0x10] sm:$0xff] }
   0x6   :  { %238 = vmatpush.bf16.msra.mxu0 %v690_v2  ;;  %709 = vmatpush.bf16.msra.mxu3 %v690_v2  ;;  %v53_v15 = vld [vmem:[%s1130_s0 + $0xc0] sm:$0xff]  ;;  %v55_v16 = vld [vmem:[%s1130_s0 + $0xd0] sm:$0xff]  ;;  %v693_v17 = vld [vmem:[%s1129_s1 + $0x48] sm:$0xff]  ;;  %v61_v20 = vmax.f32 %v29_v13, 0.0  ;;  %v63_v21 = vmax.f32 %v31_v14, 0.0 }
   0x7   :  { %287 = vmatpush.bf16.msra.mxu1 %v698_v3  ;;  %v30_v18 = vld [vmem:[%s1130_s0 + $0x8] sm:$0xff]  ;;  %v32_v19 = vld [vmem:[%s1130_s0 + $0x18] sm:$0xff]  ;;  %v85_v22 = vmax.f32 %v53_v15, 0.0  ;;  %v87_v23 = vmax.f32 %v55_v16, 0.0  ;;  %v684_v24 = vld [vmem:[%s1129_s1] sm:$0xff] }
   0x8   :  { %v62_v25 = vmax.f32 %v30_v18, 0.0  ;;  %v64_v26 = vmax.f32 %v32_v19, 0.0  ;;  %v692_v27 = vld [vmem:[%s1129_s1 + $0x40] sm:$0xff]  ;;  %v93_v28 = vpack.c.bf16 %v63_v21, %v61_v20  ;;  %v35_v32 = vld [vmem:[%s1130_s0 + $0x30] sm:$0xff]  ;;  %v34_v35 = vld [vmem:[%s1130_s0 + $0x28] sm:$0xff] }
   0x9   :  { %v105_v29 = vpack.c.bf16 %v87_v23, %v85_v22  ;;  %v33_v31 = vld [vmem:[%s1130_s0 + $0x20] sm:$0xff]  ;;  %v59_v34 = vld [vmem:[%s1130_s0 + $0xf0] sm:$0xff]  ;;  %v36_v36 = vld [vmem:[%s1130_s0 + $0x38] sm:$0xff]  ;;  %v67_v38 = vmax.f32 %v35_v32, 0.0  ;;  %v66_v41 = vmax.f32 %v34_v35, 0.0 }
   0xa   :  { %239 = vmatpush.bf16.msra.mxu0 %v689_v4  ;;  %710 = vmatpush.bf16.msra.mxu3 %v689_v4  ;;  %v94_v30 = vpack.c.bf16 %v64_v26, %v62_v25  ;;  %v57_v33 = vld [vmem:[%s1130_s0 + $0xe0] sm:$0xff]  ;;  %v65_v37 = vmax.f32 %v33_v31, 0.0  ;;  %v91_v40 = vmax.f32 %v59_v34, 0.0  ;;  %v68_v42 = vmax.f32 %v36_v36, 0.0  ;;  %v39_v47 = vld [vmem:[%s1130_s0 + $0x50] sm:$0xff]  ;;  %v54_v48 = vld [vmem:[%s1130_s0 + $0xc8] sm:$0xff] }
   0xb   :  { %288 = vmatpush.bf16.msra.mxu1 %v697_v5  ;;  %v89_v39 = vmax.f32 %v57_v33, 0.0  ;;  %v37_v46 = vld [vmem:[%s1130_s0 + $0x40] sm:$0xff]  ;;  %v56_v49 = vld [vmem:[%s1130_s0 + $0xd8] sm:$0xff]  ;;  %v38_v50 = vld [vmem:[%s1130_s0 + $0x48] sm:$0xff]  ;;  %v71_v53 = vmax.f32 %v39_v47, 0.0  ;;  %v86_v54 = vmax.f32 %v54_v48, 0.0 }
   0xc   :  { %v95_v43 = vpack.c.bf16 %v67_v38, %v65_v37  ;;  %v96_v45 = vpack.c.bf16 %v68_v42, %v66_v41  ;;  %v40_v51 = vld [vmem:[%s1130_s0 + $0x58] sm:$0xff]  ;;  %v69_v52 = vmax.f32 %v37_v46, 0.0  ;;  %v88_v55 = vmax.f32 %v56_v49, 0.0  ;;  %v41_v61 = vld [vmem:[%s1130_s0 + $0x60] sm:$0xff]  ;;  %v43_v62 = vld [vmem:[%s1130_s0 + $0x70] sm:$0xff] }
   0xd   :  { %v107_v44 = vpack.c.bf16 %v91_v40, %v89_v39  ;;  %v70_v56 = vmax.f32 %v38_v50, 0.0  ;;  %v72_v57 = vmax.f32 %v40_v51, 0.0  ;;  %v58_v63 = vld [vmem:[%s1130_s0 + $0xe8] sm:$0xff]  ;;  %v60_v0 = vld [vmem:[%s1130_s0 + $0xf8] sm:$0xff]  ;;  %v75_v4 = vmax.f32 %v43_v62, 0.0  ;;  %v706_v13 = vld [vmem:[%s1133_s4 + $0x30] sm:$0xff] }
   0xe   :  { %240 = vmatpush.bf16.msra.mxu0 %v688_v6  ;;  %711 = vmatpush.bf16.msra.mxu3 %v688_v6  ;;  %v97_v58 = vpack.c.bf16 %v71_v53, %v69_v52  ;;  %v106_v59 = vpack.c.bf16 %v88_v55, %v86_v54  ;;  %v44_v2 = vld [vmem:[%s1130_s0 + $0x78] sm:$0xff]  ;;  %v92_v6 = vmax.f32 %v60_v0, 0.0  ;;  %v45_v14 = vld [vmem:[%s1130_s0 + $0x80] sm:$0xff]  ;;  %v47_v15 = vld [vmem:[%s1130_s0 + $0x90] sm:$0xff] }
   0xf   :  { %289 = vmatpush.bf16.msra.mxu1 %v696_v7  ;;  %v98_v60 = vpack.c.bf16 %v72_v57, %v70_v56  ;;  %v46_v16 = vld [vmem:[%s1130_s0 + $0x88] sm:$0xff]  ;;  %v77_v19 = vmax.f32 %v45_v14, 0.0  ;;  %v79_v20 = vmax.f32 %v47_v15, 0.0  ;;  %v49_v25 = vld [vmem:[%s1130_s0 + $0xa0] sm:$0xff]  ;;  %v51_v26 = vld [vmem:[%s1130_s0 + $0xb0] sm:$0xff] }
  0x10   :  { %v705_v18 = vld [vmem:[%s1133_s4 + $0x28] sm:$0xff]  ;;  %v78_v21 = vmax.f32 %v46_v16, 0.0  ;;  %v704_v35 = vld [vmem:[%s1133_s4 + $0x20] sm:$0xff]  ;;  %v703_v36 = vld [vmem:[%s1133_s4 + $0x18] sm:$0xff] }
  0x11   :  { %v101_v23 = vpack.c.bf16 %v79_v20, %v77_v19  ;;  %v702_v37 = vld [vmem:[%s1133_s4 + $0x10] sm:$0xff]  ;;  %v701_v38 = vld [vmem:[%s1133_s4 + $0x8] sm:$0xff]  ;;  %v700_v39 = vld [vmem:[%s1133_s4] sm:$0xff] }
  0x12   :  { %241 = vmatpush.bf16.msra.mxu0 %v687_v8  ;;  %712 = vmatpush.bf16.msra.mxu3 %v687_v8  ;;  %v76_v8 = vmax.f32 %v44_v2, 0.0  ;;  %v958_v47 = vld [vmem:[%s1132_s3] ss:$0 sm:$0xff] }
  0x13   :  { %290 = vmatpush.bf16.msra.mxu1 %v695_v9 }
  0x16   :  { %242 = vmatpush.bf16.msra.mxu0 %v686_v10  ;;  %713 = vmatpush.bf16.msra.mxu3 %v686_v10 }
  0x17   :  { %291 = vmatpush.bf16.msra.mxu1 %v694_v11 }
  0x1a   :  { %243 = vmatpush.bf16.msra.mxu0 %v685_v12  ;;  %714 = vmatpush.bf16.msra.mxu3 %v685_v12  ;;  %v707_v12 = vld [vmem:[%s1133_s4 + $0x38] sm:$0xff] }
  0x1b   :  { %292 = vmatpush.bf16.msra.mxu1 %v693_v17  ;;  %479 = vmatpush.bf16.msra.mxu2 %v707_v12 }
  0x1e   :  { %244 = vmatpush.bf16.msra.mxu0 %v684_v24  ;;  %715 = vmatpush.bf16.msra.mxu3 %v684_v24 }
  0x1f   :  { %293 = vmatpush.bf16.msra.mxu1 %v692_v27  ;;  %480 = vmatpush.bf16.msra.mxu2 %v706_v13 }
  0x21   :  { %245 = vmatmul.bf16.vlgmr.msra.gmra.mxu0 %v93_v28  ;;  %275 = vmatmul.bf16.vlgmr.msra.gmra.mxu3 %v105_v29  ;;  %v52_v28 = vld [vmem:[%s1130_s0 + $0xb8] sm:$0xff]  ;;  %v81_v29 = vmax.f32 %v49_v25, 0.0 }
  0x22   :  { %716 = vmatpush.bf16.msrb.mxu3 %v699_v1  ;;  %294 = vmatmul.bf16.vlgmr.msra.gmra.mxu1 %v94_v30  ;;  %v42_v1 = vld [vmem:[%s1130_s0 + $0x68] sm:$0xff]  ;;  %v83_v30 = vmax.f32 %v51_v26, 0.0  ;;  %v84_v32 = vmax.f32 %v52_v28, 0.0 }
  0x23   :  { %481 = vmatpush.bf16.msra.mxu2 %v705_v18 }
  0x24   :  { %v103_v33 = vpack.c.bf16 %v83_v30, %v81_v29 }
  0x26   :  { %717 = vmatpush.bf16.msrb.mxu3 %v698_v3  ;;  %v73_v3 = vmax.f32 %v41_v61, 0.0 }
  0x27   :  { %482 = vmatpush.bf16.msra.mxu2 %v704_v35 }
  0x2a   :  { %718 = vmatpush.bf16.msrb.mxu3 %v697_v5  ;;  %v90_v5 = vmax.f32 %v58_v63, 0.0 }
  0x2b   :  { %483 = vmatpush.bf16.msra.mxu2 %v703_v36 }
  0x2c   :  { %v108_v10 = vpack.c.bf16 %v92_v6, %v90_v5 }
  0x2e   :  { %719 = vmatpush.bf16.msrb.mxu3 %v696_v7  ;;  %v74_v7 = vmax.f32 %v42_v1, 0.0 }
  0x2f   :  { %484 = vmatpush.bf16.msra.mxu2 %v702_v37 }
  0x31   :  { %250 = vmatmul.bf16.gmra.mxu0 %v95_v43  ;;  %280 = vmatmul.bf16.gmra.mxu3 %v107_v44  ;;  %v952_v43 = vld [vmem:[%s1131_s2] ss:$0 sm:$0xff] }
  0x32   :  { %720 = vmatpush.bf16.msrb.mxu3 %v695_v9  ;;  %299 = vmatmul.bf16.gmra.mxu1 %v96_v45  ;;  %v99_v9 = vpack.c.bf16 %v75_v4, %v73_v3 }
  0x33   :  { %485 = vmatpush.bf16.msra.mxu2 %v701_v38 }
  0x36   :  { %721 = vmatpush.bf16.msrb.mxu3 %v694_v11  ;;  %v100_v11 = vpack.c.bf16 %v76_v8, %v74_v7 }
  0x37   :  { %486 = vmatpush.bf16.msra.mxu2 %v700_v39 }
  0x3a   :  { %722 = vmatpush.bf16.msrb.mxu3 %v693_v17  ;;  %v48_v17 = vld [vmem:[%s1130_s0 + $0x98] sm:$0xff] }
  0x3b   :  { %v80_v22 = vmax.f32 %v48_v17, 0.0 }
  0x3d   :  { %v102_v24 = vpack.c.bf16 %v80_v22, %v78_v21 }
  0x3e   :  { %723 = vmatpush.bf16.msrb.mxu3 %v692_v27  ;;  %v50_v27 = vld [vmem:[%s1130_s0 + $0xa8] sm:$0xff] }
  0x3f   :  { %v82_v31 = vmax.f32 %v50_v27, 0.0 }
  0x41   :  { %255 = vmatmul.bf16.gmra.mxu0 %v97_v58  ;;  %324 = vmatmul.bf16.vlgmr.msrb.gmra.mxu3 %v106_v59  ;;  %v104_v34 = vpack.c.bf16 %v84_v32, %v82_v31 }
  0x42   :  { %304 = vmatmul.bf16.gmra.mxu1 %v98_v60  ;;  %724 = vmatpush.bf16.msra.mxu3 %v707_v12 }
  0x46   :  { %725 = vmatpush.bf16.msra.mxu3 %v706_v13 }
  0x4a   :  { %726 = vmatpush.bf16.msra.mxu3 %v705_v18 }
  0x4e   :  { %727 = vmatpush.bf16.msra.mxu3 %v704_v35 }
  0x51   :  { %260 = vmatmul.bf16.gmra.mxu0 %v99_v9  ;;  %329 = vmatmul.bf16.gmra.mxu3 %v108_v10 }
  0x52   :  { %309 = vmatmul.bf16.gmra.mxu1 %v100_v11  ;;  %728 = vmatpush.bf16.msra.mxu3 %v703_v36 }
  0x56   :  { %729 = vmatpush.bf16.msra.mxu3 %v702_v37 }
  0x5a   :  { %730 = vmatpush.bf16.msra.mxu3 %v701_v38 }
  0x5e   :  { %731 = vmatpush.bf16.msra.mxu3 %v700_v39 }
  0x61   :  { %265 = vmatmul.bf16.gmra.mxu0 %v101_v23 }
  0x62   :  { %314 = vmatmul.bf16.gmra.mxu1 %v102_v24 }
  0x71   :  { %270 = vmatmul.bf16.gmra.mxu0 %v103_v33 }
  0x72   :  { %319 = vmatmul.bf16.gmra.mxu1 %v104_v34 }
  0x9e   :  { %v246_v40 = vpop.f32.mrf.mxu0 }
  0x9f   :  { %v295_v41 = vpop.f32.mrf.mxu1 }
  0xa0   :  { %v296_v42 = vadd.f32 %v295_v41, %v246_v40 }
  0xa2   :  { %v339_v45 = vmul.f32 %v952_v43, %v296_v42 }
  0xa4   :  { %v276_v44 = vpop.f32.mrf.mxu3  ;;  %v359_v51 = vadd.f32 %v958_v47, %v339_v45 }
  0xa6   :  { %v248_v46 = vpop.f32.mrf.mxu0  ;;  %v375_v55 = vmax.f32 %v359_v51, 0.0 }
  0xa7   :  { %v297_v48 = vpop.f32.mrf.mxu1 }
  0xa8   :  { %v298_v49 = vadd.f32 %v297_v48, %v248_v46 }
  0xaa   :  { %v340_v50 = vmul.f32 %v952_v43, %v298_v49 }
  0xac   :  { %v278_v52 = vpop.f32.mrf.mxu3  ;;  %v360_v53 = vadd.f32 %v958_v47, %v340_v50 }
  0xae   :  { %v251_v54 = vpop.f32.mrf.mxu0  ;;  %v376_v56 = vmax.f32 %v360_v53, 0.0 }
  0xaf   :  { %v300_v57 = vpop.f32.mrf.mxu1 }
  0xb0   :  { %v391_v58 = vpack.c.bf16 %v376_v56, %v375_v55  ;;  %v301_v59 = vadd.f32 %v300_v57, %v251_v54 }
  0xb2   :  { %487 = vmatmul.bf16.vlgmr.msra.gmra.mxu2 %v391_v58  ;;  %v341_v61 = vmul.f32 %v952_v43, %v301_v59 }
  0xb4   :  { %v281_v60 = vpop.f32.mrf.mxu3  ;;  %v361_v2 = vadd.f32 %v958_v47, %v341_v61 }
  0xb6   :  { %v253_v62 = vpop.f32.mrf.mxu0  ;;  %v377_v6 = vmax.f32 %v361_v2, 0.0 }
  0xb7   :  { %v302_v63 = vpop.f32.mrf.mxu1 }
  0xb8   :  { %v303_v0 = vadd.f32 %v302_v63, %v253_v62 }
  0xba   :  { %v342_v1 = vmul.f32 %v952_v43, %v303_v0 }
  0xbc   :  { %v283_v3 = vpop.f32.mrf.mxu3  ;;  %v362_v4 = vadd.f32 %v958_v47, %v342_v1 }
  0xbe   :  { %v256_v5 = vpop.f32.mrf.mxu0  ;;  %v378_v7 = vmax.f32 %v362_v4, 0.0 }
  0xbf   :  { %v305_v8 = vpop.f32.mrf.mxu1 }
  0xc0   :  { %v392_v9 = vpack.c.bf16 %v378_v7, %v377_v6  ;;  %v306_v10 = vadd.f32 %v305_v8, %v256_v5 }
  0xc2   :  { %492 = vmatmul.bf16.gmra.mxu2 %v392_v9  ;;  %v343_v12 = vmul.f32 %v952_v43, %v306_v10 }
  0xc4   :  { %v325_v11 = vpop.f32.mrf.mxu3  ;;  %v363_v18 = vadd.f32 %v958_v47, %v343_v12 }
  0xc5   :  { %v326_v14 = vadd.f32 %v325_v11, %v276_v44 }
  0xc6   :  { %v258_v13 = vpop.f32.mrf.mxu0  ;;  %v379_v24 = vmax.f32 %v363_v18, 0.0 }
  0xc7   :  { %v307_v15 = vpop.f32.mrf.mxu1  ;;  %v351_v19 = vmul.f32 %v952_v43, %v326_v14 }
  0xc8   :  { %v308_v16 = vadd.f32 %v307_v15, %v258_v13 }
  0xc9   :  { %v371_v26 = vadd.f32 %v958_v47, %v351_v19 }
  0xca   :  { %v344_v17 = vmul.f32 %v952_v43, %v308_v16 }
  0xcb   :  { %v387_v32 = vmax.f32 %v371_v26, 0.0 }
  0xcc   :  { %v327_v20 = vpop.f32.mrf.mxu3  ;;  %v364_v21 = vadd.f32 %v958_v47, %v344_v17 }
  0xcd   :  { %v328_v22 = vadd.f32 %v327_v20, %v278_v52  ;;  %v415_v20 = vld [vmem:[%s1136_s7] sm:$0xff] }
  0xce   :  { %v261_v23 = vpop.f32.mrf.mxu0  ;;  %v380_v25 = vmax.f32 %v364_v21, 0.0  ;;  %v997_v21 = vld [vmem:[%s1134_s5] ss:$0 sm:$0xff] }
  0xcf   :  { %v352_v27 = vmul.f32 %v952_v43, %v328_v22  ;;  %v310_v28 = vpop.f32.mrf.mxu1 }
  0xd0   :  { %v393_v29 = vpack.c.bf16 %v380_v25, %v379_v24  ;;  %v311_v31 = vadd.f32 %v310_v28, %v261_v23  ;;  %v416_v25 = vld [vmem:[%s1136_s7 + $0x8] sm:$0xff] }
  0xd1   :  { %v372_v30 = vadd.f32 %v958_v47, %v352_v27 }
  0xd2   :  { %497 = vmatmul.bf16.gmra.mxu2 %v393_v29  ;;  %v345_v36 = vmul.f32 %v952_v43, %v311_v31 }
  0xd3   :  { %v388_v33 = vmax.f32 %v372_v30, 0.0  ;;  %v417_v30 = vld [vmem:[%s1136_s7 + $0x10] sm:$0xff] }
  0xd4   :  { %v330_v34 = vpop.f32.mrf.mxu3  ;;  %v365_v42 = vadd.f32 %v958_v47, %v345_v36 }
  0xd5   :  { %v397_v35 = vpack.c.bf16 %v388_v33, %v387_v32  ;;  %v331_v38 = vadd.f32 %v330_v34, %v281_v60 }
  0xd6   :  { %v263_v37 = vpop.f32.mrf.mxu0  ;;  %v381_v50 = vmax.f32 %v365_v42, 0.0 }
  0xd7   :  { %v312_v39 = vpop.f32.mrf.mxu1  ;;  %517 = vmatmul.bf16.vlgmr.msra.gmra.mxu3 %v397_v35  ;;  %v353_v44 = vmul.f32 %v952_v43, %v331_v38  ;;  %v418_v35 = vld [vmem:[%s1136_s7 + $0x18] sm:$0xff] }
  0xd8   :  { %v313_v40 = vadd.f32 %v312_v39, %v263_v37 }
  0xd9   :  { %v373_v54 = vadd.f32 %v958_v47, %v353_v44 }
  0xda   :  { %v346_v41 = vmul.f32 %v952_v43, %v313_v40  ;;  %v419_v40 = vld [vmem:[%s1136_s7 + $0x20] sm:$0xff] }
  0xdb   :  { %v389_v58 = vmax.f32 %v373_v54, 0.0 }
  0xdc   :  { %v332_v45 = vpop.f32.mrf.mxu3  ;;  %v366_v46 = vadd.f32 %v958_v47, %v346_v41 }
  0xdd   :  { %v333_v48 = vadd.f32 %v332_v45, %v283_v3  ;;  %v427_v45 = vld [vmem:[%s1136_s7 + $0x60] sm:$0xff] }
  0xde   :  { %v266_v49 = vpop.f32.mrf.mxu0  ;;  %v382_v51 = vmax.f32 %v366_v46, 0.0 }
  0xdf   :  { %v354_v52 = vmul.f32 %v952_v43, %v333_v48  ;;  %v315_v53 = vpop.f32.mrf.mxu1 }
  0xe0   :  { %v394_v55 = vpack.c.bf16 %v382_v51, %v381_v50  ;;  %v316_v57 = vadd.f32 %v315_v53, %v266_v49  ;;  %v420_v50 = vld [vmem:[%s1136_s7 + $0x28] sm:$0xff] }
  0xe1   :  { %v374_v56 = vadd.f32 %v958_v47, %v354_v52 }
  0xe2   :  { %502 = vmatmul.bf16.gmra.mxu2 %v394_v55  ;;  %v347_v61 = vmul.f32 %v952_v43, %v316_v57 }
  0xe3   :  { %v390_v59 = vmax.f32 %v374_v56, 0.0  ;;  %v428_v56 = vld [vmem:[%s1136_s7 + $0x68] sm:$0xff] }
  0xe4   :  { %v367_v2 = vadd.f32 %v958_v47, %v347_v61 }
  0xe5   :  { %v398_v60 = vpack.c.bf16 %v390_v59, %v389_v58 }
  0xe6   :  { %v268_v62 = vpop.f32.mrf.mxu0  ;;  %v383_v5 = vmax.f32 %v367_v2, 0.0  ;;  %v429_v2 = vld [vmem:[%s1136_s7 + $0x70] sm:$0xff] }
  0xe7   :  { %v317_v63 = vpop.f32.mrf.mxu1  ;;  %522 = vmatmul.bf16.gmra.mxu3 %v398_v60  ;;  %v421_v60 = vld [vmem:[%s1136_s7 + $0x30] sm:$0xff] }
  0xe8   :  { %v318_v0 = vadd.f32 %v317_v63, %v268_v62 }
  0xea   :  { %v348_v1 = vmul.f32 %v952_v43, %v318_v0 }
  0xec   :  { %v368_v3 = vadd.f32 %v958_v47, %v348_v1 }
  0xee   :  { %v271_v4 = vpop.f32.mrf.mxu0  ;;  %v384_v6 = vmax.f32 %v368_v3, 0.0 }
  0xef   :  { %v320_v7 = vpop.f32.mrf.mxu1 }
  0xf0   :  { %v395_v8 = vpack.c.bf16 %v384_v6, %v383_v5  ;;  %v321_v9 = vadd.f32 %v320_v7, %v271_v4  ;;  %v422_v6 = vld [vmem:[%s1136_s7 + $0x38] sm:$0xff] }
  0xf2   :  { %507 = vmatmul.bf16.gmra.mxu2 %v395_v8  ;;  %v349_v10 = vmul.f32 %v952_v43, %v321_v9 }
  0xf4   :  { %v369_v15 = vadd.f32 %v958_v47, %v349_v10 }
  0xf6   :  { %v273_v11 = vpop.f32.mrf.mxu0  ;;  %v385_v17 = vmax.f32 %v369_v15, 0.0 }
  0xf7   :  { %v322_v12 = vpop.f32.mrf.mxu1 }
  0xf8   :  { %v323_v13 = vadd.f32 %v322_v12, %v273_v11  ;;  %v430_v12 = vld [vmem:[%s1136_s7 + $0x78] sm:$0xff] }
  0xfa   :  { %v350_v14 = vmul.f32 %v952_v43, %v323_v13  ;;  %v1002_v43 = vld [vmem:[%s1135_s6] ss:$0 sm:$0xff] }
  0xfc   :  { %v370_v16 = vadd.f32 %v958_v47, %v350_v14 }
  0xfe   :  { %v386_v18 = vmax.f32 %v370_v16, 0.0  ;;  %v423_v16 = vld [vmem:[%s1136_s7 + $0x40] sm:$0xff] }
 0x100   :  { %v396_v19 = vpack.c.bf16 %v386_v18, %v385_v17 }
 0x102   :  { %512 = vmatmul.bf16.gmra.mxu2 %v396_v19 }
 0x135   :  { %v488_v22 = vpop.f32.mrf.mxu2 }
 0x136   :  { %v489_v23 = vadd.f32 %v488_v22, %v415_v20 }
 0x138   :  { %v532_v47 = vmul.f32 %v997_v21, %v489_v23 }
 0x13a   :  { %v552_v24 = vadd.f32 %v1002_v43, %v532_v47  ;;  %v424_v47 = vld [vmem:[%s1136_s7 + $0x48] sm:$0xff] }
 0x13c   :  { %568 = vst [vmem:[%s1137_s8] sm:$0xff] %v552_v24 }
 0x13d   :  { %v490_v26 = vpop.f32.mrf.mxu2 }
 0x13e   :  { %v491_v27 = vadd.f32 %v490_v26, %v416_v25 }
 0x140   :  { %v533_v28 = vmul.f32 %v997_v21, %v491_v27 }
 0x142   :  { %v553_v29 = vadd.f32 %v1002_v43, %v533_v28  ;;  %v425_v28 = vld [vmem:[%s1136_s7 + $0x50] sm:$0xff] }
 0x144   :  { %569 = vst [vmem:[%s1137_s8 + $0x8] sm:$0xff] %v553_v29 }
 0x145   :  { %v493_v31 = vpop.f32.mrf.mxu2 }
 0x146   :  { %v494_v32 = vadd.f32 %v493_v31, %v417_v30 }
 0x148   :  { %v534_v33 = vmul.f32 %v997_v21, %v494_v32 }
 0x14a   :  { %v554_v34 = vadd.f32 %v1002_v43, %v534_v33  ;;  %v426_v33 = vld [vmem:[%s1136_s7 + $0x58] sm:$0xff] }
 0x14c   :  { %570 = vst [vmem:[%s1137_s8 + $0x10] sm:$0xff] %v554_v34 }
 0x14d   :  { %v495_v36 = vpop.f32.mrf.mxu2 }
 0x14e   :  { %v496_v37 = vadd.f32 %v495_v36, %v418_v35 }
 0x150   :  { %v535_v38 = vmul.f32 %v997_v21, %v496_v37 }
 0x152   :  { %v555_v39 = vadd.f32 %v1002_v43, %v535_v38 }
 0x154   :  { %571 = vst [vmem:[%s1137_s8 + $0x18] sm:$0xff] %v555_v39 }
 0x155   :  { %v498_v41 = vpop.f32.mrf.mxu2 }
 0x156   :  { %v499_v42 = vadd.f32 %v498_v41, %v419_v40 }
 0x158   :  { %v536_v44 = vmul.f32 %v997_v21, %v499_v42 }
 0x15a   :  { %v556_v46 = vadd.f32 %v1002_v43, %v536_v44  ;;  %v518_v48 = vpop.f32.mrf.mxu3 }
 0x15b   :  { %v519_v49 = vadd.f32 %v518_v48, %v427_v45 }
 0x15c   :  { %572 = vst [vmem:[%s1137_s8 + $0x20] sm:$0xff] %v556_v46 }
 0x15d   :  { %v544_v51 = vmul.f32 %v997_v21, %v519_v49  ;;  %v500_v52 = vpop.f32.mrf.mxu2 }
 0x15e   :  { %v501_v53 = vadd.f32 %v500_v52, %v420_v50 }
 0x15f   :  { %v564_v54 = vadd.f32 %v1002_v43, %v544_v51 }
 0x160   :  { %v537_v55 = vmul.f32 %v997_v21, %v501_v53 }
 0x161   :  { %580 = vst [vmem:[%s1137_s8 + $0x60] sm:$0xff] %v564_v54 }
 0x162   :  { %v557_v57 = vadd.f32 %v1002_v43, %v537_v55  ;;  %v520_v58 = vpop.f32.mrf.mxu3 }
 0x163   :  { %v521_v59 = vadd.f32 %v520_v58, %v428_v56 }
 0x164   :  { %573 = vst [vmem:[%s1137_s8 + $0x28] sm:$0xff] %v557_v57 }
 0x165   :  { %v545_v61 = vmul.f32 %v997_v21, %v521_v59  ;;  %v503_v62 = vpop.f32.mrf.mxu2 }
 0x166   :  { %v504_v63 = vadd.f32 %v503_v62, %v421_v60 }
 0x167   :  { %v565_v0 = vadd.f32 %v1002_v43, %v545_v61 }
 0x168   :  { %v538_v1 = vmul.f32 %v997_v21, %v504_v63 }
 0x169   :  { %581 = vst [vmem:[%s1137_s8 + $0x68] sm:$0xff] %v565_v0 }
 0x16a   :  { %v558_v3 = vadd.f32 %v1002_v43, %v538_v1  ;;  %v523_v4 = vpop.f32.mrf.mxu3 }
 0x16b   :  { %v524_v5 = vadd.f32 %v523_v4, %v429_v2 }
 0x16c   :  { %574 = vst [vmem:[%s1137_s8 + $0x30] sm:$0xff] %v558_v3 }
 0x16d   :  { %v546_v7 = vmul.f32 %v997_v21, %v524_v5  ;;  %v505_v8 = vpop.f32.mrf.mxu2 }
 0x16e   :  { %v506_v9 = vadd.f32 %v505_v8, %v422_v6 }
 0x16f   :  { %v566_v10 = vadd.f32 %v1002_v43, %v546_v7 }
 0x170   :  { %v539_v11 = vmul.f32 %v997_v21, %v506_v9 }
 0x171   :  { %582 = vst [vmem:[%s1137_s8 + $0x70] sm:$0xff] %v566_v10 }
 0x172   :  { %v559_v13 = vadd.f32 %v1002_v43, %v539_v11  ;;  %v525_v14 = vpop.f32.mrf.mxu3 }
 0x173   :  { %v526_v15 = vadd.f32 %v525_v14, %v430_v12 }
 0x174   :  { %575 = vst [vmem:[%s1137_s8 + $0x38] sm:$0xff] %v559_v13 }
 0x175   :  { %v547_v17 = vmul.f32 %v997_v21, %v526_v15  ;;  %v508_v18 = vpop.f32.mrf.mxu2 }
 0x176   :  { %v509_v19 = vadd.f32 %v508_v18, %v423_v16 }
 0x177   :  { %v567_v20 = vadd.f32 %v1002_v43, %v547_v17 }
 0x178   :  { %v540_v22 = vmul.f32 %v997_v21, %v509_v19 }
 0x179   :  { %583 = vst [vmem:[%s1137_s8 + $0x78] sm:$0xff] %v567_v20 }
 0x17a   :  { %v560_v23 = vadd.f32 %v1002_v43, %v540_v22 }
 0x17c   :  { %576 = vst [vmem:[%s1137_s8 + $0x40] sm:$0xff] %v560_v23 }
 0x17d   :  { %v510_v24 = vpop.f32.mrf.mxu2 }
 0x17e   :  { %v511_v25 = vadd.f32 %v510_v24, %v424_v47 }
 0x180   :  { %v541_v26 = vmul.f32 %v997_v21, %v511_v25 }
 0x182   :  { %v561_v27 = vadd.f32 %v1002_v43, %v541_v26 }
 0x184   :  { %577 = vst [vmem:[%s1137_s8 + $0x48] sm:$0xff] %v561_v27 }
 0x185   :  { %v513_v29 = vpop.f32.mrf.mxu2 }
 0x186   :  { %v514_v30 = vadd.f32 %v513_v29, %v425_v28 }
 0x188   :  { %v542_v31 = vmul.f32 %v997_v21, %v514_v30 }
 0x18a   :  { %v562_v32 = vadd.f32 %v1002_v43, %v542_v31 }
 0x18c   :  { %578 = vst [vmem:[%s1137_s8 + $0x50] sm:$0xff] %v562_v32 }
 0x18d   :  { %v515_v34 = vpop.f32.mrf.mxu2 }
 0x18e   :  { %v516_v35 = vadd.f32 %v515_v34, %v426_v33 }
 0x190   :  { %v543_v36 = vmul.f32 %v997_v21, %v516_v35 }
 0x192   :  { %v563_v37 = vadd.f32 %v1002_v43, %v543_v36 }
 0x194   :  { %579 = vst [vmem:[%s1137_s8 + $0x58] sm:$0xff] %v563_v37 }

// kernel: cvae_forward.16
= control target key start
LH: loop header
LB: loop body
LE: loop exit
PB: predicated region body
PF: predicated region fallthrough
CT: control target
= control target key end

     0   :  { %s950_s15 = smov 0   ;;  %s1193_s0 = inlined_call_operand.vmem [shape: f32[512,256], index: 0, kind: input, shape index: {}]   ;;  %s1194_s1 = inlined_call_operand.vmem [shape: bf16[256,128], index: 1, kind: input, shape index: {}]   ;;  %s1195_s2 = inlined_call_operand.vmem [shape: f32[1,128], index: 2, kind: input, shape index: {}]   ;;  %s1196_s3 = inlined_call_operand.vmem [shape: f32[1,128], index: 3, kind: input, shape index: {}]   ;;  %s1197_s4 = inlined_call_operand.vmem [shape: f32[512,128], index: 4, kind: output, shape index: {}]  }
   0x1 LB: > { %s798_s16 = sadd.s32 4294967295, %s923_s15   ;;  %p802_p0 = scmp.ge.s32.totalorder %s923_s15, 1  ;;  %s923_s15 = sphi %s950_s15, %s14_s15  }
   0x2   : > { %p164_p1 = scmp.lt.s32.totalorder %s923_s15, 3 }
   0x4   : > { %p165_p2 = pnand %p802_p0, %p164_p1 }
   0x5   : > { %s803_s29 = sshll.u32 (!%p165_p2), %s798_s16, 5 }
   0x6   : > { %168 = sbr.rel (%p165_p2) target bundleno = 305 (0x131), region = 36  ;;  %p192_p3 = scmp.lt.s32.totalorder (!%p165_p2), %s803_s29, 63 }
   0xb   : > { %v882_v0 = vld [vmem:[%s1194_s1 + $0x38] sm:$0xff]  ;;  %v881_v2 = vld [vmem:[%s1194_s1 + $0x30] sm:$0xff]  ;;  %v880_v4 = vld [vmem:[%s1194_s1 + $0x28] sm:$0xff]  ;;  %s1199_s29 = smov (!%p192_p3, %s803_s29), 63 }
   0xc   : > { %v890_v1 = vld [vmem:[%s1194_s1 + $0x78] sm:$0xff]  ;;  %428 = vmatpush.bf16.msra.mxu0 %v882_v0  ;;  %891 = vmatpush.bf16.msra.mxu2 %v882_v0  ;;  %v889_v3 = vld [vmem:[%s1194_s1 + $0x70] sm:$0xff]  ;;  %v888_v5 = vld [vmem:[%s1194_s1 + $0x68] sm:$0xff]  ;;  %s874_s17 = sshll.u32 %s1199_s29, 4  ;;  %s807_s8 = sshll.u32 %s1199_s29, 3 }
   0xd   : > { %517 = vmatpush.bf16.msra.mxu1 %v890_v1  ;;  %899 = vmatpush.bf16.msra.mxu3 %v890_v1  ;;  %v879_v6 = vld [vmem:[%s1194_s1 + $0x20] sm:$0xff]  ;;  %v878_v8 = vld [vmem:[%s1194_s1 + $0x18] sm:$0xff]  ;;  %v877_v10 = vld [vmem:[%s1194_s1 + $0x10] sm:$0xff]  ;;  %s1003_s22 = scalar_lea.vmem %s1193_s0, %s874_s17  ;;  %s1094_s11 = scalar_lea.vmem %s1197_s4, %s807_s8 }
   0xe   : > { %v887_v7 = vld [vmem:[%s1194_s1 + $0x60] sm:$0xff]  ;;  %v886_v9 = vld [vmem:[%s1194_s1 + $0x58] sm:$0xff]  ;;  %v885_v11 = vld [vmem:[%s1194_s1 + $0x50] sm:$0xff] }
   0xf   : > { %v876_v12 = vld [vmem:[%s1194_s1 + $0x8] sm:$0xff]  ;;  %v875_v14 = vld [vmem:[%s1194_s1] sm:$0xff]  ;;  %v206_v17 = vld [vmem:[%s1003_s22 + $0x10] sm:$0xff] }
  0x10   : > { %429 = vmatpush.bf16.msra.mxu0 %v881_v2  ;;  %892 = vmatpush.bf16.msra.mxu2 %v881_v2  ;;  %v884_v13 = vld [vmem:[%s1194_s1 + $0x48] sm:$0xff]  ;;  %v883_v15 = vld [vmem:[%s1194_s1 + $0x40] sm:$0xff]  ;;  %v238_v19 = vld [vmem:[%s1003_s22 + $0x110] sm:$0xff] }
  0x11   : > { %518 = vmatpush.bf16.msra.mxu1 %v889_v3  ;;  %900 = vmatpush.bf16.msra.mxu3 %v889_v3  ;;  %v204_v16 = vld [vmem:[%s1003_s22] sm:$0xff]  ;;  %v205_v20 = vld [vmem:[%s1003_s22 + $0x8] sm:$0xff]  ;;  %v207_v21 = vld [vmem:[%s1003_s22 + $0x18] sm:$0xff] }
  0x12   : > { %v236_v18 = vld [vmem:[%s1003_s22 + $0x100] sm:$0xff]  ;;  %v237_v22 = vld [vmem:[%s1003_s22 + $0x108] sm:$0xff]  ;;  %v239_v23 = vld [vmem:[%s1003_s22 + $0x118] sm:$0xff]  ;;  %v268_v24 = vpack.c.bf16 %v206_v17, %v204_v16  ;;  %v269_v26 = vpack.c.bf16 %v207_v21, %v205_v20 }
  0x13   : > { %v284_v25 = vpack.c.bf16 %v238_v19, %v236_v18  ;;  %v285_v27 = vpack.c.bf16 %v239_v23, %v237_v22  ;;  %v208_v28 = vld [vmem:[%s1003_s22 + $0x20] sm:$0xff]  ;;  %v210_v29 = vld [vmem:[%s1003_s22 + $0x30] sm:$0xff]  ;;  %v209_v32 = vld [vmem:[%s1003_s22 + $0x28] sm:$0xff] }
  0x14   : > { %430 = vmatpush.bf16.msra.mxu0 %v880_v4  ;;  %893 = vmatpush.bf16.msra.mxu2 %v880_v4  ;;  %v240_v30 = vld [vmem:[%s1003_s22 + $0x120] sm:$0xff]  ;;  %v242_v31 = vld [vmem:[%s1003_s22 + $0x130] sm:$0xff]  ;;  %v211_v33 = vld [vmem:[%s1003_s22 + $0x38] sm:$0xff]  ;;  %v270_v36 = vpack.c.bf16 %v210_v29, %v208_v28 }
  0x15   : > { %519 = vmatpush.bf16.msra.mxu1 %v888_v5  ;;  %901 = vmatpush.bf16.msra.mxu3 %v888_v5  ;;  %v241_v34 = vld [vmem:[%s1003_s22 + $0x128] sm:$0xff]  ;;  %v243_v35 = vld [vmem:[%s1003_s22 + $0x138] sm:$0xff]  ;;  %v286_v37 = vpack.c.bf16 %v242_v31, %v240_v30  ;;  %v271_v38 = vpack.c.bf16 %v211_v33, %v209_v32  ;;  %v212_v40 = vld [vmem:[%s1003_s22 + $0x40] sm:$0xff] }
  0x16   : > { %v287_v39 = vpack.c.bf16 %v243_v35, %v241_v34  ;;  %v214_v41 = vld [vmem:[%s1003_s22 + $0x50] sm:$0xff]  ;;  %v244_v42 = vld [vmem:[%s1003_s22 + $0x140] sm:$0xff]  ;;  %v213_v44 = vld [vmem:[%s1003_s22 + $0x48] sm:$0xff] }
  0x17   : > { %v246_v43 = vld [vmem:[%s1003_s22 + $0x150] sm:$0xff]  ;;  %v215_v45 = vld [vmem:[%s1003_s22 + $0x58] sm:$0xff]  ;;  %v245_v46 = vld [vmem:[%s1003_s22 + $0x148] sm:$0xff]  ;;  %v272_v48 = vpack.c.bf16 %v214_v41, %v212_v40 }
  0x18   : > { %431 = vmatpush.bf16.msra.mxu0 %v879_v6  ;;  %894 = vmatpush.bf16.msra.mxu2 %v879_v6  ;;  %v247_v47 = vld [vmem:[%s1003_s22 + $0x158] sm:$0xff]  ;;  %v288_v49 = vpack.c.bf16 %v246_v43, %v244_v42  ;;  %v273_v50 = vpack.c.bf16 %v215_v45, %v213_v44  ;;  %v216_v52 = vld [vmem:[%s1003_s22 + $0x60] sm:$0xff]  ;;  %v218_v53 = vld [vmem:[%s1003_s22 + $0x70] sm:$0xff] }
  0x19   : > { %520 = vmatpush.bf16.msra.mxu1 %v887_v7  ;;  %902 = vmatpush.bf16.msra.mxu3 %v887_v7  ;;  %v289_v51 = vpack.c.bf16 %v247_v47, %v245_v46  ;;  %v248_v54 = vld [vmem:[%s1003_s22 + $0x160] sm:$0xff]  ;;  %v250_v55 = vld [vmem:[%s1003_s22 + $0x170] sm:$0xff]  ;;  %v217_v56 = vld [vmem:[%s1003_s22 + $0x68] sm:$0xff]  ;;  %v274_v60 = vpack.c.bf16 %v218_v53, %v216_v52 }
  0x1a   : > { %v219_v57 = vld [vmem:[%s1003_s22 + $0x78] sm:$0xff]  ;;  %v249_v58 = vld [vmem:[%s1003_s22 + $0x168] sm:$0xff]  ;;  %v290_v61 = vpack.c.bf16 %v250_v55, %v248_v54  ;;  %v220_v0 = vld [vmem:[%s1003_s22 + $0x80] sm:$0xff] }
  0x1b   : > { %v251_v59 = vld [vmem:[%s1003_s22 + $0x178] sm:$0xff]  ;;  %v275_v62 = vpack.c.bf16 %v219_v57, %v217_v56  ;;  %v222_v1 = vld [vmem:[%s1003_s22 + $0x90] sm:$0xff]  ;;  %v252_v2 = vld [vmem:[%s1003_s22 + $0x180] sm:$0xff] }
  0x1c   : > { %432 = vmatpush.bf16.msra.mxu0 %v878_v8  ;;  %895 = vmatpush.bf16.msra.mxu2 %v878_v8  ;;  %v291_v63 = vpack.c.bf16 %v251_v59, %v249_v58  ;;  %v254_v3 = vld [vmem:[%s1003_s22 + $0x190] sm:$0xff]  ;;  %v221_v4 = vld [vmem:[%s1003_s22 + $0x88] sm:$0xff]  ;;  %v223_v5 = vld [vmem:[%s1003_s22 + $0x98] sm:$0xff]  ;;  %v276_v8 = vpack.c.bf16 %v222_v1, %v220_v0 }
  0x1d   : > { %521 = vmatpush.bf16.msra.mxu1 %v886_v9  ;;  %903 = vmatpush.bf16.msra.mxu3 %v886_v9  ;;  %v253_v6 = vld [vmem:[%s1003_s22 + $0x188] sm:$0xff]  ;;  %v255_v7 = vld [vmem:[%s1003_s22 + $0x198] sm:$0xff]  ;;  %v292_v9 = vpack.c.bf16 %v254_v3, %v252_v2  ;;  %v1086_v52 = vld [vmem:[%s1196_s3] ss:$0 sm:$0xff] }
  0x1e   : > { %v225_v16 = vld [vmem:[%s1003_s22 + $0xa8] sm:$0xff]  ;;  %v227_v17 = vld [vmem:[%s1003_s22 + $0xb8] sm:$0xff] }
  0x1f   : > { %v257_v18 = vld [vmem:[%s1003_s22 + $0x1a8] sm:$0xff]  ;;  %v259_v19 = vld [vmem:[%s1003_s22 + $0x1b8] sm:$0xff]  ;;  %v279_v22 = vpack.c.bf16 %v227_v17, %v225_v16 }
  0x20   : > { %433 = vmatpush.bf16.msra.mxu0 %v877_v10  ;;  %896 = vmatpush.bf16.msra.mxu2 %v877_v10  ;;  %v277_v10 = vpack.c.bf16 %v223_v5, %v221_v4  ;;  %v295_v23 = vpack.c.bf16 %v259_v19, %v257_v18  ;;  %v229_v28 = vld [vmem:[%s1003_s22 + $0xc8] sm:$0xff]  ;;  %v231_v29 = vld [vmem:[%s1003_s22 + $0xd8] sm:$0xff] }
  0x21   : > { %522 = vmatpush.bf16.msra.mxu1 %v885_v11  ;;  %904 = vmatpush.bf16.msra.mxu3 %v885_v11  ;;  %v293_v11 = vpack.c.bf16 %v255_v7, %v253_v6  ;;  %v261_v30 = vld [vmem:[%s1003_s22 + $0x1c8] sm:$0xff]  ;;  %v263_v31 = vld [vmem:[%s1003_s22 + $0x1d8] sm:$0xff]  ;;  %v281_v34 = vpack.c.bf16 %v231_v29, %v229_v28 }
  0x22   : > { %v297_v35 = vpack.c.bf16 %v263_v31, %v261_v30  ;;  %v233_v40 = vld [vmem:[%s1003_s22 + $0xe8] sm:$0xff]  ;;  %v235_v41 = vld [vmem:[%s1003_s22 + $0xf8] sm:$0xff] }
  0x23   : > { %v265_v42 = vld [vmem:[%s1003_s22 + $0x1e8] sm:$0xff]  ;;  %v267_v43 = vld [vmem:[%s1003_s22 + $0x1f8] sm:$0xff]  ;;  %v283_v46 = vpack.c.bf16 %v235_v41, %v233_v40 }
  0x24   : > { %434 = vmatpush.bf16.msra.mxu0 %v876_v12  ;;  %897 = vmatpush.bf16.msra.mxu2 %v876_v12  ;;  %v224_v12 = vld [vmem:[%s1003_s22 + $0xa0] sm:$0xff]  ;;  %v299_v47 = vpack.c.bf16 %v267_v43, %v265_v42 }
  0x25   : > { %523 = vmatpush.bf16.msra.mxu1 %v884_v13  ;;  %905 = vmatpush.bf16.msra.mxu3 %v884_v13  ;;  %v226_v13 = vld [vmem:[%s1003_s22 + $0xb0] sm:$0xff] }
  0x26   : > { %v278_v20 = vpack.c.bf16 %v226_v13, %v224_v12 }
  0x28   : > { %435 = vmatpush.bf16.msra.mxu0 %v875_v14  ;;  %898 = vmatpush.bf16.msra.mxu2 %v875_v14  ;;  %v256_v14 = vld [vmem:[%s1003_s22 + $0x1a0] sm:$0xff] }
  0x29   : > { %524 = vmatpush.bf16.msra.mxu1 %v883_v15  ;;  %906 = vmatpush.bf16.msra.mxu3 %v883_v15  ;;  %v258_v15 = vld [vmem:[%s1003_s22 + $0x1b0] sm:$0xff] }
  0x2a   : > { %v294_v21 = vpack.c.bf16 %v258_v15, %v256_v14 }
  0x2b   : > { %436 = vmatmul.bf16.vlgmr.msra.gmra.mxu0 %v268_v24  ;;  %476 = vmatmul.bf16.vlgmr.msra.gmra.mxu2 %v284_v25  ;;  %v228_v24 = vld [vmem:[%s1003_s22 + $0xc0] sm:$0xff]  ;;  %v230_v25 = vld [vmem:[%s1003_s22 + $0xd0] sm:$0xff] }
  0x2c   : > { %525 = vmatmul.bf16.vlgmr.msra.gmra.mxu1 %v269_v26  ;;  %565 = vmatmul.bf16.vlgmr.msra.gmra.mxu3 %v285_v27  ;;  %v260_v26 = vld [vmem:[%s1003_s22 + $0x1c0] sm:$0xff]  ;;  %v262_v27 = vld [vmem:[%s1003_s22 + $0x1d0] sm:$0xff]  ;;  %v280_v32 = vpack.c.bf16 %v230_v25, %v228_v24 }
  0x2d   : > { %v296_v33 = vpack.c.bf16 %v262_v27, %v260_v26 }
  0x3b   : > { %441 = vmatmul.bf16.gmra.mxu0 %v270_v36  ;;  %481 = vmatmul.bf16.gmra.mxu2 %v286_v37  ;;  %v232_v36 = vld [vmem:[%s1003_s22 + $0xe0] sm:$0xff]  ;;  %v234_v37 = vld [vmem:[%s1003_s22 + $0xf0] sm:$0xff] }
  0x3c   : > { %530 = vmatmul.bf16.gmra.mxu1 %v271_v38  ;;  %570 = vmatmul.bf16.gmra.mxu3 %v287_v39  ;;  %v264_v38 = vld [vmem:[%s1003_s22 + $0x1e0] sm:$0xff]  ;;  %v266_v39 = vld [vmem:[%s1003_s22 + $0x1f0] sm:$0xff]  ;;  %v282_v44 = vpack.c.bf16 %v234_v37, %v232_v36 }
  0x3d   : > { %v298_v45 = vpack.c.bf16 %v266_v39, %v264_v38 }
  0x4b   : > { %446 = vmatmul.bf16.gmra.mxu0 %v272_v48  ;;  %486 = vmatmul.bf16.gmra.mxu2 %v288_v49  ;;  %v1081_v49 = vld [vmem:[%s1195_s2] ss:$0 sm:$0xff] }
  0x4c   : > { %535 = vmatmul.bf16.gmra.mxu1 %v273_v50  ;;  %575 = vmatmul.bf16.gmra.mxu3 %v289_v51 }
  0x5b   : > { %451 = vmatmul.bf16.gmra.mxu0 %v274_v60  ;;  %491 = vmatmul.bf16.gmra.mxu2 %v290_v61 }
  0x5c   : > { %540 = vmatmul.bf16.gmra.mxu1 %v275_v62  ;;  %580 = vmatmul.bf16.gmra.mxu3 %v291_v63 }
  0x6b   : > { %456 = vmatmul.bf16.gmra.mxu0 %v276_v8  ;;  %496 = vmatmul.bf16.gmra.mxu2 %v292_v9 }
  0x6c   : > { %545 = vmatmul.bf16.gmra.mxu1 %v277_v10  ;;  %585 = vmatmul.bf16.gmra.mxu3 %v293_v11 }
  0x7b   : > { %461 = vmatmul.bf16.gmra.mxu0 %v278_v20  ;;  %501 = vmatmul.bf16.gmra.mxu2 %v294_v21 }
  0x7c   : > { %550 = vmatmul.bf16.gmra.mxu1 %v279_v22  ;;  %590 = vmatmul.bf16.gmra.mxu3 %v295_v23 }
  0x8b   : > { %466 = vmatmul.bf16.gmra.mxu0 %v280_v32  ;;  %506 = vmatmul.bf16.gmra.mxu2 %v296_v33 }
  0x8c   : > { %555 = vmatmul.bf16.gmra.mxu1 %v281_v34  ;;  %595 = vmatmul.bf16.gmra.mxu3 %v297_v35 }
  0x9b   : > { %471 = vmatmul.bf16.gmra.mxu0 %v282_v44  ;;  %511 = vmatmul.bf16.gmra.mxu2 %v298_v45 }
  0x9c   : > { %560 = vmatmul.bf16.gmra.mxu1 %v283_v46  ;;  %600 = vmatmul.bf16.gmra.mxu3 %v299_v47 }
  0xa8   : > { %v437_v48 = vpop.f32.mrf.mxu0 }
  0xa9   : > { %v526_v50 = vpop.f32.mrf.mxu1 }
  0xaa   : > { %v527_v51 = vadd.f32 %v526_v50, %v437_v48 }
  0xac   : > { %v610_v53 = vmul.f32 %v1081_v49, %v527_v51 }
  0xae   : > { %v646_v54 = vadd.f32 %v1086_v52, %v610_v53  ;;  %v477_v55 = vpop.f32.mrf.mxu2 }
  0xaf   : > { %v566_v56 = vpop.f32.mrf.mxu3 }
  0xb0   : > { %v678_v57 = vmax.f32 %v646_v54, 0.0  ;;  %v567_v58 = vadd.f32 %v566_v56, %v477_v55  ;;  %v439_v59 = vpop.f32.mrf.mxu0 }
  0xb1   : > { %v528_v60 = vpop.f32.mrf.mxu1 }
  0xb2   : > { %710 = vst [vmem:[%s1094_s11] sm:$0xff] %v678_v57  ;;  %v626_v61 = vmul.f32 %v1081_v49, %v567_v58  ;;  %v529_v62 = vadd.f32 %v528_v60, %v439_v59 }
  0xb4   : > { %v662_v63 = vadd.f32 %v1086_v52, %v626_v61  ;;  %v611_v0 = vmul.f32 %v1081_v49, %v529_v62 }
  0xb6   : > { %v694_v1 = vmax.f32 %v662_v63, 0.0  ;;  %v647_v2 = vadd.f32 %v1086_v52, %v611_v0  ;;  %v479_v3 = vpop.f32.mrf.mxu2 }
  0xb7   : > { %v568_v4 = vpop.f32.mrf.mxu3 }
  0xb8   : > { %726 = vst [vmem:[%s1094_s11 + $0x80] sm:$0xff] %v694_v1  ;;  %v679_v5 = vmax.f32 %v647_v2, 0.0  ;;  %v569_v6 = vadd.f32 %v568_v4, %v479_v3  ;;  %v442_v7 = vpop.f32.mrf.mxu0 }
  0xb9   : > { %v531_v8 = vpop.f32.mrf.mxu1 }
  0xba   : > { %711 = vst [vmem:[%s1094_s11 + $0x8] sm:$0xff] %v679_v5  ;;  %v627_v9 = vmul.f32 %v1081_v49, %v569_v6  ;;  %v532_v10 = vadd.f32 %v531_v8, %v442_v7 }
  0xbc   : > { %v663_v11 = vadd.f32 %v1086_v52, %v627_v9  ;;  %v612_v12 = vmul.f32 %v1081_v49, %v532_v10 }
  0xbe   : > { %v695_v13 = vmax.f32 %v663_v11, 0.0  ;;  %v648_v14 = vadd.f32 %v1086_v52, %v612_v12  ;;  %v482_v15 = vpop.f32.mrf.mxu2 }
  0xbf   : > { %v571_v16 = vpop.f32.mrf.mxu3 }
  0xc0   : > { %727 = vst [vmem:[%s1094_s11 + $0x88] sm:$0xff] %v695_v13  ;;  %v680_v17 = vmax.f32 %v648_v14, 0.0  ;;  %v572_v18 = vadd.f32 %v571_v16, %v482_v15  ;;  %v444_v19 = vpop.f32.mrf.mxu0 }
  0xc1   : > { %v533_v20 = vpop.f32.mrf.mxu1 }
  0xc2   : > { %712 = vst [vmem:[%s1094_s11 + $0x10] sm:$0xff] %v680_v17  ;;  %v628_v21 = vmul.f32 %v1081_v49, %v572_v18  ;;  %v534_v22 = vadd.f32 %v533_v20, %v444_v19 }
  0xc4   : > { %v664_v23 = vadd.f32 %v1086_v52, %v628_v21  ;;  %v613_v24 = vmul.f32 %v1081_v49, %v534_v22 }
  0xc6   : > { %v696_v25 = vmax.f32 %v664_v23, 0.0  ;;  %v649_v26 = vadd.f32 %v1086_v52, %v613_v24  ;;  %v484_v27 = vpop.f32.mrf.mxu2 }
  0xc7   : > { %v573_v28 = vpop.f32.mrf.mxu3 }
  0xc8   : > { %728 = vst [vmem:[%s1094_s11 + $0x90] sm:$0xff] %v696_v25  ;;  %v681_v29 = vmax.f32 %v649_v26, 0.0  ;;  %v574_v30 = vadd.f32 %v573_v28, %v484_v27  ;;  %v447_v31 = vpop.f32.mrf.mxu0 }
  0xc9   : > { %v536_v32 = vpop.f32.mrf.mxu1 }
  0xca   : > { %713 = vst [vmem:[%s1094_s11 + $0x18] sm:$0xff] %v681_v29  ;;  %v629_v33 = vmul.f32 %v1081_v49, %v574_v30  ;;  %v537_v34 = vadd.f32 %v536_v32, %v447_v31 }
  0xcc   : > { %v665_v35 = vadd.f32 %v1086_v52, %v629_v33  ;;  %v614_v36 = vmul.f32 %v1081_v49, %v537_v34 }
  0xce   : > { %v697_v37 = vmax.f32 %v665_v35, 0.0  ;;  %v650_v38 = vadd.f32 %v1086_v52, %v614_v36  ;;  %v487_v39 = vpop.f32.mrf.mxu2 }
  0xcf   : > { %v576_v40 = vpop.f32.mrf.mxu3 }
  0xd0   : > { %729 = vst [vmem:[%s1094_s11 + $0x98] sm:$0xff] %v697_v37  ;;  %v682_v41 = vmax.f32 %v650_v38, 0.0  ;;  %v577_v42 = vadd.f32 %v576_v40, %v487_v39  ;;  %v449_v43 = vpop.f32.mrf.mxu0 }
  0xd1   : > { %v538_v44 = vpop.f32.mrf.mxu1 }
  0xd2   : > { %714 = vst [vmem:[%s1094_s11 + $0x20] sm:$0xff] %v682_v41  ;;  %v630_v45 = vmul.f32 %v1081_v49, %v577_v42  ;;  %v539_v46 = vadd.f32 %v538_v44, %v449_v43 }
  0xd4   : > { %v666_v47 = vadd.f32 %v1086_v52, %v630_v45  ;;  %v615_v48 = vmul.f32 %v1081_v49, %v539_v46 }
  0xd6   : > { %v698_v50 = vmax.f32 %v666_v47, 0.0  ;;  %v651_v51 = vadd.f32 %v1086_v52, %v615_v48  ;;  %v489_v53 = vpop.f32.mrf.mxu2 }
  0xd7   : > { %v578_v54 = vpop.f32.mrf.mxu3 }
  0xd8   : > { %730 = vst [vmem:[%s1094_s11 + $0xa0] sm:$0xff] %v698_v50  ;;  %v683_v55 = vmax.f32 %v651_v51, 0.0  ;;  %v579_v56 = vadd.f32 %v578_v54, %v489_v53  ;;  %v452_v57 = vpop.f32.mrf.mxu0 }
  0xd9   : > { %v541_v58 = vpop.f32.mrf.mxu1 }
  0xda   : > { %715 = vst [vmem:[%s1094_s11 + $0x28] sm:$0xff] %v683_v55  ;;  %v631_v59 = vmul.f32 %v1081_v49, %v579_v56  ;;  %v542_v60 = vadd.f32 %v541_v58, %v452_v57 }
  0xdc   : > { %v667_v61 = vadd.f32 %v1086_v52, %v631_v59  ;;  %v616_v62 = vmul.f32 %v1081_v49, %v542_v60 }
  0xde   : > { %v699_v63 = vmax.f32 %v667_v61, 0.0  ;;  %v652_v0 = vadd.f32 %v1086_v52, %v616_v62  ;;  %v492_v1 = vpop.f32.mrf.mxu2 }
  0xdf   : > { %v581_v2 = vpop.f32.mrf.mxu3 }
  0xe0   : > { %731 = vst [vmem:[%s1094_s11 + $0xa8] sm:$0xff] %v699_v63  ;;  %v684_v3 = vmax.f32 %v652_v0, 0.0  ;;  %v582_v4 = vadd.f32 %v581_v2, %v492_v1  ;;  %v454_v5 = vpop.f32.mrf.mxu0 }
  0xe1   : > { %v543_v6 = vpop.f32.mrf.mxu1 }
  0xe2   : > { %716 = vst [vmem:[%s1094_s11 + $0x30] sm:$0xff] %v684_v3  ;;  %v632_v7 = vmul.f32 %v1081_v49, %v582_v4  ;;  %v544_v8 = vadd.f32 %v543_v6, %v454_v5 }
  0xe4   : > { %v668_v9 = vadd.f32 %v1086_v52, %v632_v7  ;;  %v617_v10 = vmul.f32 %v1081_v49, %v544_v8 }
  0xe6   : > { %v700_v11 = vmax.f32 %v668_v9, 0.0  ;;  %v653_v12 = vadd.f32 %v1086_v52, %v617_v10  ;;  %v494_v13 = vpop.f32.mrf.mxu2 }
  0xe7   : > { %v583_v14 = vpop.f32.mrf.mxu3 }
  0xe8   : > { %732 = vst [vmem:[%s1094_s11 + $0xb0] sm:$0xff] %v700_v11  ;;  %v685_v15 = vmax.f32 %v653_v12, 0.0  ;;  %v584_v16 = vadd.f32 %v583_v14, %v494_v13  ;;  %v457_v17 = vpop.f32.mrf.mxu0 }
  0xe9   : > { %v546_v18 = vpop.f32.mrf.mxu1 }
  0xea   : > { %717 = vst [vmem:[%s1094_s11 + $0x38] sm:$0xff] %v685_v15  ;;  %v633_v19 = vmul.f32 %v1081_v49, %v584_v16  ;;  %v547_v20 = vadd.f32 %v546_v18, %v457_v17 }
  0xec   : > { %v669_v21 = vadd.f32 %v1086_v52, %v633_v19  ;;  %v618_v22 = vmul.f32 %v1081_v49, %v547_v20 }
  0xee   : > { %v701_v23 = vmax.f32 %v669_v21, 0.0  ;;  %v654_v24 = vadd.f32 %v1086_v52, %v618_v22  ;;  %v497_v25 = vpop.f32.mrf.mxu2 }
  0xef   : > { %v586_v26 = vpop.f32.mrf.mxu3 }
  0xf0   : > { %733 = vst [vmem:[%s1094_s11 + $0xb8] sm:$0xff] %v701_v23  ;;  %v686_v27 = vmax.f32 %v654_v24, 0.0  ;;  %v587_v28 = vadd.f32 %v586_v26, %v497_v25  ;;  %v459_v29 = vpop.f32.mrf.mxu0 }
  0xf1   : > { %v548_v30 = vpop.f32.mrf.mxu1 }
  0xf2   : > { %718 = vst [vmem:[%s1094_s11 + $0x40] sm:$0xff] %v686_v27  ;;  %v634_v31 = vmul.f32 %v1081_v49, %v587_v28  ;;  %v549_v32 = vadd.f32 %v548_v30, %v459_v29 }
  0xf4   : > { %v670_v33 = vadd.f32 %v1086_v52, %v634_v31  ;;  %v619_v34 = vmul.f32 %v1081_v49, %v549_v32 }
  0xf6   : > { %v702_v35 = vmax.f32 %v670_v33, 0.0  ;;  %v655_v36 = vadd.f32 %v1086_v52, %v619_v34  ;;  %v499_v37 = vpop.f32.mrf.mxu2 }
  0xf7   : > { %v588_v38 = vpop.f32.mrf.mxu3 }
  0xf8   : > { %734 = vst [vmem:[%s1094_s11 + $0xc0] sm:$0xff] %v702_v35  ;;  %v687_v39 = vmax.f32 %v655_v36, 0.0  ;;  %v589_v40 = vadd.f32 %v588_v38, %v499_v37  ;;  %v462_v41 = vpop.f32.mrf.mxu0 }
  0xf9   : > { %v551_v42 = vpop.f32.mrf.mxu1 }
  0xfa   : > { %719 = vst [vmem:[%s1094_s11 + $0x48] sm:$0xff] %v687_v39  ;;  %v635_v43 = vmul.f32 %v1081_v49, %v589_v40  ;;  %v552_v44 = vadd.f32 %v551_v42, %v462_v41 }
  0xfc   : > { %v671_v45 = vadd.f32 %v1086_v52, %v635_v43  ;;  %v620_v46 = vmul.f32 %v1081_v49, %v552_v44 }
  0xfe   : > { %v703_v47 = vmax.f32 %v671_v45, 0.0  ;;  %v656_v48 = vadd.f32 %v1086_v52, %v620_v46  ;;  %v502_v50 = vpop.f32.mrf.mxu2 }
  0xff   : > { %v591_v51 = vpop.f32.mrf.mxu3 }
 0x100   : > { %735 = vst [vmem:[%s1094_s11 + $0xc8] sm:$0xff] %v703_v47  ;;  %v688_v53 = vmax.f32 %v656_v48, 0.0  ;;  %v592_v54 = vadd.f32 %v591_v51, %v502_v50  ;;  %v464_v55 = vpop.f32.mrf.mxu0 }
 0x101   : > { %v553_v56 = vpop.f32.mrf.mxu1 }
 0x102   : > { %720 = vst [vmem:[%s1094_s11 + $0x50] sm:$0xff] %v688_v53  ;;  %v636_v57 = vmul.f32 %v1081_v49, %v592_v54  ;;  %v554_v58 = vadd.f32 %v553_v56, %v464_v55 }
 0x104   : > { %v672_v59 = vadd.f32 %v1086_v52, %v636_v57  ;;  %v621_v60 = vmul.f32 %v1081_v49, %v554_v58 }
 0x106   : > { %v704_v61 = vmax.f32 %v672_v59, 0.0  ;;  %v657_v62 = vadd.f32 %v1086_v52, %v621_v60  ;;  %v504_v63 = vpop.f32.mrf.mxu2 }
 0x107   : > { %v593_v0 = vpop.f32.mrf.mxu3 }
 0x108   : > { %736 = vst [vmem:[%s1094_s11 + $0xd0] sm:$0xff] %v704_v61  ;;  %v689_v1 = vmax.f32 %v657_v62, 0.0  ;;  %v594_v2 = vadd.f32 %v593_v0, %v504_v63  ;;  %v467_v3 = vpop.f32.mrf.mxu0 }
 0x109   : > { %v556_v4 = vpop.f32.mrf.mxu1 }
 0x10a   : > { %721 = vst [vmem:[%s1094_s11 + $0x58] sm:$0xff] %v689_v1  ;;  %v637_v5 = vmul.f32 %v1081_v49, %v594_v2  ;;  %v557_v6 = vadd.f32 %v556_v4, %v467_v3 }
 0x10c   : > { %v673_v7 = vadd.f32 %v1086_v52, %v637_v5  ;;  %v622_v8 = vmul.f32 %v1081_v49, %v557_v6 }
 0x10e   : > { %v705_v9 = vmax.f32 %v673_v7, 0.0  ;;  %v658_v10 = vadd.f32 %v1086_v52, %v622_v8  ;;  %v507_v11 = vpop.f32.mrf.mxu2 }
 0x10f   : > { %v596_v12 = vpop.f32.mrf.mxu3 }
 0x110   : > { %737 = vst [vmem:[%s1094_s11 + $0xd8] sm:$0xff] %v705_v9  ;;  %v690_v13 = vmax.f32 %v658_v10, 0.0  ;;  %v597_v14 = vadd.f32 %v596_v12, %v507_v11  ;;  %v469_v15 = vpop.f32.mrf.mxu0 }
 0x111   : > { %v558_v16 = vpop.f32.mrf.mxu1 }
 0x112   : > { %722 = vst [vmem:[%s1094_s11 + $0x60] sm:$0xff] %v690_v13  ;;  %v638_v17 = vmul.f32 %v1081_v49, %v597_v14  ;;  %v559_v18 = vadd.f32 %v558_v16, %v469_v15 }
 0x114   : > { %v674_v19 = vadd.f32 %v1086_v52, %v638_v17  ;;  %v623_v20 = vmul.f32 %v1081_v49, %v559_v18 }
 0x116   : > { %v706_v21 = vmax.f32 %v674_v19, 0.0  ;;  %v659_v22 = vadd.f32 %v1086_v52, %v623_v20  ;;  %v509_v23 = vpop.f32.mrf.mxu2 }
 0x117   : > { %v598_v24 = vpop.f32.mrf.mxu3 }
 0x118   : > { %738 = vst [vmem:[%s1094_s11 + $0xe0] sm:$0xff] %v706_v21  ;;  %v691_v25 = vmax.f32 %v659_v22, 0.0  ;;  %v599_v26 = vadd.f32 %v598_v24, %v509_v23  ;;  %v472_v27 = vpop.f32.mrf.mxu0 }
 0x119   : > { %v561_v28 = vpop.f32.mrf.mxu1 }
 0x11a   : > { %723 = vst [vmem:[%s1094_s11 + $0x68] sm:$0xff] %v691_v25  ;;  %v639_v29 = vmul.f32 %v1081_v49, %v599_v26  ;;  %v562_v30 = vadd.f32 %v561_v28, %v472_v27 }
 0x11c   : > { %v675_v31 = vadd.f32 %v1086_v52, %v639_v29  ;;  %v624_v32 = vmul.f32 %v1081_v49, %v562_v30 }
 0x11e   : > { %v707_v33 = vmax.f32 %v675_v31, 0.0  ;;  %v660_v34 = vadd.f32 %v1086_v52, %v624_v32  ;;  %v512_v35 = vpop.f32.mrf.mxu2 }
 0x11f   : > { %v601_v36 = vpop.f32.mrf.mxu3 }
 0x120   : > { %739 = vst [vmem:[%s1094_s11 + $0xe8] sm:$0xff] %v707_v33  ;;  %v692_v37 = vmax.f32 %v660_v34, 0.0  ;;  %v602_v38 = vadd.f32 %v601_v36, %v512_v35  ;;  %v474_v39 = vpop.f32.mrf.mxu0 }
 0x121   : > { %v563_v40 = vpop.f32.mrf.mxu1 }
 0x122   : > { %724 = vst [vmem:[%s1094_s11 + $0x70] sm:$0xff] %v692_v37  ;;  %v640_v41 = vmul.f32 %v1081_v49, %v602_v38  ;;  %v564_v42 = vadd.f32 %v563_v40, %v474_v39 }
 0x124   : > { %v676_v43 = vadd.f32 %v1086_v52, %v640_v41  ;;  %v625_v44 = vmul.f32 %v1081_v49, %v564_v42 }
 0x126   : > { %v708_v45 = vmax.f32 %v676_v43, 0.0  ;;  %v661_v46 = vadd.f32 %v1086_v52, %v625_v44  ;;  %v514_v47 = vpop.f32.mrf.mxu2 }
 0x127   : > { %v603_v48 = vpop.f32.mrf.mxu3 }
 0x128   : > { %740 = vst [vmem:[%s1094_s11 + $0xf0] sm:$0xff] %v708_v45  ;;  %v693_v50 = vmax.f32 %v661_v46, 0.0  ;;  %v604_v51 = vadd.f32 %v603_v48, %v514_v47 }
 0x12a   : > { %725 = vst [vmem:[%s1094_s11 + $0x78] sm:$0xff] %v693_v50  ;;  %v641_v53 = vmul.f32 %v1081_v49, %v604_v51 }
 0x12c   : > { %v677_v54 = vadd.f32 %v1086_v52, %v641_v53 }
 0x12e   : > { %v709_v55 = vmax.f32 %v677_v54, 0.0 }
 0x130   : > { %741 = vst [vmem:[%s1094_s11 + $0xf8] sm:$0xff] %v709_v55 }
 0x131 PF: > { %s14_s15 = sadd.s32 1, %s923_s15  }
 0x132   : > { %p11_p4 = scmp.ge.s32.totalorder %s14_s15, 4  }
 0x134   :  { %13 = sbr.rel (!%p11_p4) target bundleno = 1 (0x1), region = 66 }

// kernel: cvae_forward.13
= control target key start
LH: loop header
LB: loop body
LE: loop exit
PB: predicated region body
PF: predicated region fallthrough
CT: control target
= control target key end

     0   :  { %s19741_s1 = inlined_call_operand.vmem [shape: bf16[1024,2048], index: 1, kind: input, shape index: {}]   ;;  %s19742_s0 = inlined_call_operand.vmem [shape: f32[8,1024], index: 0, kind: input, shape index: {}]   ;;  %s19743_s2 = inlined_call_operand.vmem [shape: f32[1,2048], index: 2, kind: input, shape index: {}]   ;;  %s19744_s3 = inlined_call_operand.vmem [shape: f32[1,2048], index: 3, kind: input, shape index: {}]   ;;  %s19745_s4 = inlined_call_operand.vmem [shape: f32[8,2048], index: 4, kind: output, shape index: {}]  }
   0x1   :  { %v8415_v0 = vld [vmem:[%s19741_s1 + $0x380] sm:$0xf] }
   0x2   :  { %v12181_v1 = vld [vmem:[%s19741_s1 + $0x3bc] sm:$0xf0] }
   0x3   :  { %v8927_v2 = vld [vmem:[%s19741_s1 + $0x780] sm:$0xf]  ;;  %v8416_v3 = vor.u32 %v12181_v1, %v8415_v0 }
   0x4   :  { %v12309_v4 = vld [vmem:[%s19741_s1 + $0x7bc] sm:$0xf0] }
   0x5   :  { %v9439_v5 = vld [vmem:[%s19741_s1 + $0xb80] sm:$0xf]  ;;  %v8928_v7 = vor.u32 %v12309_v4, %v8927_v2  ;;  %6177 = vmatpush.bf16.msra.mxu0 %v8416_v3 }
   0x6   :  { %v12437_v6 = vld [vmem:[%s19741_s1 + $0xbbc] sm:$0xf0] }
   0x7   :  { %v9440_v8 = vor.u32 %v12437_v6, %v9439_v5  ;;  %v9951_v9 = vld [vmem:[%s19741_s1 + $0xf80] sm:$0xf]  ;;  %6190 = vmatpush.bf16.msra.mxu1 %v8928_v7 }
   0x8   :  { %v12565_v10 = vld [vmem:[%s19741_s1 + $0xfbc] sm:$0xf0] }
   0x9   :  { %v8351_v11 = vld [vmem:[%s19741_s1 + $0x300] sm:$0xf]  ;;  %v9952_v12 = vor.u32 %v12565_v10, %v9951_v9  ;;  %6203 = vmatpush.bf16.msra.mxu2 %v9440_v8 }
   0xa   :  { %v12165_v13 = vld [vmem:[%s19741_s1 + $0x33c] sm:$0xf0] }
   0xb   :  { %v8863_v14 = vld [vmem:[%s19741_s1 + $0x700] sm:$0xf]  ;;  %v8352_v16 = vor.u32 %v12165_v13, %v8351_v11  ;;  %6216 = vmatpush.bf16.msra.mxu3 %v9952_v12 }
   0xc   :  { %v12293_v15 = vld [vmem:[%s19741_s1 + $0x73c] sm:$0xf0] }
   0xd   :  { %v8864_v17 = vor.u32 %v12293_v15, %v8863_v14  ;;  %v9375_v18 = vld [vmem:[%s19741_s1 + $0xb00] sm:$0xf]  ;;  %6178 = vmatpush.bf16.msra.mxu0 %v8352_v16 }
   0xe   :  { %v12421_v19 = vld [vmem:[%s19741_s1 + $0xb3c] sm:$0xf0] }
   0xf   :  { %v9887_v20 = vld [vmem:[%s19741_s1 + $0xf00] sm:$0xf]  ;;  %v9376_v21 = vor.u32 %v12421_v19, %v9375_v18  ;;  %6191 = vmatpush.bf16.msra.mxu1 %v8864_v17 }
  0x10   :  { %v12549_v22 = vld [vmem:[%s19741_s1 + $0xf3c] sm:$0xf0] }
  0x11   :  { %v8287_v23 = vld [vmem:[%s19741_s1 + $0x280] sm:$0xf]  ;;  %v9888_v25 = vor.u32 %v12549_v22, %v9887_v20  ;;  %6204 = vmatpush.bf16.msra.mxu2 %v9376_v21 }
  0x12   :  { %v12149_v24 = vld [vmem:[%s19741_s1 + $0x2bc] sm:$0xf0] }
  0x13   :  { %v8799_v26 = vld [vmem:[%s19741_s1 + $0x680] sm:$0xf]  ;;  %v8288_v29 = vor.u32 %v12149_v24, %v8287_v23  ;;  %6217 = vmatpush.bf16.msra.mxu3 %v9888_v25 }
  0x14   :  { %v12277_v27 = vld [vmem:[%s19741_s1 + $0x6bc] sm:$0xf0] }
  0x15   :  { %v9311_v28 = vld [vmem:[%s19741_s1 + $0xa80] sm:$0xf]  ;;  %v8800_v33 = vor.u32 %v12277_v27, %v8799_v26  ;;  %6179 = vmatpush.bf16.msra.mxu0 %v8288_v29 }
  0x16   :  { %v12405_v30 = vld [vmem:[%s19741_s1 + $0xabc] sm:$0xf0] }
  0x17   :  { %v9823_v31 = vld [vmem:[%s19741_s1 + $0xe80] sm:$0xf]  ;;  %v9312_v34 = vor.u32 %v12405_v30, %v9311_v28  ;;  %6192 = vmatpush.bf16.msra.mxu1 %v8800_v33 }
  0x18   :  { %v12533_v32 = vld [vmem:[%s19741_s1 + $0xebc] sm:$0xf0] }
  0x19   :  { %v8223_v35 = vld [vmem:[%s19741_s1 + $0x200] sm:$0xf]  ;;  %v9824_v38 = vor.u32 %v12533_v32, %v9823_v31  ;;  %6205 = vmatpush.bf16.msra.mxu2 %v9312_v34 }
  0x1a   :  { %v12133_v36 = vld [vmem:[%s19741_s1 + $0x23c] sm:$0xf0] }
  0x1b   :  { %v8735_v37 = vld [vmem:[%s19741_s1 + $0x600] sm:$0xf]  ;;  %v8224_v44 = vor.u32 %v12133_v36, %v8223_v35  ;;  %6218 = vmatpush.bf16.msra.mxu3 %v9824_v38 }
  0x1c   :  { %v12261_v39 = vld [vmem:[%s19741_s1 + $0x63c] sm:$0xf0] }
  0x1d   :  { %v9247_v40 = vld [vmem:[%s19741_s1 + $0xa00] sm:$0xf]  ;;  %v8736_v45 = vor.u32 %v12261_v39, %v8735_v37  ;;  %6180 = vmatpush.bf16.msra.mxu0 %v8224_v44 }
  0x1e   :  { %v12389_v41 = vld [vmem:[%s19741_s1 + $0xa3c] sm:$0xf0] }
  0x1f   :  { %v9759_v42 = vld [vmem:[%s19741_s1 + $0xe00] sm:$0xf]  ;;  %v9248_v46 = vor.u32 %v12389_v41, %v9247_v40  ;;  %6193 = vmatpush.bf16.msra.mxu1 %v8736_v45 }
  0x20   :  { %v12517_v43 = vld [vmem:[%s19741_s1 + $0xe3c] sm:$0xf0] }
  0x21   :  { %v8159_v47 = vld [vmem:[%s19741_s1 + $0x180] sm:$0xf]  ;;  %v9760_v50 = vor.u32 %v12517_v43, %v9759_v42  ;;  %6206 = vmatpush.bf16.msra.mxu2 %v9248_v46 }
  0x22   :  { %v12117_v48 = vld [vmem:[%s19741_s1 + $0x1bc] sm:$0xf0] }
  0x23   :  { %v8671_v49 = vld [vmem:[%s19741_s1 + $0x580] sm:$0xf]  ;;  %v8160_v56 = vor.u32 %v12117_v48, %v8159_v47  ;;  %6219 = vmatpush.bf16.msra.mxu3 %v9760_v50 }
  0x24   :  { %v12245_v51 = vld [vmem:[%s19741_s1 + $0x5bc] sm:$0xf0] }
  0x25   :  { %v9183_v52 = vld [vmem:[%s19741_s1 + $0x980] sm:$0xf]  ;;  %v8672_v57 = vor.u32 %v12245_v51, %v8671_v49  ;;  %6181 = vmatpush.bf16.msra.mxu0 %v8160_v56 }
  0x26   :  { %v12373_v53 = vld [vmem:[%s19741_s1 + $0x9bc] sm:$0xf0] }
  0x27   :  { %v9695_v54 = vld [vmem:[%s19741_s1 + $0xd80] sm:$0xf]  ;;  %v9184_v58 = vor.u32 %v12373_v53, %v9183_v52  ;;  %6194 = vmatpush.bf16.msra.mxu1 %v8672_v57 }
  0x28   :  { %v12501_v55 = vld [vmem:[%s19741_s1 + $0xdbc] sm:$0xf0] }
  0x29   :  { %v8095_v59 = vld [vmem:[%s19741_s1 + $0x100] sm:$0xf]  ;;  %v9696_v62 = vor.u32 %v12501_v55, %v9695_v54  ;;  %6207 = vmatpush.bf16.msra.mxu2 %v9184_v58  ;;  %v19_v58 = vld [vmem:[%s19742_s0 + $0x10] sm:$0xff] }
  0x2a   :  { %v12101_v60 = vld [vmem:[%s19741_s1 + $0x13c] sm:$0xf0] }
  0x2b   :  { %v8607_v61 = vld [vmem:[%s19741_s1 + $0x500] sm:$0xf]  ;;  %v8096_v4 = vor.u32 %v12101_v60, %v8095_v59  ;;  %6220 = vmatpush.bf16.msra.mxu3 %v9696_v62 }
  0x2c   :  { %v12229_v63 = vld [vmem:[%s19741_s1 + $0x53c] sm:$0xf0] }
  0x2d   :  { %v9119_v0 = vld [vmem:[%s19741_s1 + $0x900] sm:$0xf]  ;;  %v8608_v5 = vor.u32 %v12229_v63, %v8607_v61  ;;  %6182 = vmatpush.bf16.msra.mxu0 %v8096_v4  ;;  %v13381_v63 = vpack.c.bf16 %v19_v58, %v19_v58 }
  0x2e   :  { %v12357_v1 = vld [vmem:[%s19741_s1 + $0x93c] sm:$0xf0] }
  0x2f   :  { %v9631_v2 = vld [vmem:[%s19741_s1 + $0xd00] sm:$0xf]  ;;  %v9120_v6 = vor.u32 %v12357_v1, %v9119_v0  ;;  %6195 = vmatpush.bf16.msra.mxu1 %v8608_v5 }
  0x30   :  { %v12485_v3 = vld [vmem:[%s19741_s1 + $0xd3c] sm:$0xf0] }
  0x31   :  { %v8031_v7 = vld [vmem:[%s19741_s1 + $0x80] sm:$0xf]  ;;  %v9632_v10 = vor.u32 %v12485_v3, %v9631_v2  ;;  %6208 = vmatpush.bf16.msra.mxu2 %v9120_v6 }
  0x32   :  { %v12085_v8 = vld [vmem:[%s19741_s1 + $0xbc] sm:$0xf0] }
  0x33   :  { %v8543_v9 = vld [vmem:[%s19741_s1 + $0x480] sm:$0xf]  ;;  %v8032_v16 = vor.u32 %v12085_v8, %v8031_v7  ;;  %6221 = vmatpush.bf16.msra.mxu3 %v9632_v10  ;;  %v20_v10 = vld [vmem:[%s19742_s0 + $0x18] sm:$0xff] }
  0x34   :  { %v12213_v11 = vld [vmem:[%s19741_s1 + $0x4bc] sm:$0xf0] }
  0x35   :  { %v9055_v12 = vld [vmem:[%s19741_s1 + $0x880] sm:$0xf]  ;;  %v8544_v19 = vor.u32 %v12213_v11, %v8543_v9  ;;  %6183 = vmatpush.bf16.msra.mxu0 %v8032_v16  ;;  %v18_v11 = vld [vmem:[%s19742_s0 + $0x8] sm:$0xff]  ;;  %v13419_v16 = vpack.c.bf16 %v20_v10, %v20_v10  ;;  %v8929_v10 = vld [vmem:[%s19741_s1 + $0x7c0] sm:$0xf0] }
  0x36   :  { %v12341_v13 = vld [vmem:[%s19741_s1 + $0x8bc] sm:$0xf0] }
  0x37   :  { %v9567_v14 = vld [vmem:[%s19741_s1 + $0xc80] sm:$0xf]  ;;  %v9056_v20 = vor.u32 %v12341_v13, %v9055_v12  ;;  %6196 = vmatpush.bf16.msra.mxu1 %v8544_v19 }
  0x38   :  { %v12469_v15 = vld [vmem:[%s19741_s1 + $0xcbc] sm:$0xf0] }
  0x39   :  { %v7967_v17 = vld [vmem:[%s19741_s1] sm:$0xf]  ;;  %v9568_v24 = vor.u32 %v12469_v15, %v9567_v14  ;;  %6209 = vmatpush.bf16.msra.mxu2 %v9056_v20 }
  0x3a   :  { %v12069_v18 = vld [vmem:[%s19741_s1 + $0x3c] sm:$0xf0] }
  0x3b   :  { %v8479_v21 = vld [vmem:[%s19741_s1 + $0x400] sm:$0xf]  ;;  %v7968_v31 = vor.u32 %v12069_v18, %v7967_v17  ;;  %6222 = vmatpush.bf16.msra.mxu3 %v9568_v24  ;;  %v13421_v17 = vpack.c.bf16 %v18_v11, %v18_v11  ;;  %v12429_v11 = vld [vmem:[%s19741_s1 + $0xb84] sm:$0xf] }
  0x3c   :  { %v12197_v22 = vld [vmem:[%s19741_s1 + $0x43c] sm:$0xf0] }
  0x3d   :  { %v8991_v23 = vld [vmem:[%s19741_s1 + $0x800] sm:$0xf]  ;;  %v8480_v35 = vor.u32 %v12197_v22, %v8479_v21  ;;  %6184 = vmatpush.bf16.msra.mxu0 %v7968_v31 }
  0x3e   :  { %v12325_v25 = vld [vmem:[%s19741_s1 + $0x83c] sm:$0xf0] }
  0x3f   :  { %v9503_v26 = vld [vmem:[%s19741_s1 + $0xc00] sm:$0xf]  ;;  %v8992_v36 = vor.u32 %v12325_v25, %v8991_v23  ;;  %6197 = vmatpush.bf16.msra.mxu1 %v8480_v35 }
  0x40   :  { %v12453_v27 = vld [vmem:[%s19741_s1 + $0xc3c] sm:$0xf0] }
  0x41   :  { %v10463_v28 = vld [vmem:[%s19741_s1 + $0x1380] sm:$0xf]  ;;  %v9504_v39 = vor.u32 %v12453_v27, %v9503_v26  ;;  %6210 = vmatpush.bf16.msra.mxu2 %v8992_v36 }
  0x42   :  { %v12693_v29 = vld [vmem:[%s19741_s1 + $0x13bc] sm:$0xf0]  ;;  %6198 = vmatmul.bf16.vlgmr.msra.gmra.mxu1 %v13421_v17 }
  0x43   :  { %v10975_v30 = vld [vmem:[%s19741_s1 + $0x1780] sm:$0xf]  ;;  %v10464_v40 = vor.u32 %v12693_v29, %v10463_v28  ;;  %6223 = vmatpush.bf16.msra.mxu3 %v9504_v39 }
  0x44   :  { %v12821_v32 = vld [vmem:[%s19741_s1 + $0x17bc] sm:$0xf0]  ;;  %6211 = vmatmul.bf16.vlgmr.msra.gmra.mxu2 %v13381_v63 }
  0x45   :  { %v11487_v33 = vld [vmem:[%s19741_s1 + $0x1b80] sm:$0xf]  ;;  %v10976_v41 = vor.u32 %v12821_v32, %v10975_v30  ;;  %6229 = vmatpush.bf16.msrb.mxu0 %v10464_v40 }
  0x46   :  { %v12949_v34 = vld [vmem:[%s19741_s1 + $0x1bbc] sm:$0xf0]  ;;  %6224 = vmatmul.bf16.vlgmr.msra.gmra.mxu3 %v13419_v16 }
  0x47   :  { %v11999_v37 = vld [vmem:[%s19741_s1 + $0x1f80] sm:$0xf]  ;;  %v11488_v42 = vor.u32 %v12949_v34, %v11487_v33  ;;  %6242 = vmatpush.bf16.msrb.mxu1 %v10976_v41 }
  0x48   :  { %v13077_v38 = vld [vmem:[%s19741_s1 + $0x1fbc] sm:$0xf0] }
  0x49   :  { %v10399_v43 = vld [vmem:[%s19741_s1 + $0x1300] sm:$0xf]  ;;  %v12000_v46 = vor.u32 %v13077_v38, %v11999_v37  ;;  %6255 = vmatpush.bf16.msrb.mxu2 %v11488_v42 }
  0x4a   :  { %v12677_v44 = vld [vmem:[%s19741_s1 + $0x133c] sm:$0xf0] }
  0x4b   :  { %v10911_v45 = vld [vmem:[%s19741_s1 + $0x1700] sm:$0xf]  ;;  %v10400_v52 = vor.u32 %v12677_v44, %v10399_v43  ;;  %6268 = vmatpush.bf16.msrb.mxu3 %v12000_v46 }
  0x4c   :  { %v12805_v47 = vld [vmem:[%s19741_s1 + $0x173c] sm:$0xf0] }
  0x4d   :  { %v11423_v48 = vld [vmem:[%s19741_s1 + $0x1b00] sm:$0xf]  ;;  %v10912_v54 = vor.u32 %v12805_v47, %v10911_v45  ;;  %6230 = vmatpush.bf16.msrb.mxu0 %v10400_v52 }
  0x4e   :  { %v12933_v49 = vld [vmem:[%s19741_s1 + $0x1b3c] sm:$0xf0] }
  0x4f   :  { %v11935_v50 = vld [vmem:[%s19741_s1 + $0x1f00] sm:$0xf]  ;;  %v11424_v55 = vor.u32 %v12933_v49, %v11423_v48  ;;  %6243 = vmatpush.bf16.msrb.mxu1 %v10912_v54 }
  0x50   :  { %v13061_v51 = vld [vmem:[%s19741_s1 + $0x1f3c] sm:$0xf0] }
  0x51   :  { %v10335_v53 = vld [vmem:[%s19741_s1 + $0x1280] sm:$0xf]  ;;  %v11936_v59 = vor.u32 %v13061_v51, %v11935_v50  ;;  %6256 = vmatpush.bf16.msrb.mxu2 %v11424_v55 }
  0x52   :  { %v12661_v56 = vld [vmem:[%s19741_s1 + $0x12bc] sm:$0xf0] }
  0x53   :  { %v10847_v57 = vld [vmem:[%s19741_s1 + $0x1680] sm:$0xf]  ;;  %v10336_v2 = vor.u32 %v12661_v56, %v10335_v53  ;;  %6269 = vmatpush.bf16.msrb.mxu3 %v11936_v59 }
  0x54   :  { %v12789_v60 = vld [vmem:[%s19741_s1 + $0x16bc] sm:$0xf0] }
  0x55   :  { %v11359_v61 = vld [vmem:[%s19741_s1 + $0x1a80] sm:$0xf]  ;;  %v10848_v6 = vor.u32 %v12789_v60, %v10847_v57  ;;  %6231 = vmatpush.bf16.msrb.mxu0 %v10336_v2 }
  0x56   :  { %v12917_v62 = vld [vmem:[%s19741_s1 + $0x1abc] sm:$0xf0] }
  0x57   :  { %v11871_v0 = vld [vmem:[%s19741_s1 + $0x1e80] sm:$0xf]  ;;  %v11360_v7 = vor.u32 %v12917_v62, %v11359_v61  ;;  %6244 = vmatpush.bf16.msrb.mxu1 %v10848_v6  ;;  %v8417_v6 = vld [vmem:[%s19741_s1 + $0x3c0] sm:$0xf0] }
  0x58   :  { %v13045_v1 = vld [vmem:[%s19741_s1 + $0x1ebc] sm:$0xf0] }
  0x59   :  { %v10271_v3 = vld [vmem:[%s19741_s1 + $0x1200] sm:$0xf]  ;;  %v11872_v12 = vor.u32 %v13045_v1, %v11871_v0  ;;  %6257 = vmatpush.bf16.msrb.mxu2 %v11360_v7  ;;  %v12301_v7 = vld [vmem:[%s19741_s1 + $0x784] sm:$0xf] }
  0x5a   :  { %v12645_v4 = vld [vmem:[%s19741_s1 + $0x123c] sm:$0xf0] }
  0x5b   :  { %v17_v5 = vld [vmem:[%s19742_s0] sm:$0xff]  ;;  %v10272_v20 = vor.u32 %v12645_v4, %v10271_v3  ;;  %6270 = vmatpush.bf16.msrb.mxu3 %v11872_v12 }
  0x5c   :  { %v10783_v8 = vld [vmem:[%s19741_s1 + $0x1600] sm:$0xf]  ;;  %v13402_v9 = vpack.c.bf16 %v17_v5, %v17_v5  ;;  %v12173_v5 = vld [vmem:[%s19741_s1 + $0x384] sm:$0xf] }
  0x5d   :  { %v12773_v13 = vld [vmem:[%s19741_s1 + $0x163c] sm:$0xf0]  ;;  %6232 = vmatpush.bf16.msrb.mxu0 %v10272_v20  ;;  %v9441_v12 = vld [vmem:[%s19741_s1 + $0xbc0] sm:$0xf0] }
  0x5e   :  { %v11295_v14 = vld [vmem:[%s19741_s1 + $0x1a00] sm:$0xf]  ;;  %6185 = vmatmul.bf16.vlgmr.msra.gmra.mxu0 %v13402_v9  ;;  %v10784_v21 = vor.u32 %v12773_v13, %v10783_v8 }
  0x5f   :  { %v12901_v15 = vld [vmem:[%s19741_s1 + $0x1a3c] sm:$0xf0] }
  0x60   :  { %v11807_v18 = vld [vmem:[%s19741_s1 + $0x1e00] sm:$0xf]  ;;  %v11296_v22 = vor.u32 %v12901_v15, %v11295_v14  ;;  %6245 = vmatpush.bf16.msrb.mxu1 %v10784_v21  ;;  %v12557_v15 = vld [vmem:[%s19741_s1 + $0xf84] sm:$0xf]  ;;  %v8420_v21 = vor.u32 %v12173_v5, %v8417_v6 }
  0x61   :  { %v13029_v19 = vld [vmem:[%s19741_s1 + $0x1e3c] sm:$0xf0]  ;;  %v8161_v5 = vld [vmem:[%s19741_s1 + $0x1c0] sm:$0xf0] }
  0x62   :  { %v10207_v23 = vld [vmem:[%s19741_s1 + $0x1180] sm:$0xf]  ;;  %v11808_v26 = vor.u32 %v13029_v19, %v11807_v18  ;;  %6258 = vmatpush.bf16.msrb.mxu2 %v11296_v22  ;;  %v9953_v18 = vld [vmem:[%s19741_s1 + $0xfc0] sm:$0xf0]  ;;  %v23_v19 = vld [vmem:[%s19742_s0 + $0x30] sm:$0xff] }
  0x63   :  { %v12629_v24 = vld [vmem:[%s19741_s1 + $0x11bc] sm:$0xf0]  ;;  %v12157_v22 = vld [vmem:[%s19741_s1 + $0x304] sm:$0xf] }
  0x64   :  { %v10719_v25 = vld [vmem:[%s19741_s1 + $0x1580] sm:$0xf]  ;;  %v10208_v32 = vor.u32 %v12629_v24, %v10207_v23  ;;  %6271 = vmatpush.bf16.msrb.mxu3 %v11808_v26  ;;  %v24_v24 = vld [vmem:[%s19742_s0 + $0x38] sm:$0xff]  ;;  %v9444_v26 = vor.u32 %v12429_v11, %v9441_v12  ;;  %v12237_v6 = vld [vmem:[%s19741_s1 + $0x584] sm:$0xf] }
  0x65   :  { %v12757_v27 = vld [vmem:[%s19741_s1 + $0x15bc] sm:$0xf0]  ;;  %v9185_v11 = vld [vmem:[%s19741_s1 + $0x9c0] sm:$0xf0] }
  0x66   :  { %v11231_v28 = vld [vmem:[%s19741_s1 + $0x1980] sm:$0xf]  ;;  %v10720_v33 = vor.u32 %v12757_v27, %v10719_v25  ;;  %6233 = vmatpush.bf16.msrb.mxu0 %v10208_v32  ;;  %v8932_v25 = vor.u32 %v12301_v7, %v8929_v10  ;;  %v8353_v27 = vld [vmem:[%s19741_s1 + $0x340] sm:$0xf0] }
  0x67   :  { %v12885_v29 = vld [vmem:[%s19741_s1 + $0x19bc] sm:$0xf0]  ;;  %v12413_v32 = vld [vmem:[%s19741_s1 + $0xb04] sm:$0xf] }
  0x68   :  { %v11743_v30 = vld [vmem:[%s19741_s1 + $0x1d80] sm:$0xf]  ;;  %v11232_v34 = vor.u32 %v12885_v29, %v11231_v28  ;;  %6246 = vmatpush.bf16.msrb.mxu1 %v10720_v33  ;;  %v12285_v28 = vld [vmem:[%s19741_s1 + $0x704] sm:$0xf]  ;;  %v22_v29 = vld [vmem:[%s19742_s0 + $0x28] sm:$0xff] }
  0x69   :  { %v13013_v31 = vld [vmem:[%s19741_s1 + $0x1dbc] sm:$0xf0]  ;;  %v9377_v33 = vld [vmem:[%s19741_s1 + $0xb40] sm:$0xf0] }
  0x6a   :  { %v10143_v35 = vld [vmem:[%s19741_s1 + $0x1100] sm:$0xf]  ;;  %v11744_v38 = vor.u32 %v13013_v31, %v11743_v30  ;;  %6259 = vmatpush.bf16.msrb.mxu2 %v11232_v34  ;;  %v9956_v30 = vor.u32 %v12557_v15, %v9953_v18  ;;  %v8865_v31 = vld [vmem:[%s19741_s1 + $0x740] sm:$0xf0]  ;;  %v13582_v34 = vpack.c.bf16 %v23_v19, %v23_v19 }
  0x6b   :  { %v12613_v36 = vld [vmem:[%s19741_s1 + $0x113c] sm:$0xf0]  ;;  %v12365_v10 = vld [vmem:[%s19741_s1 + $0x984] sm:$0xf] }
  0x6c   :  { %v10655_v37 = vld [vmem:[%s19741_s1 + $0x1500] sm:$0xf]  ;;  %v10144_v44 = vor.u32 %v12613_v36, %v10143_v35  ;;  %6272 = vmatpush.bf16.msrb.mxu3 %v11744_v38  ;;  %v12541_v35 = vld [vmem:[%s19741_s1 + $0xf04] sm:$0xf]  ;;  %v13592_v38 = vpack.c.bf16 %v24_v24, %v24_v24  ;;  %v9188_v18 = vor.u32 %v12365_v10, %v9185_v11 }
  0x6d   :  { %v12741_v39 = vld [vmem:[%s19741_s1 + $0x153c] sm:$0xf0]  ;;  %v9889_v36 = vld [vmem:[%s19741_s1 + $0xf40] sm:$0xf0] }
  0x6e   :  { %v11167_v40 = vld [vmem:[%s19741_s1 + $0x1900] sm:$0xf]  ;;  %v10656_v45 = vor.u32 %v12741_v39, %v10655_v37  ;;  %6234 = vmatpush.bf16.msrb.mxu0 %v10144_v44  ;;  %v8356_v39 = vor.u32 %v12157_v22, %v8353_v27  ;;  %v8289_v44 = vld [vmem:[%s19741_s1 + $0x2c0] sm:$0xf0] }
  0x6f   :  { %v12869_v41 = vld [vmem:[%s19741_s1 + $0x193c] sm:$0xf0]  ;;  %v12493_v12 = vld [vmem:[%s19741_s1 + $0xd84] sm:$0xf] }
  0x70   :  { %v11679_v42 = vld [vmem:[%s19741_s1 + $0x1d00] sm:$0xf]  ;;  %v11168_v46 = vor.u32 %v12869_v41, %v11167_v40  ;;  %6247 = vmatpush.bf16.msrb.mxu1 %v10656_v45  ;;  %v13594_v40 = vpack.c.bf16 %v22_v29, %v22_v29  ;;  %v8868_v41 = vor.u32 %v12285_v28, %v8865_v31  ;;  %v12269_v45 = vld [vmem:[%s19741_s1 + $0x684] sm:$0xf] }
  0x71   :  { %v12997_v43 = vld [vmem:[%s19741_s1 + $0x1d3c] sm:$0xf0]  ;;  %v12093_v19 = vld [vmem:[%s19741_s1 + $0x104] sm:$0xf] }
  0x72   :  { %v10079_v47 = vld [vmem:[%s19741_s1 + $0x1080] sm:$0xf]  ;;  %v11680_v50 = vor.u32 %v12997_v43, %v11679_v42  ;;  %6260 = vmatpush.bf16.msrb.mxu2 %v11168_v46  ;;  %v9380_v42 = vor.u32 %v12413_v32, %v9377_v33  ;;  %v12141_v43 = vld [vmem:[%s19741_s1 + $0x284] sm:$0xf]  ;;  %v9892_v46 = vor.u32 %v12541_v35, %v9889_v36 }
  0x73   :  { %v12597_v48 = vld [vmem:[%s19741_s1 + $0x10bc] sm:$0xf0]  ;;  %v12349_v24 = vld [vmem:[%s19741_s1 + $0x904] sm:$0xf] }
  0x74   :  { %v10591_v49 = vld [vmem:[%s19741_s1 + $0x1480] sm:$0xf]  ;;  %v10080_v56 = vor.u32 %v12597_v48, %v10079_v47  ;;  %6273 = vmatpush.bf16.msrb.mxu3 %v11680_v50  ;;  %v8801_v47 = vld [vmem:[%s19741_s1 + $0x6c0] sm:$0xf0] }
  0x75   :  { %v12725_v51 = vld [vmem:[%s19741_s1 + $0x14bc] sm:$0xf0]  ;;  %v12397_v48 = vld [vmem:[%s19741_s1 + $0xa84] sm:$0xf] }
  0x76   :  { %v11103_v52 = vld [vmem:[%s19741_s1 + $0x1880] sm:$0xf]  ;;  %v10592_v59 = vor.u32 %v12725_v51, %v10591_v49  ;;  %6235 = vmatpush.bf16.msrb.mxu0 %v10080_v56  ;;  %v9313_v49 = vld [vmem:[%s19741_s1 + $0xac0] sm:$0xf0] }
  0x77   :  { %v12853_v53 = vld [vmem:[%s19741_s1 + $0x18bc] sm:$0xf0]  ;;  %v12525_v50 = vld [vmem:[%s19741_s1 + $0xe84] sm:$0xf] }
  0x78   :  { %v11615_v54 = vld [vmem:[%s19741_s1 + $0x1c80] sm:$0xf]  ;;  %v11104_v60 = vor.u32 %v12853_v53, %v11103_v52  ;;  %6248 = vmatpush.bf16.msrb.mxu1 %v10592_v59  ;;  %v9825_v51 = vld [vmem:[%s19741_s1 + $0xec0] sm:$0xf0]  ;;  %v8292_v52 = vor.u32 %v12141_v43, %v8289_v44  ;;  %v8804_v53 = vor.u32 %v12269_v45, %v8801_v47 }
  0x79   :  { %v12981_v55 = vld [vmem:[%s19741_s1 + $0x1cbc] sm:$0xf0]  ;;  %v8225_v56 = vld [vmem:[%s19741_s1 + $0x240] sm:$0xf0] }
  0x7a   :  { %v10015_v57 = vld [vmem:[%s19741_s1 + $0x1000] sm:$0xf]  ;;  %v11616_v1 = vor.u32 %v12981_v55, %v11615_v54  ;;  %6261 = vmatpush.bf16.msrb.mxu2 %v11104_v60  ;;  %v9316_v54 = vor.u32 %v12397_v48, %v9313_v49  ;;  %v12125_v55 = vld [vmem:[%s19741_s1 + $0x204] sm:$0xf] }
  0x7b   :  { %v12581_v58 = vld [vmem:[%s19741_s1 + $0x103c] sm:$0xf0]  ;;  %v8737_v59 = vld [vmem:[%s19741_s1 + $0x640] sm:$0xf0] }
  0x7c   :  { %v10527_v61 = vld [vmem:[%s19741_s1 + $0x1400] sm:$0xf]  ;;  %v10016_v8 = vor.u32 %v12581_v58, %v10015_v57  ;;  %6274 = vmatpush.bf16.msrb.mxu3 %v11616_v1  ;;  %v12253_v57 = vld [vmem:[%s19741_s1 + $0x604] sm:$0xf]  ;;  %v9828_v58 = vor.u32 %v12525_v50, %v9825_v51  ;;  %v8228_v1 = vor.u32 %v12125_v55, %v8225_v56 }
  0x7d   :  { %v12709_v62 = vld [vmem:[%s19741_s1 + $0x143c] sm:$0xf0]  ;;  %v12381_v60 = vld [vmem:[%s19741_s1 + $0xa04] sm:$0xf] }
  0x7e   :  { %v11039_v0 = vld [vmem:[%s19741_s1 + $0x1800] sm:$0xf]  ;;  %v10528_v13 = vor.u32 %v12709_v62, %v10527_v61  ;;  %6236 = vmatpush.bf16.msrb.mxu0 %v10016_v8  ;;  %v9249_v61 = vld [vmem:[%s19741_s1 + $0xa40] sm:$0xf0] }
  0x7f   :  { %v12837_v2 = vld [vmem:[%s19741_s1 + $0x183c] sm:$0xf0]  ;;  %v12509_v62 = vld [vmem:[%s19741_s1 + $0xe04] sm:$0xf] }
  0x80   :  { %v11551_v3 = vld [vmem:[%s19741_s1 + $0x1c00] sm:$0xf]  ;;  %v11040_v14 = vor.u32 %v12837_v2, %v11039_v0  ;;  %6249 = vmatpush.bf16.msrb.mxu1 %v10528_v13  ;;  %v9761_v0 = vld [vmem:[%s19741_s1 + $0xe40] sm:$0xf0]  ;;  %v8740_v2 = vor.u32 %v12253_v57, %v8737_v59 }
  0x81   :  { %v12965_v4 = vld [vmem:[%s19741_s1 + $0x1c3c] sm:$0xf0]  ;;  %v9764_v7 = vor.u32 %v12509_v62, %v9761_v0  ;;  %v8673_v8 = vld [vmem:[%s19741_s1 + $0x5c0] sm:$0xf0] }
  0x82   :  { %v11552_v20 = vor.u32 %v12965_v4, %v11551_v3  ;;  %v21_v23 = vld [vmem:[%s19742_s0 + $0x20] sm:$0xff]  ;;  %6262 = vmatpush.bf16.msrb.mxu2 %v11040_v14  ;;  %6281 = vmatpush.bf16.msra.mxu0 %v8420_v21  ;;  %v9252_v3 = vor.u32 %v12381_v60, %v9249_v61  ;;  %v8676_v15 = vor.u32 %v12237_v6, %v8673_v8 }
  0x83   :  { %v13590_v37 = vpack.c.bf16 %v21_v23, %v21_v23  ;;  %6250 = vmatmul.bf16.vlgmr.msrb.gmra.mxu1 %v13594_v40  ;;  %v12109_v4 = vld [vmem:[%s19741_s1 + $0x184] sm:$0xf] }
  0x84   :  { %6275 = vmatpush.bf16.msrb.mxu3 %v11552_v20  ;;  %6294 = vmatpush.bf16.msra.mxu1 %v8932_v25  ;;  %v9697_v13 = vld [vmem:[%s19741_s1 + $0xdc0] sm:$0xf0]  ;;  %v8164_v14 = vor.u32 %v12109_v4, %v8161_v5 }
  0x85   :  { %6263 = vmatmul.bf16.vlgmr.msrb.gmra.mxu2 %v13582_v34  ;;  %6237 = vmatmul.bf16.vlgmr.msrb.gmra.mxu0 %v13590_v37  ;;  %v8097_v20 = vld [vmem:[%s19741_s1 + $0x140] sm:$0xf0]  ;;  %v9700_v22 = vor.u32 %v12493_v12, %v9697_v13 }
  0x86   :  { %6307 = vmatpush.bf16.msra.mxu2 %v9444_v26  ;;  %6282 = vmatpush.bf16.msra.mxu0 %v8356_v39  ;;  %v12221_v21 = vld [vmem:[%s19741_s1 + $0x504] sm:$0xf]  ;;  %v8100_v28 = vor.u32 %v12093_v19, %v8097_v20 }
  0x87   :  { %6276 = vmatmul.bf16.vlgmr.msrb.gmra.mxu3 %v13592_v38  ;;  %v8609_v23 = vld [vmem:[%s19741_s1 + $0x540] sm:$0xf0] }
  0x88   :  { %6320 = vmatpush.bf16.msra.mxu3 %v9956_v30  ;;  %6295 = vmatpush.bf16.msra.mxu1 %v8868_v41  ;;  %v9121_v25 = vld [vmem:[%s19741_s1 + $0x940] sm:$0xf0]  ;;  %v8612_v29 = vor.u32 %v12221_v21, %v8609_v23 }
  0x89   :  { %v12477_v26 = vld [vmem:[%s19741_s1 + $0xd04] sm:$0xf]  ;;  %v9124_v30 = vor.u32 %v12349_v24, %v9121_v25 }
  0x8a   :  { %6308 = vmatpush.bf16.msra.mxu2 %v9380_v42  ;;  %6283 = vmatpush.bf16.msra.mxu0 %v8292_v52  ;;  %v9633_v27 = vld [vmem:[%s19741_s1 + $0xd40] sm:$0xf0] }
  0x8b   :  { %v12077_v31 = vld [vmem:[%s19741_s1 + $0x84] sm:$0xf]  ;;  %v9636_v35 = vor.u32 %v12477_v26, %v9633_v27 }
  0x8c   :  { %6321 = vmatpush.bf16.msra.mxu3 %v9892_v46  ;;  %6296 = vmatpush.bf16.msra.mxu1 %v8804_v53  ;;  %v8033_v32 = vld [vmem:[%s19741_s1 + $0xc0] sm:$0xf0] }
  0x8d   :  { %v12205_v33 = vld [vmem:[%s19741_s1 + $0x484] sm:$0xf]  ;;  %v8036_v44 = vor.u32 %v12077_v31, %v8033_v32 }
  0x8e   :  { %6309 = vmatpush.bf16.msra.mxu2 %v9316_v54  ;;  %6284 = vmatpush.bf16.msra.mxu0 %v8228_v1  ;;  %v8545_v36 = vld [vmem:[%s19741_s1 + $0x4c0] sm:$0xf0] }
  0x8f   :  { %v12333_v39 = vld [vmem:[%s19741_s1 + $0x884] sm:$0xf]  ;;  %v8548_v47 = vor.u32 %v12205_v33, %v8545_v36 }
  0x90   :  { %6322 = vmatpush.bf16.msra.mxu3 %v9828_v58  ;;  %6297 = vmatpush.bf16.msra.mxu1 %v8740_v2  ;;  %v9057_v41 = vld [vmem:[%s19741_s1 + $0x8c0] sm:$0xf0] }
  0x91   :  { %v12461_v42 = vld [vmem:[%s19741_s1 + $0xc84] sm:$0xf]  ;;  %v9060_v48 = vor.u32 %v12333_v39, %v9057_v41 }
  0x92   :  { %6310 = vmatpush.bf16.msra.mxu2 %v9252_v3  ;;  %6285 = vmatpush.bf16.msra.mxu0 %v8164_v14  ;;  %v9569_v43 = vld [vmem:[%s19741_s1 + $0xcc0] sm:$0xf0] }
  0x93   :  { %v12061_v45 = vld [vmem:[%s19741_s1 + $0x4] sm:$0xf]  ;;  %v9572_v52 = vor.u32 %v12461_v42, %v9569_v43 }
  0x94   :  { %6323 = vmatpush.bf16.msra.mxu3 %v9764_v7  ;;  %6298 = vmatpush.bf16.msra.mxu1 %v8676_v15  ;;  %v7969_v46 = vld [vmem:[%s19741_s1 + $0x40] sm:$0xf0] }
  0x95   :  { %v12189_v49 = vld [vmem:[%s19741_s1 + $0x404] sm:$0xf]  ;;  %v7972_v59 = vor.u32 %v12061_v45, %v7969_v46 }
  0x96   :  { %6311 = vmatpush.bf16.msra.mxu2 %v9188_v18  ;;  %6286 = vmatpush.bf16.msra.mxu0 %v8100_v28  ;;  %v8481_v50 = vld [vmem:[%s19741_s1 + $0x440] sm:$0xf0] }
  0x97   :  { %v12317_v51 = vld [vmem:[%s19741_s1 + $0x804] sm:$0xf]  ;;  %v8484_v0 = vor.u32 %v12189_v49, %v8481_v50 }
  0x98   :  { %6324 = vmatpush.bf16.msra.mxu3 %v9700_v22  ;;  %6299 = vmatpush.bf16.msra.mxu1 %v8612_v29  ;;  %v8993_v53 = vld [vmem:[%s19741_s1 + $0x840] sm:$0xf0] }
  0x99   :  { %v12445_v54 = vld [vmem:[%s19741_s1 + $0xc04] sm:$0xf]  ;;  %v8996_v1 = vor.u32 %v12317_v51, %v8993_v53 }
  0x9a   :  { %6312 = vmatpush.bf16.msra.mxu2 %v9124_v30  ;;  %v9505_v55 = vld [vmem:[%s19741_s1 + $0xc40] sm:$0xf0]  ;;  %6287 = vmatpush.bf16.msra.mxu0 %v8036_v44 }
  0x9b   :  { %v12685_v56 = vld [vmem:[%s19741_s1 + $0x1384] sm:$0xf]  ;;  %v9508_v4 = vor.u32 %v12445_v54, %v9505_v55 }
  0x9c   :  { %6325 = vmatpush.bf16.msra.mxu3 %v9636_v35  ;;  %v10465_v57 = vld [vmem:[%s19741_s1 + $0x13c0] sm:$0xf0]  ;;  %6300 = vmatpush.bf16.msra.mxu1 %v8548_v47 }
  0x9d   :  { %v12813_v58 = vld [vmem:[%s19741_s1 + $0x1784] sm:$0xf]  ;;  %v10468_v5 = vor.u32 %v12685_v56, %v10465_v57 }
  0x9e   :  { %v10977_v60 = vld [vmem:[%s19741_s1 + $0x17c0] sm:$0xf0]  ;;  %6313 = vmatpush.bf16.msra.mxu2 %v9060_v48  ;;  %6288 = vmatpush.bf16.msra.mxu0 %v7972_v59 }
  0x9f   :  { %v12941_v61 = vld [vmem:[%s19741_s1 + $0x1b84] sm:$0xf]  ;;  %v10980_v6 = vor.u32 %v12813_v58, %v10977_v60 }
  0xa0   :  { %v11489_v62 = vld [vmem:[%s19741_s1 + $0x1bc0] sm:$0xf0]  ;;  %6326 = vmatpush.bf16.msra.mxu3 %v9572_v52  ;;  %6301 = vmatpush.bf16.msra.mxu1 %v8484_v0 }
  0xa1   :  { %v13069_v2 = vld [vmem:[%s19741_s1 + $0x1f84] sm:$0xf]  ;;  %v11492_v7 = vor.u32 %v12941_v61, %v11489_v62  ;;  %6289 = vmatmul.bf16.vlgmr.msra.gmra.mxu0 %v13402_v9 }
  0xa2   :  { %v12001_v3 = vld [vmem:[%s19741_s1 + $0x1fc0] sm:$0xf0]  ;;  %6314 = vmatpush.bf16.msra.mxu2 %v8996_v1  ;;  %6333 = vmatpush.bf16.msrb.mxu0 %v10468_v5 }
  0xa3   :  { %v12669_v8 = vld [vmem:[%s19741_s1 + $0x1304] sm:$0xf]  ;;  %v12004_v12 = vor.u32 %v13069_v2, %v12001_v3  ;;  %6302 = vmatmul.bf16.vlgmr.msra.gmra.mxu1 %v13421_v17 }
  0xa4   :  { %v10401_v10 = vld [vmem:[%s19741_s1 + $0x1340] sm:$0xf0]  ;;  %6327 = vmatpush.bf16.msra.mxu3 %v9508_v4  ;;  %6346 = vmatpush.bf16.msrb.mxu1 %v10980_v6 }
  0xa5   :  { %v12797_v11 = vld [vmem:[%s19741_s1 + $0x1704] sm:$0xf]  ;;  %v10404_v20 = vor.u32 %v12669_v8, %v10401_v10  ;;  %6315 = vmatmul.bf16.vlgmr.msra.gmra.mxu2 %v13381_v63 }
  0xa6   :  { %v10913_v13 = vld [vmem:[%s19741_s1 + $0x1740] sm:$0xf0]  ;;  %6359 = vmatpush.bf16.msrb.mxu2 %v11492_v7 }
  0xa7   :  { %v12925_v14 = vld [vmem:[%s19741_s1 + $0x1b04] sm:$0xf]  ;;  %v10916_v21 = vor.u32 %v12797_v11, %v10913_v13  ;;  %6328 = vmatmul.bf16.vlgmr.msra.gmra.mxu3 %v13419_v16  ;;  %6334 = vmatpush.bf16.msrb.mxu0 %v10404_v20 }
  0xa8   :  { %v11425_v15 = vld [vmem:[%s19741_s1 + $0x1b40] sm:$0xf0]  ;;  %6372 = vmatpush.bf16.msrb.mxu3 %v12004_v12 }
  0xa9   :  { %v13053_v18 = vld [vmem:[%s19741_s1 + $0x1f04] sm:$0xf]  ;;  %v11428_v22 = vor.u32 %v12925_v14, %v11425_v15  ;;  %6347 = vmatpush.bf16.msrb.mxu1 %v10916_v21 }
  0xaa   :  { %v11937_v19 = vld [vmem:[%s19741_s1 + $0x1f40] sm:$0xf0] }
  0xab   :  { %v12653_v23 = vld [vmem:[%s19741_s1 + $0x1284] sm:$0xf]  ;;  %v11940_v26 = vor.u32 %v13053_v18, %v11937_v19  ;;  %6360 = vmatpush.bf16.msrb.mxu2 %v11428_v22 }
  0xac   :  { %v10337_v24 = vld [vmem:[%s19741_s1 + $0x12c0] sm:$0xf0] }
  0xad   :  { %v12781_v25 = vld [vmem:[%s19741_s1 + $0x1684] sm:$0xf]  ;;  %v10340_v32 = vor.u32 %v12653_v23, %v10337_v24  ;;  %6373 = vmatpush.bf16.msrb.mxu3 %v11940_v26 }
  0xae   :  { %v10849_v27 = vld [vmem:[%s19741_s1 + $0x16c0] sm:$0xf0] }
  0xaf   :  { %v12909_v28 = vld [vmem:[%s19741_s1 + $0x1a84] sm:$0xf]  ;;  %v10852_v33 = vor.u32 %v12781_v25, %v10849_v27  ;;  %6335 = vmatpush.bf16.msrb.mxu0 %v10340_v32 }
  0xb0   :  { %v11361_v29 = vld [vmem:[%s19741_s1 + $0x1ac0] sm:$0xf0] }
  0xb1   :  { %v13037_v30 = vld [vmem:[%s19741_s1 + $0x1e84] sm:$0xf]  ;;  %v11364_v35 = vor.u32 %v12909_v28, %v11361_v29  ;;  %6348 = vmatpush.bf16.msrb.mxu1 %v10852_v33 }
  0xb2   :  { %v11873_v31 = vld [vmem:[%s19741_s1 + $0x1ec0] sm:$0xf0] }
  0xb3   :  { %v12637_v36 = vld [vmem:[%s19741_s1 + $0x1204] sm:$0xf]  ;;  %v11876_v42 = vor.u32 %v13037_v30, %v11873_v31  ;;  %6361 = vmatpush.bf16.msrb.mxu2 %v11364_v35 }
  0xb4   :  { %v10273_v39 = vld [vmem:[%s19741_s1 + $0x1240] sm:$0xf0] }
  0xb5   :  { %v12765_v41 = vld [vmem:[%s19741_s1 + $0x1604] sm:$0xf]  ;;  %v10276_v48 = vor.u32 %v12637_v36, %v10273_v39  ;;  %6374 = vmatpush.bf16.msrb.mxu3 %v11876_v42  ;;  %v8423_v39 = vld [vmem:[%s19741_s1 + $0x388] sm:$0xf] }
  0xb6   :  { %v10785_v43 = vld [vmem:[%s19741_s1 + $0x1640] sm:$0xf0]  ;;  %v8935_v42 = vld [vmem:[%s19741_s1 + $0x788] sm:$0xf] }
  0xb7   :  { %v12893_v44 = vld [vmem:[%s19741_s1 + $0x1a04] sm:$0xf]  ;;  %v10788_v49 = vor.u32 %v12765_v41, %v10785_v43  ;;  %6336 = vmatpush.bf16.msrb.mxu0 %v10276_v48  ;;  %v12182_v41 = vld [vmem:[%s19741_s1 + $0x3c4] sm:$0xf0] }
  0xb8   :  { %v11297_v45 = vld [vmem:[%s19741_s1 + $0x1a40] sm:$0xf0] }
  0xb9   :  { %v13021_v46 = vld [vmem:[%s19741_s1 + $0x1e04] sm:$0xf]  ;;  %v11300_v50 = vor.u32 %v12893_v44, %v11297_v45  ;;  %6349 = vmatpush.bf16.msrb.mxu1 %v10788_v49  ;;  %v12310_v44 = vld [vmem:[%s19741_s1 + $0x7c4] sm:$0xf0] }
  0xba   :  { %v11809_v47 = vld [vmem:[%s19741_s1 + $0x1e40] sm:$0xf0]  ;;  %v9447_v45 = vld [vmem:[%s19741_s1 + $0xb88] sm:$0xf] }
  0xbb   :  { %v12621_v51 = vld [vmem:[%s19741_s1 + $0x1184] sm:$0xf]  ;;  %v11812_v54 = vor.u32 %v13021_v46, %v11809_v47  ;;  %6362 = vmatpush.bf16.msrb.mxu2 %v11300_v50  ;;  %v12438_v46 = vld [vmem:[%s19741_s1 + $0xbc4] sm:$0xf0] }
  0xbc   :  { %v10209_v52 = vld [vmem:[%s19741_s1 + $0x11c0] sm:$0xf0]  ;;  %v9959_v49 = vld [vmem:[%s19741_s1 + $0xf88] sm:$0xf] }
  0xbd   :  { %v12749_v53 = vld [vmem:[%s19741_s1 + $0x1584] sm:$0xf]  ;;  %v10212_v60 = vor.u32 %v12621_v51, %v10209_v52  ;;  %6375 = vmatpush.bf16.msrb.mxu3 %v11812_v54  ;;  %v12566_v50 = vld [vmem:[%s19741_s1 + $0xfc4] sm:$0xf0]  ;;  %v8424_v52 = vor.u32 %v12182_v41, %v8423_v39  ;;  %v9448_v54 = vor.u32 %v12438_v46, %v9447_v45 }
  0xbe   :  { %v10721_v55 = vld [vmem:[%s19741_s1 + $0x15c0] sm:$0xf0]  ;;  %v9191_v39 = vld [vmem:[%s19741_s1 + $0x988] sm:$0xf] }
  0xbf   :  { %v12877_v56 = vld [vmem:[%s19741_s1 + $0x1984] sm:$0xf]  ;;  %v10724_v61 = vor.u32 %v12749_v53, %v10721_v55  ;;  %6337 = vmatpush.bf16.msrb.mxu0 %v10212_v60  ;;  %v8936_v53 = vor.u32 %v12310_v44, %v8935_v42  ;;  %v8359_v55 = vld [vmem:[%s19741_s1 + $0x308] sm:$0xf] }
  0xc0   :  { %v11233_v57 = vld [vmem:[%s19741_s1 + $0x19c0] sm:$0xf0]  ;;  %v9383_v60 = vld [vmem:[%s19741_s1 + $0xb08] sm:$0xf] }
  0xc1   :  { %v13005_v58 = vld [vmem:[%s19741_s1 + $0x1d84] sm:$0xf]  ;;  %v11236_v62 = vor.u32 %v12877_v56, %v11233_v57  ;;  %6350 = vmatpush.bf16.msrb.mxu1 %v10724_v61  ;;  %v12166_v56 = vld [vmem:[%s19741_s1 + $0x344] sm:$0xf0] }
  0xc2   :  { %v11745_v59 = vld [vmem:[%s19741_s1 + $0x1dc0] sm:$0xf0]  ;;  %v8871_v57 = vld [vmem:[%s19741_s1 + $0x708] sm:$0xf] }
  0xc3   :  { %v12605_v0 = vld [vmem:[%s19741_s1 + $0x1104] sm:$0xf]  ;;  %v11748_v3 = vor.u32 %v13005_v58, %v11745_v59  ;;  %6363 = vmatpush.bf16.msrb.mxu2 %v11236_v62  ;;  %v9960_v58 = vor.u32 %v12566_v50, %v9959_v49  ;;  %v12294_v59 = vld [vmem:[%s19741_s1 + $0x744] sm:$0xf0] }
  0xc4   :  { %v10145_v1 = vld [vmem:[%s19741_s1 + $0x1140] sm:$0xf0]  ;;  %v12422_v61 = vld [vmem:[%s19741_s1 + $0xb44] sm:$0xf0] }
  0xc5   :  { %v12733_v2 = vld [vmem:[%s19741_s1 + $0x1504] sm:$0xf]  ;;  %v10148_v10 = vor.u32 %v12605_v0, %v10145_v1  ;;  %6376 = vmatpush.bf16.msrb.mxu3 %v11748_v3  ;;  %v9895_v62 = vld [vmem:[%s19741_s1 + $0xf08] sm:$0xf]  ;;  %v8360_v1 = vor.u32 %v12166_v56, %v8359_v55  ;;  %v9384_v3 = vor.u32 %v12422_v61, %v9383_v60 }
  0xc6   :  { %v10657_v4 = vld [vmem:[%s19741_s1 + $0x1540] sm:$0xf0]  ;;  %v12550_v0 = vld [vmem:[%s19741_s1 + $0xf44] sm:$0xf0] }
  0xc7   :  { %v12861_v5 = vld [vmem:[%s19741_s1 + $0x1904] sm:$0xf]  ;;  %v10660_v11 = vor.u32 %v12733_v2, %v10657_v4  ;;  %6338 = vmatpush.bf16.msrb.mxu0 %v10148_v10  ;;  %v8872_v2 = vor.u32 %v12294_v59, %v8871_v57  ;;  %v8295_v4 = vld [vmem:[%s19741_s1 + $0x288] sm:$0xf] }
  0xc8   :  { %v11169_v6 = vld [vmem:[%s19741_s1 + $0x1940] sm:$0xf0]  ;;  %v9319_v10 = vld [vmem:[%s19741_s1 + $0xa88] sm:$0xf] }
  0xc9   :  { %v12989_v7 = vld [vmem:[%s19741_s1 + $0x1d04] sm:$0xf]  ;;  %v11172_v12 = vor.u32 %v12861_v5, %v11169_v6  ;;  %6351 = vmatpush.bf16.msrb.mxu1 %v10660_v11  ;;  %v12150_v5 = vld [vmem:[%s19741_s1 + $0x2c4] sm:$0xf0] }
  0xca   :  { %v11681_v8 = vld [vmem:[%s19741_s1 + $0x1d40] sm:$0xf0]  ;;  %v8807_v6 = vld [vmem:[%s19741_s1 + $0x688] sm:$0xf] }
  0xcb   :  { %v12589_v13 = vld [vmem:[%s19741_s1 + $0x1084] sm:$0xf]  ;;  %v11684_v18 = vor.u32 %v12989_v7, %v11681_v8  ;;  %6364 = vmatpush.bf16.msrb.mxu2 %v11172_v12  ;;  %v9896_v7 = vor.u32 %v12550_v0, %v9895_v62  ;;  %v12278_v8 = vld [vmem:[%s19741_s1 + $0x6c4] sm:$0xf0] }
  0xcc   :  { %v10081_v14 = vld [vmem:[%s19741_s1 + $0x10c0] sm:$0xf0]  ;;  %v12406_v11 = vld [vmem:[%s19741_s1 + $0xac4] sm:$0xf0] }
  0xcd   :  { %v12717_v15 = vld [vmem:[%s19741_s1 + $0x1484] sm:$0xf]  ;;  %v10084_v24 = vor.u32 %v12589_v13, %v10081_v14  ;;  %6377 = vmatpush.bf16.msrb.mxu3 %v11684_v18  ;;  %v9831_v12 = vld [vmem:[%s19741_s1 + $0xe88] sm:$0xf]  ;;  %v8296_v14 = vor.u32 %v12150_v5, %v8295_v4  ;;  %v9320_v18 = vor.u32 %v12406_v11, %v9319_v10 }
  0xce   :  { %v10593_v19 = vld [vmem:[%s19741_s1 + $0x14c0] sm:$0xf0]  ;;  %v12534_v13 = vld [vmem:[%s19741_s1 + $0xec4] sm:$0xf0] }
  0xcf   :  { %v12845_v20 = vld [vmem:[%s19741_s1 + $0x1884] sm:$0xf]  ;;  %v10596_v27 = vor.u32 %v12717_v15, %v10593_v19  ;;  %6339 = vmatpush.bf16.msrb.mxu0 %v10084_v24  ;;  %v8808_v15 = vor.u32 %v12278_v8, %v8807_v6  ;;  %v8231_v19 = vld [vmem:[%s19741_s1 + $0x208] sm:$0xf] }
  0xd0   :  { %v11105_v21 = vld [vmem:[%s19741_s1 + $0x18c0] sm:$0xf0]  ;;  %v9255_v24 = vld [vmem:[%s19741_s1 + $0xa08] sm:$0xf] }
  0xd1   :  { %v12973_v22 = vld [vmem:[%s19741_s1 + $0x1c84] sm:$0xf]  ;;  %v11108_v28 = vor.u32 %v12845_v20, %v11105_v21  ;;  %6352 = vmatpush.bf16.msrb.mxu1 %v10596_v27  ;;  %v12134_v20 = vld [vmem:[%s19741_s1 + $0x244] sm:$0xf0] }
  0xd2   :  { %v11617_v23 = vld [vmem:[%s19741_s1 + $0x1cc0] sm:$0xf0]  ;;  %v8743_v21 = vld [vmem:[%s19741_s1 + $0x608] sm:$0xf] }
  0xd3   :  { %v12573_v25 = vld [vmem:[%s19741_s1 + $0x1004] sm:$0xf]  ;;  %v11620_v32 = vor.u32 %v12973_v22, %v11617_v23  ;;  %6365 = vmatpush.bf16.msrb.mxu2 %v11108_v28  ;;  %v9832_v22 = vor.u32 %v12534_v13, %v9831_v12  ;;  %v12262_v23 = vld [vmem:[%s19741_s1 + $0x644] sm:$0xf0]  ;;  %v8232_v28 = vor.u32 %v12134_v20, %v8231_v19 }
  0xd4   :  { %v10017_v26 = vld [vmem:[%s19741_s1 + $0x1040] sm:$0xf0]  ;;  %v12518_v27 = vld [vmem:[%s19741_s1 + $0xe44] sm:$0xf0] }
  0xd5   :  { %v12701_v29 = vld [vmem:[%s19741_s1 + $0x1404] sm:$0xf]  ;;  %v10020_v43 = vor.u32 %v12573_v25, %v10017_v26  ;;  %6378 = vmatpush.bf16.msrb.mxu3 %v11620_v32  ;;  %v12390_v25 = vld [vmem:[%s19741_s1 + $0xa44] sm:$0xf0] }
  0xd6   :  { %v10529_v30 = vld [vmem:[%s19741_s1 + $0x1440] sm:$0xf0]  ;;  %v9767_v26 = vld [vmem:[%s19741_s1 + $0xe08] sm:$0xf] }
  0xd7   :  { %v12829_v31 = vld [vmem:[%s19741_s1 + $0x1804] sm:$0xf]  ;;  %v10532_v47 = vor.u32 %v12701_v29, %v10529_v30  ;;  %6340 = vmatpush.bf16.msrb.mxu0 %v10020_v43  ;;  %v8744_v29 = vor.u32 %v12262_v23, %v8743_v21  ;;  %v9256_v30 = vor.u32 %v12390_v25, %v9255_v24  ;;  %v12118_v32 = vld [vmem:[%s19741_s1 + $0x1c4] sm:$0xf0] }
  0xd8   :  { %v11041_v33 = vld [vmem:[%s19741_s1 + $0x1840] sm:$0xf0]  ;;  %v12374_v41 = vld [vmem:[%s19741_s1 + $0x9c4] sm:$0xf0] }
  0xd9   :  { %v12957_v35 = vld [vmem:[%s19741_s1 + $0x1c04] sm:$0xf]  ;;  %v11044_v48 = vor.u32 %v12829_v31, %v11041_v33  ;;  %6353 = vmatpush.bf16.msrb.mxu1 %v10532_v47  ;;  %v8167_v31 = vld [vmem:[%s19741_s1 + $0x188] sm:$0xf]  ;;  %v9192_v46 = vor.u32 %v12374_v41, %v9191_v39 }
  0xda   :  { %v11553_v36 = vld [vmem:[%s19741_s1 + $0x1c40] sm:$0xf0]  ;;  %6341 = vmatmul.bf16.vlgmr.msrb.gmra.mxu0 %v13590_v37  ;;  %v8679_v33 = vld [vmem:[%s19741_s1 + $0x588] sm:$0xf]  ;;  %v8168_v44 = vor.u32 %v12118_v32, %v8167_v31 }
  0xdb   :  { %v11556_v51 = vor.u32 %v12957_v35, %v11553_v36  ;;  %6366 = vmatpush.bf16.msrb.mxu2 %v11044_v48  ;;  %6385 = vmatpush.bf16.msra.mxu0 %v8424_v52  ;;  %v9768_v35 = vor.u32 %v12518_v27, %v9767_v26  ;;  %v12246_v36 = vld [vmem:[%s19741_s1 + $0x5c4] sm:$0xf0] }
  0xdc   :  { %6354 = vmatmul.bf16.vlgmr.msrb.gmra.mxu1 %v13594_v40  ;;  %v9703_v42 = vld [vmem:[%s19741_s1 + $0xd88] sm:$0xf]  ;;  %v8680_v45 = vor.u32 %v12246_v36, %v8679_v33 }
  0xdd   :  { %6379 = vmatpush.bf16.msrb.mxu3 %v11556_v51  ;;  %6398 = vmatpush.bf16.msra.mxu1 %v8936_v53  ;;  %v12502_v43 = vld [vmem:[%s19741_s1 + $0xdc4] sm:$0xf0] }
  0xde   :  { %6367 = vmatmul.bf16.vlgmr.msrb.gmra.mxu2 %v13582_v34  ;;  %v8103_v47 = vld [vmem:[%s19741_s1 + $0x108] sm:$0xf]  ;;  %v9704_v50 = vor.u32 %v12502_v43, %v9703_v42 }
  0xdf   :  { %6411 = vmatpush.bf16.msra.mxu2 %v9448_v54  ;;  %6386 = vmatpush.bf16.msra.mxu0 %v8360_v1  ;;  %v12102_v48 = vld [vmem:[%s19741_s1 + $0x144] sm:$0xf0] }
  0xe0   :  { %6380 = vmatmul.bf16.vlgmr.msrb.gmra.mxu3 %v13592_v38  ;;  %v8615_v49 = vld [vmem:[%s19741_s1 + $0x508] sm:$0xf]  ;;  %v8104_v56 = vor.u32 %v12102_v48, %v8103_v47 }
  0xe1   :  { %6424 = vmatpush.bf16.msra.mxu3 %v9960_v58  ;;  %6399 = vmatpush.bf16.msra.mxu1 %v8872_v2  ;;  %v12230_v51 = vld [vmem:[%s19741_s1 + $0x544] sm:$0xf0] }
  0xe2   :  { %v9127_v52 = vld [vmem:[%s19741_s1 + $0x908] sm:$0xf]  ;;  %v8616_v57 = vor.u32 %v12230_v51, %v8615_v49 }
  0xe3   :  { %6412 = vmatpush.bf16.msra.mxu2 %v9384_v3  ;;  %6387 = vmatpush.bf16.msra.mxu0 %v8296_v14  ;;  %v12358_v53 = vld [vmem:[%s19741_s1 + $0x944] sm:$0xf0] }
  0xe4   :  { %v9639_v54 = vld [vmem:[%s19741_s1 + $0xd08] sm:$0xf]  ;;  %v9128_v58 = vor.u32 %v12358_v53, %v9127_v52 }
  0xe5   :  { %6425 = vmatpush.bf16.msra.mxu3 %v9896_v7  ;;  %6400 = vmatpush.bf16.msra.mxu1 %v8808_v15  ;;  %v12486_v55 = vld [vmem:[%s19741_s1 + $0xd44] sm:$0xf0] }
  0xe6   :  { %v8039_v59 = vld [vmem:[%s19741_s1 + $0x88] sm:$0xf]  ;;  %v9640_v62 = vor.u32 %v12486_v55, %v9639_v54 }
  0xe7   :  { %6413 = vmatpush.bf16.msra.mxu2 %v9320_v18  ;;  %6388 = vmatpush.bf16.msra.mxu0 %v8232_v28  ;;  %v12086_v60 = vld [vmem:[%s19741_s1 + $0xc4] sm:$0xf0] }
  0xe8   :  { %v8551_v61 = vld [vmem:[%s19741_s1 + $0x488] sm:$0xf]  ;;  %v8040_v5 = vor.u32 %v12086_v60, %v8039_v59 }
  0xe9   :  { %6426 = vmatpush.bf16.msra.mxu3 %v9832_v22  ;;  %6401 = vmatpush.bf16.msra.mxu1 %v8744_v29  ;;  %v12214_v0 = vld [vmem:[%s19741_s1 + $0x4c4] sm:$0xf0] }
  0xea   :  { %v9063_v1 = vld [vmem:[%s19741_s1 + $0x888] sm:$0xf]  ;;  %v8552_v8 = vor.u32 %v12214_v0, %v8551_v61 }
  0xeb   :  { %6414 = vmatpush.bf16.msra.mxu2 %v9256_v30  ;;  %6389 = vmatpush.bf16.msra.mxu0 %v8168_v44  ;;  %v12342_v2 = vld [vmem:[%s19741_s1 + $0x8c4] sm:$0xf0] }
  0xec   :  { %v9575_v3 = vld [vmem:[%s19741_s1 + $0xc88] sm:$0xf]  ;;  %v9064_v10 = vor.u32 %v12342_v2, %v9063_v1 }
  0xed   :  { %6427 = vmatpush.bf16.msra.mxu3 %v9768_v35  ;;  %6402 = vmatpush.bf16.msra.mxu1 %v8680_v45  ;;  %v12470_v4 = vld [vmem:[%s19741_s1 + $0xcc4] sm:$0xf0] }
  0xee   :  { %v7975_v6 = vld [vmem:[%s19741_s1 + $0x8] sm:$0xf]  ;;  %v9576_v14 = vor.u32 %v12470_v4, %v9575_v3 }
  0xef   :  { %6415 = vmatpush.bf16.msra.mxu2 %v9192_v46  ;;  %6390 = vmatpush.bf16.msra.mxu0 %v8104_v56  ;;  %v12070_v7 = vld [vmem:[%s19741_s1 + $0x44] sm:$0xf0] }
  0xf0   :  { %v8487_v11 = vld [vmem:[%s19741_s1 + $0x408] sm:$0xf]  ;;  %v7976_v23 = vor.u32 %v12070_v7, %v7975_v6 }
  0xf1   :  { %6428 = vmatpush.bf16.msra.mxu3 %v9704_v50  ;;  %6403 = vmatpush.bf16.msra.mxu1 %v8616_v57  ;;  %v12198_v12 = vld [vmem:[%s19741_s1 + $0x444] sm:$0xf0] }
  0xf2   :  { %v8999_v13 = vld [vmem:[%s19741_s1 + $0x808] sm:$0xf]  ;;  %v8488_v27 = vor.u32 %v12198_v12, %v8487_v11 }
  0xf3   :  { %6416 = vmatpush.bf16.msra.mxu2 %v9128_v58  ;;  %v12326_v15 = vld [vmem:[%s19741_s1 + $0x844] sm:$0xf0]  ;;  %6391 = vmatpush.bf16.msra.mxu0 %v8040_v5 }
  0xf4   :  { %v9511_v18 = vld [vmem:[%s19741_s1 + $0xc08] sm:$0xf]  ;;  %v9000_v28 = vor.u32 %v12326_v15, %v8999_v13 }
  0xf5   :  { %6429 = vmatpush.bf16.msra.mxu3 %v9640_v62  ;;  %v12454_v19 = vld [vmem:[%s19741_s1 + $0xc44] sm:$0xf0]  ;;  %6404 = vmatpush.bf16.msra.mxu1 %v8552_v8 }
  0xf6   :  { %v10471_v20 = vld [vmem:[%s19741_s1 + $0x1388] sm:$0xf]  ;;  %v9512_v31 = vor.u32 %v12454_v19, %v9511_v18 }
  0xf7   :  { %v12694_v21 = vld [vmem:[%s19741_s1 + $0x13c4] sm:$0xf0]  ;;  %6417 = vmatpush.bf16.msra.mxu2 %v9064_v10  ;;  %6392 = vmatpush.bf16.msra.mxu0 %v7976_v23 }
  0xf8   :  { %v10983_v22 = vld [vmem:[%s19741_s1 + $0x1788] sm:$0xf]  ;;  %v10472_v32 = vor.u32 %v12694_v21, %v10471_v20 }
  0xf9   :  { %v12822_v24 = vld [vmem:[%s19741_s1 + $0x17c4] sm:$0xf0]  ;;  %6430 = vmatpush.bf16.msra.mxu3 %v9576_v14  ;;  %6405 = vmatpush.bf16.msra.mxu1 %v8488_v27 }
  0xfa   :  { %v11495_v25 = vld [vmem:[%s19741_s1 + $0x1b88] sm:$0xf]  ;;  %v10984_v33 = vor.u32 %v12822_v24, %v10983_v22  ;;  %6393 = vmatmul.bf16.vlgmr.msra.gmra.mxu0 %v13402_v9 }
  0xfb   :  { %v12950_v26 = vld [vmem:[%s19741_s1 + $0x1bc4] sm:$0xf0]  ;;  %6418 = vmatpush.bf16.msra.mxu2 %v9000_v28  ;;  %6437 = vmatpush.bf16.msrb.mxu0 %v10472_v32 }
  0xfc   :  { %v12007_v29 = vld [vmem:[%s19741_s1 + $0x1f88] sm:$0xf]  ;;  %v11496_v35 = vor.u32 %v12950_v26, %v11495_v25  ;;  %6406 = vmatmul.bf16.vlgmr.msra.gmra.mxu1 %v13421_v17  ;;  %v14260_v25 = vpop.f32.mrf.mxu0 }
  0xfd   :  { %v13078_v30 = vld [vmem:[%s19741_s1 + $0x1fc4] sm:$0xf0]  ;;  %6431 = vmatpush.bf16.msra.mxu3 %v9512_v31  ;;  %6450 = vmatpush.bf16.msrb.mxu1 %v10984_v33 }
  0xfe   :  { %v10407_v36 = vld [vmem:[%s19741_s1 + $0x1308] sm:$0xf]  ;;  %v12008_v42 = vor.u32 %v13078_v30, %v12007_v29  ;;  %6419 = vmatmul.bf16.vlgmr.msra.gmra.mxu2 %v13381_v63 }
  0xff   :  { %v12678_v39 = vld [vmem:[%s19741_s1 + $0x1344] sm:$0xf0]  ;;  %6463 = vmatpush.bf16.msrb.mxu2 %v11496_v35 }
 0x100   :  { %v10919_v41 = vld [vmem:[%s19741_s1 + $0x1708] sm:$0xf]  ;;  %v10408_v48 = vor.u32 %v12678_v39, %v10407_v36  ;;  %6432 = vmatmul.bf16.vlgmr.msra.gmra.mxu3 %v13419_v16 }
 0x101   :  { %v12806_v43 = vld [vmem:[%s19741_s1 + $0x1744] sm:$0xf0]  ;;  %6476 = vmatpush.bf16.msrb.mxu3 %v12008_v42  ;;  %v14286_v42 = vpop.f32.mrf.mxu2 }
 0x102   :  { %v11431_v44 = vld [vmem:[%s19741_s1 + $0x1b08] sm:$0xf]  ;;  %v10920_v49 = vor.u32 %v12806_v43, %v10919_v41  ;;  %6438 = vmatpush.bf16.msrb.mxu0 %v10408_v48  ;;  %v6199_v41 = vpop.f32.mrf.mxu1 }
 0x103   :  { %v12934_v45 = vld [vmem:[%s19741_s1 + $0x1b44] sm:$0xf0] }
 0x104   :  { %v11943_v46 = vld [vmem:[%s19741_s1 + $0x1f08] sm:$0xf]  ;;  %v11432_v50 = vor.u32 %v12934_v45, %v11431_v44  ;;  %6451 = vmatpush.bf16.msrb.mxu1 %v10920_v49 }
 0x105   :  { %v13062_v47 = vld [vmem:[%s19741_s1 + $0x1f44] sm:$0xf0] }
 0x106   :  { %v10343_v51 = vld [vmem:[%s19741_s1 + $0x1288] sm:$0xf]  ;;  %v11944_v54 = vor.u32 %v13062_v47, %v11943_v46  ;;  %6464 = vmatpush.bf16.msrb.mxu2 %v11432_v50 }
 0x107   :  { %v12662_v52 = vld [vmem:[%s19741_s1 + $0x12c4] sm:$0xf0] }
 0x108   :  { %v10855_v53 = vld [vmem:[%s19741_s1 + $0x1688] sm:$0xf]  ;;  %v10344_v60 = vor.u32 %v12662_v52, %v10343_v51  ;;  %6477 = vmatpush.bf16.msrb.mxu3 %v11944_v54 }
 0x109   :  { %v12790_v55 = vld [vmem:[%s19741_s1 + $0x16c4] sm:$0xf0] }
 0x10a   :  { %v11367_v56 = vld [vmem:[%s19741_s1 + $0x1a88] sm:$0xf]  ;;  %v10856_v61 = vor.u32 %v12790_v55, %v10855_v53  ;;  %6439 = vmatpush.bf16.msrb.mxu0 %v10344_v60  ;;  %v14312_v55 = vpop.f32.mrf.mxu3 }
 0x10b   :  { %v12918_v57 = vld [vmem:[%s19741_s1 + $0x1ac4] sm:$0xf0] }
 0x10c   :  { %v11879_v58 = vld [vmem:[%s19741_s1 + $0x1e88] sm:$0xf]  ;;  %v11368_v62 = vor.u32 %v12918_v57, %v11367_v56  ;;  %6452 = vmatpush.bf16.msrb.mxu1 %v10856_v61 }
 0x10d   :  { %v13046_v59 = vld [vmem:[%s19741_s1 + $0x1ec4] sm:$0xf0] }
 0x10e   :  { %v10279_v0 = vld [vmem:[%s19741_s1 + $0x1208] sm:$0xf]  ;;  %v11880_v3 = vor.u32 %v13046_v59, %v11879_v58  ;;  %6465 = vmatpush.bf16.msrb.mxu2 %v11368_v62  ;;  %v6188_v59 = vpop.f32.mrf.mxu0 }
 0x10f   :  { %v12646_v1 = vld [vmem:[%s19741_s1 + $0x1244] sm:$0xf0]  ;;  %v12126_v59 = vld [vmem:[%s19741_s1 + $0x20c] sm:$0xf] }
 0x110   :  { %v10791_v2 = vld [vmem:[%s19741_s1 + $0x1608] sm:$0xf]  ;;  %v10280_v10 = vor.u32 %v12646_v1, %v10279_v0  ;;  %6478 = vmatpush.bf16.msrb.mxu3 %v11880_v3 }
 0x111   :  { %v12774_v4 = vld [vmem:[%s19741_s1 + $0x1644] sm:$0xf0] }
 0x112   :  { %v11303_v5 = vld [vmem:[%s19741_s1 + $0x1a08] sm:$0xf]  ;;  %v10792_v11 = vor.u32 %v12774_v4, %v10791_v2  ;;  %6440 = vmatpush.bf16.msrb.mxu0 %v10280_v10  ;;  %v6201_v10 = vpop.f32.mrf.mxu1 }
 0x113   :  { %v12902_v6 = vld [vmem:[%s19741_s1 + $0x1a44] sm:$0xf0]  ;;  %v8169_v10 = vld [vmem:[%s19741_s1 + $0x1c8] sm:$0xf0] }
 0x114   :  { %v11815_v7 = vld [vmem:[%s19741_s1 + $0x1e08] sm:$0xf]  ;;  %v11304_v12 = vor.u32 %v12902_v6, %v11303_v5  ;;  %6453 = vmatpush.bf16.msrb.mxu1 %v10792_v11  ;;  %v12174_v6 = vld [vmem:[%s19741_s1 + $0x38c] sm:$0xf]  ;;  %v6214_v11 = vpop.f32.mrf.mxu2 }
 0x115   :  { %v13030_v8 = vld [vmem:[%s19741_s1 + $0x1e44] sm:$0xf0]  ;;  %v12238_v11 = vld [vmem:[%s19741_s1 + $0x58c] sm:$0xf] }
 0x116   :  { %v10215_v13 = vld [vmem:[%s19741_s1 + $0x1188] sm:$0xf]  ;;  %v11816_v18 = vor.u32 %v13030_v8, %v11815_v7  ;;  %6466 = vmatpush.bf16.msrb.mxu2 %v11304_v12  ;;  %v8425_v7 = vld [vmem:[%s19741_s1 + $0x3c8] sm:$0xf0] }
 0x117   :  { %v12630_v14 = vld [vmem:[%s19741_s1 + $0x11c4] sm:$0xf0]  ;;  %v12302_v8 = vld [vmem:[%s19741_s1 + $0x78c] sm:$0xf] }
 0x118   :  { %v10727_v15 = vld [vmem:[%s19741_s1 + $0x1588] sm:$0xf]  ;;  %v10216_v24 = vor.u32 %v12630_v14, %v10215_v13  ;;  %6479 = vmatpush.bf16.msrb.mxu3 %v11816_v18  ;;  %v8937_v13 = vld [vmem:[%s19741_s1 + $0x7c8] sm:$0xf0] }
 0x119   :  { %v12758_v19 = vld [vmem:[%s19741_s1 + $0x15c4] sm:$0xf0]  ;;  %v12430_v14 = vld [vmem:[%s19741_s1 + $0xb8c] sm:$0xf] }
 0x11a   :  { %v11239_v20 = vld [vmem:[%s19741_s1 + $0x1988] sm:$0xf]  ;;  %v10728_v26 = vor.u32 %v12758_v19, %v10727_v15  ;;  %6441 = vmatpush.bf16.msrb.mxu0 %v10216_v24  ;;  %v9449_v15 = vld [vmem:[%s19741_s1 + $0xbc8] sm:$0xf0]  ;;  %v8940_v24 = vor.u32 %v12302_v8, %v8937_v13  ;;  %v6251_v13 = vpop.f32.mrf.mxu1 }
 0x11b   :  { %v12886_v21 = vld [vmem:[%s19741_s1 + $0x19c4] sm:$0xf0]  ;;  %v12110_v8 = vld [vmem:[%s19741_s1 + $0x18c] sm:$0xf] }
 0x11c   :  { %v11751_v22 = vld [vmem:[%s19741_s1 + $0x1d88] sm:$0xf]  ;;  %v11240_v27 = vor.u32 %v12886_v21, %v11239_v20  ;;  %6454 = vmatpush.bf16.msrb.mxu1 %v10728_v26  ;;  %v12558_v20 = vld [vmem:[%s19741_s1 + $0xf8c] sm:$0xf]  ;;  %v9452_v26 = vor.u32 %v12430_v14, %v9449_v15 }
 0x11d   :  { %v13014_v23 = vld [vmem:[%s19741_s1 + $0x1dc4] sm:$0xf0]  ;;  %v9961_v21 = vld [vmem:[%s19741_s1 + $0xfc8] sm:$0xf0] }
 0x11e   :  { %v10151_v28 = vld [vmem:[%s19741_s1 + $0x1108] sm:$0xf]  ;;  %v11752_v31 = vor.u32 %v13014_v23, %v11751_v22  ;;  %6467 = vmatpush.bf16.msrb.mxu2 %v11240_v27  ;;  %v8428_v23 = vor.u32 %v12174_v6, %v8425_v7  ;;  %v6200_v27 = vadd.f32 %v6199_v41, %v14260_v25  ;;  %v12414_v25 = vld [vmem:[%s19741_s1 + $0xb0c] sm:$0xf] }
 0x11f   :  { %v12614_v29 = vld [vmem:[%s19741_s1 + $0x1144] sm:$0xf0]  ;;  %v8681_v15 = vld [vmem:[%s19741_s1 + $0x5c8] sm:$0xf0] }
 0x120   :  { %v10663_v30 = vld [vmem:[%s19741_s1 + $0x1508] sm:$0xf]  ;;  %v10152_v43 = vor.u32 %v12614_v29, %v10151_v28  ;;  %6480 = vmatpush.bf16.msrb.mxu3 %v11752_v31  ;;  %v12158_v28 = vld [vmem:[%s19741_s1 + $0x30c] sm:$0xf]  ;;  %v6227_v31 = vpop.f32.mrf.mxu3 }
 0x121   :  { %v12742_v32 = vld [vmem:[%s19741_s1 + $0x1544] sm:$0xf0]  ;;  %v8361_v29 = vld [vmem:[%s19741_s1 + $0x348] sm:$0xf0] }
 0x122   :  { %v11175_v33 = vld [vmem:[%s19741_s1 + $0x1908] sm:$0xf]  ;;  %v10664_v44 = vor.u32 %v12742_v32, %v10663_v30  ;;  %6442 = vmatpush.bf16.msrb.mxu0 %v10152_v43  ;;  %v12286_v30 = vld [vmem:[%s19741_s1 + $0x70c] sm:$0xf]  ;;  %v9964_v32 = vor.u32 %v12558_v20, %v9961_v21  ;;  %v8364_v41 = vor.u32 %v12158_v28, %v8361_v29  ;;  %v8684_v28 = vor.u32 %v12238_v11, %v8681_v15 }
 0x123   :  { %v12870_v35 = vld [vmem:[%s19741_s1 + $0x1944] sm:$0xf0]  ;;  %v12494_v20 = vld [vmem:[%s19741_s1 + $0xd8c] sm:$0xf] }
 0x124   :  { %v11687_v36 = vld [vmem:[%s19741_s1 + $0x1d08] sm:$0xf]  ;;  %v11176_v45 = vor.u32 %v12870_v35, %v11175_v33  ;;  %6455 = vmatpush.bf16.msrb.mxu1 %v10664_v44  ;;  %v8873_v33 = vld [vmem:[%s19741_s1 + $0x748] sm:$0xf0] }
 0x125   :  { %v12998_v39 = vld [vmem:[%s19741_s1 + $0x1d44] sm:$0xf0]  ;;  %v9385_v35 = vld [vmem:[%s19741_s1 + $0xb48] sm:$0xf0]  ;;  %v8876_v43 = vor.u32 %v12286_v30, %v8873_v33  ;;  %v14485_v33 = vld [vmem:[%s19744_s3] sm:$0xff] }
 0x126   :  { %v10087_v46 = vld [vmem:[%s19741_s1 + $0x1088] sm:$0xf]  ;;  %v11688_v49 = vor.u32 %v12998_v39, %v11687_v36  ;;  %6468 = vmatpush.bf16.msrb.mxu2 %v11176_v45  ;;  %v12542_v36 = vld [vmem:[%s19741_s1 + $0xf0c] sm:$0xf]  ;;  %v9388_v44 = vor.u32 %v12414_v25, %v9385_v35  ;;  %v6213_v45 = vadd.f32 %v14286_v42, %v6200_v27 }
 0x127   :  { %v12598_v47 = vld [vmem:[%s19741_s1 + $0x10c4] sm:$0xf0]  ;;  %v9897_v39 = vld [vmem:[%s19741_s1 + $0xf48] sm:$0xf0] }
 0x128   :  { %v10599_v48 = vld [vmem:[%s19741_s1 + $0x1488] sm:$0xf]  ;;  %v10088_v56 = vor.u32 %v12598_v47, %v10087_v46  ;;  %6481 = vmatpush.bf16.msrb.mxu3 %v11688_v49  ;;  %v12142_v46 = vld [vmem:[%s19741_s1 + $0x28c] sm:$0xf]  ;;  %v9900_v49 = vor.u32 %v12542_v36, %v9897_v39 }
 0x129   :  { %v12726_v50 = vld [vmem:[%s19741_s1 + $0x14c4] sm:$0xf0]  ;;  %v8297_v47 = vld [vmem:[%s19741_s1 + $0x2c8] sm:$0xf0] }
 0x12a   :  { %v11111_v51 = vld [vmem:[%s19741_s1 + $0x1888] sm:$0xf]  ;;  %v10600_v60 = vor.u32 %v12726_v50, %v10599_v48  ;;  %6443 = vmatpush.bf16.msrb.mxu0 %v10088_v56  ;;  %v12270_v48 = vld [vmem:[%s19741_s1 + $0x68c] sm:$0xf]  ;;  %v6226_v56 = vadd.f32 %v14312_v55, %v6213_v45 }
 0x12b   :  { %v12854_v52 = vld [vmem:[%s19741_s1 + $0x18c4] sm:$0xf0]  ;;  %v8809_v42 = vld [vmem:[%s19741_s1 + $0x6c8] sm:$0xf0] }
 0x12c   :  { %v11623_v53 = vld [vmem:[%s19741_s1 + $0x1c88] sm:$0xf]  ;;  %v11112_v61 = vor.u32 %v12854_v52, %v11111_v51  ;;  %6456 = vmatpush.bf16.msrb.mxu1 %v10600_v60  ;;  %v12398_v50 = vld [vmem:[%s19741_s1 + $0xa8c] sm:$0xf] }
 0x12d   :  { %v12982_v54 = vld [vmem:[%s19741_s1 + $0x1cc4] sm:$0xf0]  ;;  %v9321_v51 = vld [vmem:[%s19741_s1 + $0xac8] sm:$0xf0] }
 0x12e   :  { %v10023_v57 = vld [vmem:[%s19741_s1 + $0x1008] sm:$0xf]  ;;  %v11624_v2 = vor.u32 %v12982_v54, %v11623_v53  ;;  %6469 = vmatpush.bf16.msrb.mxu2 %v11112_v61  ;;  %v12526_v52 = vld [vmem:[%s19741_s1 + $0xe8c] sm:$0xf]  ;;  %v8300_v54 = vor.u32 %v12142_v46, %v8297_v47 }
 0x12f   :  { %v12582_v58 = vld [vmem:[%s19741_s1 + $0x1044] sm:$0xf0]  ;;  %v9833_v53 = vld [vmem:[%s19741_s1 + $0xec8] sm:$0xf0] }
 0x130   :  { %v10535_v62 = vld [vmem:[%s19741_s1 + $0x1408] sm:$0xf]  ;;  %v10024_v12 = vor.u32 %v12582_v58, %v10023_v57  ;;  %6482 = vmatpush.bf16.msrb.mxu3 %v11624_v2  ;;  %v8812_v57 = vor.u32 %v12270_v48, %v8809_v42  ;;  %v9324_v58 = vor.u32 %v12398_v50, %v9321_v51  ;;  %v8233_v60 = vld [vmem:[%s19741_s1 + $0x248] sm:$0xf0]  ;;  %v7897_v48 = vperm.slane %v14485_v33, 0 }
 0x131   :  { %v12710_v0 = vld [vmem:[%s19741_s1 + $0x1444] sm:$0xf0]  ;;  %v12254_v61 = vld [vmem:[%s19741_s1 + $0x60c] sm:$0xf] }
 0x132   :  { %v11047_v1 = vld [vmem:[%s19741_s1 + $0x1808] sm:$0xf]  ;;  %v10536_v18 = vor.u32 %v12710_v0, %v10535_v62  ;;  %6444 = vmatpush.bf16.msrb.mxu0 %v10024_v12  ;;  %v9836_v62 = vor.u32 %v12526_v52, %v9833_v53  ;;  %v8745_v55 = vld [vmem:[%s19741_s1 + $0x648] sm:$0xf0] }
 0x133   :  { %v12838_v3 = vld [vmem:[%s19741_s1 + $0x1844] sm:$0xf0]  ;;  %v12382_v0 = vld [vmem:[%s19741_s1 + $0xa0c] sm:$0xf]  ;;  %v8748_v6 = vor.u32 %v12254_v61, %v8745_v55 }
 0x134   :  { %v11559_v4 = vld [vmem:[%s19741_s1 + $0x1c08] sm:$0xf]  ;;  %v11048_v19 = vor.u32 %v12838_v3, %v11047_v1  ;;  %6457 = vmatpush.bf16.msrb.mxu1 %v10536_v18  ;;  %v9257_v1 = vld [vmem:[%s19741_s1 + $0xa48] sm:$0xf0] }
 0x135   :  { %v12966_v5 = vld [vmem:[%s19741_s1 + $0x1c44] sm:$0xf0]  ;;  %6445 = vmatmul.bf16.vlgmr.msrb.gmra.mxu0 %v13590_v37  ;;  %v12510_v2 = vld [vmem:[%s19741_s1 + $0xe0c] sm:$0xf]  ;;  %v9260_v7 = vor.u32 %v12382_v0, %v9257_v1 }
 0x136   :  { %v11560_v22 = vor.u32 %v12966_v5, %v11559_v4  ;;  %6470 = vmatpush.bf16.msrb.mxu2 %v11048_v19  ;;  %6489 = vmatpush.bf16.msra.mxu0 %v8428_v23  ;;  %v9769_v3 = vld [vmem:[%s19741_s1 + $0xe48] sm:$0xf0]  ;;  %v8236_v4 = vor.u32 %v12126_v59, %v8233_v60  ;;  %v6238_v5 = vpop.f32.mrf.mxu0  ;;  %v14468_v23 = vld [vmem:[%s19743_s2] sm:$0xff] }
 0x137   :  { %6458 = vmatmul.bf16.vlgmr.msrb.gmra.mxu1 %v13594_v40  ;;  %v6239_v12 = vadd.f32 %v6238_v5, %v6226_v56  ;;  %v9772_v14 = vor.u32 %v12510_v2, %v9769_v3  ;;  %v12366_v18 = vld [vmem:[%s19741_s1 + $0x98c] sm:$0xf] }
 0x138   :  { %6483 = vmatpush.bf16.msrb.mxu3 %v11560_v22  ;;  %6502 = vmatpush.bf16.msra.mxu1 %v8940_v24  ;;  %v9193_v19 = vld [vmem:[%s19741_s1 + $0x9c8] sm:$0xf0]  ;;  %v8172_v24 = vor.u32 %v12110_v8, %v8169_v10 }
 0x139   :  { %6471 = vmatmul.bf16.vlgmr.msrb.gmra.mxu2 %v13582_v34  ;;  %v9705_v21 = vld [vmem:[%s19741_s1 + $0xdc8] sm:$0xf0]  ;;  %v6252_v22 = vadd.f32 %v6251_v13, %v6239_v12  ;;  %v9196_v29 = vor.u32 %v12366_v18, %v9193_v19 }
 0x13a   :  { %6515 = vmatpush.bf16.msra.mxu2 %v9452_v26  ;;  %6490 = vmatpush.bf16.msra.mxu0 %v8364_v41  ;;  %v12094_v26 = vld [vmem:[%s19741_s1 + $0x10c] sm:$0xf]  ;;  %v9708_v25 = vor.u32 %v12494_v20, %v9705_v21  ;;  %v6277_v41 = vpop.f32.mrf.mxu3 }
 0x13b   :  { %6484 = vmatmul.bf16.vlgmr.msrb.gmra.mxu3 %v13592_v38  ;;  %v8105_v27 = vld [vmem:[%s19741_s1 + $0x148] sm:$0xf0] }
 0x13c   :  { %6528 = vmatpush.bf16.msra.mxu3 %v9964_v32  ;;  %6503 = vmatpush.bf16.msra.mxu1 %v8876_v43  ;;  %v12222_v30 = vld [vmem:[%s19741_s1 + $0x50c] sm:$0xf]  ;;  %v6264_v32 = vpop.f32.mrf.mxu2  ;;  %v7845_v43 = vperm.slane %v14468_v23, 0  ;;  %v8108_v46 = vor.u32 %v12094_v26, %v8105_v27 }
 0x13d   :  { %v8617_v31 = vld [vmem:[%s19741_s1 + $0x548] sm:$0xf0]  ;;  %v6265_v39 = vadd.f32 %v6264_v32, %v6252_v22 }
 0x13e   :  { %6516 = vmatpush.bf16.msra.mxu2 %v9388_v44  ;;  %6491 = vmatpush.bf16.msra.mxu0 %v8300_v54  ;;  %v12350_v35 = vld [vmem:[%s19741_s1 + $0x90c] sm:$0xf]  ;;  %v8620_v42 = vor.u32 %v12222_v30, %v8617_v31  ;;  %v6253_v54 = vpop.f32.mrf.mxu1 }
 0x13f   :  { %v9129_v36 = vld [vmem:[%s19741_s1 + $0x948] sm:$0xf0]  ;;  %v6278_v47 = vadd.f32 %v6277_v41, %v6265_v39 }
 0x140   :  { %6529 = vmatpush.bf16.msra.mxu3 %v9900_v49  ;;  %6504 = vmatpush.bf16.msra.mxu1 %v8812_v57  ;;  %v12478_v44 = vld [vmem:[%s19741_s1 + $0xd0c] sm:$0xf]  ;;  %v6240_v49 = vpop.f32.mrf.mxu0  ;;  %v9132_v50 = vor.u32 %v12350_v35, %v9129_v36 }
 0x141   :  { %v9641_v45 = vld [vmem:[%s19741_s1 + $0xd48] sm:$0xf0]  ;;  %v7877_v57 = vmul.f32 %v7845_v43, %v6278_v47 }
 0x142   :  { %6517 = vmatpush.bf16.msra.mxu2 %v9324_v58  ;;  %6492 = vmatpush.bf16.msra.mxu0 %v8236_v4  ;;  %v12078_v51 = vld [vmem:[%s19741_s1 + $0x8c] sm:$0xf]  ;;  %v9644_v56 = vor.u32 %v12478_v44, %v9641_v45 }
 0x143   :  { %v8041_v52 = vld [vmem:[%s19741_s1 + $0xc8] sm:$0xf0]  ;;  %v7929_v55 = vadd.f32 %v7897_v48, %v7877_v57 }
 0x144   :  { %6530 = vmatpush.bf16.msra.mxu3 %v9836_v62  ;;  %6505 = vmatpush.bf16.msra.mxu1 %v8748_v6  ;;  %v12206_v53 = vld [vmem:[%s19741_s1 + $0x48c] sm:$0xf]  ;;  %v8044_v0 = vor.u32 %v12078_v51, %v8041_v52  ;;  %v6266_v8 = vpop.f32.mrf.mxu2 }
 0x145   :  { %v8553_v58 = vld [vmem:[%s19741_s1 + $0x4c8] sm:$0xf0]  ;;  %7945 = vst [vmem:[%s19745_s4] sm:$0xff] %v7929_v55 }
 0x146   :  { %6518 = vmatpush.bf16.msra.mxu2 %v9260_v7  ;;  %6493 = vmatpush.bf16.msra.mxu0 %v8172_v24  ;;  %v12334_v59 = vld [vmem:[%s19741_s1 + $0x88c] sm:$0xf]  ;;  %v8556_v3 = vor.u32 %v12206_v53, %v8553_v58 }
 0x147   :  { %v9065_v60 = vld [vmem:[%s19741_s1 + $0x8c8] sm:$0xf0] }
 0x148   :  { %6531 = vmatpush.bf16.msra.mxu3 %v9772_v14  ;;  %6506 = vmatpush.bf16.msra.mxu1 %v8684_v28  ;;  %v12462_v61 = vld [vmem:[%s19741_s1 + $0xc8c] sm:$0xf]  ;;  %v9068_v4 = vor.u32 %v12334_v59, %v9065_v60  ;;  %v6279_v14 = vpop.f32.mrf.mxu3 }
 0x149   :  { %v9577_v62 = vld [vmem:[%s19741_s1 + $0xcc8] sm:$0xf0] }
 0x14a   :  { %6519 = vmatpush.bf16.msra.mxu2 %v9196_v29  ;;  %6494 = vmatpush.bf16.msra.mxu0 %v8108_v46  ;;  %v12062_v1 = vld [vmem:[%s19741_s1 + $0xc] sm:$0xf]  ;;  %v9580_v10 = vor.u32 %v12462_v61, %v9577_v62 }
 0x14b   :  { %v7977_v2 = vld [vmem:[%s19741_s1 + $0x48] sm:$0xf0] }
 0x14c   :  { %6532 = vmatpush.bf16.msra.mxu3 %v9708_v25  ;;  %6507 = vmatpush.bf16.msra.mxu1 %v8620_v42  ;;  %v12190_v5 = vld [vmem:[%s19741_s1 + $0x40c] sm:$0xf]  ;;  %v7980_v20 = vor.u32 %v12062_v1, %v7977_v2 }
 0x14d   :  { %v8489_v6 = vld [vmem:[%s19741_s1 + $0x448] sm:$0xf0] }
 0x14e   :  { %6520 = vmatpush.bf16.msra.mxu2 %v9132_v50  ;;  %v12318_v7 = vld [vmem:[%s19741_s1 + $0x80c] sm:$0xf]  ;;  %6495 = vmatpush.bf16.msra.mxu0 %v8044_v0  ;;  %v8492_v26 = vor.u32 %v12190_v5, %v8489_v6 }
 0x14f   :  { %v9001_v11 = vld [vmem:[%s19741_s1 + $0x848] sm:$0xf0] }
 0x150   :  { %6533 = vmatpush.bf16.msra.mxu3 %v9644_v56  ;;  %v12446_v12 = vld [vmem:[%s19741_s1 + $0xc0c] sm:$0xf]  ;;  %6508 = vmatpush.bf16.msra.mxu1 %v8556_v3  ;;  %v9004_v27 = vor.u32 %v12318_v7, %v9001_v11 }
 0x151   :  { %v9513_v13 = vld [vmem:[%s19741_s1 + $0xc48] sm:$0xf0] }
 0x152   :  { %v12686_v15 = vld [vmem:[%s19741_s1 + $0x138c] sm:$0xf]  ;;  %6521 = vmatpush.bf16.msra.mxu2 %v9068_v4  ;;  %v9516_v30 = vor.u32 %v12446_v12, %v9513_v13  ;;  %6496 = vmatpush.bf16.msra.mxu0 %v7980_v20 }
 0x153   :  { %v10473_v18 = vld [vmem:[%s19741_s1 + $0x13c8] sm:$0xf0] }
 0x154   :  { %v12814_v19 = vld [vmem:[%s19741_s1 + $0x178c] sm:$0xf]  ;;  %6534 = vmatpush.bf16.msra.mxu3 %v9580_v10  ;;  %v10476_v31 = vor.u32 %v12686_v15, %v10473_v18  ;;  %6509 = vmatpush.bf16.msra.mxu1 %v8492_v26  ;;  %v14652_v10 = vpop.f32.mrf.mxu0  ;;  %v14663_v18 = vpop.f32.mrf.mxu1 }
 0x155   :  { %v10985_v21 = vld [vmem:[%s19741_s1 + $0x17c8] sm:$0xf0]  ;;  %6497 = vmatmul.bf16.vlgmr.msra.gmra.mxu0 %v13402_v9 }
 0x156   :  { %v12942_v22 = vld [vmem:[%s19741_s1 + $0x1b8c] sm:$0xf]  ;;  %v10988_v32 = vor.u32 %v12814_v19, %v10985_v21  ;;  %6522 = vmatpush.bf16.msra.mxu2 %v9004_v27  ;;  %6541 = vmatpush.bf16.msrb.mxu0 %v10476_v31 }
 0x157   :  { %v11497_v24 = vld [vmem:[%s19741_s1 + $0x1bc8] sm:$0xf0]  ;;  %6510 = vmatmul.bf16.vlgmr.msra.gmra.mxu1 %v13421_v17 }
 0x158   :  { %v13070_v28 = vld [vmem:[%s19741_s1 + $0x1f8c] sm:$0xf]  ;;  %v11500_v25 = vor.u32 %v12942_v22, %v11497_v24  ;;  %6535 = vmatpush.bf16.msra.mxu3 %v9516_v30  ;;  %6554 = vmatpush.bf16.msrb.mxu1 %v10988_v32 }
 0x159   :  { %v12009_v29 = vld [vmem:[%s19741_s1 + $0x1fc8] sm:$0xf0]  ;;  %6523 = vmatmul.bf16.vlgmr.msra.gmra.mxu2 %v13381_v63 }
 0x15a   :  { %v12670_v35 = vld [vmem:[%s19741_s1 + $0x130c] sm:$0xf]  ;;  %v12012_v41 = vor.u32 %v13070_v28, %v12009_v29  ;;  %6567 = vmatpush.bf16.msrb.mxu2 %v11500_v25  ;;  %v14689_v25 = vpop.f32.mrf.mxu2 }
 0x15b   :  { %v10409_v36 = vld [vmem:[%s19741_s1 + $0x1348] sm:$0xf0]  ;;  %6536 = vmatmul.bf16.vlgmr.msra.gmra.mxu3 %v13419_v16 }
 0x15c   :  { %v12798_v39 = vld [vmem:[%s19741_s1 + $0x170c] sm:$0xf]  ;;  %v10412_v48 = vor.u32 %v12670_v35, %v10409_v36  ;;  %6580 = vmatpush.bf16.msrb.mxu3 %v12012_v41 }
 0x15d   :  { %v10921_v43 = vld [vmem:[%s19741_s1 + $0x1748] sm:$0xf0] }
 0x15e   :  { %v12926_v44 = vld [vmem:[%s19741_s1 + $0x1b0c] sm:$0xf]  ;;  %v10924_v49 = vor.u32 %v12798_v39, %v10921_v43  ;;  %6542 = vmatpush.bf16.msrb.mxu0 %v10412_v48  ;;  %v14700_v43 = vpop.f32.mrf.mxu3 }
 0x15f   :  { %v11433_v45 = vld [vmem:[%s19741_s1 + $0x1b48] sm:$0xf0] }
 0x160   :  { %v13054_v46 = vld [vmem:[%s19741_s1 + $0x1f0c] sm:$0xf]  ;;  %v11436_v42 = vor.u32 %v12926_v44, %v11433_v45  ;;  %6555 = vmatpush.bf16.msrb.mxu1 %v10924_v49 }
 0x161   :  { %v11945_v47 = vld [vmem:[%s19741_s1 + $0x1f48] sm:$0xf0] }
 0x162   :  { %v12654_v50 = vld [vmem:[%s19741_s1 + $0x128c] sm:$0xf]  ;;  %v11948_v53 = vor.u32 %v13054_v46, %v11945_v47  ;;  %6568 = vmatpush.bf16.msrb.mxu2 %v11436_v42  ;;  %v6292_v47 = vpop.f32.mrf.mxu0 }
 0x163   :  { %v10345_v51 = vld [vmem:[%s19741_s1 + $0x12c8] sm:$0xf0] }
 0x164   :  { %v12782_v52 = vld [vmem:[%s19741_s1 + $0x168c] sm:$0xf]  ;;  %v10348_v60 = vor.u32 %v12654_v50, %v10345_v51  ;;  %6581 = vmatpush.bf16.msrb.mxu3 %v11948_v53 }
 0x165   :  { %v10857_v54 = vld [vmem:[%s19741_s1 + $0x16c8] sm:$0xf0] }
 0x166   :  { %v12910_v56 = vld [vmem:[%s19741_s1 + $0x1a8c] sm:$0xf]  ;;  %v10860_v61 = vor.u32 %v12782_v52, %v10857_v54  ;;  %6543 = vmatpush.bf16.msrb.mxu0 %v10348_v60  ;;  %v6305_v52 = vpop.f32.mrf.mxu1 }
 0x167   :  { %v11369_v57 = vld [vmem:[%s19741_s1 + $0x1ac8] sm:$0xf0]  ;;  %v8815_v52 = vld [vmem:[%s19741_s1 + $0x690] sm:$0xf] }
 0x168   :  { %v13038_v58 = vld [vmem:[%s19741_s1 + $0x1e8c] sm:$0xf]  ;;  %v11372_v62 = vor.u32 %v12910_v56, %v11369_v57  ;;  %6556 = vmatpush.bf16.msrb.mxu1 %v10860_v61 }
 0x169   :  { %v11881_v59 = vld [vmem:[%s19741_s1 + $0x1ec8] sm:$0xf0] }
 0x16a   :  { %v12638_v55 = vld [vmem:[%s19741_s1 + $0x120c] sm:$0xf]  ;;  %v11884_v2 = vor.u32 %v13038_v58, %v11881_v59  ;;  %6569 = vmatpush.bf16.msrb.mxu2 %v11372_v62 }
 0x16b   :  { %v10281_v0 = vld [vmem:[%s19741_s1 + $0x1248] sm:$0xf0] }
 0x16c   :  { %v12766_v1 = vld [vmem:[%s19741_s1 + $0x160c] sm:$0xf]  ;;  %v10284_v8 = vor.u32 %v12638_v55, %v10281_v0  ;;  %6582 = vmatpush.bf16.msrb.mxu3 %v11884_v2 }
 0x16d   :  { %v10793_v3 = vld [vmem:[%s19741_s1 + $0x1648] sm:$0xf0] }
 0x16e   :  { %v12894_v4 = vld [vmem:[%s19741_s1 + $0x1a0c] sm:$0xf]  ;;  %v10796_v11 = vor.u32 %v12766_v1, %v10793_v3  ;;  %6544 = vmatpush.bf16.msrb.mxu0 %v10284_v8 }
 0x16f   :  { %v11305_v5 = vld [vmem:[%s19741_s1 + $0x1a48] sm:$0xf0] }
 0x170   :  { %v13022_v6 = vld [vmem:[%s19741_s1 + $0x1e0c] sm:$0xf]  ;;  %v11308_v12 = vor.u32 %v12894_v4, %v11305_v5  ;;  %6557 = vmatpush.bf16.msrb.mxu1 %v10796_v11  ;;  %v6318_v4 = vpop.f32.mrf.mxu2  ;;  %v6331_v11 = vpop.f32.mrf.mxu3 }
 0x171   :  { %v11817_v7 = vld [vmem:[%s19741_s1 + $0x1e48] sm:$0xf0]  ;;  %v12391_v4 = vld [vmem:[%s19741_s1 + $0xa4c] sm:$0xf0] }
 0x172   :  { %v12622_v13 = vld [vmem:[%s19741_s1 + $0x118c] sm:$0xf]  ;;  %v11820_v19 = vor.u32 %v13022_v6, %v11817_v7  ;;  %6570 = vmatpush.bf16.msrb.mxu2 %v11308_v12  ;;  %v8431_v12 = vld [vmem:[%s19741_s1 + $0x390] sm:$0xf] }
 0x173   :  { %v10217_v14 = vld [vmem:[%s19741_s1 + $0x11c8] sm:$0xf0] }
 0x174   :  { %v12750_v15 = vld [vmem:[%s19741_s1 + $0x158c] sm:$0xf]  ;;  %v10220_v27 = vor.u32 %v12622_v13, %v10217_v14  ;;  %6583 = vmatpush.bf16.msrb.mxu3 %v11820_v19  ;;  %v12183_v13 = vld [vmem:[%s19741_s1 + $0x3cc] sm:$0xf0] }
 0x175   :  { %v10729_v20 = vld [vmem:[%s19741_s1 + $0x15c8] sm:$0xf0]  ;;  %v8943_v14 = vld [vmem:[%s19741_s1 + $0x790] sm:$0xf] }
 0x176   :  { %v12878_v21 = vld [vmem:[%s19741_s1 + $0x198c] sm:$0xf]  ;;  %v10732_v28 = vor.u32 %v12750_v15, %v10729_v20  ;;  %6545 = vmatpush.bf16.msrb.mxu0 %v10220_v27  ;;  %v12311_v19 = vld [vmem:[%s19741_s1 + $0x7cc] sm:$0xf0] }
 0x177   :  { %v11241_v22 = vld [vmem:[%s19741_s1 + $0x19c8] sm:$0xf0]  ;;  %v9455_v20 = vld [vmem:[%s19741_s1 + $0xb90] sm:$0xf] }
 0x178   :  { %v13006_v24 = vld [vmem:[%s19741_s1 + $0x1d8c] sm:$0xf]  ;;  %v11244_v29 = vor.u32 %v12878_v21, %v11241_v22  ;;  %6558 = vmatpush.bf16.msrb.mxu1 %v10732_v28  ;;  %v12439_v21 = vld [vmem:[%s19741_s1 + $0xbcc] sm:$0xf0] }
 0x179   :  { %v11753_v26 = vld [vmem:[%s19741_s1 + $0x1dc8] sm:$0xf0]  ;;  %v12567_v27 = vld [vmem:[%s19741_s1 + $0xfcc] sm:$0xf0] }
 0x17a   :  { %v12606_v30 = vld [vmem:[%s19741_s1 + $0x110c] sm:$0xf]  ;;  %v11756_v35 = vor.u32 %v13006_v24, %v11753_v26  ;;  %6571 = vmatpush.bf16.msrb.mxu2 %v11244_v29  ;;  %v9967_v26 = vld [vmem:[%s19741_s1 + $0xf90] sm:$0xf]  ;;  %v8432_v29 = vor.u32 %v12183_v13, %v8431_v12 }
 0x17b   :  { %v10153_v31 = vld [vmem:[%s19741_s1 + $0x1148] sm:$0xf0]  ;;  %v8175_v13 = vld [vmem:[%s19741_s1 + $0x190] sm:$0xf] }
 0x17c   :  { %v12734_v32 = vld [vmem:[%s19741_s1 + $0x150c] sm:$0xf]  ;;  %v10156_v46 = vor.u32 %v12606_v30, %v10153_v31  ;;  %6584 = vmatpush.bf16.msrb.mxu3 %v11756_v35  ;;  %v8944_v30 = vor.u32 %v12311_v19, %v8943_v14  ;;  %v9456_v31 = vor.u32 %v12439_v21, %v9455_v20  ;;  %v8367_v35 = vld [vmem:[%s19741_s1 + $0x310] sm:$0xf]  ;;  %v6355_v20 = vpop.f32.mrf.mxu1 }
 0x17d   :  { %v10665_v36 = vld [vmem:[%s19741_s1 + $0x1548] sm:$0xf0]  ;;  %v12119_v14 = vld [vmem:[%s19741_s1 + $0x1cc] sm:$0xf0] }
 0x17e   :  { %v12862_v39 = vld [vmem:[%s19741_s1 + $0x190c] sm:$0xf]  ;;  %v10668_v48 = vor.u32 %v12734_v32, %v10665_v36  ;;  %6546 = vmatpush.bf16.msrb.mxu0 %v10156_v46  ;;  %v6304_v32 = vadd.f32 %v14663_v18, %v14652_v10  ;;  %v12167_v36 = vld [vmem:[%s19741_s1 + $0x34c] sm:$0xf0] }
 0x17f   :  { %v11177_v41 = vld [vmem:[%s19741_s1 + $0x1948] sm:$0xf0]  ;;  %v9391_v10 = vld [vmem:[%s19741_s1 + $0xb10] sm:$0xf]  ;;  %v8368_v47 = vor.u32 %v12167_v36, %v8367_v35 }
 0x180   :  { %v12990_v44 = vld [vmem:[%s19741_s1 + $0x1d0c] sm:$0xf]  ;;  %v11180_v49 = vor.u32 %v12862_v39, %v11177_v41  ;;  %6559 = vmatpush.bf16.msrb.mxu1 %v10668_v48  ;;  %v8879_v39 = vld [vmem:[%s19741_s1 + $0x710] sm:$0xf]  ;;  %v9968_v41 = vor.u32 %v12567_v27, %v9967_v26 }
 0x181   :  { %v11689_v45 = vld [vmem:[%s19741_s1 + $0x1d48] sm:$0xf0]  ;;  %v12423_v18 = vld [vmem:[%s19741_s1 + $0xb4c] sm:$0xf0] }
 0x182   :  { %v12590_v42 = vld [vmem:[%s19741_s1 + $0x108c] sm:$0xf]  ;;  %v11692_v53 = vor.u32 %v12990_v44, %v11689_v45  ;;  %6572 = vmatpush.bf16.msrb.mxu2 %v11180_v49  ;;  %v12295_v44 = vld [vmem:[%s19741_s1 + $0x74c] sm:$0xf0]  ;;  %v9392_v49 = vor.u32 %v12423_v18, %v9391_v10 }
 0x183   :  { %v10089_v50 = vld [vmem:[%s19741_s1 + $0x10c8] sm:$0xf0]  ;;  %v9903_v45 = vld [vmem:[%s19741_s1 + $0xf10] sm:$0xf]  ;;  %v8880_v48 = vor.u32 %v12295_v44, %v8879_v39  ;;  %v6368_v44 = vpop.f32.mrf.mxu2 }
 0x184   :  { %v12718_v51 = vld [vmem:[%s19741_s1 + $0x148c] sm:$0xf]  ;;  %v10092_v60 = vor.u32 %v12590_v42, %v10089_v50  ;;  %6585 = vmatpush.bf16.msrb.mxu3 %v11692_v53  ;;  %v12551_v46 = vld [vmem:[%s19741_s1 + $0xf4c] sm:$0xf0]  ;;  %v6317_v42 = vadd.f32 %v14689_v25, %v6304_v32 }
 0x185   :  { %v10601_v54 = vld [vmem:[%s19741_s1 + $0x14c8] sm:$0xf0]  ;;  %v8303_v50 = vld [vmem:[%s19741_s1 + $0x290] sm:$0xf]  ;;  %v9904_v53 = vor.u32 %v12551_v46, %v9903_v45 }
 0x186   :  { %v12846_v56 = vld [vmem:[%s19741_s1 + $0x188c] sm:$0xf]  ;;  %v10604_v55 = vor.u32 %v12718_v51, %v10601_v54  ;;  %6547 = vmatpush.bf16.msrb.mxu0 %v10092_v60  ;;  %v12151_v51 = vld [vmem:[%s19741_s1 + $0x2cc] sm:$0xf0]  ;;  %v6330_v60 = vadd.f32 %v14700_v43, %v6317_v42 }
 0x187   :  { %v11113_v57 = vld [vmem:[%s19741_s1 + $0x18c8] sm:$0xf0]  ;;  %v12279_v25 = vld [vmem:[%s19741_s1 + $0x6cc] sm:$0xf0] }
 0x188   :  { %v12974_v58 = vld [vmem:[%s19741_s1 + $0x1c8c] sm:$0xf]  ;;  %v11116_v0 = vor.u32 %v12846_v56, %v11113_v57  ;;  %6560 = vmatpush.bf16.msrb.mxu1 %v10604_v55  ;;  %v9327_v54 = vld [vmem:[%s19741_s1 + $0xa90] sm:$0xf] }
 0x189   :  { %v11625_v59 = vld [vmem:[%s19741_s1 + $0x1cc8] sm:$0xf0]  ;;  %v12407_v56 = vld [vmem:[%s19741_s1 + $0xacc] sm:$0xf0] }
 0x18a   :  { %v12574_v61 = vld [vmem:[%s19741_s1 + $0x100c] sm:$0xf]  ;;  %v11628_v5 = vor.u32 %v12974_v58, %v11625_v59  ;;  %6573 = vmatpush.bf16.msrb.mxu2 %v11116_v0  ;;  %v9839_v57 = vld [vmem:[%s19741_s1 + $0xe90] sm:$0xf]  ;;  %v8304_v59 = vor.u32 %v12151_v51, %v8303_v50 }
 0x18b   :  { %v10025_v62 = vld [vmem:[%s19741_s1 + $0x1048] sm:$0xf0]  ;;  %v12535_v58 = vld [vmem:[%s19741_s1 + $0xecc] sm:$0xf0] }
 0x18c   :  { %v12702_v1 = vld [vmem:[%s19741_s1 + $0x140c] sm:$0xf]  ;;  %v10028_v15 = vor.u32 %v12574_v61, %v10025_v62  ;;  %6586 = vmatpush.bf16.msrb.mxu3 %v11628_v5  ;;  %v8816_v61 = vor.u32 %v12279_v25, %v8815_v52  ;;  %v9328_v62 = vor.u32 %v12407_v56, %v9327_v54  ;;  %v8239_v55 = vld [vmem:[%s19741_s1 + $0x210] sm:$0xf]  ;;  %v7898_v52 = vperm.slane %v14485_v33, 1 }
 0x18d   :  { %v10537_v2 = vld [vmem:[%s19741_s1 + $0x1448] sm:$0xf0]  ;;  %v12135_v0 = vld [vmem:[%s19741_s1 + $0x24c] sm:$0xf0] }
 0x18e   :  { %v12830_v3 = vld [vmem:[%s19741_s1 + $0x180c] sm:$0xf]  ;;  %v10540_v22 = vor.u32 %v12702_v1, %v10537_v2  ;;  %6548 = vmatpush.bf16.msrb.mxu0 %v10028_v15  ;;  %v8751_v1 = vld [vmem:[%s19741_s1 + $0x610] sm:$0xf]  ;;  %v9840_v2 = vor.u32 %v12535_v58, %v9839_v57  ;;  %v6357_v58 = vpop.f32.mrf.mxu1 }
 0x18f   :  { %v11049_v6 = vld [vmem:[%s19741_s1 + $0x1848] sm:$0xf0]  ;;  %v12263_v43 = vld [vmem:[%s19741_s1 + $0x64c] sm:$0xf0] }
 0x190   :  { %v12958_v7 = vld [vmem:[%s19741_s1 + $0x1c0c] sm:$0xf]  ;;  %v11052_v24 = vor.u32 %v12830_v3, %v11049_v6  ;;  %6561 = vmatpush.bf16.msrb.mxu1 %v10540_v22  ;;  %v9263_v3 = vld [vmem:[%s19741_s1 + $0xa10] sm:$0xf]  ;;  %v8752_v11 = vor.u32 %v12263_v43, %v8751_v1 }
 0x191   :  { %v11561_v8 = vld [vmem:[%s19741_s1 + $0x1c48] sm:$0xf0]  ;;  %6549 = vmatmul.bf16.vlgmr.msrb.gmra.mxu0 %v13590_v37  ;;  %v9775_v5 = vld [vmem:[%s19741_s1 + $0xe10] sm:$0xf]  ;;  %v9264_v12 = vor.u32 %v12391_v4, %v9263_v3 }
 0x192   :  { %v11564_v28 = vor.u32 %v12958_v7, %v11561_v8  ;;  %6574 = vmatpush.bf16.msrb.mxu2 %v11052_v24  ;;  %6593 = vmatpush.bf16.msra.mxu0 %v8432_v29  ;;  %v12519_v6 = vld [vmem:[%s19741_s1 + $0xe4c] sm:$0xf0]  ;;  %v8240_v7 = vor.u32 %v12135_v0, %v8239_v55  ;;  %v6342_v8 = vpop.f32.mrf.mxu0 }
 0x193   :  { %6562 = vmatmul.bf16.vlgmr.msrb.gmra.mxu1 %v13594_v40  ;;  %v8687_v15 = vld [vmem:[%s19741_s1 + $0x590] sm:$0xf]  ;;  %v6343_v19 = vadd.f32 %v6342_v8, %v6330_v60  ;;  %v9776_v21 = vor.u32 %v12519_v6, %v9775_v5 }
 0x194   :  { %6587 = vmatpush.bf16.msrb.mxu3 %v11564_v28  ;;  %6606 = vmatpush.bf16.msra.mxu1 %v8944_v30  ;;  %v12247_v22 = vld [vmem:[%s19741_s1 + $0x5cc] sm:$0xf0]  ;;  %v8176_v30 = vor.u32 %v12119_v14, %v8175_v13 }
 0x195   :  { %6575 = vmatmul.bf16.vlgmr.msrb.gmra.mxu2 %v13582_v34  ;;  %v9199_v24 = vld [vmem:[%s19741_s1 + $0x990] sm:$0xf]  ;;  %v6356_v29 = vadd.f32 %v6355_v20, %v6343_v19  ;;  %v8688_v32 = vor.u32 %v12247_v22, %v8687_v15 }
 0x196   :  { %6619 = vmatpush.bf16.msra.mxu2 %v9456_v31  ;;  %6594 = vmatpush.bf16.msra.mxu0 %v8368_v47  ;;  %v12375_v26 = vld [vmem:[%s19741_s1 + $0x9cc] sm:$0xf0]  ;;  %v6381_v47 = vpop.f32.mrf.mxu3 }
 0x197   :  { %6588 = vmatmul.bf16.vlgmr.msrb.gmra.mxu3 %v13592_v38  ;;  %v9711_v27 = vld [vmem:[%s19741_s1 + $0xd90] sm:$0xf]  ;;  %v9200_v35 = vor.u32 %v12375_v26, %v9199_v24  ;;  %v6369_v46 = vadd.f32 %v6368_v44, %v6356_v29 }
 0x198   :  { %6632 = vmatpush.bf16.msra.mxu3 %v9968_v41  ;;  %6607 = vmatpush.bf16.msra.mxu1 %v8880_v48  ;;  %v12503_v28 = vld [vmem:[%s19741_s1 + $0xdcc] sm:$0xf0]  ;;  %v7846_v48 = vperm.slane %v14468_v23, 1 }
 0x199   :  { %v8111_v31 = vld [vmem:[%s19741_s1 + $0x110] sm:$0xf]  ;;  %v9712_v10 = vor.u32 %v12503_v28, %v9711_v27  ;;  %v6382_v51 = vadd.f32 %v6381_v47, %v6369_v46 }
 0x19a   :  { %6620 = vmatpush.bf16.msra.mxu2 %v9392_v49  ;;  %6595 = vmatpush.bf16.msra.mxu0 %v8304_v59  ;;  %v12103_v36 = vld [vmem:[%s19741_s1 + $0x14c] sm:$0xf0] }
 0x19b   :  { %v8623_v39 = vld [vmem:[%s19741_s1 + $0x510] sm:$0xf]  ;;  %v8112_v50 = vor.u32 %v12103_v36, %v8111_v31  ;;  %v7878_v59 = vmul.f32 %v7846_v48, %v6382_v51 }
 0x19c   :  { %6633 = vmatpush.bf16.msra.mxu3 %v9904_v53  ;;  %6608 = vmatpush.bf16.msra.mxu1 %v8816_v61  ;;  %v12231_v41 = vld [vmem:[%s19741_s1 + $0x54c] sm:$0xf0]  ;;  %v6344_v53 = vpop.f32.mrf.mxu0 }
 0x19d   :  { %v9135_v18 = vld [vmem:[%s19741_s1 + $0x910] sm:$0xf]  ;;  %v8624_v25 = vor.u32 %v12231_v41, %v8623_v39  ;;  %v7930_v1 = vadd.f32 %v7898_v52, %v7878_v59 }
 0x19e   :  { %6621 = vmatpush.bf16.msra.mxu2 %v9328_v62  ;;  %6596 = vmatpush.bf16.msra.mxu0 %v8240_v7  ;;  %v12359_v45 = vld [vmem:[%s19741_s1 + $0x94c] sm:$0xf0]  ;;  %v6383_v19 = vpop.f32.mrf.mxu3 }
 0x19f   :  { %v9647_v49 = vld [vmem:[%s19741_s1 + $0xd10] sm:$0xf]  ;;  %v9136_v54 = vor.u32 %v12359_v45, %v9135_v18  ;;  %7946 = vst [vmem:[%s19745_s4 + $0x8] sm:$0xff] %v7930_v1  ;;  %v15072_v19 = vpop.f32.mrf.mxu1 }
 0x1a0   :  { %6634 = vmatpush.bf16.msra.mxu3 %v9840_v2  ;;  %6609 = vmatpush.bf16.msra.mxu1 %v8752_v11  ;;  %v12487_v42 = vld [vmem:[%s19741_s1 + $0xd4c] sm:$0xf0] }
 0x1a1   :  { %v8047_v23 = vld [vmem:[%s19741_s1 + $0x90] sm:$0xf]  ;;  %v9648_v33 = vor.u32 %v12487_v42, %v9647_v49 }
 0x1a2   :  { %6622 = vmatpush.bf16.msra.mxu2 %v9264_v12  ;;  %6597 = vmatpush.bf16.msra.mxu0 %v8176_v30  ;;  %v12087_v56 = vld [vmem:[%s19741_s1 + $0xcc] sm:$0xf0]  ;;  %v6370_v12 = vpop.f32.mrf.mxu2 }
 0x1a3   :  { %v8559_v57 = vld [vmem:[%s19741_s1 + $0x490] sm:$0xf]  ;;  %v8048_v2 = vor.u32 %v12087_v56, %v8047_v23 }
 0x1a4   :  { %6635 = vmatpush.bf16.msra.mxu3 %v9776_v21  ;;  %6610 = vmatpush.bf16.msra.mxu1 %v8688_v32  ;;  %v12215_v60 = vld [vmem:[%s19741_s1 + $0x4cc] sm:$0xf0] }
 0x1a5   :  { %v9071_v61 = vld [vmem:[%s19741_s1 + $0x890] sm:$0xf]  ;;  %v8560_v5 = vor.u32 %v12215_v60, %v8559_v57 }
 0x1a6   :  { %6623 = vmatpush.bf16.msra.mxu2 %v9200_v35  ;;  %v12343_v62 = vld [vmem:[%s19741_s1 + $0x8cc] sm:$0xf0]  ;;  %6598 = vmatpush.bf16.msra.mxu0 %v8112_v50 }
 0x1a7   :  { %v9583_v55 = vld [vmem:[%s19741_s1 + $0xc90] sm:$0xf]  ;;  %v9072_v6 = vor.u32 %v12343_v62, %v9071_v61 }
 0x1a8   :  { %6636 = vmatpush.bf16.msra.mxu3 %v9712_v10  ;;  %v12471_v0 = vld [vmem:[%s19741_s1 + $0xccc] sm:$0xf0]  ;;  %6611 = vmatpush.bf16.msra.mxu1 %v8624_v25 }
 0x1a9   :  { %v7983_v43 = vld [vmem:[%s19741_s1 + $0x10] sm:$0xf]  ;;  %v9584_v13 = vor.u32 %v12471_v0, %v9583_v55 }
 0x1aa   :  { %v12071_v3 = vld [vmem:[%s19741_s1 + $0x4c] sm:$0xf0]  ;;  %6624 = vmatpush.bf16.msra.mxu2 %v9136_v54  ;;  %6599 = vmatpush.bf16.msra.mxu0 %v8048_v2 }
 0x1ab   :  { %v8495_v4 = vld [vmem:[%s19741_s1 + $0x410] sm:$0xf]  ;;  %v7984_v24 = vor.u32 %v12071_v3, %v7983_v43 }
 0x1ac   :  { %v12199_v7 = vld [vmem:[%s19741_s1 + $0x44c] sm:$0xf0]  ;;  %6637 = vmatpush.bf16.msra.mxu3 %v9648_v33  ;;  %6612 = vmatpush.bf16.msra.mxu1 %v8560_v5 }
 0x1ad   :  { %v9007_v8 = vld [vmem:[%s19741_s1 + $0x810] sm:$0xf]  ;;  %v8496_v29 = vor.u32 %v12199_v7, %v8495_v4 }
 0x1ae   :  { %v12327_v11 = vld [vmem:[%s19741_s1 + $0x84c] sm:$0xf0]  ;;  %6625 = vmatpush.bf16.msra.mxu2 %v9072_v6  ;;  %6600 = vmatpush.bf16.msra.mxu0 %v7984_v24 }
 0x1af   :  { %v9519_v14 = vld [vmem:[%s19741_s1 + $0xc10] sm:$0xf]  ;;  %v9008_v30 = vor.u32 %v12327_v11, %v9007_v8  ;;  %v15061_v8 = vpop.f32.mrf.mxu0 }
 0x1b0   :  { %v12455_v15 = vld [vmem:[%s19741_s1 + $0xc4c] sm:$0xf0]  ;;  %6638 = vmatpush.bf16.msra.mxu3 %v9584_v13  ;;  %6613 = vmatpush.bf16.msra.mxu1 %v8496_v29 }
 0x1b1   :  { %v10479_v20 = vld [vmem:[%s19741_s1 + $0x1390] sm:$0xf]  ;;  %v9520_v35 = vor.u32 %v12455_v15, %v9519_v14  ;;  %6601 = vmatmul.bf16.vlgmr.msra.gmra.mxu0 %v13402_v9 }
 0x1b2   :  { %v12695_v21 = vld [vmem:[%s19741_s1 + $0x13cc] sm:$0xf0]  ;;  %6626 = vmatpush.bf16.msra.mxu2 %v9008_v30 }
 0x1b3   :  { %v10991_v22 = vld [vmem:[%s19741_s1 + $0x1790] sm:$0xf]  ;;  %v10480_v36 = vor.u32 %v12695_v21, %v10479_v20  ;;  %6614 = vmatmul.bf16.vlgmr.msra.gmra.mxu1 %v13421_v17 }
 0x1b4   :  { %v12823_v26 = vld [vmem:[%s19741_s1 + $0x17cc] sm:$0xf0]  ;;  %6639 = vmatpush.bf16.msra.mxu3 %v9520_v35 }
 0x1b5   :  { %v11503_v27 = vld [vmem:[%s19741_s1 + $0x1b90] sm:$0xf]  ;;  %v10992_v39 = vor.u32 %v12823_v26, %v10991_v22  ;;  %6645 = vmatpush.bf16.msrb.mxu0 %v10480_v36  ;;  %6627 = vmatmul.bf16.vlgmr.msra.gmra.mxu2 %v13381_v63  ;;  %v15098_v36 = vpop.f32.mrf.mxu2 }
 0x1b6   :  { %v12951_v28 = vld [vmem:[%s19741_s1 + $0x1bcc] sm:$0xf0] }
 0x1b7   :  { %v12015_v31 = vld [vmem:[%s19741_s1 + $0x1f90] sm:$0xf]  ;;  %v11504_v41 = vor.u32 %v12951_v28, %v11503_v27  ;;  %6658 = vmatpush.bf16.msrb.mxu1 %v10992_v39  ;;  %6640 = vmatmul.bf16.vlgmr.msra.gmra.mxu3 %v13419_v16 }
 0x1b8   :  { %v13079_v32 = vld [vmem:[%s19741_s1 + $0x1fcc] sm:$0xf0] }
 0x1b9   :  { %v10415_v44 = vld [vmem:[%s19741_s1 + $0x1310] sm:$0xf]  ;;  %v12016_v45 = vor.u32 %v13079_v32, %v12015_v31  ;;  %6671 = vmatpush.bf16.msrb.mxu2 %v11504_v41 }
 0x1ba   :  { %v12679_v10 = vld [vmem:[%s19741_s1 + $0x134c] sm:$0xf0] }
 0x1bb   :  { %v10927_v18 = vld [vmem:[%s19741_s1 + $0x1710] sm:$0xf]  ;;  %v10416_v50 = vor.u32 %v12679_v10, %v10415_v44  ;;  %6684 = vmatpush.bf16.msrb.mxu3 %v12016_v45 }
 0x1bc   :  { %v12807_v46 = vld [vmem:[%s19741_s1 + $0x174c] sm:$0xf0] }
 0x1bd   :  { %v11439_v47 = vld [vmem:[%s19741_s1 + $0x1b10] sm:$0xf]  ;;  %v10928_v51 = vor.u32 %v12807_v46, %v10927_v18  ;;  %6646 = vmatpush.bf16.msrb.mxu0 %v10416_v50  ;;  %v15109_v18 = vpop.f32.mrf.mxu3 }
 0x1be   :  { %v12935_v48 = vld [vmem:[%s19741_s1 + $0x1b4c] sm:$0xf0] }
 0x1bf   :  { %v11951_v49 = vld [vmem:[%s19741_s1 + $0x1f10] sm:$0xf]  ;;  %v11440_v52 = vor.u32 %v12935_v48, %v11439_v47  ;;  %6659 = vmatpush.bf16.msrb.mxu1 %v10928_v51  ;;  %v6396_v48 = vpop.f32.mrf.mxu0 }
 0x1c0   :  { %v13063_v42 = vld [vmem:[%s19741_s1 + $0x1f4c] sm:$0xf0] }
 0x1c1   :  { %v10351_v53 = vld [vmem:[%s19741_s1 + $0x1290] sm:$0xf]  ;;  %v11952_v23 = vor.u32 %v13063_v42, %v11951_v49  ;;  %6672 = vmatpush.bf16.msrb.mxu2 %v11440_v52 }
 0x1c2   :  { %v12663_v25 = vld [vmem:[%s19741_s1 + $0x12cc] sm:$0xf0] }
 0x1c3   :  { %v10863_v54 = vld [vmem:[%s19741_s1 + $0x1690] sm:$0xf]  ;;  %v10352_v60 = vor.u32 %v12663_v25, %v10351_v53  ;;  %6685 = vmatpush.bf16.msrb.mxu3 %v11952_v23  ;;  %v6409_v53 = vpop.f32.mrf.mxu1 }
 0x1c4   :  { %v12791_v56 = vld [vmem:[%s19741_s1 + $0x16cc] sm:$0xf0]  ;;  %v12399_v53 = vld [vmem:[%s19741_s1 + $0xa94] sm:$0xf] }
 0x1c5   :  { %v11375_v57 = vld [vmem:[%s19741_s1 + $0x1a90] sm:$0xf]  ;;  %v10864_v61 = vor.u32 %v12791_v56, %v10863_v54  ;;  %6647 = vmatpush.bf16.msrb.mxu0 %v10352_v60 }
 0x1c6   :  { %v12919_v58 = vld [vmem:[%s19741_s1 + $0x1acc] sm:$0xf0] }
 0x1c7   :  { %v11887_v33 = vld [vmem:[%s19741_s1 + $0x1e90] sm:$0xf]  ;;  %v11376_v62 = vor.u32 %v12919_v58, %v11375_v57  ;;  %6660 = vmatpush.bf16.msrb.mxu1 %v10864_v61 }
 0x1c8   :  { %v13047_v59 = vld [vmem:[%s19741_s1 + $0x1ecc] sm:$0xf0] }
 0x1c9   :  { %v10287_v55 = vld [vmem:[%s19741_s1 + $0x1210] sm:$0xf]  ;;  %v11888_v2 = vor.u32 %v13047_v59, %v11887_v33  ;;  %6673 = vmatpush.bf16.msrb.mxu2 %v11376_v62 }
 0x1ca   :  { %v12647_v0 = vld [vmem:[%s19741_s1 + $0x124c] sm:$0xf0] }
 0x1cb   :  { %v10799_v1 = vld [vmem:[%s19741_s1 + $0x1610] sm:$0xf]  ;;  %v10288_v7 = vor.u32 %v12647_v0, %v10287_v55  ;;  %6686 = vmatpush.bf16.msrb.mxu3 %v11888_v2  ;;  %v6422_v2 = vpop.f32.mrf.mxu2 }
 0x1cc   :  { %v12775_v43 = vld [vmem:[%s19741_s1 + $0x164c] sm:$0xf0]  ;;  %v9777_v2 = vld [vmem:[%s19741_s1 + $0xe50] sm:$0xf0] }
 0x1cd   :  { %v11311_v3 = vld [vmem:[%s19741_s1 + $0x1a10] sm:$0xf]  ;;  %v10800_v11 = vor.u32 %v12775_v43, %v10799_v1  ;;  %6648 = vmatpush.bf16.msrb.mxu0 %v10288_v7  ;;  %v12175_v7 = vld [vmem:[%s19741_s1 + $0x394] sm:$0xf] }
 0x1ce   :  { %v12903_v4 = vld [vmem:[%s19741_s1 + $0x1a4c] sm:$0xf0] }
 0x1cf   :  { %v11823_v5 = vld [vmem:[%s19741_s1 + $0x1e10] sm:$0xf]  ;;  %v11312_v12 = vor.u32 %v12903_v4, %v11311_v3  ;;  %6661 = vmatpush.bf16.msrb.mxu1 %v10800_v11  ;;  %v8433_v11 = vld [vmem:[%s19741_s1 + $0x3d0] sm:$0xf0] }
 0x1d0   :  { %v13031_v6 = vld [vmem:[%s19741_s1 + $0x1e4c] sm:$0xf0] }
 0x1d1   :  { %v10223_v13 = vld [vmem:[%s19741_s1 + $0x1190] sm:$0xf]  ;;  %v11824_v20 = vor.u32 %v13031_v6, %v11823_v5  ;;  %6674 = vmatpush.bf16.msrb.mxu2 %v11312_v12  ;;  %v6435_v6 = vpop.f32.mrf.mxu3  ;;  %v12303_v12 = vld [vmem:[%s19741_s1 + $0x794] sm:$0xf] }
 0x1d2   :  { %v12631_v14 = vld [vmem:[%s19741_s1 + $0x11cc] sm:$0xf0]  ;;  %v12111_v6 = vld [vmem:[%s19741_s1 + $0x194] sm:$0xf] }
 0x1d3   :  { %v10735_v15 = vld [vmem:[%s19741_s1 + $0x1590] sm:$0xf]  ;;  %v10224_v28 = vor.u32 %v12631_v14, %v10223_v13  ;;  %6687 = vmatpush.bf16.msrb.mxu3 %v11824_v20  ;;  %v8945_v14 = vld [vmem:[%s19741_s1 + $0x7d0] sm:$0xf0] }
 0x1d4   :  { %v12759_v21 = vld [vmem:[%s19741_s1 + $0x15cc] sm:$0xf0]  ;;  %v9457_v20 = vld [vmem:[%s19741_s1 + $0xbd0] sm:$0xf0] }
 0x1d5   :  { %v11247_v22 = vld [vmem:[%s19741_s1 + $0x1990] sm:$0xf]  ;;  %v10736_v29 = vor.u32 %v12759_v21, %v10735_v15  ;;  %6649 = vmatpush.bf16.msrb.mxu0 %v10224_v28  ;;  %v12431_v15 = vld [vmem:[%s19741_s1 + $0xb94] sm:$0xf]  ;;  %v8436_v28 = vor.u32 %v12175_v7, %v8433_v11 }
 0x1d6   :  { %v12887_v24 = vld [vmem:[%s19741_s1 + $0x19cc] sm:$0xf0]  ;;  %v8177_v7 = vld [vmem:[%s19741_s1 + $0x1d0] sm:$0xf0] }
 0x1d7   :  { %v11759_v26 = vld [vmem:[%s19741_s1 + $0x1d90] sm:$0xf]  ;;  %v11248_v30 = vor.u32 %v12887_v24, %v11247_v22  ;;  %6662 = vmatpush.bf16.msrb.mxu1 %v10736_v29  ;;  %v12559_v24 = vld [vmem:[%s19741_s1 + $0xf94] sm:$0xf]  ;;  %v8948_v29 = vor.u32 %v12303_v12, %v8945_v14 }
 0x1d8   :  { %v13015_v27 = vld [vmem:[%s19741_s1 + $0x1dcc] sm:$0xf0]  ;;  %v12239_v11 = vld [vmem:[%s19741_s1 + $0x594] sm:$0xf] }
 0x1d9   :  { %v10159_v31 = vld [vmem:[%s19741_s1 + $0x1110] sm:$0xf]  ;;  %v11760_v39 = vor.u32 %v13015_v27, %v11759_v26  ;;  %6675 = vmatpush.bf16.msrb.mxu2 %v11248_v30  ;;  %v9969_v26 = vld [vmem:[%s19741_s1 + $0xfd0] sm:$0xf0]  ;;  %v9460_v30 = vor.u32 %v12431_v15, %v9457_v20 }
 0x1da   :  { %v12615_v32 = vld [vmem:[%s19741_s1 + $0x114c] sm:$0xf0]  ;;  %v8689_v15 = vld [vmem:[%s19741_s1 + $0x5d0] sm:$0xf0] }
 0x1db   :  { %v10671_v35 = vld [vmem:[%s19741_s1 + $0x1510] sm:$0xf]  ;;  %v10160_v47 = vor.u32 %v12615_v32, %v10159_v31  ;;  %6688 = vmatpush.bf16.msrb.mxu3 %v11760_v39  ;;  %v6408_v31 = vadd.f32 %v15072_v19, %v15061_v8  ;;  %v12159_v32 = vld [vmem:[%s19741_s1 + $0x314] sm:$0xf] }
 0x1dc   :  { %v12743_v41 = vld [vmem:[%s19741_s1 + $0x154c] sm:$0xf0]  ;;  %v12287_v39 = vld [vmem:[%s19741_s1 + $0x714] sm:$0xf] }
 0x1dd   :  { %v11183_v44 = vld [vmem:[%s19741_s1 + $0x1910] sm:$0xf]  ;;  %v10672_v49 = vor.u32 %v12743_v41, %v10671_v35  ;;  %6650 = vmatpush.bf16.msrb.mxu0 %v10160_v47  ;;  %v8369_v35 = vld [vmem:[%s19741_s1 + $0x350] sm:$0xf0]  ;;  %v9972_v41 = vor.u32 %v12559_v24, %v9969_v26 }
 0x1de   :  { %v12871_v10 = vld [vmem:[%s19741_s1 + $0x194c] sm:$0xf0]  ;;  %v12415_v8 = vld [vmem:[%s19741_s1 + $0xb14] sm:$0xf] }
 0x1df   :  { %v11695_v45 = vld [vmem:[%s19741_s1 + $0x1d10] sm:$0xf]  ;;  %v11184_v42 = vor.u32 %v12871_v10, %v11183_v44  ;;  %6663 = vmatpush.bf16.msrb.mxu1 %v10672_v49  ;;  %v8881_v44 = vld [vmem:[%s19741_s1 + $0x750] sm:$0xf0]  ;;  %v6421_v49 = vadd.f32 %v15098_v36, %v6408_v31 }
 0x1e0   :  { %v12999_v46 = vld [vmem:[%s19741_s1 + $0x1d4c] sm:$0xf0]  ;;  %v9393_v19 = vld [vmem:[%s19741_s1 + $0xb50] sm:$0xf0]  ;;  %v8884_v47 = vor.u32 %v12287_v39, %v8881_v44  ;;  %v6472_v39 = vpop.f32.mrf.mxu2 }
 0x1e1   :  { %v10095_v50 = vld [vmem:[%s19741_s1 + $0x1090] sm:$0xf]  ;;  %v11696_v25 = vor.u32 %v12999_v46, %v11695_v45  ;;  %6676 = vmatpush.bf16.msrb.mxu2 %v11184_v42  ;;  %v12543_v10 = vld [vmem:[%s19741_s1 + $0xf14] sm:$0xf]  ;;  %v8372_v46 = vor.u32 %v12159_v32, %v8369_v35  ;;  %v9396_v48 = vor.u32 %v12415_v8, %v9393_v19 }
 0x1e2   :  { %v12599_v51 = vld [vmem:[%s19741_s1 + $0x10cc] sm:$0xf0]  ;;  %v9905_v45 = vld [vmem:[%s19741_s1 + $0xf50] sm:$0xf0] }
 0x1e3   :  { %v10607_v52 = vld [vmem:[%s19741_s1 + $0x1490] sm:$0xf]  ;;  %v10096_v33 = vor.u32 %v12599_v51, %v10095_v50  ;;  %6689 = vmatpush.bf16.msrb.mxu3 %v11696_v25  ;;  %v12143_v42 = vld [vmem:[%s19741_s1 + $0x294] sm:$0xf] }
 0x1e4   :  { %v12727_v54 = vld [vmem:[%s19741_s1 + $0x14cc] sm:$0xf0]  ;;  %v8305_v50 = vld [vmem:[%s19741_s1 + $0x2d0] sm:$0xf0] }
 0x1e5   :  { %v11119_v23 = vld [vmem:[%s19741_s1 + $0x1890] sm:$0xf]  ;;  %v10608_v61 = vor.u32 %v12727_v54, %v10607_v52  ;;  %6651 = vmatpush.bf16.msrb.mxu0 %v10096_v33  ;;  %v12271_v51 = vld [vmem:[%s19741_s1 + $0x694] sm:$0xf]  ;;  %v9908_v52 = vor.u32 %v12543_v10, %v9905_v45  ;;  %v6485_v10 = vpop.f32.mrf.mxu3  ;;  %v15314_v45 = vld [vmem:[%s19743_s2] sm:$0xff] }
 0x1e6   :  { %v12855_v56 = vld [vmem:[%s19741_s1 + $0x18cc] sm:$0xf0]  ;;  %v8817_v36 = vld [vmem:[%s19741_s1 + $0x6d0] sm:$0xf0] }
 0x1e7   :  { %v11631_v57 = vld [vmem:[%s19741_s1 + $0x1c90] sm:$0xf]  ;;  %v11120_v62 = vor.u32 %v12855_v56, %v11119_v23  ;;  %6664 = vmatpush.bf16.msrb.mxu1 %v10608_v61  ;;  %v9329_v25 = vld [vmem:[%s19741_s1 + $0xad0] sm:$0xf0]  ;;  %v8308_v56 = vor.u32 %v12143_v42, %v8305_v50  ;;  %v15326_v50 = vld [vmem:[%s19744_s3] sm:$0xff] }
 0x1e8   :  { %v12983_v58 = vld [vmem:[%s19741_s1 + $0x1ccc] sm:$0xf0]  ;;  %v12527_v54 = vld [vmem:[%s19741_s1 + $0xe94] sm:$0xf]  ;;  %v9332_v33 = vor.u32 %v12399_v53, %v9329_v25 }
 0x1e9   :  { %v10031_v59 = vld [vmem:[%s19741_s1 + $0x1010] sm:$0xf]  ;;  %v11632_v43 = vor.u32 %v12983_v58, %v11631_v57  ;;  %6677 = vmatpush.bf16.msrb.mxu2 %v11120_v62  ;;  %v9841_v23 = vld [vmem:[%s19741_s1 + $0xed0] sm:$0xf0]  ;;  %v6434_v57 = vadd.f32 %v15109_v18, %v6421_v49  ;;  %v8820_v58 = vor.u32 %v12271_v51, %v8817_v36  ;;  %v7899_v51 = vperm.slane %v15326_v50, 2 }
 0x1ea   :  { %v12583_v60 = vld [vmem:[%s19741_s1 + $0x104c] sm:$0xf0]  ;;  %v12255_v61 = vld [vmem:[%s19741_s1 + $0x614] sm:$0xf]  ;;  %v9844_v62 = vor.u32 %v12527_v54, %v9841_v23 }
 0x1eb   :  { %v10543_v55 = vld [vmem:[%s19741_s1 + $0x1410] sm:$0xf]  ;;  %v10032_v13 = vor.u32 %v12583_v60, %v10031_v59  ;;  %6690 = vmatpush.bf16.msrb.mxu3 %v11632_v43  ;;  %v12127_v59 = vld [vmem:[%s19741_s1 + $0x214] sm:$0xf] }
 0x1ec   :  { %v12711_v0 = vld [vmem:[%s19741_s1 + $0x144c] sm:$0xf0]  ;;  %v8241_v60 = vld [vmem:[%s19741_s1 + $0x250] sm:$0xf0] }
 0x1ed   :  { %v11055_v1 = vld [vmem:[%s19741_s1 + $0x1810] sm:$0xf]  ;;  %v10544_v21 = vor.u32 %v12711_v0, %v10543_v55  ;;  %6652 = vmatpush.bf16.msrb.mxu0 %v10032_v13  ;;  %v8753_v18 = vld [vmem:[%s19741_s1 + $0x650] sm:$0xf0]  ;;  %v8244_v43 = vor.u32 %v12127_v59, %v8241_v60  ;;  %v6459_v13 = vpop.f32.mrf.mxu1 }
 0x1ee   :  { %v12839_v3 = vld [vmem:[%s19741_s1 + $0x184c] sm:$0xf0]  ;;  %v12383_v55 = vld [vmem:[%s19741_s1 + $0xa14] sm:$0xf] }
 0x1ef   :  { %v11567_v4 = vld [vmem:[%s19741_s1 + $0x1c10] sm:$0xf]  ;;  %v11056_v22 = vor.u32 %v12839_v3, %v11055_v1  ;;  %6665 = vmatpush.bf16.msrb.mxu1 %v10544_v21  ;;  %v9265_v0 = vld [vmem:[%s19741_s1 + $0xa50] sm:$0xf0]  ;;  %v6446_v3 = vpop.f32.mrf.mxu0 }
 0x1f0   :  { %v12967_v5 = vld [vmem:[%s19741_s1 + $0x1c4c] sm:$0xf0]  ;;  %6653 = vmatmul.bf16.vlgmr.msrb.gmra.mxu0 %v13590_v37  ;;  %v12511_v1 = vld [vmem:[%s19741_s1 + $0xe14] sm:$0xf]  ;;  %v6447_v12 = vadd.f32 %v6446_v3, %v6434_v57 }
 0x1f1   :  { %v11568_v27 = vor.u32 %v12967_v5, %v11567_v4  ;;  %6678 = vmatpush.bf16.msrb.mxu2 %v11056_v22  ;;  %6697 = vmatpush.bf16.msra.mxu0 %v8436_v28  ;;  %v8756_v4 = vor.u32 %v12255_v61, %v8753_v18  ;;  %v9268_v5 = vor.u32 %v12383_v55, %v9265_v0  ;;  %v12367_v20 = vld [vmem:[%s19741_s1 + $0x994] sm:$0xf] }
 0x1f2   :  { %6666 = vmatmul.bf16.vlgmr.msrb.gmra.mxu1 %v13594_v40  ;;  %v9780_v14 = vor.u32 %v12511_v1, %v9777_v2  ;;  %v9201_v21 = vld [vmem:[%s19741_s1 + $0x9d0] sm:$0xf0]  ;;  %v6460_v26 = vadd.f32 %v6459_v13, %v6447_v12 }
 0x1f3   :  { %6691 = vmatpush.bf16.msrb.mxu3 %v11568_v27  ;;  %6710 = vmatpush.bf16.msra.mxu1 %v8948_v29  ;;  %v12495_v22 = vld [vmem:[%s19741_s1 + $0xd94] sm:$0xf]  ;;  %v8180_v27 = vor.u32 %v12111_v6, %v8177_v7  ;;  %v8692_v29 = vor.u32 %v12239_v11, %v8689_v15  ;;  %v6474_v7 = vpop.f32.mrf.mxu2 }
 0x1f4   :  { %6679 = vmatmul.bf16.vlgmr.msrb.gmra.mxu2 %v13582_v34  ;;  %v9713_v24 = vld [vmem:[%s19741_s1 + $0xdd0] sm:$0xf0]  ;;  %v6473_v19 = vadd.f32 %v6472_v39, %v6460_v26 }
 0x1f5   :  { %6723 = vmatpush.bf16.msra.mxu2 %v9460_v30  ;;  %6698 = vmatpush.bf16.msra.mxu0 %v8372_v46  ;;  %v12095_v28 = vld [vmem:[%s19741_s1 + $0x114] sm:$0xf]  ;;  %v9204_v30 = vor.u32 %v12367_v20, %v9201_v21  ;;  %v7847_v46 = vperm.slane %v15314_v45, 2 }
 0x1f6   :  { %6692 = vmatmul.bf16.vlgmr.msrb.gmra.mxu3 %v13592_v38  ;;  %v8113_v31 = vld [vmem:[%s19741_s1 + $0x150] sm:$0xf0]  ;;  %v6486_v42 = vadd.f32 %v6485_v10, %v6473_v19 }
 0x1f7   :  { %6736 = vmatpush.bf16.msra.mxu3 %v9972_v41  ;;  %6711 = vmatpush.bf16.msra.mxu1 %v8884_v47  ;;  %v12223_v32 = vld [vmem:[%s19741_s1 + $0x514] sm:$0xf]  ;;  %v9716_v41 = vor.u32 %v12495_v22, %v9713_v24  ;;  %v8116_v49 = vor.u32 %v12095_v28, %v8113_v31 }
 0x1f8   :  { %v8625_v35 = vld [vmem:[%s19741_s1 + $0x550] sm:$0xf0] }
 0x1f9   :  { %6724 = vmatpush.bf16.msra.mxu2 %v9396_v48  ;;  %6699 = vmatpush.bf16.msra.mxu0 %v8308_v56  ;;  %v12351_v44 = vld [vmem:[%s19741_s1 + $0x914] sm:$0xf]  ;;  %v8628_v36 = vor.u32 %v12223_v32, %v8625_v35  ;;  %v6461_v56 = vpop.f32.mrf.mxu1 }
 0x1fa   :  { %v9137_v8 = vld [vmem:[%s19741_s1 + $0x950] sm:$0xf0] }
 0x1fb   :  { %6737 = vmatpush.bf16.msra.mxu3 %v9908_v52  ;;  %6712 = vmatpush.bf16.msra.mxu1 %v8820_v58  ;;  %v12479_v47 = vld [vmem:[%s19741_s1 + $0xd14] sm:$0xf]  ;;  %v6448_v52 = vpop.f32.mrf.mxu0  ;;  %v9140_v53 = vor.u32 %v12351_v44, %v9137_v8  ;;  %v7879_v58 = vmul.f32 %v7847_v46, %v6486_v42 }
 0x1fc   :  { %v9649_v48 = vld [vmem:[%s19741_s1 + $0xd50] sm:$0xf0] }
 0x1fd   :  { %6725 = vmatpush.bf16.msra.mxu2 %v9332_v33  ;;  %6700 = vmatpush.bf16.msra.mxu0 %v8244_v43  ;;  %v12079_v25 = vld [vmem:[%s19741_s1 + $0x94] sm:$0xf]  ;;  %v9652_v57 = vor.u32 %v12479_v47, %v9649_v48  ;;  %v7931_v18 = vadd.f32 %v7899_v51, %v7879_v58 }
 0x1fe   :  { %v8049_v54 = vld [vmem:[%s19741_s1 + $0xd0] sm:$0xf0] }
 0x1ff   :  { %6738 = vmatpush.bf16.msra.mxu3 %v9844_v62  ;;  %6713 = vmatpush.bf16.msra.mxu1 %v8756_v4  ;;  %v12207_v23 = vld [vmem:[%s19741_s1 + $0x494] sm:$0xf]  ;;  %v8052_v55 = vor.u32 %v12079_v25, %v8049_v54  ;;  %7947 = vst [vmem:[%s19745_s4 + $0x10] sm:$0xff] %v7931_v18 }
 0x200   :  { %v8561_v33 = vld [vmem:[%s19741_s1 + $0x4d0] sm:$0xf0] }
 0x201   :  { %6726 = vmatpush.bf16.msra.mxu2 %v9268_v5  ;;  %6701 = vmatpush.bf16.msra.mxu0 %v8180_v27  ;;  %v12335_v59 = vld [vmem:[%s19741_s1 + $0x894] sm:$0xf]  ;;  %v8564_v43 = vor.u32 %v12207_v23, %v8561_v33 }
 0x202   :  { %v9073_v60 = vld [vmem:[%s19741_s1 + $0x8d0] sm:$0xf0] }
 0x203   :  { %6739 = vmatpush.bf16.msra.mxu3 %v9780_v14  ;;  %6714 = vmatpush.bf16.msra.mxu1 %v8692_v29  ;;  %v12463_v61 = vld [vmem:[%s19741_s1 + $0xc94] sm:$0xf]  ;;  %v9076_v3 = vor.u32 %v12335_v59, %v9073_v60  ;;  %v6487_v14 = vpop.f32.mrf.mxu3  ;;  %v15480_v7 = vpop.f32.mrf.mxu0 }
 0x204   :  { %v9585_v62 = vld [vmem:[%s19741_s1 + $0xcd0] sm:$0xf0] }
 0x205   :  { %6727 = vmatpush.bf16.msra.mxu2 %v9204_v30  ;;  %6702 = vmatpush.bf16.msra.mxu0 %v8116_v49  ;;  %v12063_v0 = vld [vmem:[%s19741_s1 + $0x14] sm:$0xf]  ;;  %v9588_v11 = vor.u32 %v12463_v61, %v9585_v62 }
 0x206   :  { %v7985_v1 = vld [vmem:[%s19741_s1 + $0x50] sm:$0xf0] }
 0x207   :  { %6740 = vmatpush.bf16.msra.mxu3 %v9716_v41  ;;  %v12191_v2 = vld [vmem:[%s19741_s1 + $0x414] sm:$0xf]  ;;  %6715 = vmatpush.bf16.msra.mxu1 %v8628_v36  ;;  %v7988_v22 = vor.u32 %v12063_v0, %v7985_v1 }
 0x208   :  { %v8497_v4 = vld [vmem:[%s19741_s1 + $0x450] sm:$0xf0] }
 0x209   :  { %6728 = vmatpush.bf16.msra.mxu2 %v9140_v53  ;;  %v12319_v5 = vld [vmem:[%s19741_s1 + $0x814] sm:$0xf]  ;;  %6703 = vmatpush.bf16.msra.mxu0 %v8052_v55  ;;  %v8500_v28 = vor.u32 %v12191_v2, %v8497_v4 }
 0x20a   :  { %v9009_v6 = vld [vmem:[%s19741_s1 + $0x850] sm:$0xf0] }
 0x20b   :  { %6741 = vmatpush.bf16.msra.mxu3 %v9652_v57  ;;  %v12447_v12 = vld [vmem:[%s19741_s1 + $0xc14] sm:$0xf]  ;;  %6716 = vmatpush.bf16.msra.mxu1 %v8564_v43  ;;  %v9012_v29 = vor.u32 %v12319_v5, %v9009_v6 }
 0x20c   :  { %v9521_v13 = vld [vmem:[%s19741_s1 + $0xc50] sm:$0xf0] }
 0x20d   :  { %v12687_v15 = vld [vmem:[%s19741_s1 + $0x1394] sm:$0xf]  ;;  %6729 = vmatpush.bf16.msra.mxu2 %v9076_v3  ;;  %v9524_v32 = vor.u32 %v12447_v12, %v9521_v13  ;;  %6704 = vmatpush.bf16.msra.mxu0 %v7988_v22 }
 0x20e   :  { %v10481_v20 = vld [vmem:[%s19741_s1 + $0x13d0] sm:$0xf0] }
 0x20f   :  { %v12815_v21 = vld [vmem:[%s19741_s1 + $0x1794] sm:$0xf]  ;;  %6742 = vmatpush.bf16.msra.mxu3 %v9588_v11  ;;  %v10484_v35 = vor.u32 %v12687_v15, %v10481_v20  ;;  %6717 = vmatpush.bf16.msra.mxu1 %v8500_v28  ;;  %v15491_v20 = vpop.f32.mrf.mxu1 }
 0x210   :  { %v10993_v24 = vld [vmem:[%s19741_s1 + $0x17d0] sm:$0xf0]  ;;  %6705 = vmatmul.bf16.vlgmr.msra.gmra.mxu0 %v13402_v9 }
 0x211   :  { %v12943_v26 = vld [vmem:[%s19741_s1 + $0x1b94] sm:$0xf]  ;;  %v10996_v39 = vor.u32 %v12815_v21, %v10993_v24  ;;  %6730 = vmatpush.bf16.msra.mxu2 %v9012_v29  ;;  %6749 = vmatpush.bf16.msrb.mxu0 %v10484_v35 }
 0x212   :  { %v11505_v27 = vld [vmem:[%s19741_s1 + $0x1bd0] sm:$0xf0]  ;;  %6718 = vmatmul.bf16.vlgmr.msra.gmra.mxu1 %v13421_v17 }
 0x213   :  { %v13071_v30 = vld [vmem:[%s19741_s1 + $0x1f94] sm:$0xf]  ;;  %v11508_v41 = vor.u32 %v12943_v26, %v11505_v27  ;;  %6743 = vmatpush.bf16.msra.mxu3 %v9524_v32  ;;  %6762 = vmatpush.bf16.msrb.mxu1 %v10996_v39 }
 0x214   :  { %v12017_v31 = vld [vmem:[%s19741_s1 + $0x1fd0] sm:$0xf0]  ;;  %6731 = vmatmul.bf16.vlgmr.msra.gmra.mxu2 %v13381_v63 }
 0x215   :  { %v12671_v44 = vld [vmem:[%s19741_s1 + $0x1314] sm:$0xf]  ;;  %v12020_v10 = vor.u32 %v13071_v30, %v12017_v31  ;;  %6775 = vmatpush.bf16.msrb.mxu2 %v11508_v41  ;;  %v15517_v41 = vpop.f32.mrf.mxu2 }
 0x216   :  { %v10417_v8 = vld [vmem:[%s19741_s1 + $0x1350] sm:$0xf0]  ;;  %6744 = vmatmul.bf16.vlgmr.msra.gmra.mxu3 %v13419_v16 }
 0x217   :  { %v12799_v19 = vld [vmem:[%s19741_s1 + $0x1714] sm:$0xf]  ;;  %v10420_v51 = vor.u32 %v12671_v44, %v10417_v8  ;;  %6788 = vmatpush.bf16.msrb.mxu3 %v12020_v10 }
 0x218   :  { %v10929_v46 = vld [vmem:[%s19741_s1 + $0x1750] sm:$0xf0] }
 0x219   :  { %v12927_v47 = vld [vmem:[%s19741_s1 + $0x1b14] sm:$0xf]  ;;  %v10932_v52 = vor.u32 %v12799_v19, %v10929_v46  ;;  %6750 = vmatpush.bf16.msrb.mxu0 %v10420_v51  ;;  %v15528_v46 = vpop.f32.mrf.mxu3 }
 0x21a   :  { %v11441_v48 = vld [vmem:[%s19741_s1 + $0x1b50] sm:$0xf0] }
 0x21b   :  { %v13055_v49 = vld [vmem:[%s19741_s1 + $0x1f14] sm:$0xf]  ;;  %v11444_v36 = vor.u32 %v12927_v47, %v11441_v48  ;;  %6763 = vmatpush.bf16.msrb.mxu1 %v10932_v52 }
 0x21c   :  { %v11953_v42 = vld [vmem:[%s19741_s1 + $0x1f50] sm:$0xf0] }
 0x21d   :  { %v12655_v53 = vld [vmem:[%s19741_s1 + $0x1294] sm:$0xf]  ;;  %v11956_v23 = vor.u32 %v13055_v49, %v11953_v42  ;;  %6776 = vmatpush.bf16.msrb.mxu2 %v11444_v36  ;;  %v6500_v42 = vpop.f32.mrf.mxu0 }
 0x21e   :  { %v10353_v25 = vld [vmem:[%s19741_s1 + $0x12d0] sm:$0xf0] }
 0x21f   :  { %v12783_v54 = vld [vmem:[%s19741_s1 + $0x1694] sm:$0xf]  ;;  %v10356_v60 = vor.u32 %v12655_v53, %v10353_v25  ;;  %6789 = vmatpush.bf16.msrb.mxu3 %v11956_v23 }
 0x220   :  { %v10865_v56 = vld [vmem:[%s19741_s1 + $0x16d0] sm:$0xf0] }
 0x221   :  { %v12911_v57 = vld [vmem:[%s19741_s1 + $0x1a94] sm:$0xf]  ;;  %v10868_v61 = vor.u32 %v12783_v54, %v10865_v56  ;;  %6751 = vmatpush.bf16.msrb.mxu0 %v10356_v60  ;;  %v6513_v54 = vpop.f32.mrf.mxu1 }
 0x222   :  { %v11377_v58 = vld [vmem:[%s19741_s1 + $0x1ad0] sm:$0xf0]  ;;  %v8823_v54 = vld [vmem:[%s19741_s1 + $0x698] sm:$0xf] }
 0x223   :  { %v13039_v33 = vld [vmem:[%s19741_s1 + $0x1e94] sm:$0xf]  ;;  %v11380_v62 = vor.u32 %v12911_v57, %v11377_v58  ;;  %6764 = vmatpush.bf16.msrb.mxu1 %v10868_v61 }
 0x224   :  { %v11889_v59 = vld [vmem:[%s19741_s1 + $0x1ed0] sm:$0xf0] }
 0x225   :  { %v12639_v18 = vld [vmem:[%s19741_s1 + $0x1214] sm:$0xf]  ;;  %v11892_v1 = vor.u32 %v13039_v33, %v11889_v59  ;;  %6777 = vmatpush.bf16.msrb.mxu2 %v11380_v62 }
 0x226   :  { %v10289_v55 = vld [vmem:[%s19741_s1 + $0x1250] sm:$0xf0] }
 0x227   :  { %v12767_v0 = vld [vmem:[%s19741_s1 + $0x1614] sm:$0xf]  ;;  %v10292_v6 = vor.u32 %v12639_v18, %v10289_v55  ;;  %6790 = vmatpush.bf16.msrb.mxu3 %v11892_v1 }
 0x228   :  { %v10801_v2 = vld [vmem:[%s19741_s1 + $0x1650] sm:$0xf0] }
 0x229   :  { %v12895_v43 = vld [vmem:[%s19741_s1 + $0x1a14] sm:$0xf]  ;;  %v10804_v11 = vor.u32 %v12767_v0, %v10801_v2  ;;  %6752 = vmatpush.bf16.msrb.mxu0 %v10292_v6 }
 0x22a   :  { %v11313_v3 = vld [vmem:[%s19741_s1 + $0x1a50] sm:$0xf0] }
 0x22b   :  { %v13023_v4 = vld [vmem:[%s19741_s1 + $0x1e14] sm:$0xf]  ;;  %v11316_v12 = vor.u32 %v12895_v43, %v11313_v3  ;;  %6765 = vmatpush.bf16.msrb.mxu1 %v10804_v11  ;;  %v6526_v43 = vpop.f32.mrf.mxu2  ;;  %v6539_v11 = vpop.f32.mrf.mxu3 }
 0x22c   :  { %v11825_v5 = vld [vmem:[%s19741_s1 + $0x1e50] sm:$0xf0]  ;;  %v12392_v43 = vld [vmem:[%s19741_s1 + $0xa54] sm:$0xf0] }
 0x22d   :  { %v12623_v13 = vld [vmem:[%s19741_s1 + $0x1194] sm:$0xf]  ;;  %v11828_v21 = vor.u32 %v13023_v4, %v11825_v5  ;;  %6778 = vmatpush.bf16.msrb.mxu2 %v11316_v12  ;;  %v8439_v12 = vld [vmem:[%s19741_s1 + $0x398] sm:$0xf] }
 0x22e   :  { %v10225_v14 = vld [vmem:[%s19741_s1 + $0x11d0] sm:$0xf0] }
 0x22f   :  { %v12751_v15 = vld [vmem:[%s19741_s1 + $0x1594] sm:$0xf]  ;;  %v10228_v29 = vor.u32 %v12623_v13, %v10225_v14  ;;  %6791 = vmatpush.bf16.msrb.mxu3 %v11828_v21  ;;  %v12184_v13 = vld [vmem:[%s19741_s1 + $0x3d4] sm:$0xf0] }
 0x230   :  { %v10737_v22 = vld [vmem:[%s19741_s1 + $0x15d0] sm:$0xf0]  ;;  %v8951_v14 = vld [vmem:[%s19741_s1 + $0x798] sm:$0xf] }
 0x231   :  { %v12879_v24 = vld [vmem:[%s19741_s1 + $0x1994] sm:$0xf]  ;;  %v10740_v30 = vor.u32 %v12751_v15, %v10737_v22  ;;  %6753 = vmatpush.bf16.msrb.mxu0 %v10228_v29  ;;  %v12312_v21 = vld [vmem:[%s19741_s1 + $0x7d4] sm:$0xf0] }
 0x232   :  { %v11249_v26 = vld [vmem:[%s19741_s1 + $0x19d0] sm:$0xf0]  ;;  %v9463_v22 = vld [vmem:[%s19741_s1 + $0xb98] sm:$0xf] }
 0x233   :  { %v13007_v27 = vld [vmem:[%s19741_s1 + $0x1d94] sm:$0xf]  ;;  %v11252_v31 = vor.u32 %v12879_v24, %v11249_v26  ;;  %6766 = vmatpush.bf16.msrb.mxu1 %v10740_v30  ;;  %v12440_v24 = vld [vmem:[%s19741_s1 + $0xbd4] sm:$0xf0] }
 0x234   :  { %v11761_v28 = vld [vmem:[%s19741_s1 + $0x1dd0] sm:$0xf0]  ;;  %v12568_v29 = vld [vmem:[%s19741_s1 + $0xfd4] sm:$0xf0] }
 0x235   :  { %v12607_v32 = vld [vmem:[%s19741_s1 + $0x1114] sm:$0xf]  ;;  %v11764_v44 = vor.u32 %v13007_v27, %v11761_v28  ;;  %6779 = vmatpush.bf16.msrb.mxu2 %v11252_v31  ;;  %v9975_v28 = vld [vmem:[%s19741_s1 + $0xf98] sm:$0xf]  ;;  %v8440_v31 = vor.u32 %v12184_v13, %v8439_v12 }
 0x236   :  { %v10161_v35 = vld [vmem:[%s19741_s1 + $0x1150] sm:$0xf0]  ;;  %v8183_v13 = vld [vmem:[%s19741_s1 + $0x198] sm:$0xf] }
 0x237   :  { %v12735_v39 = vld [vmem:[%s19741_s1 + $0x1514] sm:$0xf]  ;;  %v10164_v49 = vor.u32 %v12607_v32, %v10161_v35  ;;  %6792 = vmatpush.bf16.msrb.mxu3 %v11764_v44  ;;  %v8952_v32 = vor.u32 %v12312_v21, %v8951_v14  ;;  %v9464_v35 = vor.u32 %v12440_v24, %v9463_v22  ;;  %v8375_v44 = vld [vmem:[%s19741_s1 + $0x318] sm:$0xf]  ;;  %v6563_v22 = vpop.f32.mrf.mxu1 }
 0x238   :  { %v10673_v8 = vld [vmem:[%s19741_s1 + $0x1550] sm:$0xf0]  ;;  %v12120_v14 = vld [vmem:[%s19741_s1 + $0x1d4] sm:$0xf0] }
 0x239   :  { %v12863_v19 = vld [vmem:[%s19741_s1 + $0x1914] sm:$0xf]  ;;  %v10676_v51 = vor.u32 %v12735_v39, %v10673_v8  ;;  %6754 = vmatpush.bf16.msrb.mxu0 %v10164_v49  ;;  %v6512_v39 = vadd.f32 %v15491_v20, %v15480_v7  ;;  %v12168_v8 = vld [vmem:[%s19741_s1 + $0x354] sm:$0xf0] }
 0x23a   :  { %v11185_v10 = vld [vmem:[%s19741_s1 + $0x1950] sm:$0xf0]  ;;  %v9399_v7 = vld [vmem:[%s19741_s1 + $0xb18] sm:$0xf]  ;;  %v8376_v42 = vor.u32 %v12168_v8, %v8375_v44 }
 0x23b   :  { %v12991_v47 = vld [vmem:[%s19741_s1 + $0x1d14] sm:$0xf]  ;;  %v11188_v52 = vor.u32 %v12863_v19, %v11185_v10  ;;  %6767 = vmatpush.bf16.msrb.mxu1 %v10676_v51  ;;  %v8887_v19 = vld [vmem:[%s19741_s1 + $0x718] sm:$0xf]  ;;  %v9976_v10 = vor.u32 %v12568_v29, %v9975_v28 }
 0x23c   :  { %v11697_v48 = vld [vmem:[%s19741_s1 + $0x1d50] sm:$0xf0]  ;;  %v12424_v20 = vld [vmem:[%s19741_s1 + $0xb54] sm:$0xf0] }
 0x23d   :  { %v12591_v36 = vld [vmem:[%s19741_s1 + $0x1094] sm:$0xf]  ;;  %v11700_v23 = vor.u32 %v12991_v47, %v11697_v48  ;;  %6780 = vmatpush.bf16.msrb.mxu2 %v11188_v52  ;;  %v12296_v47 = vld [vmem:[%s19741_s1 + $0x754] sm:$0xf0]  ;;  %v9400_v52 = vor.u32 %v12424_v20, %v9399_v7 }
 0x23e   :  { %v10097_v53 = vld [vmem:[%s19741_s1 + $0x10d0] sm:$0xf0]  ;;  %v9911_v48 = vld [vmem:[%s19741_s1 + $0xf18] sm:$0xf]  ;;  %v8888_v51 = vor.u32 %v12296_v47, %v8887_v19  ;;  %v6576_v47 = vpop.f32.mrf.mxu2 }
 0x23f   :  { %v12719_v25 = vld [vmem:[%s19741_s1 + $0x1494] sm:$0xf]  ;;  %v10100_v60 = vor.u32 %v12591_v36, %v10097_v53  ;;  %6793 = vmatpush.bf16.msrb.mxu3 %v11700_v23  ;;  %v12552_v49 = vld [vmem:[%s19741_s1 + $0xf54] sm:$0xf0]  ;;  %v6525_v36 = vadd.f32 %v15517_v41, %v6512_v39 }
 0x240   :  { %v10609_v56 = vld [vmem:[%s19741_s1 + $0x14d0] sm:$0xf0]  ;;  %v8311_v53 = vld [vmem:[%s19741_s1 + $0x298] sm:$0xf]  ;;  %v9912_v23 = vor.u32 %v12552_v49, %v9911_v48 }
 0x241   :  { %v12847_v57 = vld [vmem:[%s19741_s1 + $0x1894] sm:$0xf]  ;;  %v10612_v18 = vor.u32 %v12719_v25, %v10609_v56  ;;  %6755 = vmatpush.bf16.msrb.mxu0 %v10100_v60  ;;  %v12152_v25 = vld [vmem:[%s19741_s1 + $0x2d4] sm:$0xf0]  ;;  %v6538_v60 = vadd.f32 %v15528_v46, %v6525_v36 }
 0x242   :  { %v11121_v58 = vld [vmem:[%s19741_s1 + $0x18d0] sm:$0xf0]  ;;  %v12280_v41 = vld [vmem:[%s19741_s1 + $0x6d4] sm:$0xf0] }
 0x243   :  { %v12975_v33 = vld [vmem:[%s19741_s1 + $0x1c94] sm:$0xf]  ;;  %v11124_v55 = vor.u32 %v12847_v57, %v11121_v58  ;;  %6768 = vmatpush.bf16.msrb.mxu1 %v10612_v18  ;;  %v9335_v56 = vld [vmem:[%s19741_s1 + $0xa98] sm:$0xf] }
 0x244   :  { %v11633_v59 = vld [vmem:[%s19741_s1 + $0x1cd0] sm:$0xf0]  ;;  %v12408_v57 = vld [vmem:[%s19741_s1 + $0xad4] sm:$0xf0] }
 0x245   :  { %v12575_v61 = vld [vmem:[%s19741_s1 + $0x1014] sm:$0xf]  ;;  %v11636_v3 = vor.u32 %v12975_v33, %v11633_v59  ;;  %6781 = vmatpush.bf16.msrb.mxu2 %v11124_v55  ;;  %v9847_v58 = vld [vmem:[%s19741_s1 + $0xe98] sm:$0xf]  ;;  %v8312_v59 = vor.u32 %v12152_v25, %v8311_v53 }
 0x246   :  { %v10033_v62 = vld [vmem:[%s19741_s1 + $0x1050] sm:$0xf0]  ;;  %v12536_v33 = vld [vmem:[%s19741_s1 + $0xed4] sm:$0xf0] }
 0x247   :  { %v12703_v0 = vld [vmem:[%s19741_s1 + $0x1414] sm:$0xf]  ;;  %v10036_v15 = vor.u32 %v12575_v61, %v10033_v62  ;;  %6794 = vmatpush.bf16.msrb.mxu3 %v11636_v3  ;;  %v8824_v61 = vor.u32 %v12280_v41, %v8823_v54  ;;  %v9336_v62 = vor.u32 %v12408_v57, %v9335_v56  ;;  %v8247_v18 = vld [vmem:[%s19741_s1 + $0x218] sm:$0xf]  ;;  %v7900_v54 = vperm.slane %v15326_v50, 3 }
 0x248   :  { %v10545_v1 = vld [vmem:[%s19741_s1 + $0x1450] sm:$0xf0]  ;;  %v12136_v55 = vld [vmem:[%s19741_s1 + $0x254] sm:$0xf0] }
 0x249   :  { %v12831_v2 = vld [vmem:[%s19741_s1 + $0x1814] sm:$0xf]  ;;  %v10548_v26 = vor.u32 %v12703_v0, %v10545_v1  ;;  %6756 = vmatpush.bf16.msrb.mxu0 %v10036_v15  ;;  %v8759_v0 = vld [vmem:[%s19741_s1 + $0x618] sm:$0xf]  ;;  %v9848_v1 = vor.u32 %v12536_v33, %v9847_v58  ;;  %v6565_v33 = vpop.f32.mrf.mxu1 }
 0x24a   :  { %v11057_v4 = vld [vmem:[%s19741_s1 + $0x1850] sm:$0xf0]  ;;  %v12264_v46 = vld [vmem:[%s19741_s1 + $0x654] sm:$0xf0] }
 0x24b   :  { %v12959_v5 = vld [vmem:[%s19741_s1 + $0x1c14] sm:$0xf]  ;;  %v11060_v27 = vor.u32 %v12831_v2, %v11057_v4  ;;  %6769 = vmatpush.bf16.msrb.mxu1 %v10548_v26  ;;  %v9271_v2 = vld [vmem:[%s19741_s1 + $0xa18] sm:$0xf]  ;;  %v8760_v11 = vor.u32 %v12264_v46, %v8759_v0 }
 0x24c   :  { %v11569_v6 = vld [vmem:[%s19741_s1 + $0x1c50] sm:$0xf0]  ;;  %6757 = vmatmul.bf16.vlgmr.msrb.gmra.mxu0 %v13590_v37  ;;  %v9783_v3 = vld [vmem:[%s19741_s1 + $0xe18] sm:$0xf]  ;;  %v9272_v12 = vor.u32 %v12392_v43, %v9271_v2 }
 0x24d   :  { %v11572_v30 = vor.u32 %v12959_v5, %v11569_v6  ;;  %6782 = vmatpush.bf16.msrb.mxu2 %v11060_v27  ;;  %6801 = vmatpush.bf16.msra.mxu0 %v8440_v31  ;;  %v12520_v4 = vld [vmem:[%s19741_s1 + $0xe54] sm:$0xf0]  ;;  %v8248_v5 = vor.u32 %v12136_v55, %v8247_v18  ;;  %v6550_v6 = vpop.f32.mrf.mxu0 }
 0x24e   :  { %6770 = vmatmul.bf16.vlgmr.msrb.gmra.mxu1 %v13594_v40  ;;  %v8695_v15 = vld [vmem:[%s19741_s1 + $0x598] sm:$0xf]  ;;  %v6551_v21 = vadd.f32 %v6550_v6, %v6538_v60  ;;  %v9784_v24 = vor.u32 %v12520_v4, %v9783_v3 }
 0x24f   :  { %6795 = vmatpush.bf16.msrb.mxu3 %v11572_v30  ;;  %6814 = vmatpush.bf16.msra.mxu1 %v8952_v32  ;;  %v12248_v26 = vld [vmem:[%s19741_s1 + $0x5d4] sm:$0xf0]  ;;  %v8184_v32 = vor.u32 %v12120_v14, %v8183_v13 }
 0x250   :  { %6783 = vmatmul.bf16.vlgmr.msrb.gmra.mxu2 %v13582_v34  ;;  %v9207_v27 = vld [vmem:[%s19741_s1 + $0x998] sm:$0xf]  ;;  %v6564_v31 = vadd.f32 %v6563_v22, %v6551_v21  ;;  %v8696_v39 = vor.u32 %v12248_v26, %v8695_v15 }
 0x251   :  { %6827 = vmatpush.bf16.msra.mxu2 %v9464_v35  ;;  %6802 = vmatpush.bf16.msra.mxu0 %v8376_v42  ;;  %v12376_v28 = vld [vmem:[%s19741_s1 + $0x9d4] sm:$0xf0]  ;;  %v6589_v42 = vpop.f32.mrf.mxu3 }
 0x252   :  { %6796 = vmatmul.bf16.vlgmr.msrb.gmra.mxu3 %v13592_v38  ;;  %v9719_v29 = vld [vmem:[%s19741_s1 + $0xd98] sm:$0xf]  ;;  %v9208_v44 = vor.u32 %v12376_v28, %v9207_v27  ;;  %v6577_v49 = vadd.f32 %v6576_v47, %v6564_v31 }
 0x253   :  { %6840 = vmatpush.bf16.msra.mxu3 %v9976_v10  ;;  %6815 = vmatpush.bf16.msra.mxu1 %v8888_v51  ;;  %v12504_v30 = vld [vmem:[%s19741_s1 + $0xdd4] sm:$0xf0]  ;;  %v7848_v51 = vperm.slane %v15314_v45, 3 }
 0x254   :  { %v8119_v35 = vld [vmem:[%s19741_s1 + $0x118] sm:$0xf]  ;;  %v9720_v7 = vor.u32 %v12504_v30, %v9719_v29  ;;  %v6590_v25 = vadd.f32 %v6589_v42, %v6577_v49 }
 0x255   :  { %6828 = vmatpush.bf16.msra.mxu2 %v9400_v52  ;;  %6803 = vmatpush.bf16.msra.mxu0 %v8312_v59  ;;  %v12104_v8 = vld [vmem:[%s19741_s1 + $0x154] sm:$0xf0] }
 0x256   :  { %v8631_v19 = vld [vmem:[%s19741_s1 + $0x518] sm:$0xf]  ;;  %v8120_v53 = vor.u32 %v12104_v8, %v8119_v35  ;;  %v7880_v59 = vmul.f32 %v7848_v51, %v6590_v25 }
 0x257   :  { %6841 = vmatpush.bf16.msra.mxu3 %v9912_v23  ;;  %6816 = vmatpush.bf16.msra.mxu1 %v8824_v61  ;;  %v12232_v10 = vld [vmem:[%s19741_s1 + $0x554] sm:$0xf0]  ;;  %v6552_v23 = vpop.f32.mrf.mxu0 }
 0x258   :  { %v9143_v20 = vld [vmem:[%s19741_s1 + $0x918] sm:$0xf]  ;;  %v8632_v41 = vor.u32 %v12232_v10, %v8631_v19  ;;  %v7932_v0 = vadd.f32 %v7900_v54, %v7880_v59 }
 0x259   :  { %6829 = vmatpush.bf16.msra.mxu2 %v9336_v62  ;;  %6804 = vmatpush.bf16.msra.mxu0 %v8248_v5  ;;  %v12360_v48 = vld [vmem:[%s19741_s1 + $0x954] sm:$0xf0]  ;;  %v6591_v21 = vpop.f32.mrf.mxu3 }
 0x25a   :  { %v9655_v52 = vld [vmem:[%s19741_s1 + $0xd18] sm:$0xf]  ;;  %v9144_v56 = vor.u32 %v12360_v48, %v9143_v20  ;;  %7948 = vst [vmem:[%s19745_s4 + $0x18] sm:$0xff] %v7932_v0  ;;  %v15900_v21 = vpop.f32.mrf.mxu1 }
 0x25b   :  { %6842 = vmatpush.bf16.msra.mxu3 %v9848_v1  ;;  %6817 = vmatpush.bf16.msra.mxu1 %v8760_v11  ;;  %v12488_v36 = vld [vmem:[%s19741_s1 + $0xd54] sm:$0xf0] }
 0x25c   :  { %v8055_v45 = vld [vmem:[%s19741_s1 + $0x98] sm:$0xf]  ;;  %v9656_v50 = vor.u32 %v12488_v36, %v9655_v52 }
 0x25d   :  { %6830 = vmatpush.bf16.msra.mxu2 %v9272_v12  ;;  %6805 = vmatpush.bf16.msra.mxu0 %v8184_v32  ;;  %v12088_v57 = vld [vmem:[%s19741_s1 + $0xd4] sm:$0xf0]  ;;  %v6578_v12 = vpop.f32.mrf.mxu2 }
 0x25e   :  { %v8567_v58 = vld [vmem:[%s19741_s1 + $0x498] sm:$0xf]  ;;  %v8056_v1 = vor.u32 %v12088_v57, %v8055_v45 }
 0x25f   :  { %6843 = vmatpush.bf16.msra.mxu3 %v9784_v24  ;;  %6818 = vmatpush.bf16.msra.mxu1 %v8696_v39  ;;  %v12216_v60 = vld [vmem:[%s19741_s1 + $0x4d4] sm:$0xf0] }
 0x260   :  { %v9079_v61 = vld [vmem:[%s19741_s1 + $0x898] sm:$0xf]  ;;  %v8568_v3 = vor.u32 %v12216_v60, %v8567_v58 }
 0x261   :  { %6831 = vmatpush.bf16.msra.mxu2 %v9208_v44  ;;  %v12344_v62 = vld [vmem:[%s19741_s1 + $0x8d4] sm:$0xf0]  ;;  %6806 = vmatpush.bf16.msra.mxu0 %v8120_v53 }
 0x262   :  { %v9591_v18 = vld [vmem:[%s19741_s1 + $0xc98] sm:$0xf]  ;;  %v9080_v4 = vor.u32 %v12344_v62, %v9079_v61 }
 0x263   :  { %6844 = vmatpush.bf16.msra.mxu3 %v9720_v7  ;;  %v12472_v55 = vld [vmem:[%s19741_s1 + $0xcd4] sm:$0xf0]  ;;  %6819 = vmatpush.bf16.msra.mxu1 %v8632_v41 }
 0x264   :  { %v7991_v46 = vld [vmem:[%s19741_s1 + $0x18] sm:$0xf]  ;;  %v9592_v13 = vor.u32 %v12472_v55, %v9591_v18 }
 0x265   :  { %v12072_v2 = vld [vmem:[%s19741_s1 + $0x54] sm:$0xf0]  ;;  %6832 = vmatpush.bf16.msra.mxu2 %v9144_v56  ;;  %6807 = vmatpush.bf16.msra.mxu0 %v8056_v1 }
 0x266   :  { %v8503_v43 = vld [vmem:[%s19741_s1 + $0x418] sm:$0xf]  ;;  %v7992_v27 = vor.u32 %v12072_v2, %v7991_v46 }
 0x267   :  { %v12200_v5 = vld [vmem:[%s19741_s1 + $0x454] sm:$0xf0]  ;;  %6845 = vmatpush.bf16.msra.mxu3 %v9656_v50  ;;  %6820 = vmatpush.bf16.msra.mxu1 %v8568_v3 }
 0x268   :  { %v9015_v6 = vld [vmem:[%s19741_s1 + $0x818] sm:$0xf]  ;;  %v8504_v31 = vor.u32 %v12200_v5, %v8503_v43 }
 0x269   :  { %v12328_v11 = vld [vmem:[%s19741_s1 + $0x854] sm:$0xf0]  ;;  %6833 = vmatpush.bf16.msra.mxu2 %v9080_v4  ;;  %6808 = vmatpush.bf16.msra.mxu0 %v7992_v27 }
 0x26a   :  { %v9527_v14 = vld [vmem:[%s19741_s1 + $0xc18] sm:$0xf]  ;;  %v9016_v32 = vor.u32 %v12328_v11, %v9015_v6  ;;  %v15889_v6 = vpop.f32.mrf.mxu0 }
 0x26b   :  { %v12456_v15 = vld [vmem:[%s19741_s1 + $0xc54] sm:$0xf0]  ;;  %6846 = vmatpush.bf16.msra.mxu3 %v9592_v13  ;;  %6821 = vmatpush.bf16.msra.mxu1 %v8504_v31 }
 0x26c   :  { %v10487_v22 = vld [vmem:[%s19741_s1 + $0x1398] sm:$0xf]  ;;  %v9528_v44 = vor.u32 %v12456_v15, %v9527_v14  ;;  %6809 = vmatmul.bf16.vlgmr.msra.gmra.mxu0 %v13402_v9 }
 0x26d   :  { %v12696_v24 = vld [vmem:[%s19741_s1 + $0x13d4] sm:$0xf0]  ;;  %6834 = vmatpush.bf16.msra.mxu2 %v9016_v32 }
 0x26e   :  { %v10999_v26 = vld [vmem:[%s19741_s1 + $0x1798] sm:$0xf]  ;;  %v10488_v8 = vor.u32 %v12696_v24, %v10487_v22  ;;  %6822 = vmatmul.bf16.vlgmr.msra.gmra.mxu1 %v13421_v17 }
 0x26f   :  { %v12824_v28 = vld [vmem:[%s19741_s1 + $0x17d4] sm:$0xf0]  ;;  %6847 = vmatpush.bf16.msra.mxu3 %v9528_v44 }
 0x270   :  { %v11511_v29 = vld [vmem:[%s19741_s1 + $0x1b98] sm:$0xf]  ;;  %v11000_v19 = vor.u32 %v12824_v28, %v10999_v26  ;;  %6853 = vmatpush.bf16.msrb.mxu0 %v10488_v8  ;;  %6835 = vmatmul.bf16.vlgmr.msra.gmra.mxu2 %v13381_v63  ;;  %v15926_v8 = vpop.f32.mrf.mxu2 }
 0x271   :  { %v12952_v30 = vld [vmem:[%s19741_s1 + $0x1bd4] sm:$0xf0] }
 0x272   :  { %v12023_v35 = vld [vmem:[%s19741_s1 + $0x1f98] sm:$0xf]  ;;  %v11512_v10 = vor.u32 %v12952_v30, %v11511_v29  ;;  %6866 = vmatpush.bf16.msrb.mxu1 %v11000_v19  ;;  %6848 = vmatmul.bf16.vlgmr.msra.gmra.mxu3 %v13419_v16 }
 0x273   :  { %v13080_v39 = vld [vmem:[%s19741_s1 + $0x1fd4] sm:$0xf0] }
 0x274   :  { %v10423_v47 = vld [vmem:[%s19741_s1 + $0x1318] sm:$0xf]  ;;  %v12024_v48 = vor.u32 %v13080_v39, %v12023_v35  ;;  %6879 = vmatpush.bf16.msrb.mxu2 %v11512_v10 }
 0x275   :  { %v12680_v7 = vld [vmem:[%s19741_s1 + $0x1354] sm:$0xf0] }
 0x276   :  { %v10935_v20 = vld [vmem:[%s19741_s1 + $0x1718] sm:$0xf]  ;;  %v10424_v53 = vor.u32 %v12680_v7, %v10423_v47  ;;  %6892 = vmatpush.bf16.msrb.mxu3 %v12024_v48 }
 0x277   :  { %v12808_v49 = vld [vmem:[%s19741_s1 + $0x1754] sm:$0xf0] }
 0x278   :  { %v11447_v42 = vld [vmem:[%s19741_s1 + $0x1b18] sm:$0xf]  ;;  %v10936_v25 = vor.u32 %v12808_v49, %v10935_v20  ;;  %6854 = vmatpush.bf16.msrb.mxu0 %v10424_v53  ;;  %v15937_v20 = vpop.f32.mrf.mxu3 }
 0x279   :  { %v12936_v51 = vld [vmem:[%s19741_s1 + $0x1b54] sm:$0xf0] }
 0x27a   :  { %v11959_v52 = vld [vmem:[%s19741_s1 + $0x1f18] sm:$0xf]  ;;  %v11448_v54 = vor.u32 %v12936_v51, %v11447_v42  ;;  %6867 = vmatpush.bf16.msrb.mxu1 %v10936_v25  ;;  %v6604_v51 = vpop.f32.mrf.mxu0 }
 0x27b   :  { %v13064_v36 = vld [vmem:[%s19741_s1 + $0x1f54] sm:$0xf0] }
 0x27c   :  { %v10359_v23 = vld [vmem:[%s19741_s1 + $0x1298] sm:$0xf]  ;;  %v11960_v45 = vor.u32 %v13064_v36, %v11959_v52  ;;  %6880 = vmatpush.bf16.msrb.mxu2 %v11448_v54 }
 0x27d   :  { %v12664_v41 = vld [vmem:[%s19741_s1 + $0x12d4] sm:$0xf0] }
 0x27e   :  { %v10871_v56 = vld [vmem:[%s19741_s1 + $0x1698] sm:$0xf]  ;;  %v10360_v60 = vor.u32 %v12664_v41, %v10359_v23  ;;  %6893 = vmatpush.bf16.msrb.mxu3 %v11960_v45  ;;  %v6617_v23 = vpop.f32.mrf.mxu1 }
 0x27f   :  { %v12792_v57 = vld [vmem:[%s19741_s1 + $0x16d4] sm:$0xf0]  ;;  %v12400_v23 = vld [vmem:[%s19741_s1 + $0xa9c] sm:$0xf] }
 0x280   :  { %v11383_v58 = vld [vmem:[%s19741_s1 + $0x1a98] sm:$0xf]  ;;  %v10872_v61 = vor.u32 %v12792_v57, %v10871_v56  ;;  %6855 = vmatpush.bf16.msrb.mxu0 %v10360_v60 }
 0x281   :  { %v12920_v33 = vld [vmem:[%s19741_s1 + $0x1ad4] sm:$0xf0] }
 0x282   :  { %v11895_v50 = vld [vmem:[%s19741_s1 + $0x1e98] sm:$0xf]  ;;  %v11384_v62 = vor.u32 %v12920_v33, %v11383_v58  ;;  %6868 = vmatpush.bf16.msrb.mxu1 %v10872_v61 }
 0x283   :  { %v13048_v59 = vld [vmem:[%s19741_s1 + $0x1ed4] sm:$0xf0] }
 0x284   :  { %v10295_v18 = vld [vmem:[%s19741_s1 + $0x1218] sm:$0xf]  ;;  %v11896_v1 = vor.u32 %v13048_v59, %v11895_v50  ;;  %6881 = vmatpush.bf16.msrb.mxu2 %v11384_v62 }
 0x285   :  { %v12648_v55 = vld [vmem:[%s19741_s1 + $0x1254] sm:$0xf0] }
 0x286   :  { %v10807_v0 = vld [vmem:[%s19741_s1 + $0x1618] sm:$0xf]  ;;  %v10296_v5 = vor.u32 %v12648_v55, %v10295_v18  ;;  %6894 = vmatpush.bf16.msrb.mxu3 %v11896_v1  ;;  %v6630_v1 = vpop.f32.mrf.mxu2 }
 0x287   :  { %v12776_v46 = vld [vmem:[%s19741_s1 + $0x1654] sm:$0xf0]  ;;  %v9785_v1 = vld [vmem:[%s19741_s1 + $0xe58] sm:$0xf0] }
 0x288   :  { %v11319_v2 = vld [vmem:[%s19741_s1 + $0x1a18] sm:$0xf]  ;;  %v10808_v11 = vor.u32 %v12776_v46, %v10807_v0  ;;  %6856 = vmatpush.bf16.msrb.mxu0 %v10296_v5  ;;  %v12176_v5 = vld [vmem:[%s19741_s1 + $0x39c] sm:$0xf] }
 0x289   :  { %v12904_v43 = vld [vmem:[%s19741_s1 + $0x1a54] sm:$0xf0] }
 0x28a   :  { %v11831_v3 = vld [vmem:[%s19741_s1 + $0x1e18] sm:$0xf]  ;;  %v11320_v12 = vor.u32 %v12904_v43, %v11319_v2  ;;  %6869 = vmatpush.bf16.msrb.mxu1 %v10808_v11  ;;  %v8441_v11 = vld [vmem:[%s19741_s1 + $0x3d8] sm:$0xf0] }
 0x28b   :  { %v13032_v4 = vld [vmem:[%s19741_s1 + $0x1e54] sm:$0xf0] }
 0x28c   :  { %v10231_v13 = vld [vmem:[%s19741_s1 + $0x1198] sm:$0xf]  ;;  %v11832_v22 = vor.u32 %v13032_v4, %v11831_v3  ;;  %6882 = vmatpush.bf16.msrb.mxu2 %v11320_v12  ;;  %v6643_v4 = vpop.f32.mrf.mxu3  ;;  %v12304_v12 = vld [vmem:[%s19741_s1 + $0x79c] sm:$0xf] }
 0x28d   :  { %v12632_v14 = vld [vmem:[%s19741_s1 + $0x11d4] sm:$0xf0]  ;;  %v12112_v4 = vld [vmem:[%s19741_s1 + $0x19c] sm:$0xf] }
 0x28e   :  { %v10743_v15 = vld [vmem:[%s19741_s1 + $0x1598] sm:$0xf]  ;;  %v10232_v30 = vor.u32 %v12632_v14, %v10231_v13  ;;  %6895 = vmatpush.bf16.msrb.mxu3 %v11832_v22  ;;  %v8953_v14 = vld [vmem:[%s19741_s1 + $0x7d8] sm:$0xf0] }
 0x28f   :  { %v12760_v24 = vld [vmem:[%s19741_s1 + $0x15d4] sm:$0xf0]  ;;  %v9465_v22 = vld [vmem:[%s19741_s1 + $0xbd8] sm:$0xf0] }
 0x290   :  { %v11255_v26 = vld [vmem:[%s19741_s1 + $0x1998] sm:$0xf]  ;;  %v10744_v31 = vor.u32 %v12760_v24, %v10743_v15  ;;  %6857 = vmatpush.bf16.msrb.mxu0 %v10232_v30  ;;  %v12432_v15 = vld [vmem:[%s19741_s1 + $0xb9c] sm:$0xf]  ;;  %v8444_v30 = vor.u32 %v12176_v5, %v8441_v11 }
 0x291   :  { %v12888_v27 = vld [vmem:[%s19741_s1 + $0x19d4] sm:$0xf0]  ;;  %v8185_v5 = vld [vmem:[%s19741_s1 + $0x1d8] sm:$0xf0] }
 0x292   :  { %v11767_v28 = vld [vmem:[%s19741_s1 + $0x1d98] sm:$0xf]  ;;  %v11256_v32 = vor.u32 %v12888_v27, %v11255_v26  ;;  %6870 = vmatpush.bf16.msrb.mxu1 %v10744_v31  ;;  %v12560_v27 = vld [vmem:[%s19741_s1 + $0xf9c] sm:$0xf]  ;;  %v8956_v31 = vor.u32 %v12304_v12, %v8953_v14 }
 0x293   :  { %v13016_v29 = vld [vmem:[%s19741_s1 + $0x1dd4] sm:$0xf0]  ;;  %v12240_v11 = vld [vmem:[%s19741_s1 + $0x59c] sm:$0xf] }
 0x294   :  { %v10167_v35 = vld [vmem:[%s19741_s1 + $0x1118] sm:$0xf]  ;;  %v11768_v19 = vor.u32 %v13016_v29, %v11767_v28  ;;  %6883 = vmatpush.bf16.msrb.mxu2 %v11256_v32  ;;  %v9977_v28 = vld [vmem:[%s19741_s1 + $0xfd8] sm:$0xf0]  ;;  %v9468_v32 = vor.u32 %v12432_v15, %v9465_v22 }
 0x295   :  { %v12616_v39 = vld [vmem:[%s19741_s1 + $0x1154] sm:$0xf0]  ;;  %v8697_v15 = vld [vmem:[%s19741_s1 + $0x5d8] sm:$0xf0] }
 0x296   :  { %v10679_v44 = vld [vmem:[%s19741_s1 + $0x1518] sm:$0xf]  ;;  %v10168_v42 = vor.u32 %v12616_v39, %v10167_v35  ;;  %6896 = vmatpush.bf16.msrb.mxu3 %v11768_v19  ;;  %v6616_v35 = vadd.f32 %v15900_v21, %v15889_v6  ;;  %v12160_v39 = vld [vmem:[%s19741_s1 + $0x31c] sm:$0xf] }
 0x297   :  { %v12744_v10 = vld [vmem:[%s19741_s1 + $0x1554] sm:$0xf0]  ;;  %v12288_v19 = vld [vmem:[%s19741_s1 + $0x71c] sm:$0xf] }
 0x298   :  { %v11191_v47 = vld [vmem:[%s19741_s1 + $0x1918] sm:$0xf]  ;;  %v10680_v52 = vor.u32 %v12744_v10, %v10679_v44  ;;  %6858 = vmatpush.bf16.msrb.mxu0 %v10168_v42  ;;  %v8377_v44 = vld [vmem:[%s19741_s1 + $0x358] sm:$0xf0]  ;;  %v9980_v10 = vor.u32 %v12560_v27, %v9977_v28 }
 0x299   :  { %v12872_v7 = vld [vmem:[%s19741_s1 + $0x1954] sm:$0xf0]  ;;  %v12416_v6 = vld [vmem:[%s19741_s1 + $0xb1c] sm:$0xf] }
 0x29a   :  { %v11703_v48 = vld [vmem:[%s19741_s1 + $0x1d18] sm:$0xf]  ;;  %v11192_v36 = vor.u32 %v12872_v7, %v11191_v47  ;;  %6871 = vmatpush.bf16.msrb.mxu1 %v10680_v52  ;;  %v8889_v47 = vld [vmem:[%s19741_s1 + $0x758] sm:$0xf0]  ;;  %v6629_v52 = vadd.f32 %v15926_v8, %v6616_v35 }
 0x29b   :  { %v13000_v49 = vld [vmem:[%s19741_s1 + $0x1d54] sm:$0xf0]  ;;  %v9401_v21 = vld [vmem:[%s19741_s1 + $0xb58] sm:$0xf0]  ;;  %v8892_v42 = vor.u32 %v12288_v19, %v8889_v47  ;;  %v6680_v19 = vpop.f32.mrf.mxu2 }
 0x29c   :  { %v10103_v53 = vld [vmem:[%s19741_s1 + $0x1098] sm:$0xf]  ;;  %v11704_v41 = vor.u32 %v13000_v49, %v11703_v48  ;;  %6884 = vmatpush.bf16.msrb.mxu2 %v11192_v36  ;;  %v12544_v7 = vld [vmem:[%s19741_s1 + $0xf1c] sm:$0xf]  ;;  %v8380_v49 = vor.u32 %v12160_v39, %v8377_v44  ;;  %v9404_v51 = vor.u32 %v12416_v6, %v9401_v21 }
 0x29d   :  { %v12600_v25 = vld [vmem:[%s19741_s1 + $0x10d4] sm:$0xf0]  ;;  %v9913_v48 = vld [vmem:[%s19741_s1 + $0xf58] sm:$0xf0] }
 0x29e   :  { %v10615_v54 = vld [vmem:[%s19741_s1 + $0x1498] sm:$0xf]  ;;  %v10104_v50 = vor.u32 %v12600_v25, %v10103_v53  ;;  %6897 = vmatpush.bf16.msrb.mxu3 %v11704_v41  ;;  %v12144_v36 = vld [vmem:[%s19741_s1 + $0x29c] sm:$0xf] }
 0x29f   :  { %v12728_v56 = vld [vmem:[%s19741_s1 + $0x14d4] sm:$0xf0]  ;;  %v8313_v53 = vld [vmem:[%s19741_s1 + $0x2d8] sm:$0xf0] }
 0x2a0   :  { %v11127_v45 = vld [vmem:[%s19741_s1 + $0x1898] sm:$0xf]  ;;  %v10616_v61 = vor.u32 %v12728_v56, %v10615_v54  ;;  %6859 = vmatpush.bf16.msrb.mxu0 %v10104_v50  ;;  %v12272_v25 = vld [vmem:[%s19741_s1 + $0x69c] sm:$0xf]  ;;  %v9916_v54 = vor.u32 %v12544_v7, %v9913_v48  ;;  %v6693_v7 = vpop.f32.mrf.mxu3  ;;  %v16142_v48 = vld [vmem:[%s19743_s2] sm:$0xff] }
 0x2a1   :  { %v12856_v57 = vld [vmem:[%s19741_s1 + $0x18d4] sm:$0xf0]  ;;  %v8825_v8 = vld [vmem:[%s19741_s1 + $0x6d8] sm:$0xf0] }
 0x2a2   :  { %v11639_v58 = vld [vmem:[%s19741_s1 + $0x1c98] sm:$0xf]  ;;  %v11128_v62 = vor.u32 %v12856_v57, %v11127_v45  ;;  %6872 = vmatpush.bf16.msrb.mxu1 %v10616_v61  ;;  %v9337_v41 = vld [vmem:[%s19741_s1 + $0xad8] sm:$0xf0]  ;;  %v8316_v57 = vor.u32 %v12144_v36, %v8313_v53  ;;  %v16154_v53 = vld [vmem:[%s19744_s3] sm:$0xff] }
 0x2a3   :  { %v12984_v33 = vld [vmem:[%s19741_s1 + $0x1cd4] sm:$0xf0]  ;;  %v12528_v56 = vld [vmem:[%s19741_s1 + $0xe9c] sm:$0xf]  ;;  %v9340_v50 = vor.u32 %v12400_v23, %v9337_v41 }
 0x2a4   :  { %v10039_v59 = vld [vmem:[%s19741_s1 + $0x1018] sm:$0xf]  ;;  %v11640_v46 = vor.u32 %v12984_v33, %v11639_v58  ;;  %6885 = vmatpush.bf16.msrb.mxu2 %v11128_v62  ;;  %v9849_v45 = vld [vmem:[%s19741_s1 + $0xed8] sm:$0xf0]  ;;  %v6642_v58 = vadd.f32 %v15937_v20, %v6629_v52  ;;  %v8828_v33 = vor.u32 %v12272_v25, %v8825_v8  ;;  %v7901_v25 = vperm.slane %v16154_v53, 4 }
 0x2a5   :  { %v12584_v60 = vld [vmem:[%s19741_s1 + $0x1054] sm:$0xf0]  ;;  %v12256_v61 = vld [vmem:[%s19741_s1 + $0x61c] sm:$0xf]  ;;  %v9852_v62 = vor.u32 %v12528_v56, %v9849_v45 }
 0x2a6   :  { %v10551_v18 = vld [vmem:[%s19741_s1 + $0x1418] sm:$0xf]  ;;  %v10040_v13 = vor.u32 %v12584_v60, %v10039_v59  ;;  %6898 = vmatpush.bf16.msrb.mxu3 %v11640_v46  ;;  %v12128_v59 = vld [vmem:[%s19741_s1 + $0x21c] sm:$0xf] }
 0x2a7   :  { %v12712_v55 = vld [vmem:[%s19741_s1 + $0x1454] sm:$0xf0]  ;;  %v8249_v60 = vld [vmem:[%s19741_s1 + $0x258] sm:$0xf0] }
 0x2a8   :  { %v11063_v0 = vld [vmem:[%s19741_s1 + $0x1818] sm:$0xf]  ;;  %v10552_v24 = vor.u32 %v12712_v55, %v10551_v18  ;;  %6860 = vmatpush.bf16.msrb.mxu0 %v10040_v13  ;;  %v8761_v20 = vld [vmem:[%s19741_s1 + $0x658] sm:$0xf0]  ;;  %v8252_v46 = vor.u32 %v12128_v59, %v8249_v60  ;;  %v6667_v13 = vpop.f32.mrf.mxu1 }
 0x2a9   :  { %v12840_v2 = vld [vmem:[%s19741_s1 + $0x1854] sm:$0xf0]  ;;  %v12384_v18 = vld [vmem:[%s19741_s1 + $0xa1c] sm:$0xf] }
 0x2aa   :  { %v11575_v43 = vld [vmem:[%s19741_s1 + $0x1c18] sm:$0xf]  ;;  %v11064_v26 = vor.u32 %v12840_v2, %v11063_v0  ;;  %6873 = vmatpush.bf16.msrb.mxu1 %v10552_v24  ;;  %v9273_v55 = vld [vmem:[%s19741_s1 + $0xa58] sm:$0xf0]  ;;  %v6654_v2 = vpop.f32.mrf.mxu0 }
 0x2ab   :  { %v12968_v3 = vld [vmem:[%s19741_s1 + $0x1c54] sm:$0xf0]  ;;  %6861 = vmatmul.bf16.vlgmr.msrb.gmra.mxu0 %v13590_v37  ;;  %v12512_v0 = vld [vmem:[%s19741_s1 + $0xe1c] sm:$0xf]  ;;  %v6655_v12 = vadd.f32 %v6654_v2, %v6642_v58 }
 0x2ac   :  { %v11576_v29 = vor.u32 %v12968_v3, %v11575_v43  ;;  %6886 = vmatpush.bf16.msrb.mxu2 %v11064_v26  ;;  %6905 = vmatpush.bf16.msra.mxu0 %v8444_v30  ;;  %v8764_v43 = vor.u32 %v12256_v61, %v8761_v20  ;;  %v9276_v3 = vor.u32 %v12384_v18, %v9273_v55  ;;  %v12368_v22 = vld [vmem:[%s19741_s1 + $0x99c] sm:$0xf] }
 0x2ad   :  { %6874 = vmatmul.bf16.vlgmr.msrb.gmra.mxu1 %v13594_v40  ;;  %v9788_v14 = vor.u32 %v12512_v0, %v9785_v1  ;;  %v9209_v24 = vld [vmem:[%s19741_s1 + $0x9d8] sm:$0xf0]  ;;  %v6668_v28 = vadd.f32 %v6667_v13, %v6655_v12 }
 0x2ae   :  { %6899 = vmatpush.bf16.msrb.mxu3 %v11576_v29  ;;  %6918 = vmatpush.bf16.msra.mxu1 %v8956_v31  ;;  %v12496_v26 = vld [vmem:[%s19741_s1 + $0xd9c] sm:$0xf]  ;;  %v8188_v29 = vor.u32 %v12112_v4, %v8185_v5  ;;  %v8700_v31 = vor.u32 %v12240_v11, %v8697_v15  ;;  %v6682_v5 = vpop.f32.mrf.mxu2 }
 0x2af   :  { %6887 = vmatmul.bf16.vlgmr.msrb.gmra.mxu2 %v13582_v34  ;;  %v9721_v27 = vld [vmem:[%s19741_s1 + $0xdd8] sm:$0xf0]  ;;  %v6681_v21 = vadd.f32 %v6680_v19, %v6668_v28 }
 0x2b0   :  { %6931 = vmatpush.bf16.msra.mxu2 %v9468_v32  ;;  %6906 = vmatpush.bf16.msra.mxu0 %v8380_v49  ;;  %v12096_v30 = vld [vmem:[%s19741_s1 + $0x11c] sm:$0xf]  ;;  %v9212_v32 = vor.u32 %v12368_v22, %v9209_v24  ;;  %v7849_v49 = vperm.slane %v16142_v48, 4 }
 0x2b1   :  { %6900 = vmatmul.bf16.vlgmr.msrb.gmra.mxu3 %v13592_v38  ;;  %v8121_v35 = vld [vmem:[%s19741_s1 + $0x158] sm:$0xf0]  ;;  %v6694_v36 = vadd.f32 %v6693_v7, %v6681_v21 }
 0x2b2   :  { %6944 = vmatpush.bf16.msra.mxu3 %v9980_v10  ;;  %6919 = vmatpush.bf16.msra.mxu1 %v8892_v42  ;;  %v12224_v39 = vld [vmem:[%s19741_s1 + $0x51c] sm:$0xf]  ;;  %v9724_v10 = vor.u32 %v12496_v26, %v9721_v27  ;;  %v8124_v52 = vor.u32 %v12096_v30, %v8121_v35 }
 0x2b3   :  { %v8633_v44 = vld [vmem:[%s19741_s1 + $0x558] sm:$0xf0] }
 0x2b4   :  { %6932 = vmatpush.bf16.msra.mxu2 %v9404_v51  ;;  %6907 = vmatpush.bf16.msra.mxu0 %v8316_v57  ;;  %v12352_v47 = vld [vmem:[%s19741_s1 + $0x91c] sm:$0xf]  ;;  %v8636_v8 = vor.u32 %v12224_v39, %v8633_v44  ;;  %v6669_v57 = vpop.f32.mrf.mxu1 }
 0x2b5   :  { %v9145_v6 = vld [vmem:[%s19741_s1 + $0x958] sm:$0xf0] }
 0x2b6   :  { %6945 = vmatpush.bf16.msra.mxu3 %v9916_v54  ;;  %6920 = vmatpush.bf16.msra.mxu1 %v8828_v33  ;;  %v12480_v42 = vld [vmem:[%s19741_s1 + $0xd1c] sm:$0xf]  ;;  %v6656_v54 = vpop.f32.mrf.mxu0  ;;  %v9148_v23 = vor.u32 %v12352_v47, %v9145_v6  ;;  %v7881_v33 = vmul.f32 %v7849_v49, %v6694_v36 }
 0x2b7   :  { %v9657_v51 = vld [vmem:[%s19741_s1 + $0xd58] sm:$0xf0] }
 0x2b8   :  { %6933 = vmatpush.bf16.msra.mxu2 %v9340_v50  ;;  %6908 = vmatpush.bf16.msra.mxu0 %v8252_v46  ;;  %v12080_v41 = vld [vmem:[%s19741_s1 + $0x9c] sm:$0xf]  ;;  %v9660_v58 = vor.u32 %v12480_v42, %v9657_v51  ;;  %v7933_v20 = vadd.f32 %v7901_v25, %v7881_v33 }
 0x2b9   :  { %v8057_v56 = vld [vmem:[%s19741_s1 + $0xd8] sm:$0xf0] }
 0x2ba   :  { %6946 = vmatpush.bf16.msra.mxu3 %v9852_v62  ;;  %6921 = vmatpush.bf16.msra.mxu1 %v8764_v43  ;;  %v12208_v45 = vld [vmem:[%s19741_s1 + $0x49c] sm:$0xf]  ;;  %v8060_v18 = vor.u32 %v12080_v41, %v8057_v56  ;;  %7949 = vst [vmem:[%s19745_s4 + $0x20] sm:$0xff] %v7933_v20 }
 0x2bb   :  { %v8569_v50 = vld [vmem:[%s19741_s1 + $0x4d8] sm:$0xf0] }
 0x2bc   :  { %6934 = vmatpush.bf16.msra.mxu2 %v9276_v3  ;;  %6909 = vmatpush.bf16.msra.mxu0 %v8188_v29  ;;  %v12336_v59 = vld [vmem:[%s19741_s1 + $0x89c] sm:$0xf]  ;;  %v8572_v46 = vor.u32 %v12208_v45, %v8569_v50 }
 0x2bd   :  { %v9081_v60 = vld [vmem:[%s19741_s1 + $0x8d8] sm:$0xf0] }
 0x2be   :  { %6947 = vmatpush.bf16.msra.mxu3 %v9788_v14  ;;  %6922 = vmatpush.bf16.msra.mxu1 %v8700_v31  ;;  %v12464_v61 = vld [vmem:[%s19741_s1 + $0xc9c] sm:$0xf]  ;;  %v9084_v2 = vor.u32 %v12336_v59, %v9081_v60  ;;  %v6695_v14 = vpop.f32.mrf.mxu3  ;;  %v16308_v5 = vpop.f32.mrf.mxu0 }
 0x2bf   :  { %v9593_v62 = vld [vmem:[%s19741_s1 + $0xcd8] sm:$0xf0] }
 0x2c0   :  { %6935 = vmatpush.bf16.msra.mxu2 %v9212_v32  ;;  %6910 = vmatpush.bf16.msra.mxu0 %v8124_v52  ;;  %v12064_v55 = vld [vmem:[%s19741_s1 + $0x1c] sm:$0xf]  ;;  %v9596_v11 = vor.u32 %v12464_v61, %v9593_v62 }
 0x2c1   :  { %v7993_v0 = vld [vmem:[%s19741_s1 + $0x58] sm:$0xf0] }
 0x2c2   :  { %6948 = vmatpush.bf16.msra.mxu3 %v9724_v10  ;;  %v12192_v1 = vld [vmem:[%s19741_s1 + $0x41c] sm:$0xf]  ;;  %6923 = vmatpush.bf16.msra.mxu1 %v8636_v8  ;;  %v7996_v26 = vor.u32 %v12064_v55, %v7993_v0 }
 0x2c3   :  { %v8505_v43 = vld [vmem:[%s19741_s1 + $0x458] sm:$0xf0] }
 0x2c4   :  { %6936 = vmatpush.bf16.msra.mxu2 %v9148_v23  ;;  %v12320_v3 = vld [vmem:[%s19741_s1 + $0x81c] sm:$0xf]  ;;  %6911 = vmatpush.bf16.msra.mxu0 %v8060_v18  ;;  %v8508_v30 = vor.u32 %v12192_v1, %v8505_v43 }
 0x2c5   :  { %v9017_v4 = vld [vmem:[%s19741_s1 + $0x858] sm:$0xf0] }
 0x2c6   :  { %6949 = vmatpush.bf16.msra.mxu3 %v9660_v58  ;;  %v12448_v12 = vld [vmem:[%s19741_s1 + $0xc1c] sm:$0xf]  ;;  %6924 = vmatpush.bf16.msra.mxu1 %v8572_v46  ;;  %v9020_v31 = vor.u32 %v12320_v3, %v9017_v4 }
 0x2c7   :  { %v9529_v13 = vld [vmem:[%s19741_s1 + $0xc58] sm:$0xf0] }
 0x2c8   :  { %v12688_v15 = vld [vmem:[%s19741_s1 + $0x139c] sm:$0xf]  ;;  %6937 = vmatpush.bf16.msra.mxu2 %v9084_v2  ;;  %v9532_v39 = vor.u32 %v12448_v12, %v9529_v13  ;;  %6912 = vmatpush.bf16.msra.mxu0 %v7996_v26 }
 0x2c9   :  { %v10489_v22 = vld [vmem:[%s19741_s1 + $0x13d8] sm:$0xf0] }
 0x2ca   :  { %v12816_v24 = vld [vmem:[%s19741_s1 + $0x179c] sm:$0xf]  ;;  %6950 = vmatpush.bf16.msra.mxu3 %v9596_v11  ;;  %v10492_v44 = vor.u32 %v12688_v15, %v10489_v22  ;;  %6925 = vmatpush.bf16.msra.mxu1 %v8508_v30  ;;  %v16319_v22 = vpop.f32.mrf.mxu1 }
 0x2cb   :  { %v11001_v27 = vld [vmem:[%s19741_s1 + $0x17d8] sm:$0xf0]  ;;  %6913 = vmatmul.bf16.vlgmr.msra.gmra.mxu0 %v13402_v9 }
 0x2cc   :  { %v12944_v28 = vld [vmem:[%s19741_s1 + $0x1b9c] sm:$0xf]  ;;  %v11004_v19 = vor.u32 %v12816_v24, %v11001_v27  ;;  %6938 = vmatpush.bf16.msra.mxu2 %v9020_v31  ;;  %6957 = vmatpush.bf16.msrb.mxu0 %v10492_v44 }
 0x2cd   :  { %v11513_v29 = vld [vmem:[%s19741_s1 + $0x1bd8] sm:$0xf0]  ;;  %6926 = vmatmul.bf16.vlgmr.msra.gmra.mxu1 %v13421_v17 }
 0x2ce   :  { %v13072_v32 = vld [vmem:[%s19741_s1 + $0x1f9c] sm:$0xf]  ;;  %v11516_v10 = vor.u32 %v12944_v28, %v11513_v29  ;;  %6951 = vmatpush.bf16.msra.mxu3 %v9532_v39  ;;  %6970 = vmatpush.bf16.msrb.mxu1 %v11004_v19 }
 0x2cf   :  { %v12025_v35 = vld [vmem:[%s19741_s1 + $0x1fd8] sm:$0xf0]  ;;  %6939 = vmatmul.bf16.vlgmr.msra.gmra.mxu2 %v13381_v63 }
 0x2d0   :  { %v12672_v47 = vld [vmem:[%s19741_s1 + $0x131c] sm:$0xf]  ;;  %v12028_v7 = vor.u32 %v13072_v32, %v12025_v35  ;;  %6983 = vmatpush.bf16.msrb.mxu2 %v11516_v10  ;;  %v16345_v10 = vpop.f32.mrf.mxu2 }
 0x2d1   :  { %v10425_v6 = vld [vmem:[%s19741_s1 + $0x1358] sm:$0xf0]  ;;  %6952 = vmatmul.bf16.vlgmr.msra.gmra.mxu3 %v13419_v16 }
 0x2d2   :  { %v12800_v21 = vld [vmem:[%s19741_s1 + $0x171c] sm:$0xf]  ;;  %v10428_v25 = vor.u32 %v12672_v47, %v10425_v6  ;;  %6996 = vmatpush.bf16.msrb.mxu3 %v12028_v7 }
 0x2d3   :  { %v10937_v49 = vld [vmem:[%s19741_s1 + $0x1758] sm:$0xf0] }
 0x2d4   :  { %v12928_v42 = vld [vmem:[%s19741_s1 + $0x1b1c] sm:$0xf]  ;;  %v10940_v54 = vor.u32 %v12800_v21, %v10937_v49  ;;  %6958 = vmatpush.bf16.msrb.mxu0 %v10428_v25  ;;  %v16356_v49 = vpop.f32.mrf.mxu3 }
 0x2d5   :  { %v11449_v51 = vld [vmem:[%s19741_s1 + $0x1b58] sm:$0xf0] }
 0x2d6   :  { %v13056_v52 = vld [vmem:[%s19741_s1 + $0x1f1c] sm:$0xf]  ;;  %v11452_v8 = vor.u32 %v12928_v42, %v11449_v51  ;;  %6971 = vmatpush.bf16.msrb.mxu1 %v10940_v54 }
 0x2d7   :  { %v11961_v36 = vld [vmem:[%s19741_s1 + $0x1f58] sm:$0xf0] }
 0x2d8   :  { %v12656_v23 = vld [vmem:[%s19741_s1 + $0x129c] sm:$0xf]  ;;  %v11964_v45 = vor.u32 %v13056_v52, %v11961_v36  ;;  %6984 = vmatpush.bf16.msrb.mxu2 %v11452_v8  ;;  %v6708_v36 = vpop.f32.mrf.mxu0 }
 0x2d9   :  { %v10361_v41 = vld [vmem:[%s19741_s1 + $0x12d8] sm:$0xf0] }
 0x2da   :  { %v12784_v56 = vld [vmem:[%s19741_s1 + $0x169c] sm:$0xf]  ;;  %v10364_v60 = vor.u32 %v12656_v23, %v10361_v41  ;;  %6997 = vmatpush.bf16.msrb.mxu3 %v11964_v45 }
 0x2db   :  { %v10873_v57 = vld [vmem:[%s19741_s1 + $0x16d8] sm:$0xf0] }
 0x2dc   :  { %v12912_v58 = vld [vmem:[%s19741_s1 + $0x1a9c] sm:$0xf]  ;;  %v10876_v61 = vor.u32 %v12784_v56, %v10873_v57  ;;  %6959 = vmatpush.bf16.msrb.mxu0 %v10364_v60  ;;  %v6721_v56 = vpop.f32.mrf.mxu1 }
 0x2dd   :  { %v11385_v33 = vld [vmem:[%s19741_s1 + $0x1ad8] sm:$0xf0]  ;;  %v8831_v56 = vld [vmem:[%s19741_s1 + $0x6a0] sm:$0xf] }
 0x2de   :  { %v13040_v50 = vld [vmem:[%s19741_s1 + $0x1e9c] sm:$0xf]  ;;  %v11388_v62 = vor.u32 %v12912_v58, %v11385_v33  ;;  %6972 = vmatpush.bf16.msrb.mxu1 %v10876_v61 }
 0x2df   :  { %v11897_v59 = vld [vmem:[%s19741_s1 + $0x1ed8] sm:$0xf0] }
 0x2e0   :  { %v12640_v20 = vld [vmem:[%s19741_s1 + $0x121c] sm:$0xf]  ;;  %v11900_v0 = vor.u32 %v13040_v50, %v11897_v59  ;;  %6985 = vmatpush.bf16.msrb.mxu2 %v11388_v62 }
 0x2e1   :  { %v10297_v18 = vld [vmem:[%s19741_s1 + $0x1258] sm:$0xf0] }
 0x2e2   :  { %v12768_v55 = vld [vmem:[%s19741_s1 + $0x161c] sm:$0xf]  ;;  %v10300_v4 = vor.u32 %v12640_v20, %v10297_v18  ;;  %6998 = vmatpush.bf16.msrb.mxu3 %v11900_v0 }
 0x2e3   :  { %v10809_v1 = vld [vmem:[%s19741_s1 + $0x1658] sm:$0xf0] }
 0x2e4   :  { %v12896_v46 = vld [vmem:[%s19741_s1 + $0x1a1c] sm:$0xf]  ;;  %v10812_v11 = vor.u32 %v12768_v55, %v10809_v1  ;;  %6960 = vmatpush.bf16.msrb.mxu0 %v10300_v4 }
 0x2e5   :  { %v11321_v2 = vld [vmem:[%s19741_s1 + $0x1a58] sm:$0xf0] }
 0x2e6   :  { %v13024_v43 = vld [vmem:[%s19741_s1 + $0x1e1c] sm:$0xf]  ;;  %v11324_v12 = vor.u32 %v12896_v46, %v11321_v2  ;;  %6973 = vmatpush.bf16.msrb.mxu1 %v10812_v11  ;;  %v6734_v46 = vpop.f32.mrf.mxu2  ;;  %v6747_v11 = vpop.f32.mrf.mxu3 }
 0x2e7   :  { %v11833_v3 = vld [vmem:[%s19741_s1 + $0x1e58] sm:$0xf0]  ;;  %v12393_v46 = vld [vmem:[%s19741_s1 + $0xa5c] sm:$0xf0] }
 0x2e8   :  { %v12624_v13 = vld [vmem:[%s19741_s1 + $0x119c] sm:$0xf]  ;;  %v11836_v24 = vor.u32 %v13024_v43, %v11833_v3  ;;  %6986 = vmatpush.bf16.msrb.mxu2 %v11324_v12  ;;  %v8447_v12 = vld [vmem:[%s19741_s1 + $0x3a0] sm:$0xf] }
 0x2e9   :  { %v10233_v14 = vld [vmem:[%s19741_s1 + $0x11d8] sm:$0xf0] }
 0x2ea   :  { %v12752_v15 = vld [vmem:[%s19741_s1 + $0x159c] sm:$0xf]  ;;  %v10236_v31 = vor.u32 %v12624_v13, %v10233_v14  ;;  %6999 = vmatpush.bf16.msrb.mxu3 %v11836_v24  ;;  %v12185_v13 = vld [vmem:[%s19741_s1 + $0x3dc] sm:$0xf0] }
 0x2eb   :  { %v10745_v26 = vld [vmem:[%s19741_s1 + $0x15d8] sm:$0xf0]  ;;  %v8959_v14 = vld [vmem:[%s19741_s1 + $0x7a0] sm:$0xf] }
 0x2ec   :  { %v12880_v27 = vld [vmem:[%s19741_s1 + $0x199c] sm:$0xf]  ;;  %v10748_v32 = vor.u32 %v12752_v15, %v10745_v26  ;;  %6961 = vmatpush.bf16.msrb.mxu0 %v10236_v31  ;;  %v12313_v24 = vld [vmem:[%s19741_s1 + $0x7dc] sm:$0xf0] }
 0x2ed   :  { %v11257_v28 = vld [vmem:[%s19741_s1 + $0x19d8] sm:$0xf0]  ;;  %v9471_v26 = vld [vmem:[%s19741_s1 + $0xba0] sm:$0xf] }
 0x2ee   :  { %v13008_v29 = vld [vmem:[%s19741_s1 + $0x1d9c] sm:$0xf]  ;;  %v11260_v35 = vor.u32 %v12880_v27, %v11257_v28  ;;  %6974 = vmatpush.bf16.msrb.mxu1 %v10748_v32  ;;  %v12441_v27 = vld [vmem:[%s19741_s1 + $0xbdc] sm:$0xf0] }
 0x2ef   :  { %v11769_v30 = vld [vmem:[%s19741_s1 + $0x1dd8] sm:$0xf0]  ;;  %v12569_v31 = vld [vmem:[%s19741_s1 + $0xfdc] sm:$0xf0] }
 0x2f0   :  { %v12608_v39 = vld [vmem:[%s19741_s1 + $0x111c] sm:$0xf]  ;;  %v11772_v47 = vor.u32 %v13008_v29, %v11769_v30  ;;  %6987 = vmatpush.bf16.msrb.mxu2 %v11260_v35  ;;  %v9983_v30 = vld [vmem:[%s19741_s1 + $0xfa0] sm:$0xf]  ;;  %v8448_v35 = vor.u32 %v12185_v13, %v8447_v12 }
 0x2f1   :  { %v10169_v44 = vld [vmem:[%s19741_s1 + $0x1158] sm:$0xf0]  ;;  %v8191_v13 = vld [vmem:[%s19741_s1 + $0x1a0] sm:$0xf] }
 0x2f2   :  { %v12736_v19 = vld [vmem:[%s19741_s1 + $0x151c] sm:$0xf]  ;;  %v10172_v52 = vor.u32 %v12608_v39, %v10169_v44  ;;  %7000 = vmatpush.bf16.msrb.mxu3 %v11772_v47  ;;  %v8960_v39 = vor.u32 %v12313_v24, %v8959_v14  ;;  %v9472_v44 = vor.u32 %v12441_v27, %v9471_v26  ;;  %v8383_v47 = vld [vmem:[%s19741_s1 + $0x320] sm:$0xf]  ;;  %v6771_v26 = vpop.f32.mrf.mxu1 }
 0x2f3   :  { %v10681_v6 = vld [vmem:[%s19741_s1 + $0x1558] sm:$0xf0]  ;;  %v12121_v14 = vld [vmem:[%s19741_s1 + $0x1dc] sm:$0xf0] }
 0x2f4   :  { %v12864_v21 = vld [vmem:[%s19741_s1 + $0x191c] sm:$0xf]  ;;  %v10684_v25 = vor.u32 %v12736_v19, %v10681_v6  ;;  %6962 = vmatpush.bf16.msrb.mxu0 %v10172_v52  ;;  %v6720_v19 = vadd.f32 %v16319_v22, %v16308_v5  ;;  %v12169_v6 = vld [vmem:[%s19741_s1 + $0x35c] sm:$0xf0] }
 0x2f5   :  { %v11193_v7 = vld [vmem:[%s19741_s1 + $0x1958] sm:$0xf0]  ;;  %v9407_v5 = vld [vmem:[%s19741_s1 + $0xb20] sm:$0xf]  ;;  %v8384_v36 = vor.u32 %v12169_v6, %v8383_v47 }
 0x2f6   :  { %v12992_v42 = vld [vmem:[%s19741_s1 + $0x1d1c] sm:$0xf]  ;;  %v11196_v54 = vor.u32 %v12864_v21, %v11193_v7  ;;  %6975 = vmatpush.bf16.msrb.mxu1 %v10684_v25  ;;  %v8895_v21 = vld [vmem:[%s19741_s1 + $0x720] sm:$0xf]  ;;  %v9984_v7 = vor.u32 %v12569_v31, %v9983_v30 }
 0x2f7   :  { %v11705_v51 = vld [vmem:[%s19741_s1 + $0x1d58] sm:$0xf0]  ;;  %v12425_v22 = vld [vmem:[%s19741_s1 + $0xb5c] sm:$0xf0] }
 0x2f8   :  { %v12592_v8 = vld [vmem:[%s19741_s1 + $0x109c] sm:$0xf]  ;;  %v11708_v45 = vor.u32 %v12992_v42, %v11705_v51  ;;  %6988 = vmatpush.bf16.msrb.mxu2 %v11196_v54  ;;  %v12297_v42 = vld [vmem:[%s19741_s1 + $0x75c] sm:$0xf0]  ;;  %v9408_v54 = vor.u32 %v12425_v22, %v9407_v5 }
 0x2f9   :  { %v10105_v23 = vld [vmem:[%s19741_s1 + $0x10d8] sm:$0xf0]  ;;  %v9919_v51 = vld [vmem:[%s19741_s1 + $0xf20] sm:$0xf]  ;;  %v8896_v25 = vor.u32 %v12297_v42, %v8895_v21  ;;  %v6784_v42 = vpop.f32.mrf.mxu2 }
 0x2fa   :  { %v12720_v41 = vld [vmem:[%s19741_s1 + $0x149c] sm:$0xf]  ;;  %v10108_v60 = vor.u32 %v12592_v8, %v10105_v23  ;;  %7001 = vmatpush.bf16.msrb.mxu3 %v11708_v45  ;;  %v12553_v52 = vld [vmem:[%s19741_s1 + $0xf5c] sm:$0xf0]  ;;  %v6733_v8 = vadd.f32 %v16345_v10, %v6720_v19 }
 0x2fb   :  { %v10617_v57 = vld [vmem:[%s19741_s1 + $0x14d8] sm:$0xf0]  ;;  %v8319_v23 = vld [vmem:[%s19741_s1 + $0x2a0] sm:$0xf]  ;;  %v9920_v45 = vor.u32 %v12553_v52, %v9919_v51 }
 0x2fc   :  { %v12848_v58 = vld [vmem:[%s19741_s1 + $0x189c] sm:$0xf]  ;;  %v10620_v20 = vor.u32 %v12720_v41, %v10617_v57  ;;  %6963 = vmatpush.bf16.msrb.mxu0 %v10108_v60  ;;  %v12153_v41 = vld [vmem:[%s19741_s1 + $0x2dc] sm:$0xf0]  ;;  %v6746_v60 = vadd.f32 %v16356_v49, %v6733_v8 }
 0x2fd   :  { %v11129_v33 = vld [vmem:[%s19741_s1 + $0x18d8] sm:$0xf0]  ;;  %v12281_v10 = vld [vmem:[%s19741_s1 + $0x6dc] sm:$0xf0] }
 0x2fe   :  { %v12976_v50 = vld [vmem:[%s19741_s1 + $0x1c9c] sm:$0xf]  ;;  %v11132_v18 = vor.u32 %v12848_v58, %v11129_v33  ;;  %6976 = vmatpush.bf16.msrb.mxu1 %v10620_v20  ;;  %v9343_v57 = vld [vmem:[%s19741_s1 + $0xaa0] sm:$0xf] }
 0x2ff   :  { %v11641_v59 = vld [vmem:[%s19741_s1 + $0x1cd8] sm:$0xf0]  ;;  %v12409_v58 = vld [vmem:[%s19741_s1 + $0xadc] sm:$0xf0] }
 0x300   :  { %v12576_v61 = vld [vmem:[%s19741_s1 + $0x101c] sm:$0xf]  ;;  %v11644_v2 = vor.u32 %v12976_v50, %v11641_v59  ;;  %6989 = vmatpush.bf16.msrb.mxu2 %v11132_v18  ;;  %v9855_v33 = vld [vmem:[%s19741_s1 + $0xea0] sm:$0xf]  ;;  %v8320_v59 = vor.u32 %v12153_v41, %v8319_v23 }
 0x301   :  { %v10041_v62 = vld [vmem:[%s19741_s1 + $0x1058] sm:$0xf0]  ;;  %v12537_v50 = vld [vmem:[%s19741_s1 + $0xedc] sm:$0xf0] }
 0x302   :  { %v12704_v55 = vld [vmem:[%s19741_s1 + $0x141c] sm:$0xf]  ;;  %v10044_v15 = vor.u32 %v12576_v61, %v10041_v62  ;;  %7002 = vmatpush.bf16.msrb.mxu3 %v11644_v2  ;;  %v8832_v61 = vor.u32 %v12281_v10, %v8831_v56  ;;  %v9344_v62 = vor.u32 %v12409_v58, %v9343_v57  ;;  %v8255_v20 = vld [vmem:[%s19741_s1 + $0x220] sm:$0xf]  ;;  %v7902_v56 = vperm.slane %v16154_v53, 5 }
 0x303   :  { %v10553_v0 = vld [vmem:[%s19741_s1 + $0x1458] sm:$0xf0]  ;;  %v12137_v18 = vld [vmem:[%s19741_s1 + $0x25c] sm:$0xf0] }
 0x304   :  { %v12832_v1 = vld [vmem:[%s19741_s1 + $0x181c] sm:$0xf]  ;;  %v10556_v28 = vor.u32 %v12704_v55, %v10553_v0  ;;  %6964 = vmatpush.bf16.msrb.mxu0 %v10044_v15  ;;  %v8767_v55 = vld [vmem:[%s19741_s1 + $0x620] sm:$0xf]  ;;  %v9856_v0 = vor.u32 %v12537_v50, %v9855_v33  ;;  %v6773_v50 = vpop.f32.mrf.mxu1 }
 0x305   :  { %v11065_v43 = vld [vmem:[%s19741_s1 + $0x1858] sm:$0xf0]  ;;  %v12265_v49 = vld [vmem:[%s19741_s1 + $0x65c] sm:$0xf0] }
 0x306   :  { %v12960_v3 = vld [vmem:[%s19741_s1 + $0x1c1c] sm:$0xf]  ;;  %v11068_v29 = vor.u32 %v12832_v1, %v11065_v43  ;;  %6977 = vmatpush.bf16.msrb.mxu1 %v10556_v28  ;;  %v9279_v1 = vld [vmem:[%s19741_s1 + $0xa20] sm:$0xf]  ;;  %v8768_v11 = vor.u32 %v12265_v49, %v8767_v55 }
 0x307   :  { %v11577_v4 = vld [vmem:[%s19741_s1 + $0x1c58] sm:$0xf0]  ;;  %6965 = vmatmul.bf16.vlgmr.msrb.gmra.mxu0 %v13590_v37  ;;  %v9791_v2 = vld [vmem:[%s19741_s1 + $0xe20] sm:$0xf]  ;;  %v9280_v12 = vor.u32 %v12393_v46, %v9279_v1 }
 0x308   :  { %v11580_v32 = vor.u32 %v12960_v3, %v11577_v4  ;;  %6990 = vmatpush.bf16.msrb.mxu2 %v11068_v29  ;;  %7009 = vmatpush.bf16.msra.mxu0 %v8448_v35  ;;  %v12521_v43 = vld [vmem:[%s19741_s1 + $0xe5c] sm:$0xf0]  ;;  %v8256_v3 = vor.u32 %v12137_v18, %v8255_v20  ;;  %v6758_v4 = vpop.f32.mrf.mxu0 }
 0x309   :  { %6978 = vmatmul.bf16.vlgmr.msrb.gmra.mxu1 %v13594_v40  ;;  %v8703_v15 = vld [vmem:[%s19741_s1 + $0x5a0] sm:$0xf]  ;;  %v6759_v24 = vadd.f32 %v6758_v4, %v6746_v60  ;;  %v9792_v27 = vor.u32 %v12521_v43, %v9791_v2 }
 0x30a   :  { %7003 = vmatpush.bf16.msrb.mxu3 %v11580_v32  ;;  %7022 = vmatpush.bf16.msra.mxu1 %v8960_v39  ;;  %v12249_v28 = vld [vmem:[%s19741_s1 + $0x5dc] sm:$0xf0]  ;;  %v8192_v39 = vor.u32 %v12121_v14, %v8191_v13 }
 0x30b   :  { %6991 = vmatmul.bf16.vlgmr.msrb.gmra.mxu2 %v13582_v34  ;;  %v9215_v29 = vld [vmem:[%s19741_s1 + $0x9a0] sm:$0xf]  ;;  %v6772_v35 = vadd.f32 %v6771_v26, %v6759_v24  ;;  %v8704_v19 = vor.u32 %v12249_v28, %v8703_v15 }
 0x30c   :  { %7035 = vmatpush.bf16.msra.mxu2 %v9472_v44  ;;  %7010 = vmatpush.bf16.msra.mxu0 %v8384_v36  ;;  %v12377_v30 = vld [vmem:[%s19741_s1 + $0x9dc] sm:$0xf0]  ;;  %v6797_v36 = vpop.f32.mrf.mxu3 }
 0x30d   :  { %7004 = vmatmul.bf16.vlgmr.msrb.gmra.mxu3 %v13592_v38  ;;  %v9727_v31 = vld [vmem:[%s19741_s1 + $0xda0] sm:$0xf]  ;;  %v9216_v47 = vor.u32 %v12377_v30, %v9215_v29  ;;  %v6785_v52 = vadd.f32 %v6784_v42, %v6772_v35 }
 0x30e   :  { %7048 = vmatpush.bf16.msra.mxu3 %v9984_v7  ;;  %7023 = vmatpush.bf16.msra.mxu1 %v8896_v25  ;;  %v12505_v32 = vld [vmem:[%s19741_s1 + $0xddc] sm:$0xf0]  ;;  %v7850_v25 = vperm.slane %v16142_v48, 5 }
 0x30f   :  { %v8127_v44 = vld [vmem:[%s19741_s1 + $0x120] sm:$0xf]  ;;  %v9728_v5 = vor.u32 %v12505_v32, %v9727_v31  ;;  %v6798_v41 = vadd.f32 %v6797_v36, %v6785_v52 }
 0x310   :  { %7036 = vmatpush.bf16.msra.mxu2 %v9408_v54  ;;  %7011 = vmatpush.bf16.msra.mxu0 %v8320_v59  ;;  %v12105_v6 = vld [vmem:[%s19741_s1 + $0x15c] sm:$0xf0] }
 0x311   :  { %v8639_v21 = vld [vmem:[%s19741_s1 + $0x520] sm:$0xf]  ;;  %v8128_v23 = vor.u32 %v12105_v6, %v8127_v44  ;;  %v7882_v59 = vmul.f32 %v7850_v25, %v6798_v41 }
 0x312   :  { %7049 = vmatpush.bf16.msra.mxu3 %v9920_v45  ;;  %7024 = vmatpush.bf16.msra.mxu1 %v8832_v61  ;;  %v12233_v7 = vld [vmem:[%s19741_s1 + $0x55c] sm:$0xf0]  ;;  %v6760_v45 = vpop.f32.mrf.mxu0 }
 0x313   :  { %v9151_v22 = vld [vmem:[%s19741_s1 + $0x920] sm:$0xf]  ;;  %v8640_v10 = vor.u32 %v12233_v7, %v8639_v21  ;;  %v7934_v55 = vadd.f32 %v7902_v56, %v7882_v59 }
 0x314   :  { %7037 = vmatpush.bf16.msra.mxu2 %v9344_v62  ;;  %7012 = vmatpush.bf16.msra.mxu0 %v8256_v3  ;;  %v12361_v51 = vld [vmem:[%s19741_s1 + $0x95c] sm:$0xf0]  ;;  %v6799_v24 = vpop.f32.mrf.mxu3 }
 0x315   :  { %v9663_v54 = vld [vmem:[%s19741_s1 + $0xd20] sm:$0xf]  ;;  %v9152_v57 = vor.u32 %v12361_v51, %v9151_v22  ;;  %7950 = vst [vmem:[%s19745_s4 + $0x28] sm:$0xff] %v7934_v55  ;;  %v16728_v24 = vpop.f32.mrf.mxu1 }
 0x316   :  { %7050 = vmatpush.bf16.msra.mxu3 %v9856_v0  ;;  %7025 = vmatpush.bf16.msra.mxu1 %v8768_v11  ;;  %v12489_v8 = vld [vmem:[%s19741_s1 + $0xd5c] sm:$0xf0] }
 0x317   :  { %v8063_v48 = vld [vmem:[%s19741_s1 + $0xa0] sm:$0xf]  ;;  %v9664_v53 = vor.u32 %v12489_v8, %v9663_v54 }
 0x318   :  { %7038 = vmatpush.bf16.msra.mxu2 %v9280_v12  ;;  %7013 = vmatpush.bf16.msra.mxu0 %v8192_v39  ;;  %v12089_v58 = vld [vmem:[%s19741_s1 + $0xdc] sm:$0xf0]  ;;  %v6786_v12 = vpop.f32.mrf.mxu2 }
 0x319   :  { %v8575_v33 = vld [vmem:[%s19741_s1 + $0x4a0] sm:$0xf]  ;;  %v8064_v0 = vor.u32 %v12089_v58, %v8063_v48 }
 0x31a   :  { %7051 = vmatpush.bf16.msra.mxu3 %v9792_v27  ;;  %7026 = vmatpush.bf16.msra.mxu1 %v8704_v19  ;;  %v12217_v60 = vld [vmem:[%s19741_s1 + $0x4dc] sm:$0xf0] }
 0x31b   :  { %v9087_v61 = vld [vmem:[%s19741_s1 + $0x8a0] sm:$0xf]  ;;  %v8576_v2 = vor.u32 %v12217_v60, %v8575_v33 }
 0x31c   :  { %7039 = vmatpush.bf16.msra.mxu2 %v9216_v47  ;;  %v12345_v62 = vld [vmem:[%s19741_s1 + $0x8dc] sm:$0xf0]  ;;  %7014 = vmatpush.bf16.msra.mxu0 %v8128_v23 }
 0x31d   :  { %v9599_v20 = vld [vmem:[%s19741_s1 + $0xca0] sm:$0xf]  ;;  %v9088_v43 = vor.u32 %v12345_v62, %v9087_v61 }
 0x31e   :  { %7052 = vmatpush.bf16.msra.mxu3 %v9728_v5  ;;  %v12473_v18 = vld [vmem:[%s19741_s1 + $0xcdc] sm:$0xf0]  ;;  %7027 = vmatpush.bf16.msra.mxu1 %v8640_v10 }
 0x31f   :  { %v7999_v49 = vld [vmem:[%s19741_s1 + $0x20] sm:$0xf]  ;;  %v9600_v13 = vor.u32 %v12473_v18, %v9599_v20 }
 0x320   :  { %v12073_v1 = vld [vmem:[%s19741_s1 + $0x5c] sm:$0xf0]  ;;  %7040 = vmatpush.bf16.msra.mxu2 %v9152_v57  ;;  %7015 = vmatpush.bf16.msra.mxu0 %v8064_v0 }
 0x321   :  { %v8511_v46 = vld [vmem:[%s19741_s1 + $0x420] sm:$0xf]  ;;  %v8000_v29 = vor.u32 %v12073_v1, %v7999_v49 }
 0x322   :  { %v12201_v3 = vld [vmem:[%s19741_s1 + $0x45c] sm:$0xf0]  ;;  %7053 = vmatpush.bf16.msra.mxu3 %v9664_v53  ;;  %7028 = vmatpush.bf16.msra.mxu1 %v8576_v2 }
 0x323   :  { %v9023_v4 = vld [vmem:[%s19741_s1 + $0x820] sm:$0xf]  ;;  %v8512_v35 = vor.u32 %v12201_v3, %v8511_v46 }
 0x324   :  { %v12329_v11 = vld [vmem:[%s19741_s1 + $0x85c] sm:$0xf0]  ;;  %7041 = vmatpush.bf16.msra.mxu2 %v9088_v43  ;;  %7016 = vmatpush.bf16.msra.mxu0 %v8000_v29 }
 0x325   :  { %v9535_v14 = vld [vmem:[%s19741_s1 + $0xc20] sm:$0xf]  ;;  %v9024_v39 = vor.u32 %v12329_v11, %v9023_v4  ;;  %v16717_v4 = vpop.f32.mrf.mxu0 }
 0x326   :  { %v12457_v15 = vld [vmem:[%s19741_s1 + $0xc5c] sm:$0xf0]  ;;  %7054 = vmatpush.bf16.msra.mxu3 %v9600_v13  ;;  %7029 = vmatpush.bf16.msra.mxu1 %v8512_v35 }
 0x327   :  { %v10495_v26 = vld [vmem:[%s19741_s1 + $0x13a0] sm:$0xf]  ;;  %v9536_v47 = vor.u32 %v12457_v15, %v9535_v14  ;;  %7017 = vmatmul.bf16.vlgmr.msra.gmra.mxu0 %v13402_v9 }
 0x328   :  { %v12697_v27 = vld [vmem:[%s19741_s1 + $0x13dc] sm:$0xf0]  ;;  %7042 = vmatpush.bf16.msra.mxu2 %v9024_v39 }
 0x329   :  { %v11007_v28 = vld [vmem:[%s19741_s1 + $0x17a0] sm:$0xf]  ;;  %v10496_v6 = vor.u32 %v12697_v27, %v10495_v26  ;;  %7030 = vmatmul.bf16.vlgmr.msra.gmra.mxu1 %v13421_v17 }
 0x32a   :  { %v12825_v30 = vld [vmem:[%s19741_s1 + $0x17dc] sm:$0xf0]  ;;  %7055 = vmatpush.bf16.msra.mxu3 %v9536_v47 }
 0x32b   :  { %v11519_v31 = vld [vmem:[%s19741_s1 + $0x1ba0] sm:$0xf]  ;;  %v11008_v21 = vor.u32 %v12825_v30, %v11007_v28  ;;  %7061 = vmatpush.bf16.msrb.mxu0 %v10496_v6  ;;  %7043 = vmatmul.bf16.vlgmr.msra.gmra.mxu2 %v13381_v63  ;;  %v16754_v6 = vpop.f32.mrf.mxu2 }
 0x32c   :  { %v12953_v32 = vld [vmem:[%s19741_s1 + $0x1bdc] sm:$0xf0] }
 0x32d   :  { %v12031_v44 = vld [vmem:[%s19741_s1 + $0x1fa0] sm:$0xf]  ;;  %v11520_v7 = vor.u32 %v12953_v32, %v11519_v31  ;;  %7074 = vmatpush.bf16.msrb.mxu1 %v11008_v21  ;;  %7056 = vmatmul.bf16.vlgmr.msra.gmra.mxu3 %v13419_v16 }
 0x32e   :  { %v13081_v19 = vld [vmem:[%s19741_s1 + $0x1fdc] sm:$0xf0] }
 0x32f   :  { %v10431_v42 = vld [vmem:[%s19741_s1 + $0x1320] sm:$0xf]  ;;  %v12032_v51 = vor.u32 %v13081_v19, %v12031_v44  ;;  %7087 = vmatpush.bf16.msrb.mxu2 %v11520_v7 }
 0x330   :  { %v12681_v5 = vld [vmem:[%s19741_s1 + $0x135c] sm:$0xf0] }
 0x331   :  { %v10943_v22 = vld [vmem:[%s19741_s1 + $0x1720] sm:$0xf]  ;;  %v10432_v23 = vor.u32 %v12681_v5, %v10431_v42  ;;  %7100 = vmatpush.bf16.msrb.mxu3 %v12032_v51 }
 0x332   :  { %v12809_v52 = vld [vmem:[%s19741_s1 + $0x175c] sm:$0xf0] }
 0x333   :  { %v11455_v36 = vld [vmem:[%s19741_s1 + $0x1b20] sm:$0xf]  ;;  %v10944_v41 = vor.u32 %v12809_v52, %v10943_v22  ;;  %7062 = vmatpush.bf16.msrb.mxu0 %v10432_v23  ;;  %v16765_v22 = vpop.f32.mrf.mxu3 }
 0x334   :  { %v12937_v25 = vld [vmem:[%s19741_s1 + $0x1b5c] sm:$0xf0] }
 0x335   :  { %v11967_v54 = vld [vmem:[%s19741_s1 + $0x1f20] sm:$0xf]  ;;  %v11456_v56 = vor.u32 %v12937_v25, %v11455_v36  ;;  %7075 = vmatpush.bf16.msrb.mxu1 %v10944_v41  ;;  %v6812_v25 = vpop.f32.mrf.mxu0 }
 0x336   :  { %v13065_v8 = vld [vmem:[%s19741_s1 + $0x1f5c] sm:$0xf0] }
 0x337   :  { %v10367_v45 = vld [vmem:[%s19741_s1 + $0x12a0] sm:$0xf]  ;;  %v11968_v48 = vor.u32 %v13065_v8, %v11967_v54  ;;  %7088 = vmatpush.bf16.msrb.mxu2 %v11456_v56 }
 0x338   :  { %v12665_v10 = vld [vmem:[%s19741_s1 + $0x12dc] sm:$0xf0] }
 0x339   :  { %v10879_v57 = vld [vmem:[%s19741_s1 + $0x16a0] sm:$0xf]  ;;  %v10368_v60 = vor.u32 %v12665_v10, %v10367_v45  ;;  %7101 = vmatpush.bf16.msrb.mxu3 %v11968_v48  ;;  %v6825_v45 = vpop.f32.mrf.mxu1 }
 0x33a   :  { %v12793_v58 = vld [vmem:[%s19741_s1 + $0x16dc] sm:$0xf0]  ;;  %v12401_v45 = vld [vmem:[%s19741_s1 + $0xaa4] sm:$0xf] }
 0x33b   :  { %v11391_v33 = vld [vmem:[%s19741_s1 + $0x1aa0] sm:$0xf]  ;;  %v10880_v61 = vor.u32 %v12793_v58, %v10879_v57  ;;  %7063 = vmatpush.bf16.msrb.mxu0 %v10368_v60 }
 0x33c   :  { %v12921_v50 = vld [vmem:[%s19741_s1 + $0x1adc] sm:$0xf0] }
 0x33d   :  { %v11903_v53 = vld [vmem:[%s19741_s1 + $0x1ea0] sm:$0xf]  ;;  %v11392_v62 = vor.u32 %v12921_v50, %v11391_v33  ;;  %7076 = vmatpush.bf16.msrb.mxu1 %v10880_v61 }
 0x33e   :  { %v13049_v59 = vld [vmem:[%s19741_s1 + $0x1edc] sm:$0xf0] }
 0x33f   :  { %v10303_v20 = vld [vmem:[%s19741_s1 + $0x1220] sm:$0xf]  ;;  %v11904_v0 = vor.u32 %v13049_v59, %v11903_v53  ;;  %7089 = vmatpush.bf16.msrb.mxu2 %v11392_v62 }
 0x340   :  { %v12649_v18 = vld [vmem:[%s19741_s1 + $0x125c] sm:$0xf0] }
 0x341   :  { %v10815_v55 = vld [vmem:[%s19741_s1 + $0x1620] sm:$0xf]  ;;  %v10304_v3 = vor.u32 %v12649_v18, %v10303_v20  ;;  %7102 = vmatpush.bf16.msrb.mxu3 %v11904_v0  ;;  %v6838_v0 = vpop.f32.mrf.mxu2 }
 0x342   :  { %v12777_v49 = vld [vmem:[%s19741_s1 + $0x165c] sm:$0xf0]  ;;  %v9793_v0 = vld [vmem:[%s19741_s1 + $0xe60] sm:$0xf0] }
 0x343   :  { %v11327_v1 = vld [vmem:[%s19741_s1 + $0x1a20] sm:$0xf]  ;;  %v10816_v11 = vor.u32 %v12777_v49, %v10815_v55  ;;  %7064 = vmatpush.bf16.msrb.mxu0 %v10304_v3  ;;  %v12177_v3 = vld [vmem:[%s19741_s1 + $0x3a4] sm:$0xf] }
 0x344   :  { %v12905_v46 = vld [vmem:[%s19741_s1 + $0x1a5c] sm:$0xf0] }
 0x345   :  { %v11839_v2 = vld [vmem:[%s19741_s1 + $0x1e20] sm:$0xf]  ;;  %v11328_v12 = vor.u32 %v12905_v46, %v11327_v1  ;;  %7077 = vmatpush.bf16.msrb.mxu1 %v10816_v11  ;;  %v8449_v11 = vld [vmem:[%s19741_s1 + $0x3e0] sm:$0xf0] }
 0x346   :  { %v13033_v43 = vld [vmem:[%s19741_s1 + $0x1e5c] sm:$0xf0] }
 0x347   :  { %v10239_v13 = vld [vmem:[%s19741_s1 + $0x11a0] sm:$0xf]  ;;  %v11840_v26 = vor.u32 %v13033_v43, %v11839_v2  ;;  %7090 = vmatpush.bf16.msrb.mxu2 %v11328_v12  ;;  %v6851_v43 = vpop.f32.mrf.mxu3  ;;  %v12305_v12 = vld [vmem:[%s19741_s1 + $0x7a4] sm:$0xf] }
 0x348   :  { %v12633_v14 = vld [vmem:[%s19741_s1 + $0x11dc] sm:$0xf0]  ;;  %v12113_v43 = vld [vmem:[%s19741_s1 + $0x1a4] sm:$0xf] }
 0x349   :  { %v10751_v15 = vld [vmem:[%s19741_s1 + $0x15a0] sm:$0xf]  ;;  %v10240_v32 = vor.u32 %v12633_v14, %v10239_v13  ;;  %7103 = vmatpush.bf16.msrb.mxu3 %v11840_v26  ;;  %v8961_v14 = vld [vmem:[%s19741_s1 + $0x7e0] sm:$0xf0] }
 0x34a   :  { %v12761_v27 = vld [vmem:[%s19741_s1 + $0x15dc] sm:$0xf0]  ;;  %v9473_v26 = vld [vmem:[%s19741_s1 + $0xbe0] sm:$0xf0] }
 0x34b   :  { %v11263_v28 = vld [vmem:[%s19741_s1 + $0x19a0] sm:$0xf]  ;;  %v10752_v35 = vor.u32 %v12761_v27, %v10751_v15  ;;  %7065 = vmatpush.bf16.msrb.mxu0 %v10240_v32  ;;  %v12433_v15 = vld [vmem:[%s19741_s1 + $0xba4] sm:$0xf]  ;;  %v8452_v32 = vor.u32 %v12177_v3, %v8449_v11 }
 0x34c   :  { %v12889_v29 = vld [vmem:[%s19741_s1 + $0x19dc] sm:$0xf0]  ;;  %v8193_v3 = vld [vmem:[%s19741_s1 + $0x1e0] sm:$0xf0] }
 0x34d   :  { %v11775_v30 = vld [vmem:[%s19741_s1 + $0x1da0] sm:$0xf]  ;;  %v11264_v39 = vor.u32 %v12889_v29, %v11263_v28  ;;  %7078 = vmatpush.bf16.msrb.mxu1 %v10752_v35  ;;  %v12561_v29 = vld [vmem:[%s19741_s1 + $0xfa4] sm:$0xf]  ;;  %v8964_v35 = vor.u32 %v12305_v12, %v8961_v14 }
 0x34e   :  { %v13017_v31 = vld [vmem:[%s19741_s1 + $0x1ddc] sm:$0xf0]  ;;  %v12241_v11 = vld [vmem:[%s19741_s1 + $0x5a4] sm:$0xf] }
 0x34f   :  { %v10175_v44 = vld [vmem:[%s19741_s1 + $0x1120] sm:$0xf]  ;;  %v11776_v21 = vor.u32 %v13017_v31, %v11775_v30  ;;  %7091 = vmatpush.bf16.msrb.mxu2 %v11264_v39  ;;  %v9985_v30 = vld [vmem:[%s19741_s1 + $0xfe0] sm:$0xf0]  ;;  %v9476_v39 = vor.u32 %v12433_v15, %v9473_v26 }
 0x350   :  { %v12617_v19 = vld [vmem:[%s19741_s1 + $0x115c] sm:$0xf0]  ;;  %v8705_v15 = vld [vmem:[%s19741_s1 + $0x5e0] sm:$0xf0] }
 0x351   :  { %v10687_v47 = vld [vmem:[%s19741_s1 + $0x1520] sm:$0xf]  ;;  %v10176_v36 = vor.u32 %v12617_v19, %v10175_v44  ;;  %7104 = vmatpush.bf16.msrb.mxu3 %v11776_v21  ;;  %v6824_v44 = vadd.f32 %v16728_v24, %v16717_v4  ;;  %v12161_v19 = vld [vmem:[%s19741_s1 + $0x324] sm:$0xf] }
 0x352   :  { %v12745_v7 = vld [vmem:[%s19741_s1 + $0x155c] sm:$0xf0]  ;;  %v12289_v21 = vld [vmem:[%s19741_s1 + $0x724] sm:$0xf] }
 0x353   :  { %v11199_v42 = vld [vmem:[%s19741_s1 + $0x1920] sm:$0xf]  ;;  %v10688_v54 = vor.u32 %v12745_v7, %v10687_v47  ;;  %7066 = vmatpush.bf16.msrb.mxu0 %v10176_v36  ;;  %v8385_v47 = vld [vmem:[%s19741_s1 + $0x360] sm:$0xf0]  ;;  %v9988_v7 = vor.u32 %v12561_v29, %v9985_v30 }
 0x354   :  { %v12873_v5 = vld [vmem:[%s19741_s1 + $0x195c] sm:$0xf0]  ;;  %v12417_v4 = vld [vmem:[%s19741_s1 + $0xb24] sm:$0xf] }
 0x355   :  { %v11711_v51 = vld [vmem:[%s19741_s1 + $0x1d20] sm:$0xf]  ;;  %v11200_v8 = vor.u32 %v12873_v5, %v11199_v42  ;;  %7079 = vmatpush.bf16.msrb.mxu1 %v10688_v54  ;;  %v8897_v42 = vld [vmem:[%s19741_s1 + $0x760] sm:$0xf0]  ;;  %v6837_v54 = vadd.f32 %v16754_v6, %v6824_v44 }
 0x356   :  { %v13001_v52 = vld [vmem:[%s19741_s1 + $0x1d5c] sm:$0xf0]  ;;  %v9409_v24 = vld [vmem:[%s19741_s1 + $0xb60] sm:$0xf0]  ;;  %v8900_v36 = vor.u32 %v12289_v21, %v8897_v42  ;;  %v6888_v21 = vpop.f32.mrf.mxu2 }
 0x357   :  { %v10111_v23 = vld [vmem:[%s19741_s1 + $0x10a0] sm:$0xf]  ;;  %v11712_v10 = vor.u32 %v13001_v52, %v11711_v51  ;;  %7092 = vmatpush.bf16.msrb.mxu2 %v11200_v8  ;;  %v12545_v5 = vld [vmem:[%s19741_s1 + $0xf24] sm:$0xf]  ;;  %v8388_v52 = vor.u32 %v12161_v19, %v8385_v47  ;;  %v9412_v25 = vor.u32 %v12417_v4, %v9409_v24 }
 0x358   :  { %v12601_v41 = vld [vmem:[%s19741_s1 + $0x10dc] sm:$0xf0]  ;;  %v9921_v51 = vld [vmem:[%s19741_s1 + $0xf60] sm:$0xf0] }
 0x359   :  { %v10623_v56 = vld [vmem:[%s19741_s1 + $0x14a0] sm:$0xf]  ;;  %v10112_v53 = vor.u32 %v12601_v41, %v10111_v23  ;;  %7105 = vmatpush.bf16.msrb.mxu3 %v11712_v10  ;;  %v12145_v8 = vld [vmem:[%s19741_s1 + $0x2a4] sm:$0xf] }
 0x35a   :  { %v12729_v57 = vld [vmem:[%s19741_s1 + $0x14dc] sm:$0xf0]  ;;  %v8321_v23 = vld [vmem:[%s19741_s1 + $0x2e0] sm:$0xf0] }
 0x35b   :  { %v11135_v48 = vld [vmem:[%s19741_s1 + $0x18a0] sm:$0xf]  ;;  %v10624_v61 = vor.u32 %v12729_v57, %v10623_v56  ;;  %7067 = vmatpush.bf16.msrb.mxu0 %v10112_v53  ;;  %v12273_v41 = vld [vmem:[%s19741_s1 + $0x6a4] sm:$0xf]  ;;  %v9924_v56 = vor.u32 %v12545_v5, %v9921_v51  ;;  %v6901_v5 = vpop.f32.mrf.mxu3 }
 0x35c   :  { %v12857_v58 = vld [vmem:[%s19741_s1 + $0x18dc] sm:$0xf0]  ;;  %v8833_v6 = vld [vmem:[%s19741_s1 + $0x6e0] sm:$0xf0] }
 0x35d   :  { %v11647_v33 = vld [vmem:[%s19741_s1 + $0x1ca0] sm:$0xf]  ;;  %v11136_v62 = vor.u32 %v12857_v58, %v11135_v48  ;;  %7080 = vmatpush.bf16.msrb.mxu1 %v10624_v61  ;;  %v9345_v10 = vld [vmem:[%s19741_s1 + $0xae0] sm:$0xf0]  ;;  %v8324_v58 = vor.u32 %v12145_v8, %v8321_v23 }
 0x35e   :  { %v12985_v50 = vld [vmem:[%s19741_s1 + $0x1cdc] sm:$0xf0]  ;;  %v12529_v57 = vld [vmem:[%s19741_s1 + $0xea4] sm:$0xf]  ;;  %v9348_v53 = vor.u32 %v12401_v45, %v9345_v10 }
 0x35f   :  { %v10047_v59 = vld [vmem:[%s19741_s1 + $0x1020] sm:$0xf]  ;;  %v11648_v49 = vor.u32 %v12985_v50, %v11647_v33  ;;  %7093 = vmatpush.bf16.msrb.mxu2 %v11136_v62  ;;  %v9857_v48 = vld [vmem:[%s19741_s1 + $0xee0] sm:$0xf0]  ;;  %v6850_v33 = vadd.f32 %v16765_v22, %v6837_v54  ;;  %v8836_v50 = vor.u32 %v12273_v41, %v8833_v6 }
 0x360   :  { %v12585_v60 = vld [vmem:[%s19741_s1 + $0x105c] sm:$0xf0]  ;;  %v12257_v61 = vld [vmem:[%s19741_s1 + $0x624] sm:$0xf]  ;;  %v9860_v62 = vor.u32 %v12529_v57, %v9857_v48 }
 0x361   :  { %v10559_v20 = vld [vmem:[%s19741_s1 + $0x1420] sm:$0xf]  ;;  %v10048_v13 = vor.u32 %v12585_v60, %v10047_v59  ;;  %7106 = vmatpush.bf16.msrb.mxu3 %v11648_v49  ;;  %v12129_v59 = vld [vmem:[%s19741_s1 + $0x224] sm:$0xf] }
 0x362   :  { %v12713_v18 = vld [vmem:[%s19741_s1 + $0x145c] sm:$0xf0]  ;;  %v8257_v60 = vld [vmem:[%s19741_s1 + $0x260] sm:$0xf0] }
 0x363   :  { %v11071_v55 = vld [vmem:[%s19741_s1 + $0x1820] sm:$0xf]  ;;  %v10560_v27 = vor.u32 %v12713_v18, %v10559_v20  ;;  %7068 = vmatpush.bf16.msrb.mxu0 %v10048_v13  ;;  %v8769_v22 = vld [vmem:[%s19741_s1 + $0x660] sm:$0xf0]  ;;  %v8260_v49 = vor.u32 %v12129_v59, %v8257_v60  ;;  %v6875_v13 = vpop.f32.mrf.mxu1 }
 0x364   :  { %v12841_v1 = vld [vmem:[%s19741_s1 + $0x185c] sm:$0xf0]  ;;  %v12385_v20 = vld [vmem:[%s19741_s1 + $0xa24] sm:$0xf] }
 0x365   :  { %v11583_v46 = vld [vmem:[%s19741_s1 + $0x1c20] sm:$0xf]  ;;  %v11072_v28 = vor.u32 %v12841_v1, %v11071_v55  ;;  %7081 = vmatpush.bf16.msrb.mxu1 %v10560_v27  ;;  %v9281_v18 = vld [vmem:[%s19741_s1 + $0xa60] sm:$0xf0]  ;;  %v6862_v1 = vpop.f32.mrf.mxu0 }
 0x366   :  { %v12969_v2 = vld [vmem:[%s19741_s1 + $0x1c5c] sm:$0xf0]  ;;  %7069 = vmatmul.bf16.vlgmr.msrb.gmra.mxu0 %v13590_v37  ;;  %v12513_v55 = vld [vmem:[%s19741_s1 + $0xe24] sm:$0xf]  ;;  %v6863_v12 = vadd.f32 %v6862_v1, %v6850_v33 }
 0x367   :  { %v11584_v31 = vor.u32 %v12969_v2, %v11583_v46  ;;  %7094 = vmatpush.bf16.msrb.mxu2 %v11072_v28  ;;  %7113 = vmatpush.bf16.msra.mxu0 %v8452_v32  ;;  %v8772_v46 = vor.u32 %v12257_v61, %v8769_v22  ;;  %v9284_v2 = vor.u32 %v12385_v20, %v9281_v18  ;;  %v12369_v26 = vld [vmem:[%s19741_s1 + $0x9a4] sm:$0xf] }
 0x368   :  { %7082 = vmatmul.bf16.vlgmr.msrb.gmra.mxu1 %v13594_v40  ;;  %v9796_v14 = vor.u32 %v12513_v55, %v9793_v0  ;;  %v9217_v27 = vld [vmem:[%s19741_s1 + $0x9e0] sm:$0xf0]  ;;  %v6876_v30 = vadd.f32 %v6875_v13, %v6863_v12 }
 0x369   :  { %7107 = vmatpush.bf16.msrb.mxu3 %v11584_v31  ;;  %7126 = vmatpush.bf16.msra.mxu1 %v8964_v35  ;;  %v12497_v28 = vld [vmem:[%s19741_s1 + $0xda4] sm:$0xf]  ;;  %v8196_v31 = vor.u32 %v12113_v43, %v8193_v3  ;;  %v8708_v35 = vor.u32 %v12241_v11, %v8705_v15  ;;  %v6890_v3 = vpop.f32.mrf.mxu2 }
 0x36a   :  { %7095 = vmatmul.bf16.vlgmr.msrb.gmra.mxu2 %v13582_v34  ;;  %v9729_v29 = vld [vmem:[%s19741_s1 + $0xde0] sm:$0xf0]  ;;  %v6889_v24 = vadd.f32 %v6888_v21, %v6876_v30 }
 0x36b   :  { %7139 = vmatpush.bf16.msra.mxu2 %v9476_v39  ;;  %7114 = vmatpush.bf16.msra.mxu0 %v8388_v52  ;;  %v12097_v32 = vld [vmem:[%s19741_s1 + $0x124] sm:$0xf]  ;;  %v9220_v39 = vor.u32 %v12369_v26, %v9217_v27 }
 0x36c   :  { %7108 = vmatmul.bf16.vlgmr.msrb.gmra.mxu3 %v13592_v38  ;;  %v8129_v44 = vld [vmem:[%s19741_s1 + $0x160] sm:$0xf0]  ;;  %v6902_v8 = vadd.f32 %v6901_v5, %v6889_v24 }
 0x36d   :  { %7152 = vmatpush.bf16.msra.mxu3 %v9988_v7  ;;  %7127 = vmatpush.bf16.msra.mxu1 %v8900_v36  ;;  %v12225_v19 = vld [vmem:[%s19741_s1 + $0x524] sm:$0xf]  ;;  %v9732_v7 = vor.u32 %v12497_v28, %v9729_v29  ;;  %v8132_v54 = vor.u32 %v12097_v32, %v8129_v44 }
 0x36e   :  { %v8641_v47 = vld [vmem:[%s19741_s1 + $0x560] sm:$0xf0] }
 0x36f   :  { %7140 = vmatpush.bf16.msra.mxu2 %v9412_v25  ;;  %7115 = vmatpush.bf16.msra.mxu0 %v8324_v58  ;;  %v12353_v42 = vld [vmem:[%s19741_s1 + $0x924] sm:$0xf]  ;;  %v8644_v6 = vor.u32 %v12225_v19, %v8641_v47  ;;  %v6877_v58 = vpop.f32.mrf.mxu1 }
 0x370   :  { %v9153_v4 = vld [vmem:[%s19741_s1 + $0x960] sm:$0xf0] }
 0x371   :  { %7153 = vmatpush.bf16.msra.mxu3 %v9924_v56  ;;  %7128 = vmatpush.bf16.msra.mxu1 %v8836_v50  ;;  %v16970_v51 = vld [vmem:[%s19743_s2] sm:$0xff]  ;;  %v6864_v56 = vpop.f32.mrf.mxu0  ;;  %v9156_v45 = vor.u32 %v12353_v42, %v9153_v4 }
 0x372   :  { %v7851_v52 = vperm.slane %v16970_v51, 6  ;;  %v12481_v36 = vld [vmem:[%s19741_s1 + $0xd24] sm:$0xf] }
 0x373   :  { %7141 = vmatpush.bf16.msra.mxu2 %v9348_v53  ;;  %7116 = vmatpush.bf16.msra.mxu0 %v8260_v49  ;;  %v9665_v25 = vld [vmem:[%s19741_s1 + $0xd60] sm:$0xf0] }
 0x374   :  { %v16982_v23 = vld [vmem:[%s19744_s3] sm:$0xff]  ;;  %v9668_v33 = vor.u32 %v12481_v36, %v9665_v25  ;;  %v7883_v50 = vmul.f32 %v7851_v52, %v6902_v8 }
 0x375   :  { %7154 = vmatpush.bf16.msra.mxu3 %v9860_v62  ;;  %7129 = vmatpush.bf16.msra.mxu1 %v8772_v46  ;;  %v7903_v41 = vperm.slane %v16982_v23, 6  ;;  %v12081_v10 = vld [vmem:[%s19741_s1 + $0xa4] sm:$0xf] }
 0x376   :  { %v8065_v57 = vld [vmem:[%s19741_s1 + $0xe0] sm:$0xf0] }
 0x377   :  { %7142 = vmatpush.bf16.msra.mxu2 %v9284_v2  ;;  %7117 = vmatpush.bf16.msra.mxu0 %v8196_v31  ;;  %v12209_v48 = vld [vmem:[%s19741_s1 + $0x4a4] sm:$0xf]  ;;  %v7935_v22 = vadd.f32 %v7903_v41, %v7883_v50  ;;  %v8068_v20 = vor.u32 %v12081_v10, %v8065_v57 }
 0x378   :  { %v8577_v53 = vld [vmem:[%s19741_s1 + $0x4e0] sm:$0xf0] }
 0x379   :  { %7155 = vmatpush.bf16.msra.mxu3 %v9796_v14  ;;  %7130 = vmatpush.bf16.msra.mxu1 %v8708_v35  ;;  %v12337_v59 = vld [vmem:[%s19741_s1 + $0x8a4] sm:$0xf]  ;;  %v8580_v49 = vor.u32 %v12209_v48, %v8577_v53  ;;  %7951 = vst [vmem:[%s19745_s4 + $0x30] sm:$0xff] %v7935_v22  ;;  %v6903_v14 = vpop.f32.mrf.mxu3  ;;  %v17136_v3 = vpop.f32.mrf.mxu0 }
 0x37a   :  { %v9089_v60 = vld [vmem:[%s19741_s1 + $0x8e0] sm:$0xf0] }
 0x37b   :  { %7143 = vmatpush.bf16.msra.mxu2 %v9220_v39  ;;  %v12465_v61 = vld [vmem:[%s19741_s1 + $0xca4] sm:$0xf]  ;;  %7118 = vmatpush.bf16.msra.mxu0 %v8132_v54  ;;  %v9092_v1 = vor.u32 %v12337_v59, %v9089_v60 }
 0x37c   :  { %v9601_v62 = vld [vmem:[%s19741_s1 + $0xce0] sm:$0xf0] }
 0x37d   :  { %7156 = vmatpush.bf16.msra.mxu3 %v9732_v7  ;;  %v12065_v18 = vld [vmem:[%s19741_s1 + $0x24] sm:$0xf]  ;;  %7131 = vmatpush.bf16.msra.mxu1 %v8644_v6  ;;  %v9604_v11 = vor.u32 %v12465_v61, %v9601_v62 }
 0x37e   :  { %v8001_v55 = vld [vmem:[%s19741_s1 + $0x60] sm:$0xf0] }
 0x37f   :  { %v12193_v0 = vld [vmem:[%s19741_s1 + $0x424] sm:$0xf]  ;;  %7144 = vmatpush.bf16.msra.mxu2 %v9156_v45  ;;  %7119 = vmatpush.bf16.msra.mxu0 %v8068_v20  ;;  %v8004_v28 = vor.u32 %v12065_v18, %v8001_v55 }
 0x380   :  { %v8513_v46 = vld [vmem:[%s19741_s1 + $0x460] sm:$0xf0] }
 0x381   :  { %v12321_v2 = vld [vmem:[%s19741_s1 + $0x824] sm:$0xf]  ;;  %7157 = vmatpush.bf16.msra.mxu3 %v9668_v33  ;;  %7132 = vmatpush.bf16.msra.mxu1 %v8580_v49  ;;  %v8516_v32 = vor.u32 %v12193_v0, %v8513_v46 }
 0x382   :  { %v9025_v43 = vld [vmem:[%s19741_s1 + $0x860] sm:$0xf0] }
 0x383   :  { %v12449_v12 = vld [vmem:[%s19741_s1 + $0xc24] sm:$0xf]  ;;  %7145 = vmatpush.bf16.msra.mxu2 %v9092_v1  ;;  %v9028_v35 = vor.u32 %v12321_v2, %v9025_v43  ;;  %7120 = vmatpush.bf16.msra.mxu0 %v8004_v28 }
 0x384   :  { %v9537_v13 = vld [vmem:[%s19741_s1 + $0xc60] sm:$0xf0] }
 0x385   :  { %v12689_v15 = vld [vmem:[%s19741_s1 + $0x13a4] sm:$0xf]  ;;  %7158 = vmatpush.bf16.msra.mxu3 %v9604_v11  ;;  %v9540_v19 = vor.u32 %v12449_v12, %v9537_v13  ;;  %7133 = vmatpush.bf16.msra.mxu1 %v8516_v32 }
 0x386   :  { %v10497_v26 = vld [vmem:[%s19741_s1 + $0x13e0] sm:$0xf0]  ;;  %7121 = vmatmul.bf16.vlgmr.msra.gmra.mxu0 %v13402_v9 }
 0x387   :  { %v12817_v27 = vld [vmem:[%s19741_s1 + $0x17a4] sm:$0xf]  ;;  %v10500_v47 = vor.u32 %v12689_v15, %v10497_v26  ;;  %7146 = vmatpush.bf16.msra.mxu2 %v9028_v35  ;;  %v17147_v26 = vpop.f32.mrf.mxu1 }
 0x388   :  { %v11009_v29 = vld [vmem:[%s19741_s1 + $0x17e0] sm:$0xf0]  ;;  %7134 = vmatmul.bf16.vlgmr.msra.gmra.mxu1 %v13421_v17 }
 0x389   :  { %v12945_v30 = vld [vmem:[%s19741_s1 + $0x1ba4] sm:$0xf]  ;;  %v11012_v21 = vor.u32 %v12817_v27, %v11009_v29  ;;  %7159 = vmatpush.bf16.msra.mxu3 %v9540_v19  ;;  %7165 = vmatpush.bf16.msrb.mxu0 %v10500_v47 }
 0x38a   :  { %v11521_v31 = vld [vmem:[%s19741_s1 + $0x1be0] sm:$0xf0]  ;;  %7147 = vmatmul.bf16.vlgmr.msra.gmra.mxu2 %v13381_v63 }
 0x38b   :  { %v13073_v39 = vld [vmem:[%s19741_s1 + $0x1fa4] sm:$0xf]  ;;  %v11524_v7 = vor.u32 %v12945_v30, %v11521_v31  ;;  %7178 = vmatpush.bf16.msrb.mxu1 %v11012_v21 }
 0x38c   :  { %v12033_v44 = vld [vmem:[%s19741_s1 + $0x1fe0] sm:$0xf0]  ;;  %7160 = vmatmul.bf16.vlgmr.msra.gmra.mxu3 %v13419_v16 }
 0x38d   :  { %v12673_v42 = vld [vmem:[%s19741_s1 + $0x1324] sm:$0xf]  ;;  %v12036_v5 = vor.u32 %v13073_v39, %v12033_v44  ;;  %7191 = vmatpush.bf16.msrb.mxu2 %v11524_v7  ;;  %v17173_v7 = vpop.f32.mrf.mxu2 }
 0x38e   :  { %v10433_v4 = vld [vmem:[%s19741_s1 + $0x1360] sm:$0xf0] }
 0x38f   :  { %v12801_v24 = vld [vmem:[%s19741_s1 + $0x1724] sm:$0xf]  ;;  %v10436_v41 = vor.u32 %v12673_v42, %v10433_v4  ;;  %7204 = vmatpush.bf16.msrb.mxu3 %v12036_v5 }
 0x390   :  { %v10945_v52 = vld [vmem:[%s19741_s1 + $0x1760] sm:$0xf0] }
 0x391   :  { %v12929_v36 = vld [vmem:[%s19741_s1 + $0x1b24] sm:$0xf]  ;;  %v10948_v56 = vor.u32 %v12801_v24, %v10945_v52  ;;  %7166 = vmatpush.bf16.msrb.mxu0 %v10436_v41  ;;  %v17184_v52 = vpop.f32.mrf.mxu3 }
 0x392   :  { %v11457_v25 = vld [vmem:[%s19741_s1 + $0x1b60] sm:$0xf0] }
 0x393   :  { %v13057_v54 = vld [vmem:[%s19741_s1 + $0x1f24] sm:$0xf]  ;;  %v11460_v6 = vor.u32 %v12929_v36, %v11457_v25  ;;  %7179 = vmatpush.bf16.msrb.mxu1 %v10948_v56 }
 0x394   :  { %v11969_v8 = vld [vmem:[%s19741_s1 + $0x1f60] sm:$0xf0] }
 0x395   :  { %v12657_v45 = vld [vmem:[%s19741_s1 + $0x12a4] sm:$0xf]  ;;  %v11972_v48 = vor.u32 %v13057_v54, %v11969_v8  ;;  %7192 = vmatpush.bf16.msrb.mxu2 %v11460_v6  ;;  %v6916_v8 = vpop.f32.mrf.mxu0 }
 0x396   :  { %v10369_v10 = vld [vmem:[%s19741_s1 + $0x12e0] sm:$0xf0] }
 0x397   :  { %v12785_v57 = vld [vmem:[%s19741_s1 + $0x16a4] sm:$0xf]  ;;  %v10372_v60 = vor.u32 %v12657_v45, %v10369_v10  ;;  %7205 = vmatpush.bf16.msrb.mxu3 %v11972_v48 }
 0x398   :  { %v10881_v58 = vld [vmem:[%s19741_s1 + $0x16e0] sm:$0xf0] }
 0x399   :  { %v12913_v33 = vld [vmem:[%s19741_s1 + $0x1aa4] sm:$0xf]  ;;  %v10884_v61 = vor.u32 %v12785_v57, %v10881_v58  ;;  %7167 = vmatpush.bf16.msrb.mxu0 %v10372_v60  ;;  %v6929_v57 = vpop.f32.mrf.mxu1 }
 0x39a   :  { %v11393_v50 = vld [vmem:[%s19741_s1 + $0x1ae0] sm:$0xf0]  ;;  %v8839_v57 = vld [vmem:[%s19741_s1 + $0x6a8] sm:$0xf] }
 0x39b   :  { %v13041_v53 = vld [vmem:[%s19741_s1 + $0x1ea4] sm:$0xf]  ;;  %v11396_v62 = vor.u32 %v12913_v33, %v11393_v50  ;;  %7180 = vmatpush.bf16.msrb.mxu1 %v10884_v61 }
 0x39c   :  { %v11905_v59 = vld [vmem:[%s19741_s1 + $0x1ee0] sm:$0xf0] }
 0x39d   :  { %v12641_v22 = vld [vmem:[%s19741_s1 + $0x1224] sm:$0xf]  ;;  %v11908_v55 = vor.u32 %v13041_v53, %v11905_v59  ;;  %7193 = vmatpush.bf16.msrb.mxu2 %v11396_v62 }
 0x39e   :  { %v10305_v20 = vld [vmem:[%s19741_s1 + $0x1260] sm:$0xf0] }
 0x39f   :  { %v12769_v18 = vld [vmem:[%s19741_s1 + $0x1624] sm:$0xf]  ;;  %v10308_v43 = vor.u32 %v12641_v22, %v10305_v20  ;;  %7206 = vmatpush.bf16.msrb.mxu3 %v11908_v55 }
 0x3a0   :  { %v10817_v0 = vld [vmem:[%s19741_s1 + $0x1660] sm:$0xf0] }
 0x3a1   :  { %v12897_v49 = vld [vmem:[%s19741_s1 + $0x1a24] sm:$0xf]  ;;  %v10820_v11 = vor.u32 %v12769_v18, %v10817_v0  ;;  %7168 = vmatpush.bf16.msrb.mxu0 %v10308_v43 }
 0x3a2   :  { %v11329_v1 = vld [vmem:[%s19741_s1 + $0x1a60] sm:$0xf0] }
 0x3a3   :  { %v13025_v46 = vld [vmem:[%s19741_s1 + $0x1e24] sm:$0xf]  ;;  %v11332_v12 = vor.u32 %v12897_v49, %v11329_v1  ;;  %7181 = vmatpush.bf16.msrb.mxu1 %v10820_v11  ;;  %v6942_v49 = vpop.f32.mrf.mxu2  ;;  %v6955_v11 = vpop.f32.mrf.mxu3 }
 0x3a4   :  { %v11841_v2 = vld [vmem:[%s19741_s1 + $0x1e60] sm:$0xf0]  ;;  %v12394_v49 = vld [vmem:[%s19741_s1 + $0xa64] sm:$0xf0] }
 0x3a5   :  { %v12625_v13 = vld [vmem:[%s19741_s1 + $0x11a4] sm:$0xf]  ;;  %v11844_v27 = vor.u32 %v13025_v46, %v11841_v2  ;;  %7194 = vmatpush.bf16.msrb.mxu2 %v11332_v12  ;;  %v8455_v12 = vld [vmem:[%s19741_s1 + $0x3a8] sm:$0xf] }
 0x3a6   :  { %v10241_v14 = vld [vmem:[%s19741_s1 + $0x11e0] sm:$0xf0] }
 0x3a7   :  { %v12753_v15 = vld [vmem:[%s19741_s1 + $0x15a4] sm:$0xf]  ;;  %v10244_v35 = vor.u32 %v12625_v13, %v10241_v14  ;;  %7207 = vmatpush.bf16.msrb.mxu3 %v11844_v27  ;;  %v12186_v13 = vld [vmem:[%s19741_s1 + $0x3e4] sm:$0xf0] }
 0x3a8   :  { %v10753_v28 = vld [vmem:[%s19741_s1 + $0x15e0] sm:$0xf0]  ;;  %v8967_v14 = vld [vmem:[%s19741_s1 + $0x7a8] sm:$0xf] }
 0x3a9   :  { %v12881_v29 = vld [vmem:[%s19741_s1 + $0x19a4] sm:$0xf]  ;;  %v10756_v39 = vor.u32 %v12753_v15, %v10753_v28  ;;  %7169 = vmatpush.bf16.msrb.mxu0 %v10244_v35  ;;  %v12314_v27 = vld [vmem:[%s19741_s1 + $0x7e4] sm:$0xf0] }
 0x3aa   :  { %v11265_v30 = vld [vmem:[%s19741_s1 + $0x19e0] sm:$0xf0]  ;;  %v9479_v28 = vld [vmem:[%s19741_s1 + $0xba8] sm:$0xf] }
 0x3ab   :  { %v13009_v31 = vld [vmem:[%s19741_s1 + $0x1da4] sm:$0xf]  ;;  %v11268_v44 = vor.u32 %v12881_v29, %v11265_v30  ;;  %7182 = vmatpush.bf16.msrb.mxu1 %v10756_v39  ;;  %v12442_v29 = vld [vmem:[%s19741_s1 + $0xbe4] sm:$0xf0] }
 0x3ac   :  { %v11777_v32 = vld [vmem:[%s19741_s1 + $0x1de0] sm:$0xf0]  ;;  %v12570_v35 = vld [vmem:[%s19741_s1 + $0xfe4] sm:$0xf0] }
 0x3ad   :  { %v12609_v19 = vld [vmem:[%s19741_s1 + $0x1124] sm:$0xf]  ;;  %v11780_v42 = vor.u32 %v13009_v31, %v11777_v32  ;;  %7195 = vmatpush.bf16.msrb.mxu2 %v11268_v44  ;;  %v9991_v32 = vld [vmem:[%s19741_s1 + $0xfa8] sm:$0xf]  ;;  %v8456_v44 = vor.u32 %v12186_v13, %v8455_v12 }
 0x3ae   :  { %v10177_v47 = vld [vmem:[%s19741_s1 + $0x1160] sm:$0xf0]  ;;  %v8199_v13 = vld [vmem:[%s19741_s1 + $0x1a8] sm:$0xf] }
 0x3af   :  { %v12737_v21 = vld [vmem:[%s19741_s1 + $0x1524] sm:$0xf]  ;;  %v10180_v54 = vor.u32 %v12609_v19, %v10177_v47  ;;  %7208 = vmatpush.bf16.msrb.mxu3 %v11780_v42  ;;  %v8968_v19 = vor.u32 %v12314_v27, %v8967_v14  ;;  %v9480_v47 = vor.u32 %v12442_v29, %v9479_v28  ;;  %v8391_v42 = vld [vmem:[%s19741_s1 + $0x328] sm:$0xf]  ;;  %v6979_v28 = vpop.f32.mrf.mxu1 }
 0x3b0   :  { %v10689_v4 = vld [vmem:[%s19741_s1 + $0x1560] sm:$0xf0]  ;;  %v12122_v14 = vld [vmem:[%s19741_s1 + $0x1e4] sm:$0xf0] }
 0x3b1   :  { %v12865_v24 = vld [vmem:[%s19741_s1 + $0x1924] sm:$0xf]  ;;  %v10692_v41 = vor.u32 %v12737_v21, %v10689_v4  ;;  %7170 = vmatpush.bf16.msrb.mxu0 %v10180_v54  ;;  %v6928_v21 = vadd.f32 %v17147_v26, %v17136_v3  ;;  %v12170_v4 = vld [vmem:[%s19741_s1 + $0x364] sm:$0xf0] }
 0x3b2   :  { %v11201_v5 = vld [vmem:[%s19741_s1 + $0x1960] sm:$0xf0]  ;;  %v9415_v3 = vld [vmem:[%s19741_s1 + $0xb28] sm:$0xf]  ;;  %v8392_v8 = vor.u32 %v12170_v4, %v8391_v42 }
 0x3b3   :  { %v12993_v36 = vld [vmem:[%s19741_s1 + $0x1d24] sm:$0xf]  ;;  %v11204_v56 = vor.u32 %v12865_v24, %v11201_v5  ;;  %7183 = vmatpush.bf16.msrb.mxu1 %v10692_v41  ;;  %v8903_v24 = vld [vmem:[%s19741_s1 + $0x728] sm:$0xf]  ;;  %v9992_v5 = vor.u32 %v12570_v35, %v9991_v32 }
 0x3b4   :  { %v11713_v25 = vld [vmem:[%s19741_s1 + $0x1d60] sm:$0xf0]  ;;  %v12426_v26 = vld [vmem:[%s19741_s1 + $0xb64] sm:$0xf0] }
 0x3b5   :  { %v12593_v6 = vld [vmem:[%s19741_s1 + $0x10a4] sm:$0xf]  ;;  %v11716_v48 = vor.u32 %v12993_v36, %v11713_v25  ;;  %7196 = vmatpush.bf16.msrb.mxu2 %v11204_v56  ;;  %v12298_v36 = vld [vmem:[%s19741_s1 + $0x764] sm:$0xf0]  ;;  %v9416_v56 = vor.u32 %v12426_v26, %v9415_v3 }
 0x3b6   :  { %v10113_v45 = vld [vmem:[%s19741_s1 + $0x10e0] sm:$0xf0]  ;;  %v9927_v25 = vld [vmem:[%s19741_s1 + $0xf28] sm:$0xf]  ;;  %v8904_v41 = vor.u32 %v12298_v36, %v8903_v24  ;;  %v6992_v36 = vpop.f32.mrf.mxu2 }
 0x3b7   :  { %v12721_v10 = vld [vmem:[%s19741_s1 + $0x14a4] sm:$0xf]  ;;  %v10116_v60 = vor.u32 %v12593_v6, %v10113_v45  ;;  %7209 = vmatpush.bf16.msrb.mxu3 %v11716_v48  ;;  %v12554_v54 = vld [vmem:[%s19741_s1 + $0xf64] sm:$0xf0]  ;;  %v6941_v6 = vadd.f32 %v17173_v7, %v6928_v21 }
 0x3b8   :  { %v10625_v58 = vld [vmem:[%s19741_s1 + $0x14e0] sm:$0xf0]  ;;  %v8327_v45 = vld [vmem:[%s19741_s1 + $0x2a8] sm:$0xf]  ;;  %v9928_v48 = vor.u32 %v12554_v54, %v9927_v25 }
 0x3b9   :  { %v12849_v33 = vld [vmem:[%s19741_s1 + $0x18a4] sm:$0xf]  ;;  %v10628_v22 = vor.u32 %v12721_v10, %v10625_v58  ;;  %7171 = vmatpush.bf16.msrb.mxu0 %v10116_v60  ;;  %v12154_v10 = vld [vmem:[%s19741_s1 + $0x2e4] sm:$0xf0]  ;;  %v6954_v60 = vadd.f32 %v17184_v52, %v6941_v6 }
 0x3ba   :  { %v11137_v50 = vld [vmem:[%s19741_s1 + $0x18e0] sm:$0xf0]  ;;  %v12282_v7 = vld [vmem:[%s19741_s1 + $0x6e4] sm:$0xf0] }
 0x3bb   :  { %v12977_v53 = vld [vmem:[%s19741_s1 + $0x1ca4] sm:$0xf]  ;;  %v11140_v20 = vor.u32 %v12849_v33, %v11137_v50  ;;  %7184 = vmatpush.bf16.msrb.mxu1 %v10628_v22  ;;  %v9351_v58 = vld [vmem:[%s19741_s1 + $0xaa8] sm:$0xf] }
 0x3bc   :  { %v11649_v59 = vld [vmem:[%s19741_s1 + $0x1ce0] sm:$0xf0]  ;;  %v12410_v33 = vld [vmem:[%s19741_s1 + $0xae4] sm:$0xf0] }
 0x3bd   :  { %v12577_v61 = vld [vmem:[%s19741_s1 + $0x1024] sm:$0xf]  ;;  %v11652_v1 = vor.u32 %v12977_v53, %v11649_v59  ;;  %7197 = vmatpush.bf16.msrb.mxu2 %v11140_v20  ;;  %v9863_v50 = vld [vmem:[%s19741_s1 + $0xea8] sm:$0xf]  ;;  %v8328_v59 = vor.u32 %v12154_v10, %v8327_v45 }
 0x3be   :  { %v10049_v62 = vld [vmem:[%s19741_s1 + $0x1060] sm:$0xf0]  ;;  %v12538_v53 = vld [vmem:[%s19741_s1 + $0xee4] sm:$0xf0] }
 0x3bf   :  { %v12705_v18 = vld [vmem:[%s19741_s1 + $0x1424] sm:$0xf]  ;;  %v10052_v15 = vor.u32 %v12577_v61, %v10049_v62  ;;  %7210 = vmatpush.bf16.msrb.mxu3 %v11652_v1  ;;  %v8840_v61 = vor.u32 %v12282_v7, %v8839_v57  ;;  %v9352_v62 = vor.u32 %v12410_v33, %v9351_v58  ;;  %v8263_v22 = vld [vmem:[%s19741_s1 + $0x228] sm:$0xf]  ;;  %v7904_v57 = vperm.slane %v16982_v23, 7 }
 0x3c0   :  { %v10561_v55 = vld [vmem:[%s19741_s1 + $0x1460] sm:$0xf0]  ;;  %v12138_v20 = vld [vmem:[%s19741_s1 + $0x264] sm:$0xf0] }
 0x3c1   :  { %v12833_v0 = vld [vmem:[%s19741_s1 + $0x1824] sm:$0xf]  ;;  %v10564_v30 = vor.u32 %v12705_v18, %v10561_v55  ;;  %7172 = vmatpush.bf16.msrb.mxu0 %v10052_v15  ;;  %v8775_v18 = vld [vmem:[%s19741_s1 + $0x628] sm:$0xf]  ;;  %v9864_v55 = vor.u32 %v12538_v53, %v9863_v50  ;;  %v6981_v53 = vpop.f32.mrf.mxu1 }
 0x3c2   :  { %v11073_v46 = vld [vmem:[%s19741_s1 + $0x1860] sm:$0xf0]  ;;  %v12266_v52 = vld [vmem:[%s19741_s1 + $0x664] sm:$0xf0] }
 0x3c3   :  { %v12961_v2 = vld [vmem:[%s19741_s1 + $0x1c24] sm:$0xf]  ;;  %v11076_v31 = vor.u32 %v12833_v0, %v11073_v46  ;;  %7185 = vmatpush.bf16.msrb.mxu1 %v10564_v30  ;;  %v9287_v0 = vld [vmem:[%s19741_s1 + $0xa28] sm:$0xf]  ;;  %v8776_v11 = vor.u32 %v12266_v52, %v8775_v18 }
 0x3c4   :  { %v11585_v43 = vld [vmem:[%s19741_s1 + $0x1c60] sm:$0xf0]  ;;  %7173 = vmatmul.bf16.vlgmr.msrb.gmra.mxu0 %v13590_v37  ;;  %v9799_v1 = vld [vmem:[%s19741_s1 + $0xe28] sm:$0xf]  ;;  %v9288_v12 = vor.u32 %v12394_v49, %v9287_v0 }
 0x3c5   :  { %v11588_v39 = vor.u32 %v12961_v2, %v11585_v43  ;;  %7198 = vmatpush.bf16.msrb.mxu2 %v11076_v31  ;;  %7217 = vmatpush.bf16.msra.mxu0 %v8456_v44  ;;  %v12522_v46 = vld [vmem:[%s19741_s1 + $0xe64] sm:$0xf0]  ;;  %v8264_v2 = vor.u32 %v12138_v20, %v8263_v22  ;;  %v6966_v43 = vpop.f32.mrf.mxu0 }
 0x3c6   :  { %7186 = vmatmul.bf16.vlgmr.msrb.gmra.mxu1 %v13594_v40  ;;  %v8711_v15 = vld [vmem:[%s19741_s1 + $0x5a8] sm:$0xf]  ;;  %v6967_v27 = vadd.f32 %v6966_v43, %v6954_v60  ;;  %v9800_v29 = vor.u32 %v12522_v46, %v9799_v1 }
 0x3c7   :  { %7211 = vmatpush.bf16.msrb.mxu3 %v11588_v39  ;;  %7230 = vmatpush.bf16.msra.mxu1 %v8968_v19  ;;  %v12250_v30 = vld [vmem:[%s19741_s1 + $0x5e4] sm:$0xf0]  ;;  %v8200_v19 = vor.u32 %v12122_v14, %v8199_v13 }
 0x3c8   :  { %7199 = vmatmul.bf16.vlgmr.msrb.gmra.mxu2 %v13582_v34  ;;  %v9223_v31 = vld [vmem:[%s19741_s1 + $0x9a8] sm:$0xf]  ;;  %v6980_v44 = vadd.f32 %v6979_v28, %v6967_v27  ;;  %v8712_v21 = vor.u32 %v12250_v30, %v8711_v15 }
 0x3c9   :  { %7243 = vmatpush.bf16.msra.mxu2 %v9480_v47  ;;  %7218 = vmatpush.bf16.msra.mxu0 %v8392_v8  ;;  %v12378_v32 = vld [vmem:[%s19741_s1 + $0x9e4] sm:$0xf0]  ;;  %v7005_v8 = vpop.f32.mrf.mxu3 }
 0x3ca   :  { %7212 = vmatmul.bf16.vlgmr.msrb.gmra.mxu3 %v13592_v38  ;;  %v9735_v35 = vld [vmem:[%s19741_s1 + $0xda8] sm:$0xf]  ;;  %v9224_v42 = vor.u32 %v12378_v32, %v9223_v31  ;;  %v6993_v54 = vadd.f32 %v6992_v36, %v6980_v44 }
 0x3cb   :  { %7256 = vmatpush.bf16.msra.mxu3 %v9992_v5  ;;  %7231 = vmatpush.bf16.msra.mxu1 %v8904_v41  ;;  %v12506_v39 = vld [vmem:[%s19741_s1 + $0xde4] sm:$0xf0]  ;;  %v7852_v41 = vperm.slane %v16970_v51, 7 }
 0x3cc   :  { %v8135_v47 = vld [vmem:[%s19741_s1 + $0x128] sm:$0xf]  ;;  %v9736_v3 = vor.u32 %v12506_v39, %v9735_v35  ;;  %v7006_v10 = vadd.f32 %v7005_v8, %v6993_v54 }
 0x3cd   :  { %7244 = vmatpush.bf16.msra.mxu2 %v9416_v56  ;;  %7219 = vmatpush.bf16.msra.mxu0 %v8328_v59  ;;  %v12106_v4 = vld [vmem:[%s19741_s1 + $0x164] sm:$0xf0] }
 0x3ce   :  { %v8647_v24 = vld [vmem:[%s19741_s1 + $0x528] sm:$0xf]  ;;  %v8136_v45 = vor.u32 %v12106_v4, %v8135_v47  ;;  %v7884_v59 = vmul.f32 %v7852_v41, %v7006_v10 }
 0x3cf   :  { %7257 = vmatpush.bf16.msra.mxu3 %v9928_v48  ;;  %7232 = vmatpush.bf16.msra.mxu1 %v8840_v61  ;;  %v12234_v5 = vld [vmem:[%s19741_s1 + $0x564] sm:$0xf0]  ;;  %v6968_v48 = vpop.f32.mrf.mxu0 }
 0x3d0   :  { %v9159_v26 = vld [vmem:[%s19741_s1 + $0x928] sm:$0xf]  ;;  %v8648_v7 = vor.u32 %v12234_v5, %v8647_v24  ;;  %v7936_v18 = vadd.f32 %v7904_v57, %v7884_v59 }
 0x3d1   :  { %7245 = vmatpush.bf16.msra.mxu2 %v9352_v62  ;;  %7220 = vmatpush.bf16.msra.mxu0 %v8264_v2  ;;  %v12362_v25 = vld [vmem:[%s19741_s1 + $0x964] sm:$0xf0]  ;;  %v7007_v27 = vpop.f32.mrf.mxu3 }
 0x3d2   :  { %v9671_v56 = vld [vmem:[%s19741_s1 + $0xd28] sm:$0xf]  ;;  %v9160_v58 = vor.u32 %v12362_v25, %v9159_v26  ;;  %7952 = vst [vmem:[%s19745_s4 + $0x38] sm:$0xff] %v7936_v18  ;;  %v17556_v27 = vpop.f32.mrf.mxu1 }
 0x3d3   :  { %7258 = vmatpush.bf16.msra.mxu3 %v9864_v55  ;;  %7233 = vmatpush.bf16.msra.mxu1 %v8776_v11  ;;  %v12490_v6 = vld [vmem:[%s19741_s1 + $0xd64] sm:$0xf0] }
 0x3d4   :  { %v8071_v51 = vld [vmem:[%s19741_s1 + $0xa8] sm:$0xf]  ;;  %v9672_v23 = vor.u32 %v12490_v6, %v9671_v56 }
 0x3d5   :  { %7246 = vmatpush.bf16.msra.mxu2 %v9288_v12  ;;  %7221 = vmatpush.bf16.msra.mxu0 %v8200_v19  ;;  %v12090_v33 = vld [vmem:[%s19741_s1 + $0xe4] sm:$0xf0]  ;;  %v6994_v12 = vpop.f32.mrf.mxu2 }
 0x3d6   :  { %v8583_v50 = vld [vmem:[%s19741_s1 + $0x4a8] sm:$0xf]  ;;  %v8072_v55 = vor.u32 %v12090_v33, %v8071_v51 }
 0x3d7   :  { %7259 = vmatpush.bf16.msra.mxu3 %v9800_v29  ;;  %7234 = vmatpush.bf16.msra.mxu1 %v8712_v21  ;;  %v12218_v60 = vld [vmem:[%s19741_s1 + $0x4e4] sm:$0xf0] }
 0x3d8   :  { %v9095_v61 = vld [vmem:[%s19741_s1 + $0x8a8] sm:$0xf]  ;;  %v8584_v1 = vor.u32 %v12218_v60, %v8583_v50 }
 0x3d9   :  { %7247 = vmatpush.bf16.msra.mxu2 %v9224_v42  ;;  %v12346_v62 = vld [vmem:[%s19741_s1 + $0x8e4] sm:$0xf0]  ;;  %7222 = vmatpush.bf16.msra.mxu0 %v8136_v45 }
 0x3da   :  { %v9607_v22 = vld [vmem:[%s19741_s1 + $0xca8] sm:$0xf]  ;;  %v9096_v46 = vor.u32 %v12346_v62, %v9095_v61 }
 0x3db   :  { %7260 = vmatpush.bf16.msra.mxu3 %v9736_v3  ;;  %v12474_v20 = vld [vmem:[%s19741_s1 + $0xce4] sm:$0xf0]  ;;  %7235 = vmatpush.bf16.msra.mxu1 %v8648_v7 }
 0x3dc   :  { %v8007_v52 = vld [vmem:[%s19741_s1 + $0x28] sm:$0xf]  ;;  %v9608_v13 = vor.u32 %v12474_v20, %v9607_v22 }
 0x3dd   :  { %v12074_v0 = vld [vmem:[%s19741_s1 + $0x64] sm:$0xf0]  ;;  %7248 = vmatpush.bf16.msra.mxu2 %v9160_v58  ;;  %7223 = vmatpush.bf16.msra.mxu0 %v8072_v55 }
 0x3de   :  { %v8519_v49 = vld [vmem:[%s19741_s1 + $0x428] sm:$0xf]  ;;  %v8008_v31 = vor.u32 %v12074_v0, %v8007_v52 }
 0x3df   :  { %v12202_v2 = vld [vmem:[%s19741_s1 + $0x464] sm:$0xf0]  ;;  %7261 = vmatpush.bf16.msra.mxu3 %v9672_v23  ;;  %7236 = vmatpush.bf16.msra.mxu1 %v8584_v1 }
 0x3e0   :  { %v9031_v43 = vld [vmem:[%s19741_s1 + $0x828] sm:$0xf]  ;;  %v8520_v44 = vor.u32 %v12202_v2, %v8519_v49 }
 0x3e1   :  { %v12330_v11 = vld [vmem:[%s19741_s1 + $0x864] sm:$0xf0]  ;;  %7249 = vmatpush.bf16.msra.mxu2 %v9096_v46  ;;  %7224 = vmatpush.bf16.msra.mxu0 %v8008_v31 }
 0x3e2   :  { %v9543_v14 = vld [vmem:[%s19741_s1 + $0xc28] sm:$0xf]  ;;  %v9032_v19 = vor.u32 %v12330_v11, %v9031_v43  ;;  %v17545_v43 = vpop.f32.mrf.mxu0 }
 0x3e3   :  { %v12458_v15 = vld [vmem:[%s19741_s1 + $0xc64] sm:$0xf0]  ;;  %7262 = vmatpush.bf16.msra.mxu3 %v9608_v13  ;;  %7237 = vmatpush.bf16.msra.mxu1 %v8520_v44 }
 0x3e4   :  { %v10503_v28 = vld [vmem:[%s19741_s1 + $0x13a8] sm:$0xf]  ;;  %v9544_v42 = vor.u32 %v12458_v15, %v9543_v14  ;;  %7225 = vmatmul.bf16.vlgmr.msra.gmra.mxu0 %v13402_v9 }
 0x3e5   :  { %v12698_v29 = vld [vmem:[%s19741_s1 + $0x13e4] sm:$0xf0]  ;;  %7250 = vmatpush.bf16.msra.mxu2 %v9032_v19 }
 0x3e6   :  { %v11015_v30 = vld [vmem:[%s19741_s1 + $0x17a8] sm:$0xf]  ;;  %v10504_v4 = vor.u32 %v12698_v29, %v10503_v28  ;;  %7238 = vmatmul.bf16.vlgmr.msra.gmra.mxu1 %v13421_v17 }
 0x3e7   :  { %v12826_v32 = vld [vmem:[%s19741_s1 + $0x17e4] sm:$0xf0]  ;;  %7263 = vmatpush.bf16.msra.mxu3 %v9544_v42 }
 0x3e8   :  { %v11527_v35 = vld [vmem:[%s19741_s1 + $0x1ba8] sm:$0xf]  ;;  %v11016_v24 = vor.u32 %v12826_v32, %v11015_v30  ;;  %7269 = vmatpush.bf16.msrb.mxu0 %v10504_v4  ;;  %7251 = vmatmul.bf16.vlgmr.msra.gmra.mxu2 %v13381_v63  ;;  %v17582_v4 = vpop.f32.mrf.mxu2 }
 0x3e9   :  { %v12954_v39 = vld [vmem:[%s19741_s1 + $0x1be4] sm:$0xf0] }
 0x3ea   :  { %v12039_v47 = vld [vmem:[%s19741_s1 + $0x1fa8] sm:$0xf]  ;;  %v11528_v5 = vor.u32 %v12954_v39, %v11527_v35  ;;  %7282 = vmatpush.bf16.msrb.mxu1 %v11016_v24  ;;  %7264 = vmatmul.bf16.vlgmr.msra.gmra.mxu3 %v13419_v16 }
 0x3eb   :  { %v13082_v21 = vld [vmem:[%s19741_s1 + $0x1fe4] sm:$0xf0] }
 0x3ec   :  { %v10439_v36 = vld [vmem:[%s19741_s1 + $0x1328] sm:$0xf]  ;;  %v12040_v25 = vor.u32 %v13082_v21, %v12039_v47  ;;  %7295 = vmatpush.bf16.msrb.mxu2 %v11528_v5 }
 0x3ed   :  { %v12682_v3 = vld [vmem:[%s19741_s1 + $0x1364] sm:$0xf0] }
 0x3ee   :  { %v10951_v26 = vld [vmem:[%s19741_s1 + $0x1728] sm:$0xf]  ;;  %v10440_v45 = vor.u32 %v12682_v3, %v10439_v36  ;;  %7308 = vmatpush.bf16.msrb.mxu3 %v12040_v25 }
 0x3ef   :  { %v12810_v54 = vld [vmem:[%s19741_s1 + $0x1764] sm:$0xf0] }
 0x3f0   :  { %v11463_v8 = vld [vmem:[%s19741_s1 + $0x1b28] sm:$0xf]  ;;  %v10952_v10 = vor.u32 %v12810_v54, %v10951_v26  ;;  %7270 = vmatpush.bf16.msrb.mxu0 %v10440_v45  ;;  %v17593_v26 = vpop.f32.mrf.mxu3 }
 0x3f1   :  { %v12938_v41 = vld [vmem:[%s19741_s1 + $0x1b64] sm:$0xf0] }
 0x3f2   :  { %v11975_v56 = vld [vmem:[%s19741_s1 + $0x1f28] sm:$0xf]  ;;  %v11464_v57 = vor.u32 %v12938_v41, %v11463_v8  ;;  %7283 = vmatpush.bf16.msrb.mxu1 %v10952_v10  ;;  %v7020_v41 = vpop.f32.mrf.mxu0 }
 0x3f3   :  { %v13066_v6 = vld [vmem:[%s19741_s1 + $0x1f64] sm:$0xf0] }
 0x3f4   :  { %v10375_v48 = vld [vmem:[%s19741_s1 + $0x12a8] sm:$0xf]  ;;  %v11976_v51 = vor.u32 %v13066_v6, %v11975_v56  ;;  %7296 = vmatpush.bf16.msrb.mxu2 %v11464_v57 }
 0x3f5   :  { %v12666_v7 = vld [vmem:[%s19741_s1 + $0x12e4] sm:$0xf0] }
 0x3f6   :  { %v10887_v58 = vld [vmem:[%s19741_s1 + $0x16a8] sm:$0xf]  ;;  %v10376_v60 = vor.u32 %v12666_v7, %v10375_v48  ;;  %7309 = vmatpush.bf16.msrb.mxu3 %v11976_v51  ;;  %v7033_v48 = vpop.f32.mrf.mxu1 }
 0x3f7   :  { %v12794_v33 = vld [vmem:[%s19741_s1 + $0x16e4] sm:$0xf0]  ;;  %v12402_v48 = vld [vmem:[%s19741_s1 + $0xaac] sm:$0xf] }
 0x3f8   :  { %v11399_v50 = vld [vmem:[%s19741_s1 + $0x1aa8] sm:$0xf]  ;;  %v10888_v61 = vor.u32 %v12794_v33, %v10887_v58  ;;  %7271 = vmatpush.bf16.msrb.mxu0 %v10376_v60 }
 0x3f9   :  { %v12922_v53 = vld [vmem:[%s19741_s1 + $0x1ae4] sm:$0xf0] }
 0x3fa   :  { %v11911_v23 = vld [vmem:[%s19741_s1 + $0x1ea8] sm:$0xf]  ;;  %v11400_v62 = vor.u32 %v12922_v53, %v11399_v50  ;;  %7284 = vmatpush.bf16.msrb.mxu1 %v10888_v61 }
 0x3fb   :  { %v13050_v59 = vld [vmem:[%s19741_s1 + $0x1ee4] sm:$0xf0] }
 0x3fc   :  { %v10311_v22 = vld [vmem:[%s19741_s1 + $0x1228] sm:$0xf]  ;;  %v11912_v55 = vor.u32 %v13050_v59, %v11911_v23  ;;  %7297 = vmatpush.bf16.msrb.mxu2 %v11400_v62 }
 0x3fd   :  { %v12650_v20 = vld [vmem:[%s19741_s1 + $0x1264] sm:$0xf0] }
 0x3fe   :  { %v10823_v18 = vld [vmem:[%s19741_s1 + $0x1628] sm:$0xf]  ;;  %v10312_v2 = vor.u32 %v12650_v20, %v10311_v22  ;;  %7310 = vmatpush.bf16.msrb.mxu3 %v11912_v55  ;;  %v7046_v55 = vpop.f32.mrf.mxu2 }
 0x3ff   :  { %v12778_v52 = vld [vmem:[%s19741_s1 + $0x1664] sm:$0xf0]  ;;  %v9801_v55 = vld [vmem:[%s19741_s1 + $0xe68] sm:$0xf0] }
 0x400   :  { %v11335_v0 = vld [vmem:[%s19741_s1 + $0x1a28] sm:$0xf]  ;;  %v10824_v11 = vor.u32 %v12778_v52, %v10823_v18  ;;  %7272 = vmatpush.bf16.msrb.mxu0 %v10312_v2  ;;  %v12178_v2 = vld [vmem:[%s19741_s1 + $0x3ac] sm:$0xf] }
 0x401   :  { %v12906_v49 = vld [vmem:[%s19741_s1 + $0x1a64] sm:$0xf0] }
 0x402   :  { %v11847_v1 = vld [vmem:[%s19741_s1 + $0x1e28] sm:$0xf]  ;;  %v11336_v12 = vor.u32 %v12906_v49, %v11335_v0  ;;  %7285 = vmatpush.bf16.msrb.mxu1 %v10824_v11  ;;  %v8457_v11 = vld [vmem:[%s19741_s1 + $0x3e8] sm:$0xf0] }
 0x403   :  { %v13034_v46 = vld [vmem:[%s19741_s1 + $0x1e64] sm:$0xf0] }
 0x404   :  { %v10247_v13 = vld [vmem:[%s19741_s1 + $0x11a8] sm:$0xf]  ;;  %v11848_v28 = vor.u32 %v13034_v46, %v11847_v1  ;;  %7298 = vmatpush.bf16.msrb.mxu2 %v11336_v12  ;;  %v7059_v46 = vpop.f32.mrf.mxu3  ;;  %v12306_v12 = vld [vmem:[%s19741_s1 + $0x7ac] sm:$0xf] }
 0x405   :  { %v12634_v14 = vld [vmem:[%s19741_s1 + $0x11e4] sm:$0xf0]  ;;  %v12114_v46 = vld [vmem:[%s19741_s1 + $0x1ac] sm:$0xf] }
 0x406   :  { %v10759_v15 = vld [vmem:[%s19741_s1 + $0x15a8] sm:$0xf]  ;;  %v10248_v39 = vor.u32 %v12634_v14, %v10247_v13  ;;  %7311 = vmatpush.bf16.msrb.mxu3 %v11848_v28  ;;  %v8969_v14 = vld [vmem:[%s19741_s1 + $0x7e8] sm:$0xf0] }
 0x407   :  { %v12762_v29 = vld [vmem:[%s19741_s1 + $0x15e4] sm:$0xf0]  ;;  %v9481_v28 = vld [vmem:[%s19741_s1 + $0xbe8] sm:$0xf0] }
 0x408   :  { %v11271_v30 = vld [vmem:[%s19741_s1 + $0x19a8] sm:$0xf]  ;;  %v10760_v44 = vor.u32 %v12762_v29, %v10759_v15  ;;  %7273 = vmatpush.bf16.msrb.mxu0 %v10248_v39  ;;  %v12434_v15 = vld [vmem:[%s19741_s1 + $0xbac] sm:$0xf]  ;;  %v8460_v39 = vor.u32 %v12178_v2, %v8457_v11 }
 0x409   :  { %v12890_v31 = vld [vmem:[%s19741_s1 + $0x19e4] sm:$0xf0]  ;;  %v8201_v2 = vld [vmem:[%s19741_s1 + $0x1e8] sm:$0xf0] }
 0x40a   :  { %v11783_v32 = vld [vmem:[%s19741_s1 + $0x1da8] sm:$0xf]  ;;  %v11272_v19 = vor.u32 %v12890_v31, %v11271_v30  ;;  %7286 = vmatpush.bf16.msrb.mxu1 %v10760_v44  ;;  %v12562_v31 = vld [vmem:[%s19741_s1 + $0xfac] sm:$0xf]  ;;  %v8972_v44 = vor.u32 %v12306_v12, %v8969_v14 }
 0x40b   :  { %v13018_v35 = vld [vmem:[%s19741_s1 + $0x1de4] sm:$0xf0]  ;;  %v12242_v11 = vld [vmem:[%s19741_s1 + $0x5ac] sm:$0xf] }
 0x40c   :  { %v10183_v47 = vld [vmem:[%s19741_s1 + $0x1128] sm:$0xf]  ;;  %v11784_v24 = vor.u32 %v13018_v35, %v11783_v32  ;;  %7299 = vmatpush.bf16.msrb.mxu2 %v11272_v19  ;;  %v9993_v32 = vld [vmem:[%s19741_s1 + $0xfe8] sm:$0xf0]  ;;  %v9484_v19 = vor.u32 %v12434_v15, %v9481_v28 }
 0x40d   :  { %v12618_v21 = vld [vmem:[%s19741_s1 + $0x1164] sm:$0xf0]  ;;  %v8713_v15 = vld [vmem:[%s19741_s1 + $0x5e8] sm:$0xf0] }
 0x40e   :  { %v10695_v42 = vld [vmem:[%s19741_s1 + $0x1528] sm:$0xf]  ;;  %v10184_v8 = vor.u32 %v12618_v21, %v10183_v47  ;;  %7312 = vmatpush.bf16.msrb.mxu3 %v11784_v24  ;;  %v7032_v47 = vadd.f32 %v17556_v27, %v17545_v43  ;;  %v12162_v21 = vld [vmem:[%s19741_s1 + $0x32c] sm:$0xf] }
 0x40f   :  { %v12746_v5 = vld [vmem:[%s19741_s1 + $0x1564] sm:$0xf0]  ;;  %v12290_v24 = vld [vmem:[%s19741_s1 + $0x72c] sm:$0xf] }
 0x410   :  { %v11207_v36 = vld [vmem:[%s19741_s1 + $0x1928] sm:$0xf]  ;;  %v10696_v56 = vor.u32 %v12746_v5, %v10695_v42  ;;  %7274 = vmatpush.bf16.msrb.mxu0 %v10184_v8  ;;  %v8393_v42 = vld [vmem:[%s19741_s1 + $0x368] sm:$0xf0]  ;;  %v9996_v5 = vor.u32 %v12562_v31, %v9993_v32 }
 0x411   :  { %v12874_v3 = vld [vmem:[%s19741_s1 + $0x1964] sm:$0xf0]  ;;  %v12418_v43 = vld [vmem:[%s19741_s1 + $0xb2c] sm:$0xf] }
 0x412   :  { %v11719_v25 = vld [vmem:[%s19741_s1 + $0x1d28] sm:$0xf]  ;;  %v11208_v6 = vor.u32 %v12874_v3, %v11207_v36  ;;  %7287 = vmatpush.bf16.msrb.mxu1 %v10696_v56  ;;  %v8905_v36 = vld [vmem:[%s19741_s1 + $0x768] sm:$0xf0]  ;;  %v7045_v56 = vadd.f32 %v17582_v4, %v7032_v47  ;;  %v8716_v47 = vor.u32 %v12242_v11, %v8713_v15 }
 0x413   :  { %v13002_v54 = vld [vmem:[%s19741_s1 + $0x1d64] sm:$0xf0]  ;;  %v9417_v27 = vld [vmem:[%s19741_s1 + $0xb68] sm:$0xf0]  ;;  %v8908_v8 = vor.u32 %v12290_v24, %v8905_v36 }
 0x414   :  { %v10119_v45 = vld [vmem:[%s19741_s1 + $0x10a8] sm:$0xf]  ;;  %v11720_v7 = vor.u32 %v13002_v54, %v11719_v25  ;;  %7300 = vmatpush.bf16.msrb.mxu2 %v11208_v6  ;;  %v12546_v3 = vld [vmem:[%s19741_s1 + $0xf2c] sm:$0xf]  ;;  %v8396_v54 = vor.u32 %v12162_v21, %v8393_v42  ;;  %v9420_v41 = vor.u32 %v12418_v43, %v9417_v27 }
 0x415   :  { %v12602_v10 = vld [vmem:[%s19741_s1 + $0x10e4] sm:$0xf0]  ;;  %v9929_v25 = vld [vmem:[%s19741_s1 + $0xf68] sm:$0xf0] }
 0x416   :  { %v10631_v57 = vld [vmem:[%s19741_s1 + $0x14a8] sm:$0xf]  ;;  %v10120_v23 = vor.u32 %v12602_v10, %v10119_v45  ;;  %7313 = vmatpush.bf16.msrb.mxu3 %v11720_v7  ;;  %v12146_v6 = vld [vmem:[%s19741_s1 + $0x2ac] sm:$0xf] }
 0x417   :  { %v12730_v58 = vld [vmem:[%s19741_s1 + $0x14e4] sm:$0xf0]  ;;  %v8329_v45 = vld [vmem:[%s19741_s1 + $0x2e8] sm:$0xf0] }
 0x418   :  { %v11143_v51 = vld [vmem:[%s19741_s1 + $0x18a8] sm:$0xf]  ;;  %v10632_v61 = vor.u32 %v12730_v58, %v10631_v57  ;;  %7275 = vmatpush.bf16.msrb.mxu0 %v10120_v23  ;;  %v12274_v10 = vld [vmem:[%s19741_s1 + $0x6ac] sm:$0xf]  ;;  %v9932_v57 = vor.u32 %v12546_v3, %v9929_v25 }
 0x419   :  { %v12858_v33 = vld [vmem:[%s19741_s1 + $0x18e4] sm:$0xf0]  ;;  %v8841_v4 = vld [vmem:[%s19741_s1 + $0x6e8] sm:$0xf0] }
 0x41a   :  { %v11655_v50 = vld [vmem:[%s19741_s1 + $0x1ca8] sm:$0xf]  ;;  %v11144_v62 = vor.u32 %v12858_v33, %v11143_v51  ;;  %7288 = vmatpush.bf16.msrb.mxu1 %v10632_v61  ;;  %v9353_v7 = vld [vmem:[%s19741_s1 + $0xae8] sm:$0xf0]  ;;  %v8332_v33 = vor.u32 %v12146_v6, %v8329_v45 }
 0x41b   :  { %v12986_v53 = vld [vmem:[%s19741_s1 + $0x1ce4] sm:$0xf0]  ;;  %v12530_v58 = vld [vmem:[%s19741_s1 + $0xeac] sm:$0xf]  ;;  %v9356_v23 = vor.u32 %v12402_v48, %v9353_v7 }
 0x41c   :  { %v10055_v59 = vld [vmem:[%s19741_s1 + $0x1028] sm:$0xf]  ;;  %v11656_v52 = vor.u32 %v12986_v53, %v11655_v50  ;;  %7301 = vmatpush.bf16.msrb.mxu2 %v11144_v62  ;;  %v9865_v51 = vld [vmem:[%s19741_s1 + $0xee8] sm:$0xf0]  ;;  %v7058_v50 = vadd.f32 %v17593_v26, %v7045_v56  ;;  %v8844_v53 = vor.u32 %v12274_v10, %v8841_v4 }
 0x41d   :  { %v12586_v60 = vld [vmem:[%s19741_s1 + $0x1064] sm:$0xf0]  ;;  %v12258_v61 = vld [vmem:[%s19741_s1 + $0x62c] sm:$0xf]  ;;  %v9868_v62 = vor.u32 %v12530_v58, %v9865_v51 }
 0x41e   :  { %v10567_v22 = vld [vmem:[%s19741_s1 + $0x1428] sm:$0xf]  ;;  %v10056_v13 = vor.u32 %v12586_v60, %v10055_v59  ;;  %7314 = vmatpush.bf16.msrb.mxu3 %v11656_v52  ;;  %v12130_v59 = vld [vmem:[%s19741_s1 + $0x22c] sm:$0xf] }
 0x41f   :  { %v12714_v20 = vld [vmem:[%s19741_s1 + $0x1464] sm:$0xf0]  ;;  %v8265_v60 = vld [vmem:[%s19741_s1 + $0x268] sm:$0xf0] }
 0x420   :  { %v11079_v18 = vld [vmem:[%s19741_s1 + $0x1828] sm:$0xf]  ;;  %v10568_v29 = vor.u32 %v12714_v20, %v10567_v22  ;;  %7276 = vmatpush.bf16.msrb.mxu0 %v10056_v13  ;;  %v8777_v26 = vld [vmem:[%s19741_s1 + $0x668] sm:$0xf0]  ;;  %v8268_v52 = vor.u32 %v12130_v59, %v8265_v60  ;;  %v7083_v13 = vpop.f32.mrf.mxu1 }
 0x421   :  { %v12842_v0 = vld [vmem:[%s19741_s1 + $0x1864] sm:$0xf0]  ;;  %v12386_v22 = vld [vmem:[%s19741_s1 + $0xa2c] sm:$0xf] }
 0x422   :  { %v11591_v49 = vld [vmem:[%s19741_s1 + $0x1c28] sm:$0xf]  ;;  %v11080_v30 = vor.u32 %v12842_v0, %v11079_v18  ;;  %7289 = vmatpush.bf16.msrb.mxu1 %v10568_v29  ;;  %v9289_v20 = vld [vmem:[%s19741_s1 + $0xa68] sm:$0xf0]  ;;  %v7070_v0 = vpop.f32.mrf.mxu0 }
 0x423   :  { %v12970_v1 = vld [vmem:[%s19741_s1 + $0x1c64] sm:$0xf0]  ;;  %7277 = vmatmul.bf16.vlgmr.msrb.gmra.mxu0 %v13590_v37  ;;  %v12514_v18 = vld [vmem:[%s19741_s1 + $0xe2c] sm:$0xf]  ;;  %v7071_v12 = vadd.f32 %v7070_v0, %v7058_v50 }
 0x424   :  { %v11592_v35 = vor.u32 %v12970_v1, %v11591_v49  ;;  %7302 = vmatpush.bf16.msrb.mxu2 %v11080_v30  ;;  %7321 = vmatpush.bf16.msra.mxu0 %v8460_v39  ;;  %v8780_v49 = vor.u32 %v12258_v61, %v8777_v26  ;;  %v9292_v1 = vor.u32 %v12386_v22, %v9289_v20  ;;  %v12370_v28 = vld [vmem:[%s19741_s1 + $0x9ac] sm:$0xf] }
 0x425   :  { %7290 = vmatmul.bf16.vlgmr.msrb.gmra.mxu1 %v13594_v40  ;;  %v9804_v14 = vor.u32 %v12514_v18, %v9801_v55  ;;  %v9225_v29 = vld [vmem:[%s19741_s1 + $0x9e8] sm:$0xf0]  ;;  %v7084_v32 = vadd.f32 %v7083_v13, %v7071_v12  ;;  %v8204_v39 = vor.u32 %v12114_v46, %v8201_v2 }
 0x426   :  { %7315 = vmatpush.bf16.msrb.mxu3 %v11592_v35  ;;  %7334 = vmatpush.bf16.msra.mxu1 %v8972_v44  ;;  %v12498_v30 = vld [vmem:[%s19741_s1 + $0xdac] sm:$0xf]  ;;  %v9228_v21 = vor.u32 %v12370_v28, %v9225_v29 }
 0x427   :  { %7303 = vmatmul.bf16.vlgmr.msrb.gmra.mxu2 %v13582_v34  ;;  %v9737_v31 = vld [vmem:[%s19741_s1 + $0xde8] sm:$0xf0] }
 0x428   :  { %7347 = vmatpush.bf16.msra.mxu2 %v9484_v19  ;;  %7322 = vmatpush.bf16.msra.mxu0 %v8396_v54  ;;  %v17780_v35 = vld [vmem:[%s19743_s2 + $0x8] sm:$0xff]  ;;  %v9740_v43 = vor.u32 %v12498_v30, %v9737_v31  ;;  %v7109_v54 = vpop.f32.mrf.mxu3 }
 0x429   :  { %7316 = vmatmul.bf16.vlgmr.msrb.gmra.mxu3 %v13592_v38  ;;  %v12098_v44 = vld [vmem:[%s19741_s1 + $0x12c] sm:$0xf] }
 0x42a   :  { %7360 = vmatpush.bf16.msra.mxu3 %v9996_v5  ;;  %7335 = vmatpush.bf16.msra.mxu1 %v8908_v8  ;;  %v8137_v19 = vld [vmem:[%s19741_s1 + $0x168] sm:$0xf0]  ;;  %v7096_v5 = vpop.f32.mrf.mxu2  ;;  %v7853_v8 = vperm.slane %v17780_v35, 0 }
 0x42b   :  { %v12226_v42 = vld [vmem:[%s19741_s1 + $0x52c] sm:$0xf]  ;;  %v7097_v25 = vadd.f32 %v7096_v5, %v7084_v32  ;;  %v8140_v6 = vor.u32 %v12098_v44, %v8137_v19 }
 0x42c   :  { %7348 = vmatpush.bf16.msra.mxu2 %v9420_v41  ;;  %7323 = vmatpush.bf16.msra.mxu0 %v8332_v33  ;;  %v8649_v24 = vld [vmem:[%s19741_s1 + $0x568] sm:$0xf0]  ;;  %v7085_v33 = vpop.f32.mrf.mxu1 }
 0x42d   :  { %v17797_v36 = vld [vmem:[%s19744_s3 + $0x8] sm:$0xff]  ;;  %v7110_v45 = vadd.f32 %v7109_v54, %v7097_v25  ;;  %v8652_v4 = vor.u32 %v12226_v42, %v8649_v24 }
 0x42e   :  { %7361 = vmatpush.bf16.msra.mxu3 %v9932_v57  ;;  %7336 = vmatpush.bf16.msra.mxu1 %v8844_v53  ;;  %v12354_v27 = vld [vmem:[%s19741_s1 + $0x92c] sm:$0xf]  ;;  %v7905_v10 = vperm.slane %v17797_v36, 0  ;;  %v7072_v57 = vpop.f32.mrf.mxu0 }
 0x42f   :  { %v9161_v3 = vld [vmem:[%s19741_s1 + $0x968] sm:$0xf0]  ;;  %v7885_v53 = vmul.f32 %v7853_v8, %v7110_v45 }
 0x430   :  { %7349 = vmatpush.bf16.msra.mxu2 %v9356_v23  ;;  %7324 = vmatpush.bf16.msra.mxu0 %v8268_v52  ;;  %v12482_v41 = vld [vmem:[%s19741_s1 + $0xd2c] sm:$0xf]  ;;  %v9164_v48 = vor.u32 %v12354_v27, %v9161_v3 }
 0x431   :  { %v9673_v56 = vld [vmem:[%s19741_s1 + $0xd68] sm:$0xf0]  ;;  %v7937_v26 = vadd.f32 %v7905_v10, %v7885_v53 }
 0x432   :  { %7362 = vmatpush.bf16.msra.mxu3 %v9868_v62  ;;  %7337 = vmatpush.bf16.msra.mxu1 %v8780_v49  ;;  %v12082_v7 = vld [vmem:[%s19741_s1 + $0xac] sm:$0xf]  ;;  %v9676_v50 = vor.u32 %v12482_v41, %v9673_v56  ;;  %v7098_v2 = vpop.f32.mrf.mxu2 }
 0x433   :  { %v8073_v58 = vld [vmem:[%s19741_s1 + $0xe8] sm:$0xf0]  ;;  %7953 = vst [vmem:[%s19745_s4 + $0x40] sm:$0xff] %v7937_v26 }
 0x434   :  { %7350 = vmatpush.bf16.msra.mxu2 %v9292_v1  ;;  %7325 = vmatpush.bf16.msra.mxu0 %v8204_v39  ;;  %v12210_v51 = vld [vmem:[%s19741_s1 + $0x4ac] sm:$0xf]  ;;  %v8076_v22 = vor.u32 %v12082_v7, %v8073_v58 }
 0x435   :  { %v8585_v23 = vld [vmem:[%s19741_s1 + $0x4e8] sm:$0xf0] }
 0x436   :  { %7363 = vmatpush.bf16.msra.mxu3 %v9804_v14  ;;  %7338 = vmatpush.bf16.msra.mxu1 %v8716_v47  ;;  %v12338_v59 = vld [vmem:[%s19741_s1 + $0x8ac] sm:$0xf]  ;;  %v8588_v52 = vor.u32 %v12210_v51, %v8585_v23  ;;  %v7111_v14 = vpop.f32.mrf.mxu3  ;;  %v17964_v2 = vpop.f32.mrf.mxu0 }
 0x437   :  { %v9097_v60 = vld [vmem:[%s19741_s1 + $0x8e8] sm:$0xf0] }
 0x438   :  { %7351 = vmatpush.bf16.msra.mxu2 %v9228_v21  ;;  %v12466_v61 = vld [vmem:[%s19741_s1 + $0xcac] sm:$0xf]  ;;  %7326 = vmatpush.bf16.msra.mxu0 %v8140_v6  ;;  %v9100_v0 = vor.u32 %v12338_v59, %v9097_v60 }
 0x439   :  { %v9609_v62 = vld [vmem:[%s19741_s1 + $0xce8] sm:$0xf0] }
 0x43a   :  { %7364 = vmatpush.bf16.msra.mxu3 %v9740_v43  ;;  %v12066_v20 = vld [vmem:[%s19741_s1 + $0x2c] sm:$0xf]  ;;  %7339 = vmatpush.bf16.msra.mxu1 %v8652_v4  ;;  %v9612_v11 = vor.u32 %v12466_v61, %v9609_v62 }
 0x43b   :  { %v8009_v18 = vld [vmem:[%s19741_s1 + $0x68] sm:$0xf0] }
 0x43c   :  { %v12194_v55 = vld [vmem:[%s19741_s1 + $0x42c] sm:$0xf]  ;;  %7352 = vmatpush.bf16.msra.mxu2 %v9164_v48  ;;  %7327 = vmatpush.bf16.msra.mxu0 %v8076_v22  ;;  %v8012_v30 = vor.u32 %v12066_v20, %v8009_v18 }
 0x43d   :  { %v8521_v49 = vld [vmem:[%s19741_s1 + $0x468] sm:$0xf0] }
 0x43e   :  { %v12322_v1 = vld [vmem:[%s19741_s1 + $0x82c] sm:$0xf]  ;;  %7365 = vmatpush.bf16.msra.mxu3 %v9676_v50  ;;  %7340 = vmatpush.bf16.msra.mxu1 %v8588_v52  ;;  %v8524_v44 = vor.u32 %v12194_v55, %v8521_v49 }
 0x43f   :  { %v9033_v46 = vld [vmem:[%s19741_s1 + $0x868] sm:$0xf0] }
 0x440   :  { %v12450_v12 = vld [vmem:[%s19741_s1 + $0xc2c] sm:$0xf]  ;;  %7353 = vmatpush.bf16.msra.mxu2 %v9100_v0  ;;  %v9036_v19 = vor.u32 %v12322_v1, %v9033_v46  ;;  %7328 = vmatpush.bf16.msra.mxu0 %v8012_v30 }
 0x441   :  { %v9545_v13 = vld [vmem:[%s19741_s1 + $0xc68] sm:$0xf0] }
 0x442   :  { %v12690_v15 = vld [vmem:[%s19741_s1 + $0x13ac] sm:$0xf]  ;;  %7366 = vmatpush.bf16.msra.mxu3 %v9612_v11  ;;  %v9548_v42 = vor.u32 %v12450_v12, %v9545_v13  ;;  %7341 = vmatpush.bf16.msra.mxu1 %v8524_v44 }
 0x443   :  { %v10505_v28 = vld [vmem:[%s19741_s1 + $0x13e8] sm:$0xf0]  ;;  %7329 = vmatmul.bf16.vlgmr.msra.gmra.mxu0 %v13402_v9 }
 0x444   :  { %v12818_v29 = vld [vmem:[%s19741_s1 + $0x17ac] sm:$0xf]  ;;  %v10508_v24 = vor.u32 %v12690_v15, %v10505_v28  ;;  %7354 = vmatpush.bf16.msra.mxu2 %v9036_v19  ;;  %v17975_v28 = vpop.f32.mrf.mxu1 }
 0x445   :  { %v11017_v31 = vld [vmem:[%s19741_s1 + $0x17e8] sm:$0xf0]  ;;  %7342 = vmatmul.bf16.vlgmr.msra.gmra.mxu1 %v13421_v17 }
 0x446   :  { %v12946_v32 = vld [vmem:[%s19741_s1 + $0x1bac] sm:$0xf]  ;;  %v11020_v5 = vor.u32 %v12818_v29, %v11017_v31  ;;  %7367 = vmatpush.bf16.msra.mxu3 %v9548_v42  ;;  %7373 = vmatpush.bf16.msrb.mxu0 %v10508_v24 }
 0x447   :  { %v11529_v39 = vld [vmem:[%s19741_s1 + $0x1be8] sm:$0xf0]  ;;  %7355 = vmatmul.bf16.vlgmr.msra.gmra.mxu2 %v13381_v63 }
 0x448   :  { %v13074_v47 = vld [vmem:[%s19741_s1 + $0x1fac] sm:$0xf]  ;;  %v11532_v43 = vor.u32 %v12946_v32, %v11529_v39  ;;  %7386 = vmatpush.bf16.msrb.mxu1 %v11020_v5 }
 0x449   :  { %v12041_v21 = vld [vmem:[%s19741_s1 + $0x1fe8] sm:$0xf0]  ;;  %7368 = vmatmul.bf16.vlgmr.msra.gmra.mxu3 %v13419_v16 }
 0x44a   :  { %v12674_v27 = vld [vmem:[%s19741_s1 + $0x132c] sm:$0xf]  ;;  %v12044_v54 = vor.u32 %v13074_v47, %v12041_v21  ;;  %7399 = vmatpush.bf16.msrb.mxu2 %v11532_v43  ;;  %v18001_v43 = vpop.f32.mrf.mxu2 }
 0x44b   :  { %v10441_v3 = vld [vmem:[%s19741_s1 + $0x1368] sm:$0xf0] }
 0x44c   :  { %v12802_v25 = vld [vmem:[%s19741_s1 + $0x172c] sm:$0xf]  ;;  %v10444_v10 = vor.u32 %v12674_v27, %v10441_v3  ;;  %7412 = vmatpush.bf16.msrb.mxu3 %v12044_v54 }
 0x44d   :  { %v10953_v8 = vld [vmem:[%s19741_s1 + $0x1768] sm:$0xf0] }
 0x44e   :  { %v12930_v41 = vld [vmem:[%s19741_s1 + $0x1b2c] sm:$0xf]  ;;  %v10956_v57 = vor.u32 %v12802_v25, %v10953_v8  ;;  %7374 = vmatpush.bf16.msrb.mxu0 %v10444_v10  ;;  %v18012_v8 = vpop.f32.mrf.mxu3 }
 0x44f   :  { %v11465_v56 = vld [vmem:[%s19741_s1 + $0x1b68] sm:$0xf0] }
 0x450   :  { %v13058_v6 = vld [vmem:[%s19741_s1 + $0x1f2c] sm:$0xf]  ;;  %v11468_v4 = vor.u32 %v12930_v41, %v11465_v56  ;;  %7387 = vmatpush.bf16.msrb.mxu1 %v10956_v57 }
 0x451   :  { %v11977_v45 = vld [vmem:[%s19741_s1 + $0x1f68] sm:$0xf0] }
 0x452   :  { %v12658_v48 = vld [vmem:[%s19741_s1 + $0x12ac] sm:$0xf]  ;;  %v11980_v51 = vor.u32 %v13058_v6, %v11977_v45  ;;  %7400 = vmatpush.bf16.msrb.mxu2 %v11468_v4  ;;  %v7124_v45 = vpop.f32.mrf.mxu0 }
 0x453   :  { %v10377_v7 = vld [vmem:[%s19741_s1 + $0x12e8] sm:$0xf0] }
 0x454   :  { %v12786_v58 = vld [vmem:[%s19741_s1 + $0x16ac] sm:$0xf]  ;;  %v10380_v60 = vor.u32 %v12658_v48, %v10377_v7  ;;  %7413 = vmatpush.bf16.msrb.mxu3 %v11980_v51 }
 0x455   :  { %v10889_v33 = vld [vmem:[%s19741_s1 + $0x16e8] sm:$0xf0] }
 0x456   :  { %v12914_v50 = vld [vmem:[%s19741_s1 + $0x1aac] sm:$0xf]  ;;  %v10892_v61 = vor.u32 %v12786_v58, %v10889_v33  ;;  %7375 = vmatpush.bf16.msrb.mxu0 %v10380_v60  ;;  %v7137_v58 = vpop.f32.mrf.mxu1 }
 0x457   :  { %v11401_v53 = vld [vmem:[%s19741_s1 + $0x1ae8] sm:$0xf0]  ;;  %v8847_v58 = vld [vmem:[%s19741_s1 + $0x6b0] sm:$0xf] }
 0x458   :  { %v13042_v23 = vld [vmem:[%s19741_s1 + $0x1eac] sm:$0xf]  ;;  %v11404_v62 = vor.u32 %v12914_v50, %v11401_v53  ;;  %7388 = vmatpush.bf16.msrb.mxu1 %v10892_v61 }
 0x459   :  { %v11913_v59 = vld [vmem:[%s19741_s1 + $0x1ee8] sm:$0xf0] }
 0x45a   :  { %v12642_v26 = vld [vmem:[%s19741_s1 + $0x122c] sm:$0xf]  ;;  %v11916_v18 = vor.u32 %v13042_v23, %v11913_v59  ;;  %7401 = vmatpush.bf16.msrb.mxu2 %v11404_v62 }
 0x45b   :  { %v10313_v22 = vld [vmem:[%s19741_s1 + $0x1268] sm:$0xf0] }
 0x45c   :  { %v12770_v20 = vld [vmem:[%s19741_s1 + $0x162c] sm:$0xf]  ;;  %v10316_v46 = vor.u32 %v12642_v26, %v10313_v22  ;;  %7414 = vmatpush.bf16.msrb.mxu3 %v11916_v18 }
 0x45d   :  { %v10825_v55 = vld [vmem:[%s19741_s1 + $0x1668] sm:$0xf0] }
 0x45e   :  { %v12898_v52 = vld [vmem:[%s19741_s1 + $0x1a2c] sm:$0xf]  ;;  %v10828_v11 = vor.u32 %v12770_v20, %v10825_v55  ;;  %7376 = vmatpush.bf16.msrb.mxu0 %v10316_v46 }
 0x45f   :  { %v11337_v0 = vld [vmem:[%s19741_s1 + $0x1a68] sm:$0xf0] }
 0x460   :  { %v13026_v49 = vld [vmem:[%s19741_s1 + $0x1e2c] sm:$0xf]  ;;  %v11340_v12 = vor.u32 %v12898_v52, %v11337_v0  ;;  %7389 = vmatpush.bf16.msrb.mxu1 %v10828_v11  ;;  %v7150_v52 = vpop.f32.mrf.mxu2  ;;  %v7163_v11 = vpop.f32.mrf.mxu3 }
 0x461   :  { %v11849_v1 = vld [vmem:[%s19741_s1 + $0x1e68] sm:$0xf0]  ;;  %v12395_v52 = vld [vmem:[%s19741_s1 + $0xa6c] sm:$0xf0] }
 0x462   :  { %v12626_v13 = vld [vmem:[%s19741_s1 + $0x11ac] sm:$0xf]  ;;  %v11852_v29 = vor.u32 %v13026_v49, %v11849_v1  ;;  %7402 = vmatpush.bf16.msrb.mxu2 %v11340_v12  ;;  %v8463_v12 = vld [vmem:[%s19741_s1 + $0x3b0] sm:$0xf] }
 0x463   :  { %v10249_v14 = vld [vmem:[%s19741_s1 + $0x11e8] sm:$0xf0] }
 0x464   :  { %v12754_v15 = vld [vmem:[%s19741_s1 + $0x15ac] sm:$0xf]  ;;  %v10252_v19 = vor.u32 %v12626_v13, %v10249_v14  ;;  %7415 = vmatpush.bf16.msrb.mxu3 %v11852_v29  ;;  %v12187_v13 = vld [vmem:[%s19741_s1 + $0x3ec] sm:$0xf0] }
 0x465   :  { %v10761_v30 = vld [vmem:[%s19741_s1 + $0x15e8] sm:$0xf0]  ;;  %v8975_v14 = vld [vmem:[%s19741_s1 + $0x7b0] sm:$0xf] }
 0x466   :  { %v12882_v31 = vld [vmem:[%s19741_s1 + $0x19ac] sm:$0xf]  ;;  %v10764_v47 = vor.u32 %v12754_v15, %v10761_v30  ;;  %7377 = vmatpush.bf16.msrb.mxu0 %v10252_v19  ;;  %v12315_v29 = vld [vmem:[%s19741_s1 + $0x7ec] sm:$0xf0] }
 0x467   :  { %v11273_v32 = vld [vmem:[%s19741_s1 + $0x19e8] sm:$0xf0]  ;;  %v9487_v30 = vld [vmem:[%s19741_s1 + $0xbb0] sm:$0xf] }
 0x468   :  { %v13010_v39 = vld [vmem:[%s19741_s1 + $0x1dac] sm:$0xf]  ;;  %v11276_v21 = vor.u32 %v12882_v31, %v11273_v32  ;;  %7390 = vmatpush.bf16.msrb.mxu1 %v10764_v47  ;;  %v12443_v31 = vld [vmem:[%s19741_s1 + $0xbec] sm:$0xf0] }
 0x469   :  { %v11785_v44 = vld [vmem:[%s19741_s1 + $0x1de8] sm:$0xf0]  ;;  %v12571_v19 = vld [vmem:[%s19741_s1 + $0xfec] sm:$0xf0] }
 0x46a   :  { %v12610_v42 = vld [vmem:[%s19741_s1 + $0x112c] sm:$0xf]  ;;  %v11788_v27 = vor.u32 %v13010_v39, %v11785_v44  ;;  %7403 = vmatpush.bf16.msrb.mxu2 %v11276_v21  ;;  %v9999_v44 = vld [vmem:[%s19741_s1 + $0xfb0] sm:$0xf]  ;;  %v8464_v21 = vor.u32 %v12187_v13, %v8463_v12 }
 0x46b   :  { %v10185_v24 = vld [vmem:[%s19741_s1 + $0x1168] sm:$0xf0]  ;;  %v8207_v13 = vld [vmem:[%s19741_s1 + $0x1b0] sm:$0xf] }
 0x46c   :  { %v12738_v5 = vld [vmem:[%s19741_s1 + $0x152c] sm:$0xf]  ;;  %v10188_v6 = vor.u32 %v12610_v42, %v10185_v24  ;;  %7416 = vmatpush.bf16.msrb.mxu3 %v11788_v27  ;;  %v8976_v42 = vor.u32 %v12315_v29, %v8975_v14  ;;  %v9488_v24 = vor.u32 %v12443_v31, %v9487_v30  ;;  %v8399_v27 = vld [vmem:[%s19741_s1 + $0x330] sm:$0xf]  ;;  %v7187_v30 = vpop.f32.mrf.mxu1 }
 0x46d   :  { %v10697_v3 = vld [vmem:[%s19741_s1 + $0x1568] sm:$0xf0]  ;;  %v12123_v14 = vld [vmem:[%s19741_s1 + $0x1ec] sm:$0xf0] }
 0x46e   :  { %v12866_v25 = vld [vmem:[%s19741_s1 + $0x192c] sm:$0xf]  ;;  %v10700_v10 = vor.u32 %v12738_v5, %v10697_v3  ;;  %7378 = vmatpush.bf16.msrb.mxu0 %v10188_v6  ;;  %v7136_v5 = vadd.f32 %v17975_v28, %v17964_v2  ;;  %v12171_v3 = vld [vmem:[%s19741_s1 + $0x36c] sm:$0xf0] }
 0x46f   :  { %v11209_v54 = vld [vmem:[%s19741_s1 + $0x1968] sm:$0xf0]  ;;  %v9423_v2 = vld [vmem:[%s19741_s1 + $0xb30] sm:$0xf]  ;;  %v8400_v45 = vor.u32 %v12171_v3, %v8399_v27 }
 0x470   :  { %v12994_v41 = vld [vmem:[%s19741_s1 + $0x1d2c] sm:$0xf]  ;;  %v11212_v57 = vor.u32 %v12866_v25, %v11209_v54  ;;  %7391 = vmatpush.bf16.msrb.mxu1 %v10700_v10  ;;  %v8911_v25 = vld [vmem:[%s19741_s1 + $0x730] sm:$0xf]  ;;  %v10000_v54 = vor.u32 %v12571_v19, %v9999_v44 }
 0x471   :  { %v11721_v56 = vld [vmem:[%s19741_s1 + $0x1d68] sm:$0xf0]  ;;  %v12427_v28 = vld [vmem:[%s19741_s1 + $0xb6c] sm:$0xf0] }
 0x472   :  { %v12594_v4 = vld [vmem:[%s19741_s1 + $0x10ac] sm:$0xf]  ;;  %v11724_v51 = vor.u32 %v12994_v41, %v11721_v56  ;;  %7404 = vmatpush.bf16.msrb.mxu2 %v11212_v57  ;;  %v12299_v41 = vld [vmem:[%s19741_s1 + $0x76c] sm:$0xf0]  ;;  %v9424_v57 = vor.u32 %v12427_v28, %v9423_v2 }
 0x473   :  { %v10121_v48 = vld [vmem:[%s19741_s1 + $0x10e8] sm:$0xf0]  ;;  %v9935_v56 = vld [vmem:[%s19741_s1 + $0xf30] sm:$0xf]  ;;  %v8912_v10 = vor.u32 %v12299_v41, %v8911_v25  ;;  %v7200_v41 = vpop.f32.mrf.mxu2 }
 0x474   :  { %v12722_v7 = vld [vmem:[%s19741_s1 + $0x14ac] sm:$0xf]  ;;  %v10124_v60 = vor.u32 %v12594_v4, %v10121_v48  ;;  %7417 = vmatpush.bf16.msrb.mxu3 %v11724_v51  ;;  %v12555_v6 = vld [vmem:[%s19741_s1 + $0xf6c] sm:$0xf0]  ;;  %v7149_v4 = vadd.f32 %v18001_v43, %v7136_v5 }
 0x475   :  { %v10633_v33 = vld [vmem:[%s19741_s1 + $0x14e8] sm:$0xf0]  ;;  %v8335_v48 = vld [vmem:[%s19741_s1 + $0x2b0] sm:$0xf]  ;;  %v9936_v51 = vor.u32 %v12555_v6, %v9935_v56 }
 0x476   :  { %v12850_v50 = vld [vmem:[%s19741_s1 + $0x18ac] sm:$0xf]  ;;  %v10636_v26 = vor.u32 %v12722_v7, %v10633_v33  ;;  %7379 = vmatpush.bf16.msrb.mxu0 %v10124_v60  ;;  %v12155_v7 = vld [vmem:[%s19741_s1 + $0x2ec] sm:$0xf0]  ;;  %v7162_v60 = vadd.f32 %v18012_v8, %v7149_v4 }
 0x477   :  { %v11145_v53 = vld [vmem:[%s19741_s1 + $0x18e8] sm:$0xf0]  ;;  %v12283_v43 = vld [vmem:[%s19741_s1 + $0x6ec] sm:$0xf0] }
 0x478   :  { %v12978_v23 = vld [vmem:[%s19741_s1 + $0x1cac] sm:$0xf]  ;;  %v11148_v22 = vor.u32 %v12850_v50, %v11145_v53  ;;  %7392 = vmatpush.bf16.msrb.mxu1 %v10636_v26  ;;  %v9359_v33 = vld [vmem:[%s19741_s1 + $0xab0] sm:$0xf] }
 0x479   :  { %v11657_v59 = vld [vmem:[%s19741_s1 + $0x1ce8] sm:$0xf0]  ;;  %v12411_v50 = vld [vmem:[%s19741_s1 + $0xaec] sm:$0xf0] }
 0x47a   :  { %v12578_v61 = vld [vmem:[%s19741_s1 + $0x102c] sm:$0xf]  ;;  %v11660_v0 = vor.u32 %v12978_v23, %v11657_v59  ;;  %7405 = vmatpush.bf16.msrb.mxu2 %v11148_v22  ;;  %v9871_v53 = vld [vmem:[%s19741_s1 + $0xeb0] sm:$0xf]  ;;  %v8336_v59 = vor.u32 %v12155_v7, %v8335_v48 }
 0x47b   :  { %v10057_v62 = vld [vmem:[%s19741_s1 + $0x1068] sm:$0xf0]  ;;  %v12539_v23 = vld [vmem:[%s19741_s1 + $0xeec] sm:$0xf0] }
 0x47c   :  { %v12706_v20 = vld [vmem:[%s19741_s1 + $0x142c] sm:$0xf]  ;;  %v10060_v15 = vor.u32 %v12578_v61, %v10057_v62  ;;  %7418 = vmatpush.bf16.msrb.mxu3 %v11660_v0  ;;  %v8848_v61 = vor.u32 %v12283_v43, %v8847_v58  ;;  %v9360_v62 = vor.u32 %v12411_v50, %v9359_v33  ;;  %v8271_v26 = vld [vmem:[%s19741_s1 + $0x230] sm:$0xf]  ;;  %v7906_v58 = vperm.slane %v17797_v36, 1 }
 0x47d   :  { %v10569_v18 = vld [vmem:[%s19741_s1 + $0x1468] sm:$0xf0]  ;;  %v12139_v22 = vld [vmem:[%s19741_s1 + $0x26c] sm:$0xf0] }
 0x47e   :  { %v12834_v55 = vld [vmem:[%s19741_s1 + $0x182c] sm:$0xf]  ;;  %v10572_v32 = vor.u32 %v12706_v20, %v10569_v18  ;;  %7380 = vmatpush.bf16.msrb.mxu0 %v10060_v15  ;;  %v8783_v20 = vld [vmem:[%s19741_s1 + $0x630] sm:$0xf]  ;;  %v9872_v18 = vor.u32 %v12539_v23, %v9871_v53  ;;  %v7189_v23 = vpop.f32.mrf.mxu1 }
 0x47f   :  { %v11081_v49 = vld [vmem:[%s19741_s1 + $0x1868] sm:$0xf0]  ;;  %v12267_v8 = vld [vmem:[%s19741_s1 + $0x66c] sm:$0xf0] }
 0x480   :  { %v12962_v1 = vld [vmem:[%s19741_s1 + $0x1c2c] sm:$0xf]  ;;  %v11084_v39 = vor.u32 %v12834_v55, %v11081_v49  ;;  %7393 = vmatpush.bf16.msrb.mxu1 %v10572_v32  ;;  %v9295_v55 = vld [vmem:[%s19741_s1 + $0xa30] sm:$0xf]  ;;  %v8784_v11 = vor.u32 %v12267_v8, %v8783_v20 }
 0x481   :  { %v11593_v46 = vld [vmem:[%s19741_s1 + $0x1c68] sm:$0xf0]  ;;  %7381 = vmatmul.bf16.vlgmr.msrb.gmra.mxu0 %v13590_v37  ;;  %v9807_v0 = vld [vmem:[%s19741_s1 + $0xe30] sm:$0xf]  ;;  %v9296_v12 = vor.u32 %v12395_v52, %v9295_v55 }
 0x482   :  { %v11596_v47 = vor.u32 %v12962_v1, %v11593_v46  ;;  %7406 = vmatpush.bf16.msrb.mxu2 %v11084_v39  ;;  %7425 = vmatpush.bf16.msra.mxu0 %v8464_v21  ;;  %v12523_v49 = vld [vmem:[%s19741_s1 + $0xe6c] sm:$0xf0]  ;;  %v8272_v1 = vor.u32 %v12139_v22, %v8271_v26  ;;  %v7174_v46 = vpop.f32.mrf.mxu0 }
 0x483   :  { %7394 = vmatmul.bf16.vlgmr.msrb.gmra.mxu1 %v13594_v40  ;;  %v8719_v15 = vld [vmem:[%s19741_s1 + $0x5b0] sm:$0xf]  ;;  %v7175_v29 = vadd.f32 %v7174_v46, %v7162_v60  ;;  %v9808_v31 = vor.u32 %v12523_v49, %v9807_v0 }
 0x484   :  { %7419 = vmatpush.bf16.msrb.mxu3 %v11596_v47  ;;  %7438 = vmatpush.bf16.msra.mxu1 %v8976_v42  ;;  %v12251_v32 = vld [vmem:[%s19741_s1 + $0x5ec] sm:$0xf0]  ;;  %v8208_v42 = vor.u32 %v12123_v14, %v8207_v13 }
 0x485   :  { %7407 = vmatmul.bf16.vlgmr.msrb.gmra.mxu2 %v13582_v34  ;;  %v9231_v39 = vld [vmem:[%s19741_s1 + $0x9b0] sm:$0xf]  ;;  %v7188_v21 = vadd.f32 %v7187_v30, %v7175_v29  ;;  %v8720_v5 = vor.u32 %v12251_v32, %v8719_v15 }
 0x486   :  { %7451 = vmatpush.bf16.msra.mxu2 %v9488_v24  ;;  %7426 = vmatpush.bf16.msra.mxu0 %v8400_v45  ;;  %v12379_v44 = vld [vmem:[%s19741_s1 + $0x9ec] sm:$0xf0]  ;;  %v7213_v45 = vpop.f32.mrf.mxu3 }
 0x487   :  { %7420 = vmatmul.bf16.vlgmr.msrb.gmra.mxu3 %v13592_v38  ;;  %v9743_v19 = vld [vmem:[%s19741_s1 + $0xdb0] sm:$0xf]  ;;  %v9232_v27 = vor.u32 %v12379_v44, %v9231_v39  ;;  %v7201_v6 = vadd.f32 %v7200_v41, %v7188_v21 }
 0x488   :  { %7464 = vmatpush.bf16.msra.mxu3 %v10000_v54  ;;  %7439 = vmatpush.bf16.msra.mxu1 %v8912_v10  ;;  %v12507_v47 = vld [vmem:[%s19741_s1 + $0xdec] sm:$0xf0]  ;;  %v7854_v10 = vperm.slane %v17780_v35, 1 }
 0x489   :  { %v8143_v24 = vld [vmem:[%s19741_s1 + $0x130] sm:$0xf]  ;;  %v9744_v2 = vor.u32 %v12507_v47, %v9743_v19  ;;  %v7214_v7 = vadd.f32 %v7213_v45, %v7201_v6 }
 0x48a   :  { %7452 = vmatpush.bf16.msra.mxu2 %v9424_v57  ;;  %7427 = vmatpush.bf16.msra.mxu0 %v8336_v59  ;;  %v12107_v3 = vld [vmem:[%s19741_s1 + $0x16c] sm:$0xf0] }
 0x48b   :  { %v8655_v25 = vld [vmem:[%s19741_s1 + $0x530] sm:$0xf]  ;;  %v8144_v48 = vor.u32 %v12107_v3, %v8143_v24  ;;  %v7886_v59 = vmul.f32 %v7854_v10, %v7214_v7 }
 0x48c   :  { %7465 = vmatpush.bf16.msra.mxu3 %v9936_v51  ;;  %7440 = vmatpush.bf16.msra.mxu1 %v8848_v61  ;;  %v12235_v54 = vld [vmem:[%s19741_s1 + $0x56c] sm:$0xf0]  ;;  %v7176_v51 = vpop.f32.mrf.mxu0 }
 0x48d   :  { %v9167_v28 = vld [vmem:[%s19741_s1 + $0x930] sm:$0xf]  ;;  %v8656_v43 = vor.u32 %v12235_v54, %v8655_v25  ;;  %v7938_v20 = vadd.f32 %v7906_v58, %v7886_v59 }
 0x48e   :  { %7453 = vmatpush.bf16.msra.mxu2 %v9360_v62  ;;  %7428 = vmatpush.bf16.msra.mxu0 %v8272_v1  ;;  %v12363_v56 = vld [vmem:[%s19741_s1 + $0x96c] sm:$0xf0]  ;;  %v7215_v29 = vpop.f32.mrf.mxu3 }
 0x48f   :  { %v9679_v57 = vld [vmem:[%s19741_s1 + $0xd30] sm:$0xf]  ;;  %v9168_v33 = vor.u32 %v12363_v56, %v9167_v28  ;;  %7954 = vst [vmem:[%s19745_s4 + $0x48] sm:$0xff] %v7938_v20  ;;  %v18384_v29 = vpop.f32.mrf.mxu1 }
 0x490   :  { %7466 = vmatpush.bf16.msra.mxu3 %v9872_v18  ;;  %7441 = vmatpush.bf16.msra.mxu1 %v8784_v11  ;;  %v12491_v4 = vld [vmem:[%s19741_s1 + $0xd6c] sm:$0xf0] }
 0x491   :  { %v8079_v35 = vld [vmem:[%s19741_s1 + $0xb0] sm:$0xf]  ;;  %v9680_v36 = vor.u32 %v12491_v4, %v9679_v57 }
 0x492   :  { %7454 = vmatpush.bf16.msra.mxu2 %v9296_v12  ;;  %7429 = vmatpush.bf16.msra.mxu0 %v8208_v42  ;;  %v12091_v50 = vld [vmem:[%s19741_s1 + $0xec] sm:$0xf0]  ;;  %v7202_v12 = vpop.f32.mrf.mxu2 }
 0x493   :  { %v8591_v53 = vld [vmem:[%s19741_s1 + $0x4b0] sm:$0xf]  ;;  %v8080_v18 = vor.u32 %v12091_v50, %v8079_v35 }
 0x494   :  { %7467 = vmatpush.bf16.msra.mxu3 %v9808_v31  ;;  %7442 = vmatpush.bf16.msra.mxu1 %v8720_v5  ;;  %v12219_v60 = vld [vmem:[%s19741_s1 + $0x4ec] sm:$0xf0] }
 0x495   :  { %v9103_v61 = vld [vmem:[%s19741_s1 + $0x8b0] sm:$0xf]  ;;  %v8592_v0 = vor.u32 %v12219_v60, %v8591_v53 }
 0x496   :  { %7455 = vmatpush.bf16.msra.mxu2 %v9232_v27  ;;  %v12347_v62 = vld [vmem:[%s19741_s1 + $0x8ec] sm:$0xf0]  ;;  %7430 = vmatpush.bf16.msra.mxu0 %v8144_v48 }
 0x497   :  { %v9615_v26 = vld [vmem:[%s19741_s1 + $0xcb0] sm:$0xf]  ;;  %v9104_v49 = vor.u32 %v12347_v62, %v9103_v61 }
 0x498   :  { %7468 = vmatpush.bf16.msra.mxu3 %v9744_v2  ;;  %v12475_v22 = vld [vmem:[%s19741_s1 + $0xcec] sm:$0xf0]  ;;  %7443 = vmatpush.bf16.msra.mxu1 %v8656_v43 }
 0x499   :  { %v8015_v8 = vld [vmem:[%s19741_s1 + $0x30] sm:$0xf]  ;;  %v9616_v13 = vor.u32 %v12475_v22, %v9615_v26 }
 0x49a   :  { %v12075_v55 = vld [vmem:[%s19741_s1 + $0x6c] sm:$0xf0]  ;;  %7456 = vmatpush.bf16.msra.mxu2 %v9168_v33  ;;  %7431 = vmatpush.bf16.msra.mxu0 %v8080_v18 }
 0x49b   :  { %v8527_v52 = vld [vmem:[%s19741_s1 + $0x430] sm:$0xf]  ;;  %v8016_v39 = vor.u32 %v12075_v55, %v8015_v8 }
 0x49c   :  { %v12203_v1 = vld [vmem:[%s19741_s1 + $0x46c] sm:$0xf0]  ;;  %7469 = vmatpush.bf16.msra.mxu3 %v9680_v36  ;;  %7444 = vmatpush.bf16.msra.mxu1 %v8592_v0 }
 0x49d   :  { %v9039_v46 = vld [vmem:[%s19741_s1 + $0x830] sm:$0xf]  ;;  %v8528_v21 = vor.u32 %v12203_v1, %v8527_v52 }
 0x49e   :  { %v12331_v11 = vld [vmem:[%s19741_s1 + $0x86c] sm:$0xf0]  ;;  %7457 = vmatpush.bf16.msra.mxu2 %v9104_v49  ;;  %7432 = vmatpush.bf16.msra.mxu0 %v8016_v39 }
 0x49f   :  { %v9551_v14 = vld [vmem:[%s19741_s1 + $0xc30] sm:$0xf]  ;;  %v9040_v42 = vor.u32 %v12331_v11, %v9039_v46  ;;  %v18373_v46 = vpop.f32.mrf.mxu0 }
 0x4a0   :  { %v12459_v15 = vld [vmem:[%s19741_s1 + $0xc6c] sm:$0xf0]  ;;  %7470 = vmatpush.bf16.msra.mxu3 %v9616_v13  ;;  %7445 = vmatpush.bf16.msra.mxu1 %v8528_v21 }
 0x4a1   :  { %v10511_v30 = vld [vmem:[%s19741_s1 + $0x13b0] sm:$0xf]  ;;  %v9552_v27 = vor.u32 %v12459_v15, %v9551_v14  ;;  %7433 = vmatmul.bf16.vlgmr.msra.gmra.mxu0 %v13402_v9 }
 0x4a2   :  { %v12699_v31 = vld [vmem:[%s19741_s1 + $0x13ec] sm:$0xf0]  ;;  %7458 = vmatpush.bf16.msra.mxu2 %v9040_v42 }
 0x4a3   :  { %v11023_v32 = vld [vmem:[%s19741_s1 + $0x17b0] sm:$0xf]  ;;  %v10512_v3 = vor.u32 %v12699_v31, %v10511_v30  ;;  %7446 = vmatmul.bf16.vlgmr.msra.gmra.mxu1 %v13421_v17 }
 0x4a4   :  { %v12827_v44 = vld [vmem:[%s19741_s1 + $0x17ec] sm:$0xf0]  ;;  %7471 = vmatpush.bf16.msra.mxu3 %v9552_v27 }
 0x4a5   :  { %v11535_v19 = vld [vmem:[%s19741_s1 + $0x1bb0] sm:$0xf]  ;;  %v11024_v25 = vor.u32 %v12827_v44, %v11023_v32  ;;  %7477 = vmatpush.bf16.msrb.mxu0 %v10512_v3  ;;  %7459 = vmatmul.bf16.vlgmr.msra.gmra.mxu2 %v13381_v63  ;;  %v18410_v3 = vpop.f32.mrf.mxu2 }
 0x4a6   :  { %v12955_v47 = vld [vmem:[%s19741_s1 + $0x1bec] sm:$0xf0] }
 0x4a7   :  { %v12047_v24 = vld [vmem:[%s19741_s1 + $0x1fb0] sm:$0xf]  ;;  %v11536_v54 = vor.u32 %v12955_v47, %v11535_v19  ;;  %7490 = vmatpush.bf16.msrb.mxu1 %v11024_v25  ;;  %7472 = vmatmul.bf16.vlgmr.msra.gmra.mxu3 %v13419_v16 }
 0x4a8   :  { %v13083_v5 = vld [vmem:[%s19741_s1 + $0x1fec] sm:$0xf0] }
 0x4a9   :  { %v10447_v41 = vld [vmem:[%s19741_s1 + $0x1330] sm:$0xf]  ;;  %v12048_v56 = vor.u32 %v13083_v5, %v12047_v24  ;;  %7503 = vmatpush.bf16.msrb.mxu2 %v11536_v54 }
 0x4aa   :  { %v12683_v2 = vld [vmem:[%s19741_s1 + $0x136c] sm:$0xf0] }
 0x4ab   :  { %v10959_v28 = vld [vmem:[%s19741_s1 + $0x1730] sm:$0xf]  ;;  %v10448_v48 = vor.u32 %v12683_v2, %v10447_v41  ;;  %7516 = vmatpush.bf16.msrb.mxu3 %v12048_v56 }
 0x4ac   :  { %v12811_v6 = vld [vmem:[%s19741_s1 + $0x176c] sm:$0xf0] }
 0x4ad   :  { %v11471_v45 = vld [vmem:[%s19741_s1 + $0x1b30] sm:$0xf]  ;;  %v10960_v7 = vor.u32 %v12811_v6, %v10959_v28  ;;  %7478 = vmatpush.bf16.msrb.mxu0 %v10448_v48  ;;  %v18421_v28 = vpop.f32.mrf.mxu3 }
 0x4ae   :  { %v12939_v10 = vld [vmem:[%s19741_s1 + $0x1b6c] sm:$0xf0] }
 0x4af   :  { %v11983_v57 = vld [vmem:[%s19741_s1 + $0x1f30] sm:$0xf]  ;;  %v11472_v58 = vor.u32 %v12939_v10, %v11471_v45  ;;  %7491 = vmatpush.bf16.msrb.mxu1 %v10960_v7  ;;  %v7228_v10 = vpop.f32.mrf.mxu0 }
 0x4b0   :  { %v13067_v4 = vld [vmem:[%s19741_s1 + $0x1f6c] sm:$0xf0] }
 0x4b1   :  { %v10383_v51 = vld [vmem:[%s19741_s1 + $0x12b0] sm:$0xf]  ;;  %v11984_v35 = vor.u32 %v13067_v4, %v11983_v57  ;;  %7504 = vmatpush.bf16.msrb.mxu2 %v11472_v58 }
 0x4b2   :  { %v12667_v43 = vld [vmem:[%s19741_s1 + $0x12ec] sm:$0xf0] }
 0x4b3   :  { %v10895_v33 = vld [vmem:[%s19741_s1 + $0x16b0] sm:$0xf]  ;;  %v10384_v60 = vor.u32 %v12667_v43, %v10383_v51  ;;  %7517 = vmatpush.bf16.msrb.mxu3 %v11984_v35  ;;  %v7241_v51 = vpop.f32.mrf.mxu1 }
 0x4b4   :  { %v12795_v50 = vld [vmem:[%s19741_s1 + $0x16ec] sm:$0xf0]  ;;  %v12403_v51 = vld [vmem:[%s19741_s1 + $0xab4] sm:$0xf] }
 0x4b5   :  { %v11407_v53 = vld [vmem:[%s19741_s1 + $0x1ab0] sm:$0xf]  ;;  %v10896_v61 = vor.u32 %v12795_v50, %v10895_v33  ;;  %7479 = vmatpush.bf16.msrb.mxu0 %v10384_v60 }
 0x4b6   :  { %v12923_v23 = vld [vmem:[%s19741_s1 + $0x1aec] sm:$0xf0] }
 0x4b7   :  { %v11919_v36 = vld [vmem:[%s19741_s1 + $0x1eb0] sm:$0xf]  ;;  %v11408_v62 = vor.u32 %v12923_v23, %v11407_v53  ;;  %7492 = vmatpush.bf16.msrb.mxu1 %v10896_v61 }
 0x4b8   :  { %v13051_v59 = vld [vmem:[%s19741_s1 + $0x1eec] sm:$0xf0] }
 0x4b9   :  { %v10319_v26 = vld [vmem:[%s19741_s1 + $0x1230] sm:$0xf]  ;;  %v11920_v18 = vor.u32 %v13051_v59, %v11919_v36  ;;  %7505 = vmatpush.bf16.msrb.mxu2 %v11408_v62 }
 0x4ba   :  { %v12651_v22 = vld [vmem:[%s19741_s1 + $0x126c] sm:$0xf0] }
 0x4bb   :  { %v10831_v20 = vld [vmem:[%s19741_s1 + $0x1630] sm:$0xf]  ;;  %v10320_v1 = vor.u32 %v12651_v22, %v10319_v26  ;;  %7518 = vmatpush.bf16.msrb.mxu3 %v11920_v18  ;;  %v7254_v18 = vpop.f32.mrf.mxu2 }
 0x4bc   :  { %v12779_v8 = vld [vmem:[%s19741_s1 + $0x166c] sm:$0xf0]  ;;  %v9809_v18 = vld [vmem:[%s19741_s1 + $0xe70] sm:$0xf0] }
 0x4bd   :  { %v11343_v55 = vld [vmem:[%s19741_s1 + $0x1a30] sm:$0xf]  ;;  %v10832_v11 = vor.u32 %v12779_v8, %v10831_v20  ;;  %7480 = vmatpush.bf16.msrb.mxu0 %v10320_v1  ;;  %v12179_v1 = vld [vmem:[%s19741_s1 + $0x3b4] sm:$0xf] }
 0x4be   :  { %v12907_v52 = vld [vmem:[%s19741_s1 + $0x1a6c] sm:$0xf0] }
 0x4bf   :  { %v11855_v0 = vld [vmem:[%s19741_s1 + $0x1e30] sm:$0xf]  ;;  %v11344_v12 = vor.u32 %v12907_v52, %v11343_v55  ;;  %7493 = vmatpush.bf16.msrb.mxu1 %v10832_v11  ;;  %v8465_v11 = vld [vmem:[%s19741_s1 + $0x3f0] sm:$0xf0] }
 0x4c0   :  { %v13035_v49 = vld [vmem:[%s19741_s1 + $0x1e6c] sm:$0xf0] }
 0x4c1   :  { %v10255_v13 = vld [vmem:[%s19741_s1 + $0x11b0] sm:$0xf]  ;;  %v11856_v30 = vor.u32 %v13035_v49, %v11855_v0  ;;  %7506 = vmatpush.bf16.msrb.mxu2 %v11344_v12  ;;  %v7267_v49 = vpop.f32.mrf.mxu3  ;;  %v12307_v12 = vld [vmem:[%s19741_s1 + $0x7b4] sm:$0xf] }
 0x4c2   :  { %v12635_v14 = vld [vmem:[%s19741_s1 + $0x11ec] sm:$0xf0]  ;;  %v12115_v49 = vld [vmem:[%s19741_s1 + $0x1b4] sm:$0xf] }
 0x4c3   :  { %v10767_v15 = vld [vmem:[%s19741_s1 + $0x15b0] sm:$0xf]  ;;  %v10256_v47 = vor.u32 %v12635_v14, %v10255_v13  ;;  %7519 = vmatpush.bf16.msrb.mxu3 %v11856_v30  ;;  %v8977_v14 = vld [vmem:[%s19741_s1 + $0x7f0] sm:$0xf0] }
 0x4c4   :  { %v12763_v31 = vld [vmem:[%s19741_s1 + $0x15ec] sm:$0xf0]  ;;  %v9489_v30 = vld [vmem:[%s19741_s1 + $0xbf0] sm:$0xf0] }
 0x4c5   :  { %v11279_v32 = vld [vmem:[%s19741_s1 + $0x19b0] sm:$0xf]  ;;  %v10768_v21 = vor.u32 %v12763_v31, %v10767_v15  ;;  %7481 = vmatpush.bf16.msrb.mxu0 %v10256_v47  ;;  %v12435_v15 = vld [vmem:[%s19741_s1 + $0xbb4] sm:$0xf]  ;;  %v8468_v47 = vor.u32 %v12179_v1, %v8465_v11 }
 0x4c6   :  { %v12891_v39 = vld [vmem:[%s19741_s1 + $0x19ec] sm:$0xf0]  ;;  %v8209_v1 = vld [vmem:[%s19741_s1 + $0x1f0] sm:$0xf0] }
 0x4c7   :  { %v11791_v44 = vld [vmem:[%s19741_s1 + $0x1db0] sm:$0xf]  ;;  %v11280_v42 = vor.u32 %v12891_v39, %v11279_v32  ;;  %7494 = vmatpush.bf16.msrb.mxu1 %v10768_v21  ;;  %v12563_v39 = vld [vmem:[%s19741_s1 + $0xfb4] sm:$0xf]  ;;  %v8980_v21 = vor.u32 %v12307_v12, %v8977_v14 }
 0x4c8   :  { %v13019_v19 = vld [vmem:[%s19741_s1 + $0x1dec] sm:$0xf0]  ;;  %v12243_v11 = vld [vmem:[%s19741_s1 + $0x5b4] sm:$0xf] }
 0x4c9   :  { %v10191_v24 = vld [vmem:[%s19741_s1 + $0x1130] sm:$0xf]  ;;  %v11792_v25 = vor.u32 %v13019_v19, %v11791_v44  ;;  %7507 = vmatpush.bf16.msrb.mxu2 %v11280_v42  ;;  %v10001_v44 = vld [vmem:[%s19741_s1 + $0xff0] sm:$0xf0]  ;;  %v9492_v42 = vor.u32 %v12435_v15, %v9489_v30 }
 0x4ca   :  { %v12619_v5 = vld [vmem:[%s19741_s1 + $0x116c] sm:$0xf0]  ;;  %v8721_v15 = vld [vmem:[%s19741_s1 + $0x5f0] sm:$0xf0] }
 0x4cb   :  { %v10703_v27 = vld [vmem:[%s19741_s1 + $0x1530] sm:$0xf]  ;;  %v10192_v45 = vor.u32 %v12619_v5, %v10191_v24  ;;  %7520 = vmatpush.bf16.msrb.mxu3 %v11792_v25  ;;  %v7240_v24 = vadd.f32 %v18384_v29, %v18373_v46  ;;  %v12163_v5 = vld [vmem:[%s19741_s1 + $0x334] sm:$0xf] }
 0x4cc   :  { %v12747_v54 = vld [vmem:[%s19741_s1 + $0x156c] sm:$0xf0]  ;;  %v12291_v25 = vld [vmem:[%s19741_s1 + $0x734] sm:$0xf] }
 0x4cd   :  { %v11215_v41 = vld [vmem:[%s19741_s1 + $0x1930] sm:$0xf]  ;;  %v10704_v57 = vor.u32 %v12747_v54, %v10703_v27  ;;  %7482 = vmatpush.bf16.msrb.mxu0 %v10192_v45  ;;  %v8401_v27 = vld [vmem:[%s19741_s1 + $0x370] sm:$0xf0]  ;;  %v10004_v54 = vor.u32 %v12563_v39, %v10001_v44 }
 0x4ce   :  { %v12875_v2 = vld [vmem:[%s19741_s1 + $0x196c] sm:$0xf0]  ;;  %v12419_v46 = vld [vmem:[%s19741_s1 + $0xb34] sm:$0xf] }
 0x4cf   :  { %v11727_v56 = vld [vmem:[%s19741_s1 + $0x1d30] sm:$0xf]  ;;  %v11216_v4 = vor.u32 %v12875_v2, %v11215_v41  ;;  %7495 = vmatpush.bf16.msrb.mxu1 %v10704_v57  ;;  %v8913_v41 = vld [vmem:[%s19741_s1 + $0x770] sm:$0xf0]  ;;  %v7253_v57 = vadd.f32 %v18410_v3, %v7240_v24 }
 0x4d0   :  { %v13003_v6 = vld [vmem:[%s19741_s1 + $0x1d6c] sm:$0xf0]  ;;  %v9425_v29 = vld [vmem:[%s19741_s1 + $0xb70] sm:$0xf0]  ;;  %v8916_v45 = vor.u32 %v12291_v25, %v8913_v41  ;;  %v7304_v25 = vpop.f32.mrf.mxu2 }
 0x4d1   :  { %v10127_v48 = vld [vmem:[%s19741_s1 + $0x10b0] sm:$0xf]  ;;  %v11728_v43 = vor.u32 %v13003_v6, %v11727_v56  ;;  %7508 = vmatpush.bf16.msrb.mxu2 %v11216_v4  ;;  %v12547_v2 = vld [vmem:[%s19741_s1 + $0xf34] sm:$0xf]  ;;  %v8404_v6 = vor.u32 %v12163_v5, %v8401_v27  ;;  %v9428_v10 = vor.u32 %v12419_v46, %v9425_v29 }
 0x4d2   :  { %v12603_v7 = vld [vmem:[%s19741_s1 + $0x10ec] sm:$0xf0]  ;;  %v9937_v56 = vld [vmem:[%s19741_s1 + $0xf70] sm:$0xf0] }
 0x4d3   :  { %v10639_v58 = vld [vmem:[%s19741_s1 + $0x14b0] sm:$0xf]  ;;  %v10128_v36 = vor.u32 %v12603_v7, %v10127_v48  ;;  %7521 = vmatpush.bf16.msrb.mxu3 %v11728_v43  ;;  %v12147_v4 = vld [vmem:[%s19741_s1 + $0x2b4] sm:$0xf] }
 0x4d4   :  { %v12731_v33 = vld [vmem:[%s19741_s1 + $0x14ec] sm:$0xf0]  ;;  %v8337_v48 = vld [vmem:[%s19741_s1 + $0x2f0] sm:$0xf0] }
 0x4d5   :  { %v11151_v35 = vld [vmem:[%s19741_s1 + $0x18b0] sm:$0xf]  ;;  %v10640_v61 = vor.u32 %v12731_v33, %v10639_v58  ;;  %7483 = vmatpush.bf16.msrb.mxu0 %v10128_v36  ;;  %v12275_v7 = vld [vmem:[%s19741_s1 + $0x6b4] sm:$0xf]  ;;  %v9940_v58 = vor.u32 %v12547_v2, %v9937_v56  ;;  %v7317_v2 = vpop.f32.mrf.mxu3  ;;  %v18626_v56 = vld [vmem:[%s19743_s2 + $0x8] sm:$0xff] }
 0x4d6   :  { %v12859_v50 = vld [vmem:[%s19741_s1 + $0x18ec] sm:$0xf0]  ;;  %v8849_v3 = vld [vmem:[%s19741_s1 + $0x6f0] sm:$0xf0] }
 0x4d7   :  { %v11663_v53 = vld [vmem:[%s19741_s1 + $0x1cb0] sm:$0xf]  ;;  %v11152_v62 = vor.u32 %v12859_v50, %v11151_v35  ;;  %7496 = vmatpush.bf16.msrb.mxu1 %v10640_v61  ;;  %v9361_v43 = vld [vmem:[%s19741_s1 + $0xaf0] sm:$0xf0]  ;;  %v8340_v50 = vor.u32 %v12147_v4, %v8337_v48  ;;  %v18638_v48 = vld [vmem:[%s19744_s3 + $0x8] sm:$0xff] }
 0x4d8   :  { %v12987_v23 = vld [vmem:[%s19741_s1 + $0x1cec] sm:$0xf0]  ;;  %v12531_v33 = vld [vmem:[%s19741_s1 + $0xeb4] sm:$0xf]  ;;  %v9364_v36 = vor.u32 %v12403_v51, %v9361_v43 }
 0x4d9   :  { %v10063_v59 = vld [vmem:[%s19741_s1 + $0x1030] sm:$0xf]  ;;  %v11664_v8 = vor.u32 %v12987_v23, %v11663_v53  ;;  %7509 = vmatpush.bf16.msrb.mxu2 %v11152_v62  ;;  %v9873_v35 = vld [vmem:[%s19741_s1 + $0xef0] sm:$0xf0]  ;;  %v7266_v53 = vadd.f32 %v18421_v28, %v7253_v57  ;;  %v8852_v23 = vor.u32 %v12275_v7, %v8849_v3  ;;  %v7907_v7 = vperm.slane %v18638_v48, 2 }
 0x4da   :  { %v12587_v60 = vld [vmem:[%s19741_s1 + $0x106c] sm:$0xf0]  ;;  %v12259_v61 = vld [vmem:[%s19741_s1 + $0x634] sm:$0xf]  ;;  %v9876_v62 = vor.u32 %v12531_v33, %v9873_v35 }
 0x4db   :  { %v10575_v26 = vld [vmem:[%s19741_s1 + $0x1430] sm:$0xf]  ;;  %v10064_v13 = vor.u32 %v12587_v60, %v10063_v59  ;;  %7522 = vmatpush.bf16.msrb.mxu3 %v11664_v8  ;;  %v12131_v59 = vld [vmem:[%s19741_s1 + $0x234] sm:$0xf] }
 0x4dc   :  { %v12715_v22 = vld [vmem:[%s19741_s1 + $0x146c] sm:$0xf0]  ;;  %v8273_v60 = vld [vmem:[%s19741_s1 + $0x270] sm:$0xf0] }
 0x4dd   :  { %v11087_v20 = vld [vmem:[%s19741_s1 + $0x1830] sm:$0xf]  ;;  %v10576_v31 = vor.u32 %v12715_v22, %v10575_v26  ;;  %7484 = vmatpush.bf16.msrb.mxu0 %v10064_v13  ;;  %v8785_v28 = vld [vmem:[%s19741_s1 + $0x670] sm:$0xf0]  ;;  %v8276_v8 = vor.u32 %v12131_v59, %v8273_v60  ;;  %v7291_v13 = vpop.f32.mrf.mxu1 }
 0x4de   :  { %v12843_v55 = vld [vmem:[%s19741_s1 + $0x186c] sm:$0xf0]  ;;  %v12387_v26 = vld [vmem:[%s19741_s1 + $0xa34] sm:$0xf] }
 0x4df   :  { %v11599_v52 = vld [vmem:[%s19741_s1 + $0x1c30] sm:$0xf]  ;;  %v11088_v32 = vor.u32 %v12843_v55, %v11087_v20  ;;  %7497 = vmatpush.bf16.msrb.mxu1 %v10576_v31  ;;  %v9297_v22 = vld [vmem:[%s19741_s1 + $0xa70] sm:$0xf0]  ;;  %v7278_v55 = vpop.f32.mrf.mxu0 }
 0x4e0   :  { %v12971_v0 = vld [vmem:[%s19741_s1 + $0x1c6c] sm:$0xf0]  ;;  %7485 = vmatmul.bf16.vlgmr.msrb.gmra.mxu0 %v13590_v37  ;;  %v12515_v20 = vld [vmem:[%s19741_s1 + $0xe34] sm:$0xf]  ;;  %v7279_v12 = vadd.f32 %v7278_v55, %v7266_v53 }
 0x4e1   :  { %v11600_v19 = vor.u32 %v12971_v0, %v11599_v52  ;;  %7510 = vmatpush.bf16.msrb.mxu2 %v11088_v32  ;;  %7529 = vmatpush.bf16.msra.mxu0 %v8468_v47  ;;  %v8788_v52 = vor.u32 %v12259_v61, %v8785_v28  ;;  %v9300_v0 = vor.u32 %v12387_v26, %v9297_v22  ;;  %v12371_v30 = vld [vmem:[%s19741_s1 + $0x9b4] sm:$0xf] }
 0x4e2   :  { %7498 = vmatmul.bf16.vlgmr.msrb.gmra.mxu1 %v13594_v40  ;;  %v9812_v14 = vor.u32 %v12515_v20, %v9809_v18  ;;  %v9233_v31 = vld [vmem:[%s19741_s1 + $0x9f0] sm:$0xf0]  ;;  %v7292_v44 = vadd.f32 %v7291_v13, %v7279_v12 }
 0x4e3   :  { %7523 = vmatpush.bf16.msrb.mxu3 %v11600_v19  ;;  %7542 = vmatpush.bf16.msra.mxu1 %v8980_v21  ;;  %v12499_v32 = vld [vmem:[%s19741_s1 + $0xdb4] sm:$0xf]  ;;  %v8212_v19 = vor.u32 %v12115_v49, %v8209_v1  ;;  %v8724_v21 = vor.u32 %v12243_v11, %v8721_v15  ;;  %v7306_v1 = vpop.f32.mrf.mxu2 }
 0x4e4   :  { %7511 = vmatmul.bf16.vlgmr.msrb.gmra.mxu2 %v13582_v34  ;;  %v9745_v39 = vld [vmem:[%s19741_s1 + $0xdf0] sm:$0xf0]  ;;  %v7305_v29 = vadd.f32 %v7304_v25, %v7292_v44 }
 0x4e5   :  { %7555 = vmatpush.bf16.msra.mxu2 %v9492_v42  ;;  %7530 = vmatpush.bf16.msra.mxu0 %v8404_v6  ;;  %v12099_v47 = vld [vmem:[%s19741_s1 + $0x134] sm:$0xf]  ;;  %v9236_v42 = vor.u32 %v12371_v30, %v9233_v31  ;;  %v7855_v6 = vperm.slane %v18626_v56, 2 }
 0x4e6   :  { %7524 = vmatmul.bf16.vlgmr.msrb.gmra.mxu3 %v13592_v38  ;;  %v8145_v24 = vld [vmem:[%s19741_s1 + $0x170] sm:$0xf0]  ;;  %v7318_v4 = vadd.f32 %v7317_v2, %v7305_v29 }
 0x4e7   :  { %7568 = vmatpush.bf16.msra.mxu3 %v10004_v54  ;;  %7543 = vmatpush.bf16.msra.mxu1 %v8916_v45  ;;  %v12227_v5 = vld [vmem:[%s19741_s1 + $0x534] sm:$0xf]  ;;  %v9748_v54 = vor.u32 %v12499_v32, %v9745_v39  ;;  %v8148_v57 = vor.u32 %v12099_v47, %v8145_v24 }
 0x4e8   :  { %v8657_v27 = vld [vmem:[%s19741_s1 + $0x570] sm:$0xf0] }
 0x4e9   :  { %7556 = vmatpush.bf16.msra.mxu2 %v9428_v10  ;;  %7531 = vmatpush.bf16.msra.mxu0 %v8340_v50  ;;  %v12355_v41 = vld [vmem:[%s19741_s1 + $0x934] sm:$0xf]  ;;  %v8660_v3 = vor.u32 %v12227_v5, %v8657_v27  ;;  %v7293_v50 = vpop.f32.mrf.mxu1 }
 0x4ea   :  { %v9169_v46 = vld [vmem:[%s19741_s1 + $0x970] sm:$0xf0] }
 0x4eb   :  { %7569 = vmatpush.bf16.msra.mxu3 %v9940_v58  ;;  %7544 = vmatpush.bf16.msra.mxu1 %v8852_v23  ;;  %v12483_v45 = vld [vmem:[%s19741_s1 + $0xd34] sm:$0xf]  ;;  %v7280_v58 = vpop.f32.mrf.mxu0  ;;  %v9172_v51 = vor.u32 %v12355_v41, %v9169_v46  ;;  %v7887_v23 = vmul.f32 %v7855_v6, %v7318_v4 }
 0x4ec   :  { %v9681_v10 = vld [vmem:[%s19741_s1 + $0xd70] sm:$0xf0] }
 0x4ed   :  { %7557 = vmatpush.bf16.msra.mxu2 %v9364_v36  ;;  %7532 = vmatpush.bf16.msra.mxu0 %v8276_v8  ;;  %v12083_v43 = vld [vmem:[%s19741_s1 + $0xb4] sm:$0xf]  ;;  %v9684_v53 = vor.u32 %v12483_v45, %v9681_v10  ;;  %v7939_v28 = vadd.f32 %v7907_v7, %v7887_v23 }
 0x4ee   :  { %v8081_v33 = vld [vmem:[%s19741_s1 + $0xf0] sm:$0xf0] }
 0x4ef   :  { %7570 = vmatpush.bf16.msra.mxu3 %v9876_v62  ;;  %7545 = vmatpush.bf16.msra.mxu1 %v8788_v52  ;;  %v12211_v35 = vld [vmem:[%s19741_s1 + $0x4b4] sm:$0xf]  ;;  %v8084_v26 = vor.u32 %v12083_v43, %v8081_v33  ;;  %7955 = vst [vmem:[%s19745_s4 + $0x50] sm:$0xff] %v7939_v28 }
 0x4f0   :  { %v8593_v36 = vld [vmem:[%s19741_s1 + $0x4f0] sm:$0xf0] }
 0x4f1   :  { %7558 = vmatpush.bf16.msra.mxu2 %v9300_v0  ;;  %7533 = vmatpush.bf16.msra.mxu0 %v8212_v19  ;;  %v12339_v59 = vld [vmem:[%s19741_s1 + $0x8b4] sm:$0xf]  ;;  %v8596_v8 = vor.u32 %v12211_v35, %v8593_v36 }
 0x4f2   :  { %v9105_v60 = vld [vmem:[%s19741_s1 + $0x8f0] sm:$0xf0] }
 0x4f3   :  { %7571 = vmatpush.bf16.msra.mxu3 %v9812_v14  ;;  %7546 = vmatpush.bf16.msra.mxu1 %v8724_v21  ;;  %v12467_v61 = vld [vmem:[%s19741_s1 + $0xcb4] sm:$0xf]  ;;  %v9108_v55 = vor.u32 %v12339_v59, %v9105_v60  ;;  %v7319_v14 = vpop.f32.mrf.mxu3  ;;  %v18792_v1 = vpop.f32.mrf.mxu0 }
 0x4f4   :  { %v9617_v62 = vld [vmem:[%s19741_s1 + $0xcf0] sm:$0xf0] }
 0x4f5   :  { %7559 = vmatpush.bf16.msra.mxu2 %v9236_v42  ;;  %7534 = vmatpush.bf16.msra.mxu0 %v8148_v57  ;;  %v12067_v22 = vld [vmem:[%s19741_s1 + $0x34] sm:$0xf]  ;;  %v9620_v11 = vor.u32 %v12467_v61, %v9617_v62 }
 0x4f6   :  { %v8017_v20 = vld [vmem:[%s19741_s1 + $0x70] sm:$0xf0] }
 0x4f7   :  { %7572 = vmatpush.bf16.msra.mxu3 %v9748_v54  ;;  %v12195_v18 = vld [vmem:[%s19741_s1 + $0x434] sm:$0xf]  ;;  %7547 = vmatpush.bf16.msra.mxu1 %v8660_v3  ;;  %v8020_v32 = vor.u32 %v12067_v22, %v8017_v20 }
 0x4f8   :  { %v8529_v52 = vld [vmem:[%s19741_s1 + $0x470] sm:$0xf0] }
 0x4f9   :  { %7560 = vmatpush.bf16.msra.mxu2 %v9172_v51  ;;  %v12323_v0 = vld [vmem:[%s19741_s1 + $0x834] sm:$0xf]  ;;  %7535 = vmatpush.bf16.msra.mxu0 %v8084_v26  ;;  %v8532_v47 = vor.u32 %v12195_v18, %v8529_v52 }
 0x4fa   :  { %v9041_v49 = vld [vmem:[%s19741_s1 + $0x870] sm:$0xf0] }
 0x4fb   :  { %7573 = vmatpush.bf16.msra.mxu3 %v9684_v53  ;;  %v12451_v12 = vld [vmem:[%s19741_s1 + $0xc34] sm:$0xf]  ;;  %7548 = vmatpush.bf16.msra.mxu1 %v8596_v8  ;;  %v9044_v21 = vor.u32 %v12323_v0, %v9041_v49 }
 0x4fc   :  { %v9553_v13 = vld [vmem:[%s19741_s1 + $0xc70] sm:$0xf0] }
 0x4fd   :  { %v12691_v15 = vld [vmem:[%s19741_s1 + $0x13b4] sm:$0xf]  ;;  %7561 = vmatpush.bf16.msra.mxu2 %v9108_v55  ;;  %v9556_v5 = vor.u32 %v12451_v12, %v9553_v13  ;;  %7536 = vmatpush.bf16.msra.mxu0 %v8020_v32 }
 0x4fe   :  { %v10513_v30 = vld [vmem:[%s19741_s1 + $0x13f0] sm:$0xf0] }
 0x4ff   :  { %v12819_v31 = vld [vmem:[%s19741_s1 + $0x17b4] sm:$0xf]  ;;  %7574 = vmatpush.bf16.msra.mxu3 %v9620_v11  ;;  %v10516_v27 = vor.u32 %v12691_v15, %v10513_v30  ;;  %7549 = vmatpush.bf16.msra.mxu1 %v8532_v47  ;;  %v18803_v30 = vpop.f32.mrf.mxu1 }
 0x500   :  { %v11025_v39 = vld [vmem:[%s19741_s1 + $0x17f0] sm:$0xf0]  ;;  %7537 = vmatmul.bf16.vlgmr.msra.gmra.mxu0 %v13402_v9 }
 0x501   :  { %v12947_v44 = vld [vmem:[%s19741_s1 + $0x1bb4] sm:$0xf]  ;;  %v11028_v25 = vor.u32 %v12819_v31, %v11025_v39  ;;  %7562 = vmatpush.bf16.msra.mxu2 %v9044_v21  ;;  %7581 = vmatpush.bf16.msrb.mxu0 %v10516_v27 }
 0x502   :  { %v11537_v19 = vld [vmem:[%s19741_s1 + $0x1bf0] sm:$0xf0]  ;;  %7550 = vmatmul.bf16.vlgmr.msra.gmra.mxu1 %v13421_v17 }
 0x503   :  { %v13075_v42 = vld [vmem:[%s19741_s1 + $0x1fb4] sm:$0xf]  ;;  %v11540_v54 = vor.u32 %v12947_v44, %v11537_v19  ;;  %7575 = vmatpush.bf16.msra.mxu3 %v9556_v5  ;;  %7594 = vmatpush.bf16.msrb.mxu1 %v11028_v25 }
 0x504   :  { %v12049_v24 = vld [vmem:[%s19741_s1 + $0x1ff0] sm:$0xf0]  ;;  %7563 = vmatmul.bf16.vlgmr.msra.gmra.mxu2 %v13381_v63 }
 0x505   :  { %v12675_v41 = vld [vmem:[%s19741_s1 + $0x1334] sm:$0xf]  ;;  %v12052_v2 = vor.u32 %v13075_v42, %v12049_v24  ;;  %7607 = vmatpush.bf16.msrb.mxu2 %v11540_v54  ;;  %v18829_v54 = vpop.f32.mrf.mxu2 }
 0x506   :  { %v10449_v46 = vld [vmem:[%s19741_s1 + $0x1370] sm:$0xf0]  ;;  %7576 = vmatmul.bf16.vlgmr.msra.gmra.mxu3 %v13419_v16 }
 0x507   :  { %v12803_v29 = vld [vmem:[%s19741_s1 + $0x1734] sm:$0xf]  ;;  %v10452_v7 = vor.u32 %v12675_v41, %v10449_v46  ;;  %7620 = vmatpush.bf16.msrb.mxu3 %v12052_v2 }
 0x508   :  { %v10961_v6 = vld [vmem:[%s19741_s1 + $0x1770] sm:$0xf0] }
 0x509   :  { %v12931_v45 = vld [vmem:[%s19741_s1 + $0x1b34] sm:$0xf]  ;;  %v10964_v58 = vor.u32 %v12803_v29, %v10961_v6  ;;  %7582 = vmatpush.bf16.msrb.mxu0 %v10452_v7  ;;  %v18840_v6 = vpop.f32.mrf.mxu3 }
 0x50a   :  { %v11473_v10 = vld [vmem:[%s19741_s1 + $0x1b70] sm:$0xf0] }
 0x50b   :  { %v13059_v57 = vld [vmem:[%s19741_s1 + $0x1f34] sm:$0xf]  ;;  %v11476_v3 = vor.u32 %v12931_v45, %v11473_v10  ;;  %7595 = vmatpush.bf16.msrb.mxu1 %v10964_v58 }
 0x50c   :  { %v11985_v4 = vld [vmem:[%s19741_s1 + $0x1f70] sm:$0xf0] }
 0x50d   :  { %v12659_v51 = vld [vmem:[%s19741_s1 + $0x12b4] sm:$0xf]  ;;  %v11988_v35 = vor.u32 %v13059_v57, %v11985_v4  ;;  %7608 = vmatpush.bf16.msrb.mxu2 %v11476_v3  ;;  %v7332_v4 = vpop.f32.mrf.mxu0 }
 0x50e   :  { %v10385_v43 = vld [vmem:[%s19741_s1 + $0x12f0] sm:$0xf0] }
 0x50f   :  { %v12787_v33 = vld [vmem:[%s19741_s1 + $0x16b4] sm:$0xf]  ;;  %v10388_v60 = vor.u32 %v12659_v51, %v10385_v43  ;;  %7621 = vmatpush.bf16.msrb.mxu3 %v11988_v35 }
 0x510   :  { %v10897_v50 = vld [vmem:[%s19741_s1 + $0x16f0] sm:$0xf0] }
 0x511   :  { %v12915_v53 = vld [vmem:[%s19741_s1 + $0x1ab4] sm:$0xf]  ;;  %v10900_v61 = vor.u32 %v12787_v33, %v10897_v50  ;;  %7583 = vmatpush.bf16.msrb.mxu0 %v10388_v60  ;;  %v7345_v33 = vpop.f32.mrf.mxu1 }
 0x512   :  { %v11409_v23 = vld [vmem:[%s19741_s1 + $0x1af0] sm:$0xf0]  ;;  %v8855_v33 = vld [vmem:[%s19741_s1 + $0x6b8] sm:$0xf] }
 0x513   :  { %v13043_v36 = vld [vmem:[%s19741_s1 + $0x1eb4] sm:$0xf]  ;;  %v11412_v62 = vor.u32 %v12915_v53, %v11409_v23  ;;  %7596 = vmatpush.bf16.msrb.mxu1 %v10900_v61 }
 0x514   :  { %v11921_v59 = vld [vmem:[%s19741_s1 + $0x1ef0] sm:$0xf0] }
 0x515   :  { %v12643_v28 = vld [vmem:[%s19741_s1 + $0x1234] sm:$0xf]  ;;  %v11924_v20 = vor.u32 %v13043_v36, %v11921_v59  ;;  %7609 = vmatpush.bf16.msrb.mxu2 %v11412_v62 }
 0x516   :  { %v10321_v26 = vld [vmem:[%s19741_s1 + $0x1270] sm:$0xf0] }
 0x517   :  { %v12771_v22 = vld [vmem:[%s19741_s1 + $0x1634] sm:$0xf]  ;;  %v10324_v49 = vor.u32 %v12643_v28, %v10321_v26  ;;  %7622 = vmatpush.bf16.msrb.mxu3 %v11924_v20 }
 0x518   :  { %v10833_v18 = vld [vmem:[%s19741_s1 + $0x1670] sm:$0xf0] }
 0x519   :  { %v12899_v8 = vld [vmem:[%s19741_s1 + $0x1a34] sm:$0xf]  ;;  %v10836_v11 = vor.u32 %v12771_v22, %v10833_v18  ;;  %7584 = vmatpush.bf16.msrb.mxu0 %v10324_v49 }
 0x51a   :  { %v11345_v55 = vld [vmem:[%s19741_s1 + $0x1a70] sm:$0xf0] }
 0x51b   :  { %v13027_v52 = vld [vmem:[%s19741_s1 + $0x1e34] sm:$0xf]  ;;  %v11348_v12 = vor.u32 %v12899_v8, %v11345_v55  ;;  %7597 = vmatpush.bf16.msrb.mxu1 %v10836_v11  ;;  %v7358_v8 = vpop.f32.mrf.mxu2  ;;  %v7371_v11 = vpop.f32.mrf.mxu3 }
 0x51c   :  { %v11857_v0 = vld [vmem:[%s19741_s1 + $0x1e70] sm:$0xf0]  ;;  %v12396_v8 = vld [vmem:[%s19741_s1 + $0xa74] sm:$0xf0] }
 0x51d   :  { %v12627_v13 = vld [vmem:[%s19741_s1 + $0x11b4] sm:$0xf]  ;;  %v11860_v31 = vor.u32 %v13027_v52, %v11857_v0  ;;  %7610 = vmatpush.bf16.msrb.mxu2 %v11348_v12  ;;  %v8471_v12 = vld [vmem:[%s19741_s1 + $0x3b8] sm:$0xf] }
 0x51e   :  { %v10257_v14 = vld [vmem:[%s19741_s1 + $0x11f0] sm:$0xf0] }
 0x51f   :  { %v12755_v15 = vld [vmem:[%s19741_s1 + $0x15b4] sm:$0xf]  ;;  %v10260_v21 = vor.u32 %v12627_v13, %v10257_v14  ;;  %7623 = vmatpush.bf16.msrb.mxu3 %v11860_v31  ;;  %v12188_v13 = vld [vmem:[%s19741_s1 + $0x3f4] sm:$0xf0] }
 0x520   :  { %v10769_v32 = vld [vmem:[%s19741_s1 + $0x15f0] sm:$0xf0]  ;;  %v8983_v14 = vld [vmem:[%s19741_s1 + $0x7b8] sm:$0xf] }
 0x521   :  { %v12883_v39 = vld [vmem:[%s19741_s1 + $0x19b4] sm:$0xf]  ;;  %v10772_v42 = vor.u32 %v12755_v15, %v10769_v32  ;;  %7585 = vmatpush.bf16.msrb.mxu0 %v10260_v21  ;;  %v12316_v31 = vld [vmem:[%s19741_s1 + $0x7f4] sm:$0xf0] }
 0x522   :  { %v11281_v44 = vld [vmem:[%s19741_s1 + $0x19f0] sm:$0xf0]  ;;  %v9495_v32 = vld [vmem:[%s19741_s1 + $0xbb8] sm:$0xf] }
 0x523   :  { %v13011_v19 = vld [vmem:[%s19741_s1 + $0x1db4] sm:$0xf]  ;;  %v11284_v24 = vor.u32 %v12883_v39, %v11281_v44  ;;  %7598 = vmatpush.bf16.msrb.mxu1 %v10772_v42  ;;  %v12444_v39 = vld [vmem:[%s19741_s1 + $0xbf4] sm:$0xf0] }
 0x524   :  { %v11793_v47 = vld [vmem:[%s19741_s1 + $0x1df0] sm:$0xf0]  ;;  %v12572_v21 = vld [vmem:[%s19741_s1 + $0xff4] sm:$0xf0] }
 0x525   :  { %v12611_v5 = vld [vmem:[%s19741_s1 + $0x1134] sm:$0xf]  ;;  %v11796_v41 = vor.u32 %v13011_v19, %v11793_v47  ;;  %7611 = vmatpush.bf16.msrb.mxu2 %v11284_v24  ;;  %v10007_v47 = vld [vmem:[%s19741_s1 + $0xfb8] sm:$0xf]  ;;  %v8472_v24 = vor.u32 %v12188_v13, %v8471_v12 }
 0x526   :  { %v10193_v27 = vld [vmem:[%s19741_s1 + $0x1170] sm:$0xf0]  ;;  %v8215_v13 = vld [vmem:[%s19741_s1 + $0x1b8] sm:$0xf] }
 0x527   :  { %v12739_v25 = vld [vmem:[%s19741_s1 + $0x1534] sm:$0xf]  ;;  %v10196_v57 = vor.u32 %v12611_v5, %v10193_v27  ;;  %7624 = vmatpush.bf16.msrb.mxu3 %v11796_v41  ;;  %v8984_v5 = vor.u32 %v12316_v31, %v8983_v14  ;;  %v9496_v27 = vor.u32 %v12444_v39, %v9495_v32  ;;  %v8407_v41 = vld [vmem:[%s19741_s1 + $0x338] sm:$0xf]  ;;  %v7395_v32 = vpop.f32.mrf.mxu1 }
 0x528   :  { %v10705_v46 = vld [vmem:[%s19741_s1 + $0x1570] sm:$0xf0]  ;;  %v12124_v14 = vld [vmem:[%s19741_s1 + $0x1f4] sm:$0xf0] }
 0x529   :  { %v12867_v29 = vld [vmem:[%s19741_s1 + $0x1934] sm:$0xf]  ;;  %v10708_v7 = vor.u32 %v12739_v25, %v10705_v46  ;;  %7586 = vmatpush.bf16.msrb.mxu0 %v10196_v57  ;;  %v7344_v25 = vadd.f32 %v18803_v30, %v18792_v1  ;;  %v12172_v46 = vld [vmem:[%s19741_s1 + $0x374] sm:$0xf0] }
 0x52a   :  { %v11217_v2 = vld [vmem:[%s19741_s1 + $0x1970] sm:$0xf0]  ;;  %v9431_v1 = vld [vmem:[%s19741_s1 + $0xb38] sm:$0xf]  ;;  %v8408_v4 = vor.u32 %v12172_v46, %v8407_v41 }
 0x52b   :  { %v12995_v45 = vld [vmem:[%s19741_s1 + $0x1d34] sm:$0xf]  ;;  %v11220_v58 = vor.u32 %v12867_v29, %v11217_v2  ;;  %7599 = vmatpush.bf16.msrb.mxu1 %v10708_v7  ;;  %v8919_v29 = vld [vmem:[%s19741_s1 + $0x738] sm:$0xf]  ;;  %v10008_v2 = vor.u32 %v12572_v21, %v10007_v47 }
 0x52c   :  { %v11729_v10 = vld [vmem:[%s19741_s1 + $0x1d70] sm:$0xf0]  ;;  %v12428_v30 = vld [vmem:[%s19741_s1 + $0xb74] sm:$0xf0] }
 0x52d   :  { %v12595_v3 = vld [vmem:[%s19741_s1 + $0x10b4] sm:$0xf]  ;;  %v11732_v35 = vor.u32 %v12995_v45, %v11729_v10  ;;  %7612 = vmatpush.bf16.msrb.mxu2 %v11220_v58  ;;  %v12300_v45 = vld [vmem:[%s19741_s1 + $0x774] sm:$0xf0]  ;;  %v9432_v58 = vor.u32 %v12428_v30, %v9431_v1 }
 0x52e   :  { %v10129_v51 = vld [vmem:[%s19741_s1 + $0x10f0] sm:$0xf0]  ;;  %v9943_v10 = vld [vmem:[%s19741_s1 + $0xf38] sm:$0xf]  ;;  %v8920_v7 = vor.u32 %v12300_v45, %v8919_v29  ;;  %v7408_v45 = vpop.f32.mrf.mxu2 }
 0x52f   :  { %v12723_v43 = vld [vmem:[%s19741_s1 + $0x14b4] sm:$0xf]  ;;  %v10132_v60 = vor.u32 %v12595_v3, %v10129_v51  ;;  %7625 = vmatpush.bf16.msrb.mxu3 %v11732_v35  ;;  %v12556_v57 = vld [vmem:[%s19741_s1 + $0xf74] sm:$0xf0]  ;;  %v7357_v3 = vadd.f32 %v18829_v54, %v7344_v25 }
 0x530   :  { %v10641_v50 = vld [vmem:[%s19741_s1 + $0x14f0] sm:$0xf0]  ;;  %v8343_v51 = vld [vmem:[%s19741_s1 + $0x2b8] sm:$0xf]  ;;  %v9944_v35 = vor.u32 %v12556_v57, %v9943_v10 }
 0x531   :  { %v12851_v53 = vld [vmem:[%s19741_s1 + $0x18b4] sm:$0xf]  ;;  %v10644_v28 = vor.u32 %v12723_v43, %v10641_v50  ;;  %7587 = vmatpush.bf16.msrb.mxu0 %v10132_v60  ;;  %v12156_v43 = vld [vmem:[%s19741_s1 + $0x2f4] sm:$0xf0]  ;;  %v7370_v60 = vadd.f32 %v18840_v6, %v7357_v3 }
 0x532   :  { %v11153_v23 = vld [vmem:[%s19741_s1 + $0x18f0] sm:$0xf0]  ;;  %v12284_v54 = vld [vmem:[%s19741_s1 + $0x6f4] sm:$0xf0] }
 0x533   :  { %v12979_v36 = vld [vmem:[%s19741_s1 + $0x1cb4] sm:$0xf]  ;;  %v11156_v26 = vor.u32 %v12851_v53, %v11153_v23  ;;  %7600 = vmatpush.bf16.msrb.mxu1 %v10644_v28  ;;  %v9367_v50 = vld [vmem:[%s19741_s1 + $0xab8] sm:$0xf] }
 0x534   :  { %v11665_v59 = vld [vmem:[%s19741_s1 + $0x1cf0] sm:$0xf0]  ;;  %v12412_v53 = vld [vmem:[%s19741_s1 + $0xaf4] sm:$0xf0] }
 0x535   :  { %v12579_v61 = vld [vmem:[%s19741_s1 + $0x1034] sm:$0xf]  ;;  %v11668_v55 = vor.u32 %v12979_v36, %v11665_v59  ;;  %7613 = vmatpush.bf16.msrb.mxu2 %v11156_v26  ;;  %v9879_v23 = vld [vmem:[%s19741_s1 + $0xeb8] sm:$0xf]  ;;  %v8344_v59 = vor.u32 %v12156_v43, %v8343_v51 }
 0x536   :  { %v10065_v62 = vld [vmem:[%s19741_s1 + $0x1070] sm:$0xf0]  ;;  %v12540_v36 = vld [vmem:[%s19741_s1 + $0xef4] sm:$0xf0] }
 0x537   :  { %v12707_v22 = vld [vmem:[%s19741_s1 + $0x1434] sm:$0xf]  ;;  %v10068_v15 = vor.u32 %v12579_v61, %v10065_v62  ;;  %7626 = vmatpush.bf16.msrb.mxu3 %v11668_v55  ;;  %v8856_v61 = vor.u32 %v12284_v54, %v8855_v33  ;;  %v9368_v62 = vor.u32 %v12412_v53, %v9367_v50  ;;  %v8279_v28 = vld [vmem:[%s19741_s1 + $0x238] sm:$0xf]  ;;  %v7908_v33 = vperm.slane %v18638_v48, 3 }
 0x538   :  { %v10577_v20 = vld [vmem:[%s19741_s1 + $0x1470] sm:$0xf0]  ;;  %v12140_v26 = vld [vmem:[%s19741_s1 + $0x274] sm:$0xf0] }
 0x539   :  { %v12835_v18 = vld [vmem:[%s19741_s1 + $0x1834] sm:$0xf]  ;;  %v10580_v44 = vor.u32 %v12707_v22, %v10577_v20  ;;  %7588 = vmatpush.bf16.msrb.mxu0 %v10068_v15  ;;  %v8791_v22 = vld [vmem:[%s19741_s1 + $0x638] sm:$0xf]  ;;  %v9880_v20 = vor.u32 %v12540_v36, %v9879_v23  ;;  %v7397_v36 = vpop.f32.mrf.mxu1 }
 0x53a   :  { %v11089_v52 = vld [vmem:[%s19741_s1 + $0x1870] sm:$0xf0]  ;;  %v12268_v6 = vld [vmem:[%s19741_s1 + $0x674] sm:$0xf0] }
 0x53b   :  { %v12963_v0 = vld [vmem:[%s19741_s1 + $0x1c34] sm:$0xf]  ;;  %v11092_v19 = vor.u32 %v12835_v18, %v11089_v52  ;;  %7601 = vmatpush.bf16.msrb.mxu1 %v10580_v44  ;;  %v9303_v18 = vld [vmem:[%s19741_s1 + $0xa38] sm:$0xf]  ;;  %v8792_v11 = vor.u32 %v12268_v6, %v8791_v22 }
 0x53c   :  { %v11601_v49 = vld [vmem:[%s19741_s1 + $0x1c70] sm:$0xf0]  ;;  %7589 = vmatmul.bf16.vlgmr.msrb.gmra.mxu0 %v13590_v37  ;;  %v9815_v55 = vld [vmem:[%s19741_s1 + $0xe38] sm:$0xf]  ;;  %v9304_v12 = vor.u32 %v12396_v8, %v9303_v18 }
 0x53d   :  { %v11604_v42 = vor.u32 %v12963_v0, %v11601_v49  ;;  %7614 = vmatpush.bf16.msrb.mxu2 %v11092_v19  ;;  %7633 = vmatpush.bf16.msra.mxu0 %v8472_v24  ;;  %v12524_v52 = vld [vmem:[%s19741_s1 + $0xe74] sm:$0xf0]  ;;  %v8280_v0 = vor.u32 %v12140_v26, %v8279_v28  ;;  %v7382_v49 = vpop.f32.mrf.mxu0 }
 0x53e   :  { %7602 = vmatmul.bf16.vlgmr.msrb.gmra.mxu1 %v13594_v40  ;;  %v8727_v15 = vld [vmem:[%s19741_s1 + $0x5b8] sm:$0xf]  ;;  %v7383_v31 = vadd.f32 %v7382_v49, %v7370_v60  ;;  %v9816_v39 = vor.u32 %v12524_v52, %v9815_v55 }
 0x53f   :  { %7627 = vmatpush.bf16.msrb.mxu3 %v11604_v42  ;;  %7646 = vmatpush.bf16.msra.mxu1 %v8984_v5  ;;  %v12252_v44 = vld [vmem:[%s19741_s1 + $0x5f4] sm:$0xf0]  ;;  %v8216_v5 = vor.u32 %v12124_v14, %v8215_v13 }
 0x540   :  { %7615 = vmatmul.bf16.vlgmr.msrb.gmra.mxu2 %v13582_v34  ;;  %v9239_v19 = vld [vmem:[%s19741_s1 + $0x9b8] sm:$0xf]  ;;  %v7396_v24 = vadd.f32 %v7395_v32, %v7383_v31  ;;  %v8728_v25 = vor.u32 %v12252_v44, %v8727_v15 }
 0x541   :  { %7659 = vmatpush.bf16.msra.mxu2 %v9496_v27  ;;  %7634 = vmatpush.bf16.msra.mxu0 %v8408_v4  ;;  %v12380_v47 = vld [vmem:[%s19741_s1 + $0x9f4] sm:$0xf0]  ;;  %v7421_v4 = vpop.f32.mrf.mxu3 }
 0x542   :  { %7628 = vmatmul.bf16.vlgmr.msrb.gmra.mxu3 %v13592_v38  ;;  %v9751_v21 = vld [vmem:[%s19741_s1 + $0xdb8] sm:$0xf]  ;;  %v9240_v41 = vor.u32 %v12380_v47, %v9239_v19  ;;  %v7409_v57 = vadd.f32 %v7408_v45, %v7396_v24 }
 0x543   :  { %7672 = vmatpush.bf16.msra.mxu3 %v10008_v2  ;;  %7647 = vmatpush.bf16.msra.mxu1 %v8920_v7  ;;  %v12508_v42 = vld [vmem:[%s19741_s1 + $0xdf4] sm:$0xf0]  ;;  %v7856_v7 = vperm.slane %v18626_v56, 3 }
 0x544   :  { %v8151_v27 = vld [vmem:[%s19741_s1 + $0x138] sm:$0xf]  ;;  %v9752_v1 = vor.u32 %v12508_v42, %v9751_v21  ;;  %v7422_v43 = vadd.f32 %v7421_v4, %v7409_v57 }
 0x545   :  { %7660 = vmatpush.bf16.msra.mxu2 %v9432_v58  ;;  %7635 = vmatpush.bf16.msra.mxu0 %v8344_v59  ;;  %v12108_v46 = vld [vmem:[%s19741_s1 + $0x174] sm:$0xf0] }
 0x546   :  { %v8663_v29 = vld [vmem:[%s19741_s1 + $0x538] sm:$0xf]  ;;  %v8152_v51 = vor.u32 %v12108_v46, %v8151_v27  ;;  %v7888_v59 = vmul.f32 %v7856_v7, %v7422_v43 }
 0x547   :  { %7673 = vmatpush.bf16.msra.mxu3 %v9944_v35  ;;  %7648 = vmatpush.bf16.msra.mxu1 %v8856_v61  ;;  %v12236_v2 = vld [vmem:[%s19741_s1 + $0x574] sm:$0xf0]  ;;  %v7384_v35 = vpop.f32.mrf.mxu0 }
 0x548   :  { %v9175_v30 = vld [vmem:[%s19741_s1 + $0x938] sm:$0xf]  ;;  %v8664_v54 = vor.u32 %v12236_v2, %v8663_v29  ;;  %v7940_v22 = vadd.f32 %v7908_v33, %v7888_v59 }
 0x549   :  { %7661 = vmatpush.bf16.msra.mxu2 %v9368_v62  ;;  %7636 = vmatpush.bf16.msra.mxu0 %v8280_v0  ;;  %v12364_v10 = vld [vmem:[%s19741_s1 + $0x974] sm:$0xf0]  ;;  %v7423_v31 = vpop.f32.mrf.mxu3 }
 0x54a   :  { %v9687_v58 = vld [vmem:[%s19741_s1 + $0xd38] sm:$0xf]  ;;  %v9176_v50 = vor.u32 %v12364_v10, %v9175_v30  ;;  %7956 = vst [vmem:[%s19745_s4 + $0x58] sm:$0xff] %v7940_v22  ;;  %v19212_v31 = vpop.f32.mrf.mxu1 }
 0x54b   :  { %7674 = vmatpush.bf16.msra.mxu3 %v9880_v20  ;;  %7649 = vmatpush.bf16.msra.mxu1 %v8792_v11  ;;  %v12492_v3 = vld [vmem:[%s19741_s1 + $0xd74] sm:$0xf0] }
 0x54c   :  { %v8087_v56 = vld [vmem:[%s19741_s1 + $0xb8] sm:$0xf]  ;;  %v9688_v48 = vor.u32 %v12492_v3, %v9687_v58 }
 0x54d   :  { %7662 = vmatpush.bf16.msra.mxu2 %v9304_v12  ;;  %7637 = vmatpush.bf16.msra.mxu0 %v8216_v5  ;;  %v12092_v53 = vld [vmem:[%s19741_s1 + $0xf4] sm:$0xf0]  ;;  %v7410_v12 = vpop.f32.mrf.mxu2 }
 0x54e   :  { %v8599_v23 = vld [vmem:[%s19741_s1 + $0x4b8] sm:$0xf]  ;;  %v8088_v20 = vor.u32 %v12092_v53, %v8087_v56 }
 0x54f   :  { %7675 = vmatpush.bf16.msra.mxu3 %v9816_v39  ;;  %7650 = vmatpush.bf16.msra.mxu1 %v8728_v25  ;;  %v12220_v60 = vld [vmem:[%s19741_s1 + $0x4f4] sm:$0xf0] }
 0x550   :  { %v9111_v61 = vld [vmem:[%s19741_s1 + $0x8b8] sm:$0xf]  ;;  %v8600_v55 = vor.u32 %v12220_v60, %v8599_v23 }
 0x551   :  { %7663 = vmatpush.bf16.msra.mxu2 %v9240_v41  ;;  %v12348_v62 = vld [vmem:[%s19741_s1 + $0x8f4] sm:$0xf0]  ;;  %7638 = vmatpush.bf16.msra.mxu0 %v8152_v51 }
 0x552   :  { %v9623_v28 = vld [vmem:[%s19741_s1 + $0xcb8] sm:$0xf]  ;;  %v9112_v52 = vor.u32 %v12348_v62, %v9111_v61 }
 0x553   :  { %7676 = vmatpush.bf16.msra.mxu3 %v9752_v1  ;;  %v12476_v26 = vld [vmem:[%s19741_s1 + $0xcf4] sm:$0xf0]  ;;  %7651 = vmatpush.bf16.msra.mxu1 %v8664_v54 }
 0x554   :  { %v8023_v6 = vld [vmem:[%s19741_s1 + $0x38] sm:$0xf]  ;;  %v9624_v13 = vor.u32 %v12476_v26, %v9623_v28 }
 0x555   :  { %v12076_v18 = vld [vmem:[%s19741_s1 + $0x74] sm:$0xf0]  ;;  %7664 = vmatpush.bf16.msra.mxu2 %v9176_v50  ;;  %7639 = vmatpush.bf16.msra.mxu0 %v8088_v20 }
 0x556   :  { %v8535_v8 = vld [vmem:[%s19741_s1 + $0x438] sm:$0xf]  ;;  %v8024_v19 = vor.u32 %v12076_v18, %v8023_v6 }
 0x557   :  { %v12204_v0 = vld [vmem:[%s19741_s1 + $0x474] sm:$0xf0]  ;;  %7677 = vmatpush.bf16.msra.mxu3 %v9688_v48  ;;  %7652 = vmatpush.bf16.msra.mxu1 %v8600_v55 }
 0x558   :  { %v9047_v49 = vld [vmem:[%s19741_s1 + $0x838] sm:$0xf]  ;;  %v8536_v24 = vor.u32 %v12204_v0, %v8535_v8 }
 0x559   :  { %v12332_v11 = vld [vmem:[%s19741_s1 + $0x874] sm:$0xf0]  ;;  %7665 = vmatpush.bf16.msra.mxu2 %v9112_v52  ;;  %7640 = vmatpush.bf16.msra.mxu0 %v8024_v19 }
 0x55a   :  { %v9559_v14 = vld [vmem:[%s19741_s1 + $0xc38] sm:$0xf]  ;;  %v9048_v5 = vor.u32 %v12332_v11, %v9047_v49  ;;  %v19201_v49 = vpop.f32.mrf.mxu0 }
 0x55b   :  { %v12460_v15 = vld [vmem:[%s19741_s1 + $0xc74] sm:$0xf0]  ;;  %7678 = vmatpush.bf16.msra.mxu3 %v9624_v13  ;;  %7653 = vmatpush.bf16.msra.mxu1 %v8536_v24 }
 0x55c   :  { %v10519_v32 = vld [vmem:[%s19741_s1 + $0x13b8] sm:$0xf]  ;;  %v9560_v41 = vor.u32 %v12460_v15, %v9559_v14  ;;  %7641 = vmatmul.bf16.vlgmr.msra.gmra.mxu0 %v13402_v9 }
 0x55d   :  { %v12700_v39 = vld [vmem:[%s19741_s1 + $0x13f4] sm:$0xf0]  ;;  %7666 = vmatpush.bf16.msra.mxu2 %v9048_v5 }
 0x55e   :  { %v11031_v44 = vld [vmem:[%s19741_s1 + $0x17b8] sm:$0xf]  ;;  %v10520_v46 = vor.u32 %v12700_v39, %v10519_v32  ;;  %7654 = vmatmul.bf16.vlgmr.msra.gmra.mxu1 %v13421_v17 }
 0x55f   :  { %v12828_v47 = vld [vmem:[%s19741_s1 + $0x17f4] sm:$0xf0]  ;;  %7679 = vmatpush.bf16.msra.mxu3 %v9560_v41 }
 0x560   :  { %v11543_v21 = vld [vmem:[%s19741_s1 + $0x1bb8] sm:$0xf]  ;;  %v11032_v29 = vor.u32 %v12828_v47, %v11031_v44  ;;  %7685 = vmatpush.bf16.msrb.mxu0 %v10520_v46  ;;  %7667 = vmatmul.bf16.vlgmr.msra.gmra.mxu2 %v13381_v63  ;;  %v19238_v46 = vpop.f32.mrf.mxu2 }
 0x561   :  { %v12956_v42 = vld [vmem:[%s19741_s1 + $0x1bf4] sm:$0xf0] }
 0x562   :  { %v12055_v27 = vld [vmem:[%s19741_s1 + $0x1fb8] sm:$0xf]  ;;  %v11544_v2 = vor.u32 %v12956_v42, %v11543_v21  ;;  %7698 = vmatpush.bf16.msrb.mxu1 %v11032_v29  ;;  %7680 = vmatmul.bf16.vlgmr.msra.gmra.mxu3 %v13419_v16 }
 0x563   :  { %v13084_v25 = vld [vmem:[%s19741_s1 + $0x1ff4] sm:$0xf0] }
 0x564   :  { %v10455_v45 = vld [vmem:[%s19741_s1 + $0x1338] sm:$0xf]  ;;  %v12056_v10 = vor.u32 %v13084_v25, %v12055_v27  ;;  %7711 = vmatpush.bf16.msrb.mxu2 %v11544_v2 }
 0x565   :  { %v12684_v1 = vld [vmem:[%s19741_s1 + $0x1374] sm:$0xf0] }
 0x566   :  { %v10967_v30 = vld [vmem:[%s19741_s1 + $0x1738] sm:$0xf]  ;;  %v10456_v51 = vor.u32 %v12684_v1, %v10455_v45  ;;  %7724 = vmatpush.bf16.msrb.mxu3 %v12056_v10 }
 0x567   :  { %v12812_v57 = vld [vmem:[%s19741_s1 + $0x1774] sm:$0xf0] }
 0x568   :  { %v11479_v4 = vld [vmem:[%s19741_s1 + $0x1b38] sm:$0xf]  ;;  %v10968_v43 = vor.u32 %v12812_v57, %v10967_v30  ;;  %7686 = vmatpush.bf16.msrb.mxu0 %v10456_v51  ;;  %v19249_v30 = vpop.f32.mrf.mxu3 }
 0x569   :  { %v12940_v7 = vld [vmem:[%s19741_s1 + $0x1b74] sm:$0xf0] }
 0x56a   :  { %v11991_v58 = vld [vmem:[%s19741_s1 + $0x1f38] sm:$0xf]  ;;  %v11480_v33 = vor.u32 %v12940_v7, %v11479_v4  ;;  %7699 = vmatpush.bf16.msrb.mxu1 %v10968_v43  ;;  %v7436_v7 = vpop.f32.mrf.mxu0 }
 0x56b   :  { %v13068_v3 = vld [vmem:[%s19741_s1 + $0x1f74] sm:$0xf0] }
 0x56c   :  { %v10391_v35 = vld [vmem:[%s19741_s1 + $0x12b8] sm:$0xf]  ;;  %v11992_v56 = vor.u32 %v13068_v3, %v11991_v58  ;;  %7712 = vmatpush.bf16.msrb.mxu2 %v11480_v33 }
 0x56d   :  { %v12668_v54 = vld [vmem:[%s19741_s1 + $0x12f4] sm:$0xf0] }
 0x56e   :  { %v10903_v50 = vld [vmem:[%s19741_s1 + $0x16b8] sm:$0xf]  ;;  %v10392_v60 = vor.u32 %v12668_v54, %v10391_v35  ;;  %7725 = vmatpush.bf16.msrb.mxu3 %v11992_v56  ;;  %v7449_v35 = vpop.f32.mrf.mxu1 }
 0x56f   :  { %v12796_v53 = vld [vmem:[%s19741_s1 + $0x16f4] sm:$0xf0]  ;;  %v12404_v35 = vld [vmem:[%s19741_s1 + $0xabc] sm:$0xf] }
 0x570   :  { %v11415_v23 = vld [vmem:[%s19741_s1 + $0x1ab8] sm:$0xf]  ;;  %v10904_v61 = vor.u32 %v12796_v53, %v10903_v50  ;;  %7687 = vmatpush.bf16.msrb.mxu0 %v10392_v60 }
 0x571   :  { %v12924_v36 = vld [vmem:[%s19741_s1 + $0x1af4] sm:$0xf0] }
 0x572   :  { %v11927_v48 = vld [vmem:[%s19741_s1 + $0x1eb8] sm:$0xf]  ;;  %v11416_v62 = vor.u32 %v12924_v36, %v11415_v23  ;;  %7700 = vmatpush.bf16.msrb.mxu1 %v10904_v61 }
 0x573   :  { %v13052_v59 = vld [vmem:[%s19741_s1 + $0x1ef4] sm:$0xf0] }
 0x574   :  { %v10327_v28 = vld [vmem:[%s19741_s1 + $0x1238] sm:$0xf]  ;;  %v11928_v20 = vor.u32 %v13052_v59, %v11927_v48  ;;  %7713 = vmatpush.bf16.msrb.mxu2 %v11416_v62 }
 0x575   :  { %v12652_v26 = vld [vmem:[%s19741_s1 + $0x1274] sm:$0xf0] }
 0x576   :  { %v10839_v22 = vld [vmem:[%s19741_s1 + $0x1638] sm:$0xf]  ;;  %v10328_v0 = vor.u32 %v12652_v26, %v10327_v28  ;;  %7726 = vmatpush.bf16.msrb.mxu3 %v11928_v20  ;;  %v7462_v20 = vpop.f32.mrf.mxu2 }
 0x577   :  { %v12780_v6 = vld [vmem:[%s19741_s1 + $0x1674] sm:$0xf0]  ;;  %v9817_v20 = vld [vmem:[%s19741_s1 + $0xe78] sm:$0xf0] }
 0x578   :  { %v11351_v18 = vld [vmem:[%s19741_s1 + $0x1a38] sm:$0xf]  ;;  %v10840_v11 = vor.u32 %v12780_v6, %v10839_v22  ;;  %7688 = vmatpush.bf16.msrb.mxu0 %v10328_v0  ;;  %v12180_v0 = vld [vmem:[%s19741_s1 + $0x3bc] sm:$0xf] }
 0x579   :  { %v12908_v8 = vld [vmem:[%s19741_s1 + $0x1a74] sm:$0xf0] }
 0x57a   :  { %v11863_v55 = vld [vmem:[%s19741_s1 + $0x1e38] sm:$0xf]  ;;  %v11352_v12 = vor.u32 %v12908_v8, %v11351_v18  ;;  %7701 = vmatpush.bf16.msrb.mxu1 %v10840_v11  ;;  %v8473_v11 = vld [vmem:[%s19741_s1 + $0x3f8] sm:$0xf0] }
 0x57b   :  { %v13036_v52 = vld [vmem:[%s19741_s1 + $0x1e74] sm:$0xf0] }
 0x57c   :  { %v10263_v13 = vld [vmem:[%s19741_s1 + $0x11b8] sm:$0xf]  ;;  %v11864_v32 = vor.u32 %v13036_v52, %v11863_v55  ;;  %7714 = vmatpush.bf16.msrb.mxu2 %v11352_v12  ;;  %v7475_v52 = vpop.f32.mrf.mxu3  ;;  %v12308_v12 = vld [vmem:[%s19741_s1 + $0x7bc] sm:$0xf] }
 0x57d   :  { %v12636_v14 = vld [vmem:[%s19741_s1 + $0x11f4] sm:$0xf0]  ;;  %v12116_v52 = vld [vmem:[%s19741_s1 + $0x1bc] sm:$0xf] }
 0x57e   :  { %v10775_v15 = vld [vmem:[%s19741_s1 + $0x15b8] sm:$0xf]  ;;  %v10264_v42 = vor.u32 %v12636_v14, %v10263_v13  ;;  %7727 = vmatpush.bf16.msrb.mxu3 %v11864_v32  ;;  %v8985_v14 = vld [vmem:[%s19741_s1 + $0x7f8] sm:$0xf0] }
 0x57f   :  { %v12764_v39 = vld [vmem:[%s19741_s1 + $0x15f4] sm:$0xf0]  ;;  %v9497_v32 = vld [vmem:[%s19741_s1 + $0xbf8] sm:$0xf0] }
 0x580   :  { %v11287_v44 = vld [vmem:[%s19741_s1 + $0x19b8] sm:$0xf]  ;;  %v10776_v24 = vor.u32 %v12764_v39, %v10775_v15  ;;  %7689 = vmatpush.bf16.msrb.mxu0 %v10264_v42  ;;  %v12436_v15 = vld [vmem:[%s19741_s1 + $0xbbc] sm:$0xf]  ;;  %v8476_v42 = vor.u32 %v12180_v0, %v8473_v11 }
 0x581   :  { %v12892_v19 = vld [vmem:[%s19741_s1 + $0x19f4] sm:$0xf0]  ;;  %v8217_v0 = vld [vmem:[%s19741_s1 + $0x1f8] sm:$0xf0] }
 0x582   :  { %v11799_v47 = vld [vmem:[%s19741_s1 + $0x1db8] sm:$0xf]  ;;  %v11288_v5 = vor.u32 %v12892_v19, %v11287_v44  ;;  %7702 = vmatpush.bf16.msrb.mxu1 %v10776_v24  ;;  %v12564_v19 = vld [vmem:[%s19741_s1 + $0xfbc] sm:$0xf]  ;;  %v8988_v24 = vor.u32 %v12308_v12, %v8985_v14 }
 0x583   :  { %v13020_v21 = vld [vmem:[%s19741_s1 + $0x1df4] sm:$0xf0]  ;;  %v12244_v11 = vld [vmem:[%s19741_s1 + $0x5bc] sm:$0xf] }
 0x584   :  { %v10199_v27 = vld [vmem:[%s19741_s1 + $0x1138] sm:$0xf]  ;;  %v11800_v29 = vor.u32 %v13020_v21, %v11799_v47  ;;  %7715 = vmatpush.bf16.msrb.mxu2 %v11288_v5  ;;  %v10009_v47 = vld [vmem:[%s19741_s1 + $0xff8] sm:$0xf0]  ;;  %v9500_v5 = vor.u32 %v12436_v15, %v9497_v32 }
 0x585   :  { %v12620_v25 = vld [vmem:[%s19741_s1 + $0x1174] sm:$0xf0]  ;;  %v8729_v15 = vld [vmem:[%s19741_s1 + $0x5f8] sm:$0xf0] }
 0x586   :  { %v10711_v41 = vld [vmem:[%s19741_s1 + $0x1538] sm:$0xf]  ;;  %v10200_v4 = vor.u32 %v12620_v25, %v10199_v27  ;;  %7728 = vmatpush.bf16.msrb.mxu3 %v11800_v29  ;;  %v7448_v27 = vadd.f32 %v19212_v31, %v19201_v49  ;;  %v12164_v25 = vld [vmem:[%s19741_s1 + $0x33c] sm:$0xf] }
 0x587   :  { %v12748_v2 = vld [vmem:[%s19741_s1 + $0x1574] sm:$0xf0]  ;;  %v12292_v29 = vld [vmem:[%s19741_s1 + $0x73c] sm:$0xf] }
 0x588   :  { %v11223_v45 = vld [vmem:[%s19741_s1 + $0x1938] sm:$0xf]  ;;  %v10712_v58 = vor.u32 %v12748_v2, %v10711_v41  ;;  %7690 = vmatpush.bf16.msrb.mxu0 %v10200_v4  ;;  %v8409_v41 = vld [vmem:[%s19741_s1 + $0x378] sm:$0xf0]  ;;  %v10012_v2 = vor.u32 %v12564_v19, %v10009_v47 }
 0x589   :  { %v12876_v1 = vld [vmem:[%s19741_s1 + $0x1974] sm:$0xf0]  ;;  %v12420_v49 = vld [vmem:[%s19741_s1 + $0xb3c] sm:$0xf] }
 0x58a   :  { %v11735_v10 = vld [vmem:[%s19741_s1 + $0x1d38] sm:$0xf]  ;;  %v11224_v3 = vor.u32 %v12876_v1, %v11223_v45  ;;  %7703 = vmatpush.bf16.msrb.mxu1 %v10712_v58  ;;  %v8921_v45 = vld [vmem:[%s19741_s1 + $0x778] sm:$0xf0]  ;;  %v7461_v58 = vadd.f32 %v19238_v46, %v7448_v27 }
 0x58b   :  { %v13004_v57 = vld [vmem:[%s19741_s1 + $0x1d74] sm:$0xf0]  ;;  %v9433_v31 = vld [vmem:[%s19741_s1 + $0xb78] sm:$0xf0]  ;;  %v8924_v4 = vor.u32 %v12292_v29, %v8921_v45  ;;  %v7512_v29 = vpop.f32.mrf.mxu2 }
 0x58c   :  { %v10135_v51 = vld [vmem:[%s19741_s1 + $0x10b8] sm:$0xf]  ;;  %v11736_v54 = vor.u32 %v13004_v57, %v11735_v10  ;;  %7716 = vmatpush.bf16.msrb.mxu2 %v11224_v3  ;;  %v12548_v1 = vld [vmem:[%s19741_s1 + $0xf3c] sm:$0xf]  ;;  %v8412_v57 = vor.u32 %v12164_v25, %v8409_v41  ;;  %v9436_v7 = vor.u32 %v12420_v49, %v9433_v31 }
 0x58d   :  { %v12604_v43 = vld [vmem:[%s19741_s1 + $0x10f4] sm:$0xf0]  ;;  %v9945_v10 = vld [vmem:[%s19741_s1 + $0xf78] sm:$0xf0] }
 0x58e   :  { %v10647_v33 = vld [vmem:[%s19741_s1 + $0x14b8] sm:$0xf]  ;;  %v10136_v48 = vor.u32 %v12604_v43, %v10135_v51  ;;  %7729 = vmatpush.bf16.msrb.mxu3 %v11736_v54  ;;  %v12148_v3 = vld [vmem:[%s19741_s1 + $0x2bc] sm:$0xf] }
 0x58f   :  { %v12732_v50 = vld [vmem:[%s19741_s1 + $0x14f4] sm:$0xf0]  ;;  %v8345_v51 = vld [vmem:[%s19741_s1 + $0x2f8] sm:$0xf0] }
 0x590   :  { %v11159_v56 = vld [vmem:[%s19741_s1 + $0x18b8] sm:$0xf]  ;;  %v10648_v61 = vor.u32 %v12732_v50, %v10647_v33  ;;  %7691 = vmatpush.bf16.msrb.mxu0 %v10136_v48  ;;  %v12276_v43 = vld [vmem:[%s19741_s1 + $0x6bc] sm:$0xf]  ;;  %v9948_v33 = vor.u32 %v12548_v1, %v9945_v10  ;;  %v7525_v1 = vpop.f32.mrf.mxu3  ;;  %v19454_v10 = vld [vmem:[%s19743_s2 + $0x8] sm:$0xff] }
 0x591   :  { %v12860_v53 = vld [vmem:[%s19741_s1 + $0x18f4] sm:$0xf0]  ;;  %v8857_v46 = vld [vmem:[%s19741_s1 + $0x6f8] sm:$0xf0] }
 0x592   :  { %v11671_v23 = vld [vmem:[%s19741_s1 + $0x1cb8] sm:$0xf]  ;;  %v11160_v62 = vor.u32 %v12860_v53, %v11159_v56  ;;  %7704 = vmatpush.bf16.msrb.mxu1 %v10648_v61  ;;  %v9369_v54 = vld [vmem:[%s19741_s1 + $0xaf8] sm:$0xf0]  ;;  %v8348_v53 = vor.u32 %v12148_v3, %v8345_v51  ;;  %v19466_v51 = vld [vmem:[%s19744_s3 + $0x8] sm:$0xff] }
 0x593   :  { %v12988_v36 = vld [vmem:[%s19741_s1 + $0x1cf4] sm:$0xf0]  ;;  %v12532_v50 = vld [vmem:[%s19741_s1 + $0xebc] sm:$0xf]  ;;  %v9372_v48 = vor.u32 %v12404_v35, %v9369_v54 }
 0x594   :  { %v10071_v59 = vld [vmem:[%s19741_s1 + $0x1038] sm:$0xf]  ;;  %v11672_v6 = vor.u32 %v12988_v36, %v11671_v23  ;;  %7717 = vmatpush.bf16.msrb.mxu2 %v11160_v62  ;;  %v9881_v56 = vld [vmem:[%s19741_s1 + $0xef8] sm:$0xf0]  ;;  %v7474_v23 = vadd.f32 %v19249_v30, %v7461_v58  ;;  %v8860_v36 = vor.u32 %v12276_v43, %v8857_v46  ;;  %v7909_v43 = vperm.slane %v19466_v51, 4 }
 0x595   :  { %v12588_v60 = vld [vmem:[%s19741_s1 + $0x1074] sm:$0xf0]  ;;  %v12260_v61 = vld [vmem:[%s19741_s1 + $0x63c] sm:$0xf]  ;;  %v9884_v62 = vor.u32 %v12532_v50, %v9881_v56 }
 0x596   :  { %v10583_v28 = vld [vmem:[%s19741_s1 + $0x1438] sm:$0xf]  ;;  %v10072_v13 = vor.u32 %v12588_v60, %v10071_v59  ;;  %7730 = vmatpush.bf16.msrb.mxu3 %v11672_v6  ;;  %v12132_v59 = vld [vmem:[%s19741_s1 + $0x23c] sm:$0xf] }
 0x597   :  { %v12716_v26 = vld [vmem:[%s19741_s1 + $0x1474] sm:$0xf0]  ;;  %v8281_v60 = vld [vmem:[%s19741_s1 + $0x278] sm:$0xf0] }
 0x598   :  { %v11095_v22 = vld [vmem:[%s19741_s1 + $0x1838] sm:$0xf]  ;;  %v10584_v39 = vor.u32 %v12716_v26, %v10583_v28  ;;  %7692 = vmatpush.bf16.msrb.mxu0 %v10072_v13  ;;  %v8793_v30 = vld [vmem:[%s19741_s1 + $0x678] sm:$0xf0]  ;;  %v8284_v6 = vor.u32 %v12132_v59, %v8281_v60  ;;  %v7499_v13 = vpop.f32.mrf.mxu1 }
 0x599   :  { %v12844_v18 = vld [vmem:[%s19741_s1 + $0x1874] sm:$0xf0]  ;;  %v12388_v28 = vld [vmem:[%s19741_s1 + $0xa3c] sm:$0xf] }
 0x59a   :  { %v11607_v8 = vld [vmem:[%s19741_s1 + $0x1c38] sm:$0xf]  ;;  %v11096_v44 = vor.u32 %v12844_v18, %v11095_v22  ;;  %7705 = vmatpush.bf16.msrb.mxu1 %v10584_v39  ;;  %v9305_v26 = vld [vmem:[%s19741_s1 + $0xa78] sm:$0xf0]  ;;  %v7486_v18 = vpop.f32.mrf.mxu0 }
 0x59b   :  { %v12972_v55 = vld [vmem:[%s19741_s1 + $0x1c74] sm:$0xf0]  ;;  %7693 = vmatmul.bf16.vlgmr.msrb.gmra.mxu0 %v13590_v37  ;;  %v12516_v22 = vld [vmem:[%s19741_s1 + $0xe3c] sm:$0xf]  ;;  %v7487_v12 = vadd.f32 %v7486_v18, %v7474_v23 }
 0x59c   :  { %v11608_v21 = vor.u32 %v12972_v55, %v11607_v8  ;;  %7718 = vmatpush.bf16.msrb.mxu2 %v11096_v44  ;;  %7737 = vmatpush.bf16.msra.mxu0 %v8476_v42  ;;  %v8796_v8 = vor.u32 %v12260_v61, %v8793_v30  ;;  %v9308_v55 = vor.u32 %v12388_v28, %v9305_v26  ;;  %v12372_v32 = vld [vmem:[%s19741_s1 + $0x9bc] sm:$0xf] }
 0x59d   :  { %7706 = vmatmul.bf16.vlgmr.msrb.gmra.mxu1 %v13594_v40  ;;  %v9820_v14 = vor.u32 %v12516_v22, %v9817_v20  ;;  %v9241_v39 = vld [vmem:[%s19741_s1 + $0x9f8] sm:$0xf0]  ;;  %v7500_v47 = vadd.f32 %v7499_v13, %v7487_v12 }
 0x59e   :  { %7731 = vmatpush.bf16.msrb.mxu3 %v11608_v21  ;;  %7750 = vmatpush.bf16.msra.mxu1 %v8988_v24  ;;  %v12500_v44 = vld [vmem:[%s19741_s1 + $0xdbc] sm:$0xf]  ;;  %v8220_v21 = vor.u32 %v12116_v52, %v8217_v0  ;;  %v8732_v24 = vor.u32 %v12244_v11, %v8729_v15  ;;  %v7514_v0 = vpop.f32.mrf.mxu2 }
 0x59f   :  { %7719 = vmatmul.bf16.vlgmr.msrb.gmra.mxu2 %v13582_v34  ;;  %v9753_v19 = vld [vmem:[%s19741_s1 + $0xdf8] sm:$0xf0]  ;;  %v7513_v31 = vadd.f32 %v7512_v29, %v7500_v47 }
 0x5a0   :  { %7763 = vmatpush.bf16.msra.mxu2 %v9500_v5  ;;  %7738 = vmatpush.bf16.msra.mxu0 %v8412_v57  ;;  %v12100_v42 = vld [vmem:[%s19741_s1 + $0x13c] sm:$0xf]  ;;  %v9244_v5 = vor.u32 %v12372_v32, %v9241_v39  ;;  %v7857_v57 = vperm.slane %v19454_v10, 4 }
 0x5a1   :  { %7732 = vmatmul.bf16.vlgmr.msrb.gmra.mxu3 %v13592_v38  ;;  %v8153_v27 = vld [vmem:[%s19741_s1 + $0x178] sm:$0xf0]  ;;  %v7526_v3 = vadd.f32 %v7525_v1, %v7513_v31 }
 0x5a2   :  { %7776 = vmatpush.bf16.msra.mxu3 %v10012_v2  ;;  %7751 = vmatpush.bf16.msra.mxu1 %v8924_v4  ;;  %v12228_v25 = vld [vmem:[%s19741_s1 + $0x53c] sm:$0xf]  ;;  %v9756_v2 = vor.u32 %v12500_v44, %v9753_v19  ;;  %v8156_v58 = vor.u32 %v12100_v42, %v8153_v27 }
 0x5a3   :  { %v8665_v41 = vld [vmem:[%s19741_s1 + $0x578] sm:$0xf0] }
 0x5a4   :  { %7764 = vmatpush.bf16.msra.mxu2 %v9436_v7  ;;  %7739 = vmatpush.bf16.msra.mxu0 %v8348_v53  ;;  %v12356_v45 = vld [vmem:[%s19741_s1 + $0x93c] sm:$0xf]  ;;  %v8668_v46 = vor.u32 %v12228_v25, %v8665_v41  ;;  %v7501_v53 = vpop.f32.mrf.mxu1 }
 0x5a5   :  { %v9177_v49 = vld [vmem:[%s19741_s1 + $0x978] sm:$0xf0] }
 0x5a6   :  { %7777 = vmatpush.bf16.msra.mxu3 %v9948_v33  ;;  %7752 = vmatpush.bf16.msra.mxu1 %v8860_v36  ;;  %v12484_v4 = vld [vmem:[%s19741_s1 + $0xd3c] sm:$0xf]  ;;  %v7488_v33 = vpop.f32.mrf.mxu0  ;;  %v9180_v35 = vor.u32 %v12356_v45, %v9177_v49  ;;  %v7889_v36 = vmul.f32 %v7857_v57, %v7526_v3 }
 0x5a7   :  { %v9689_v7 = vld [vmem:[%s19741_s1 + $0xd78] sm:$0xf0] }
 0x5a8   :  { %7765 = vmatpush.bf16.msra.mxu2 %v9372_v48  ;;  %7740 = vmatpush.bf16.msra.mxu0 %v8284_v6  ;;  %v12084_v54 = vld [vmem:[%s19741_s1 + $0xbc] sm:$0xf]  ;;  %v9692_v23 = vor.u32 %v12484_v4, %v9689_v7  ;;  %v7941_v30 = vadd.f32 %v7909_v43, %v7889_v36 }
 0x5a9   :  { %v8089_v50 = vld [vmem:[%s19741_s1 + $0xf8] sm:$0xf0] }
 0x5aa   :  { %7778 = vmatpush.bf16.msra.mxu3 %v9884_v62  ;;  %7753 = vmatpush.bf16.msra.mxu1 %v8796_v8  ;;  %v12212_v56 = vld [vmem:[%s19741_s1 + $0x4bc] sm:$0xf]  ;;  %v8092_v28 = vor.u32 %v12084_v54, %v8089_v50  ;;  %7957 = vst [vmem:[%s19745_s4 + $0x60] sm:$0xff] %v7941_v30 }
 0x5ab   :  { %v8601_v48 = vld [vmem:[%s19741_s1 + $0x4f8] sm:$0xf0] }
 0x5ac   :  { %7766 = vmatpush.bf16.msra.mxu2 %v9308_v55  ;;  %7741 = vmatpush.bf16.msra.mxu0 %v8220_v21  ;;  %v12340_v59 = vld [vmem:[%s19741_s1 + $0x8bc] sm:$0xf]  ;;  %v8604_v6 = vor.u32 %v12212_v56, %v8601_v48 }
 0x5ad   :  { %v9113_v60 = vld [vmem:[%s19741_s1 + $0x8f8] sm:$0xf0] }
 0x5ae   :  { %7779 = vmatpush.bf16.msra.mxu3 %v9820_v14  ;;  %7754 = vmatpush.bf16.msra.mxu1 %v8732_v24  ;;  %v12468_v61 = vld [vmem:[%s19741_s1 + $0xcbc] sm:$0xf]  ;;  %v9116_v18 = vor.u32 %v12340_v59, %v9113_v60  ;;  %v7527_v14 = vpop.f32.mrf.mxu3 }
 0x5af   :  { %v9625_v62 = vld [vmem:[%s19741_s1 + $0xcf8] sm:$0xf0] }
 0x5b0   :  { %7767 = vmatpush.bf16.msra.mxu2 %v9244_v5  ;;  %7742 = vmatpush.bf16.msra.mxu0 %v8156_v58  ;;  %v12068_v26 = vld [vmem:[%s19741_s1 + $0x3c] sm:$0xf]  ;;  %v9628_v11 = vor.u32 %v12468_v61, %v9625_v62 }
 0x5b1   :  { %v8025_v22 = vld [vmem:[%s19741_s1 + $0x78] sm:$0xf0] }
 0x5b2   :  { %7780 = vmatpush.bf16.msra.mxu3 %v9756_v2  ;;  %v12196_v20 = vld [vmem:[%s19741_s1 + $0x43c] sm:$0xf]  ;;  %7755 = vmatpush.bf16.msra.mxu1 %v8668_v46  ;;  %v8028_v44 = vor.u32 %v12068_v26, %v8025_v22 }
 0x5b3   :  { %v8537_v8 = vld [vmem:[%s19741_s1 + $0x478] sm:$0xf0] }
 0x5b4   :  { %7768 = vmatpush.bf16.msra.mxu2 %v9180_v35  ;;  %v12324_v55 = vld [vmem:[%s19741_s1 + $0x83c] sm:$0xf]  ;;  %7743 = vmatpush.bf16.msra.mxu0 %v8092_v28  ;;  %v8540_v42 = vor.u32 %v12196_v20, %v8537_v8 }
 0x5b5   :  { %v9049_v52 = vld [vmem:[%s19741_s1 + $0x878] sm:$0xf0] }
 0x5b6   :  { %7781 = vmatpush.bf16.msra.mxu3 %v9692_v23  ;;  %v12452_v12 = vld [vmem:[%s19741_s1 + $0xc3c] sm:$0xf]  ;;  %7756 = vmatpush.bf16.msra.mxu1 %v8604_v6  ;;  %v9052_v24 = vor.u32 %v12324_v55, %v9049_v52 }
 0x5b7   :  { %v9561_v13 = vld [vmem:[%s19741_s1 + $0xc78] sm:$0xf0] }
 0x5b8   :  { %v12692_v15 = vld [vmem:[%s19741_s1 + $0x13bc] sm:$0xf]  ;;  %7769 = vmatpush.bf16.msra.mxu2 %v9116_v18  ;;  %v9564_v25 = vor.u32 %v12452_v12, %v9561_v13  ;;  %7744 = vmatpush.bf16.msra.mxu0 %v8028_v44  ;;  %v19620_v18 = vpop.f32.mrf.mxu0  ;;  %v19631_v12 = vpop.f32.mrf.mxu1 }
 0x5b9   :  { %v10521_v32 = vld [vmem:[%s19741_s1 + $0x13f8] sm:$0xf0] }
 0x5ba   :  { %v12820_v39 = vld [vmem:[%s19741_s1 + $0x17bc] sm:$0xf]  ;;  %7782 = vmatpush.bf16.msra.mxu3 %v9628_v11  ;;  %v10524_v41 = vor.u32 %v12692_v15, %v10521_v32  ;;  %7757 = vmatpush.bf16.msra.mxu1 %v8540_v42 }
 0x5bb   :  { %v11033_v19 = vld [vmem:[%s19741_s1 + $0x17f8] sm:$0xf0]  ;;  %7745 = vmatmul.bf16.vlgmr.msra.gmra.mxu0 %v13402_v9 }
 0x5bc   :  { %v12948_v47 = vld [vmem:[%s19741_s1 + $0x1bbc] sm:$0xf]  ;;  %v11036_v29 = vor.u32 %v12820_v39, %v11033_v19  ;;  %7770 = vmatpush.bf16.msra.mxu2 %v9052_v24  ;;  %7789 = vmatpush.bf16.msrb.mxu0 %v10524_v41 }
 0x5bd   :  { %v11545_v21 = vld [vmem:[%s19741_s1 + $0x1bf8] sm:$0xf0]  ;;  %7758 = vmatmul.bf16.vlgmr.msra.gmra.mxu1 %v13421_v17 }
 0x5be   :  { %v13076_v5 = vld [vmem:[%s19741_s1 + $0x1fbc] sm:$0xf]  ;;  %v11548_v2 = vor.u32 %v12948_v47, %v11545_v21  ;;  %7783 = vmatpush.bf16.msra.mxu3 %v9564_v25  ;;  %7802 = vmatpush.bf16.msrb.mxu1 %v11036_v29 }
 0x5bf   :  { %v12057_v27 = vld [vmem:[%s19741_s1 + $0x1ff8] sm:$0xf0]  ;;  %7771 = vmatmul.bf16.vlgmr.msra.gmra.mxu2 %v13381_v63 }
 0x5c0   :  { %v12676_v45 = vld [vmem:[%s19741_s1 + $0x133c] sm:$0xf]  ;;  %v12060_v1 = vor.u32 %v13076_v5, %v12057_v27  ;;  %7815 = vmatpush.bf16.msrb.mxu2 %v11548_v2  ;;  %v7564_v27 = vpop.f32.mrf.mxu2 }
 0x5c1   :  { %v10457_v49 = vld [vmem:[%s19741_s1 + $0x1378] sm:$0xf0]  ;;  %7784 = vmatmul.bf16.vlgmr.msra.gmra.mxu3 %v13419_v16 }
 0x5c2   :  { %v12804_v31 = vld [vmem:[%s19741_s1 + $0x173c] sm:$0xf]  ;;  %v10460_v43 = vor.u32 %v12676_v45, %v10457_v49  ;;  %7828 = vmatpush.bf16.msrb.mxu3 %v12060_v1  ;;  %v7577_v45 = vpop.f32.mrf.mxu3 }
 0x5c3   :  { %v10969_v57 = vld [vmem:[%s19741_s1 + $0x1778] sm:$0xf0] }
 0x5c4   :  { %v12932_v4 = vld [vmem:[%s19741_s1 + $0x1b3c] sm:$0xf]  ;;  %v10972_v33 = vor.u32 %v12804_v31, %v10969_v57  ;;  %7790 = vmatpush.bf16.msrb.mxu0 %v10460_v43  ;;  %v7540_v57 = vpop.f32.mrf.mxu0 }
 0x5c5   :  { %v11481_v7 = vld [vmem:[%s19741_s1 + $0x1b78] sm:$0xf0] }
 0x5c6   :  { %v13060_v58 = vld [vmem:[%s19741_s1 + $0x1f3c] sm:$0xf]  ;;  %v11484_v46 = vor.u32 %v12932_v4, %v11481_v7  ;;  %7803 = vmatpush.bf16.msrb.mxu1 %v10972_v33  ;;  %v7553_v33 = vpop.f32.mrf.mxu1 }
 0x5c7   :  { %v11993_v3 = vld [vmem:[%s19741_s1 + $0x1f78] sm:$0xf0]  ;;  %v7859_v33 = vperm.slane %v19454_v10, 6 }
 0x5c8   :  { %v12660_v35 = vld [vmem:[%s19741_s1 + $0x12bc] sm:$0xf]  ;;  %v11996_v56 = vor.u32 %v13060_v58, %v11993_v3  ;;  %7816 = vmatpush.bf16.msrb.mxu2 %v11484_v46 }
 0x5c9   :  { %v10393_v54 = vld [vmem:[%s19741_s1 + $0x12f8] sm:$0xf0] }
 0x5ca   :  { %v12788_v50 = vld [vmem:[%s19741_s1 + $0x16bc] sm:$0xf]  ;;  %v10396_v59 = vor.u32 %v12660_v35, %v10393_v54  ;;  %7829 = vmatpush.bf16.msrb.mxu3 %v11996_v56 }
 0x5cb   :  { %v10905_v53 = vld [vmem:[%s19741_s1 + $0x16f8] sm:$0xf0] }
 0x5cc   :  { %v12916_v23 = vld [vmem:[%s19741_s1 + $0x1abc] sm:$0xf]  ;;  %v10908_v60 = vor.u32 %v12788_v50, %v10905_v53  ;;  %7791 = vmatpush.bf16.msrb.mxu0 %v10396_v59 }
 0x5cd   :  { %v11417_v36 = vld [vmem:[%s19741_s1 + $0x1af8] sm:$0xf0] }
 0x5ce   :  { %v13044_v48 = vld [vmem:[%s19741_s1 + $0x1ebc] sm:$0xf]  ;;  %v11420_v61 = vor.u32 %v12916_v23, %v11417_v36  ;;  %7804 = vmatpush.bf16.msrb.mxu1 %v10908_v60 }
 0x5cf   :  { %v11929_v63 = vld [vmem:[%s19741_s1 + $0x1ef8] sm:$0xf0] }
 0x5d0   :  { %v12644_v16 = vld [vmem:[%s19741_s1 + $0x123c] sm:$0xf]  ;;  %v11932_v30 = vor.u32 %v13044_v48, %v11929_v63  ;;  %7817 = vmatpush.bf16.msrb.mxu2 %v11420_v61  ;;  %v7566_v61 = vpop.f32.mrf.mxu2 }
 0x5d1   :  { %v10329_v62 = vld [vmem:[%s19741_s1 + $0x1278] sm:$0xf0] }
 0x5d2   :  { %v12772_v9 = vld [vmem:[%s19741_s1 + $0x163c] sm:$0xf]  ;;  %v10332_v6 = vor.u32 %v12644_v16, %v10329_v62  ;;  %7830 = vmatpush.bf16.msrb.mxu3 %v11932_v30 }
 0x5d3   :  { %v10841_v17 = vld [vmem:[%s19741_s1 + $0x1678] sm:$0xf0] }
 0x5d4   :  { %v12900_v28 = vld [vmem:[%s19741_s1 + $0x1a3c] sm:$0xf]  ;;  %v10844_v8 = vor.u32 %v12772_v9, %v10841_v17  ;;  %7792 = vmatpush.bf16.msrb.mxu0 %v10332_v6  ;;  %v7579_v17 = vpop.f32.mrf.mxu3 }
 0x5d5   :  { %v11353_v26 = vld [vmem:[%s19741_s1 + $0x1a78] sm:$0xf0] }
 0x5d6   :  { %v13028_v22 = vld [vmem:[%s19741_s1 + $0x1e3c] sm:$0xf]  ;;  %v11356_v55 = vor.u32 %v12900_v28, %v11353_v26  ;;  %7805 = vmatpush.bf16.msrb.mxu1 %v10844_v8 }
 0x5d7   :  { %v11865_v20 = vld [vmem:[%s19741_s1 + $0x1e78] sm:$0xf0] }
 0x5d8   :  { %v12628_v52 = vld [vmem:[%s19741_s1 + $0x11bc] sm:$0xf]  ;;  %v11868_v13 = vor.u32 %v13028_v22, %v11865_v20  ;;  %7818 = vmatpush.bf16.msrb.mxu2 %v11356_v55  ;;  %v7552_v55 = vadd.f32 %v19631_v12, %v19620_v18 }
 0x5d9   :  { %v10265_v0 = vld [vmem:[%s19741_s1 + $0x11f8] sm:$0xf0] }
 0x5da   :  { %v12756_v11 = vld [vmem:[%s19741_s1 + $0x15bc] sm:$0xf]  ;;  %v10268_v19 = vor.u32 %v12628_v52, %v10265_v0  ;;  %7831 = vmatpush.bf16.msrb.mxu3 %v11868_v13  ;;  %v7565_v52 = vadd.f32 %v7564_v27, %v7552_v55 }
 0x5db   :  { %v10777_v14 = vld [vmem:[%s19741_s1 + $0x15f8] sm:$0xf0] }
 0x5dc   :  { %v12884_v15 = vld [vmem:[%s19741_s1 + $0x19bc] sm:$0xf]  ;;  %v10780_v47 = vor.u32 %v12756_v11, %v10777_v14  ;;  %7793 = vmatpush.bf16.msrb.mxu0 %v10268_v19  ;;  %v7578_v0 = vadd.f32 %v7577_v45, %v7565_v52  ;;  %v7590_v11 = vpop.f32.mrf.mxu0  ;;  %v7603_v14 = vpop.f32.mrf.mxu1 }
 0x5dd   :  { %v11289_v32 = vld [vmem:[%s19741_s1 + $0x19f8] sm:$0xf0]  ;;  %v7629_v12 = vpop.f32.mrf.mxu3 }
 0x5de   :  { %v13012_v39 = vld [vmem:[%s19741_s1 + $0x1dbc] sm:$0xf]  ;;  %v11292_v21 = vor.u32 %v12884_v15, %v11289_v32  ;;  %7806 = vmatpush.bf16.msrb.mxu1 %v10780_v47  ;;  %v7591_v13 = vadd.f32 %v7590_v11, %v7578_v0  ;;  %v7616_v32 = vpop.f32.mrf.mxu2  ;;  %v7860_v0 = vperm.slane %v19454_v10, 7 }
 0x5df   :  { %v11801_v44 = vld [vmem:[%s19741_s1 + $0x1df8] sm:$0xf0] }
 0x5e0   :  { %v12612_v42 = vld [vmem:[%s19741_s1 + $0x113c] sm:$0xf]  ;;  %v11804_v25 = vor.u32 %v13012_v39, %v11801_v44  ;;  %7819 = vmatpush.bf16.msrb.mxu2 %v11292_v21  ;;  %v7604_v15 = vadd.f32 %v7603_v14, %v7591_v13  ;;  %v7858_v39 = vperm.slane %v19454_v10, 5 }
 0x5e1   :  { %v10201_v24 = vld [vmem:[%s19741_s1 + $0x1178] sm:$0xf0] }
 0x5e2   :  { %v12740_v5 = vld [vmem:[%s19741_s1 + $0x153c] sm:$0xf]  ;;  %v10204_v1 = vor.u32 %v12612_v42, %v10201_v24  ;;  %7832 = vmatpush.bf16.msrb.mxu3 %v11804_v25  ;;  %v7617_v18 = vadd.f32 %v7616_v32, %v7604_v15  ;;  %v7912_v15 = vperm.slane %v19466_v51, 7 }
 0x5e3   :  { %v10713_v41 = vld [vmem:[%s19741_s1 + $0x1578] sm:$0xf0] }
 0x5e4   :  { %v12868_v29 = vld [vmem:[%s19741_s1 + $0x193c] sm:$0xf]  ;;  %v10716_v4 = vor.u32 %v12740_v5, %v10713_v41  ;;  %7794 = vmatpush.bf16.msrb.mxu0 %v10204_v1  ;;  %v7630_v44 = vadd.f32 %v7629_v12, %v7617_v18  ;;  %v7592_v19 = vpop.f32.mrf.mxu0  ;;  %v7605_v47 = vpop.f32.mrf.mxu1 }
 0x5e5   :  { %v11225_v2 = vld [vmem:[%s19741_s1 + $0x1978] sm:$0xf0] }
 0x5e6   :  { %v12996_v49 = vld [vmem:[%s19741_s1 + $0x1d3c] sm:$0xf]  ;;  %v11228_v7 = vor.u32 %v12868_v29, %v11225_v2  ;;  %7807 = vmatpush.bf16.msrb.mxu1 %v10716_v4 }
 0x5e7   :  { %v11737_v31 = vld [vmem:[%s19741_s1 + $0x1d78] sm:$0xf0] }
 0x5e8   :  { %v12596_v58 = vld [vmem:[%s19741_s1 + $0x10bc] sm:$0xf]  ;;  %v11740_v46 = vor.u32 %v12996_v49, %v11737_v31  ;;  %7820 = vmatpush.bf16.msrb.mxu2 %v11228_v7 }
 0x5e9   :  { %v10137_v3 = vld [vmem:[%s19741_s1 + $0x10f8] sm:$0xf0] }
 0x5ea   :  { %v12724_v43 = vld [vmem:[%s19741_s1 + $0x14bc] sm:$0xf]  ;;  %v10140_v23 = vor.u32 %v12596_v58, %v10137_v3  ;;  %7833 = vmatpush.bf16.msrb.mxu3 %v11740_v46 }
 0x5eb   :  { %v10649_v35 = vld [vmem:[%s19741_s1 + $0x14f8] sm:$0xf0] }
 0x5ec   :  { %v12852_v54 = vld [vmem:[%s19741_s1 + $0x18bc] sm:$0xf]  ;;  %v10652_v36 = vor.u32 %v12724_v43, %v10649_v35  ;;  %7795 = vmatpush.bf16.msrb.mxu0 %v10140_v23  ;;  %v7642_v42 = vpop.f32.mrf.mxu0  ;;  %v7655_v24 = vpop.f32.mrf.mxu1  ;;  %v7911_v35 = vperm.slane %v19466_v51, 6 }
 0x5ed   :  { %v11161_v50 = vld [vmem:[%s19741_s1 + $0x18f8] sm:$0xf0]  ;;  %v7656_v45 = vadd.f32 %v7655_v24, %v7642_v42 }
 0x5ee   :  { %v12980_v56 = vld [vmem:[%s19741_s1 + $0x1cbc] sm:$0xf]  ;;  %v11164_v48 = vor.u32 %v12852_v54, %v11161_v50  ;;  %7808 = vmatpush.bf16.msrb.mxu1 %v10652_v36 }
 0x5ef   :  { %v11673_v53 = vld [vmem:[%s19741_s1 + $0x1cf8] sm:$0xf0] }
 0x5f0   :  { %v12580_v63 = vld [vmem:[%s19741_s1 + $0x103c] sm:$0xf]  ;;  %v11676_v16 = vor.u32 %v12980_v56, %v11673_v53  ;;  %7821 = vmatpush.bf16.msrb.mxu2 %v11164_v48 }
 0x5f1   :  { %v10073_v59 = vld [vmem:[%s19741_s1 + $0x1078] sm:$0xf0] }
 0x5f2   :  { %v12708_v60 = vld [vmem:[%s19741_s1 + $0x143c] sm:$0xf]  ;;  %v10076_v22 = vor.u32 %v12580_v63, %v10073_v59  ;;  %7834 = vmatpush.bf16.msrb.mxu3 %v11676_v16 }
 0x5f3   :  { %v10585_v62 = vld [vmem:[%s19741_s1 + $0x1478] sm:$0xf0] }
 0x5f4   :  { %v12836_v9 = vld [vmem:[%s19741_s1 + $0x183c] sm:$0xf]  ;;  %v10588_v20 = vor.u32 %v12708_v60, %v10585_v62  ;;  %7796 = vmatpush.bf16.msrb.mxu0 %v10076_v22  ;;  %v7644_v25 = vpop.f32.mrf.mxu0  ;;  %v7657_v41 = vpop.f32.mrf.mxu1 }
 0x5f5   :  { %v11097_v30 = vld [vmem:[%s19741_s1 + $0x1878] sm:$0xf0] }
 0x5f6   :  { %v12964_v28 = vld [vmem:[%s19741_s1 + $0x1c3c] sm:$0xf]  ;;  %v11100_v6 = vor.u32 %v12836_v9, %v11097_v30  ;;  %7809 = vmatpush.bf16.msrb.mxu1 %v10588_v20 }
 0x5f7   :  { %v11609_v26 = vld [vmem:[%s19741_s1 + $0x1c78] sm:$0xf0]  ;;  %7797 = vmatmul.bf16.vlgmr.msrb.gmra.mxu0 %v13590_v37  ;;  %v7910_v37 = vperm.slane %v19466_v51, 5 }
 0x5f8   :  { %v11612_v8 = vor.u32 %v12964_v28, %v11609_v26  ;;  %7822 = vmatpush.bf16.msrb.mxu2 %v11100_v6 }
 0x5f9   :  { %7810 = vmatmul.bf16.vlgmr.msrb.gmra.mxu1 %v13594_v40  ;;  %v7890_v40 = vmul.f32 %v7858_v39, %v7630_v44 }
 0x5fa   :  { %7835 = vmatpush.bf16.msrb.mxu3 %v11612_v8 }
 0x5fb   :  { %7823 = vmatmul.bf16.vlgmr.msrb.gmra.mxu2 %v13582_v34  ;;  %v7942_v21 = vadd.f32 %v7910_v37, %v7890_v40  ;;  %v7618_v34 = vpop.f32.mrf.mxu2 }
 0x5fd   :  { %7836 = vmatmul.bf16.vlgmr.msrb.gmra.mxu3 %v13592_v38  ;;  %7958 = vst [vmem:[%s19745_s4 + $0x68] sm:$0xff] %v7942_v21  ;;  %v7631_v38 = vpop.f32.mrf.mxu3 }
 0x603   :  { %v7668_v5 = vpop.f32.mrf.mxu2 }
 0x604   :  { %v7669_v49 = vadd.f32 %v7668_v5, %v7656_v45 }
 0x605   :  { %v7681_v27 = vpop.f32.mrf.mxu3 }
 0x606   :  { %v7682_v31 = vadd.f32 %v7681_v27, %v7669_v49 }
 0x60b   :  { %v7670_v29 = vpop.f32.mrf.mxu2 }
 0x60d   :  { %v7683_v2 = vpop.f32.mrf.mxu3 }
 0x618   :  { %v7694_v1 = vpop.f32.mrf.mxu0 }
 0x619   :  { %v7695_v57 = vadd.f32 %v7694_v1, %v7682_v31 }
 0x61a   :  { %v7707_v4 = vpop.f32.mrf.mxu1 }
 0x61b   :  { %v7708_v7 = vadd.f32 %v7707_v4, %v7695_v57 }
 0x620   :  { %v7696_v54 = vpop.f32.mrf.mxu0 }
 0x622   :  { %v7720_v58 = vpop.f32.mrf.mxu2  ;;  %v7709_v50 = vpop.f32.mrf.mxu1 }
 0x623   :  { %v7721_v3 = vadd.f32 %v7720_v58, %v7708_v7 }
 0x624   :  { %v7733_v43 = vpop.f32.mrf.mxu3 }
 0x625   :  { %v7734_v46 = vadd.f32 %v7733_v43, %v7721_v3 }
 0x627   :  { %v7891_v56 = vmul.f32 %v7859_v33, %v7734_v46 }
 0x629   :  { %v7943_v53 = vadd.f32 %v7911_v35, %v7891_v56 }
 0x62a   :  { %v7722_v23 = vpop.f32.mrf.mxu2 }
 0x62b   :  { %7959 = vst [vmem:[%s19745_s4 + $0x70] sm:$0xff] %v7943_v53 }
 0x62c   :  { %v7735_v36 = vpop.f32.mrf.mxu3 }
 0x638   :  { %v7746_v48 = vpop.f32.mrf.mxu0 }
 0x63a   :  { %v7759_v63 = vpop.f32.mrf.mxu1 }
 0x63b   :  { %v7760_v30 = vadd.f32 %v7759_v63, %v7746_v48 }
 0x640   :  { %v7748_v61 = vpop.f32.mrf.mxu0 }
 0x642   :  { %v7772_v59 = vpop.f32.mrf.mxu2  ;;  %v7761_v16 = vpop.f32.mrf.mxu1 }
 0x643   :  { %v7773_v17 = vadd.f32 %v7772_v59, %v7760_v30 }
 0x644   :  { %v7785_v60 = vpop.f32.mrf.mxu3 }
 0x645   :  { %v7786_v28 = vadd.f32 %v7785_v60, %v7773_v17 }
 0x64a   :  { %v7774_v62 = vpop.f32.mrf.mxu2 }
 0x64c   :  { %v7787_v9 = vpop.f32.mrf.mxu3 }
 0x674   :  { %v7798_v26 = vpop.f32.mrf.mxu0 }
 0x675   :  { %v7799_v20 = vadd.f32 %v7798_v26, %v7786_v28 }
 0x676   :  { %v7811_v22 = vpop.f32.mrf.mxu1 }
 0x677   :  { %v7812_v6 = vadd.f32 %v7811_v22, %v7799_v20 }
 0x67c   :  { %v7800_v11 = vpop.f32.mrf.mxu0 }
 0x67e   :  { %v7824_v8 = vpop.f32.mrf.mxu2  ;;  %v7813_v13 = vpop.f32.mrf.mxu1 }
 0x67f   :  { %v7825_v55 = vadd.f32 %v7824_v8, %v7812_v6 }
 0x680   :  { %v7837_v52 = vpop.f32.mrf.mxu3 }
 0x681   :  { %v7838_v14 = vadd.f32 %v7837_v52, %v7825_v55 }
 0x683   :  { %v7892_v32 = vmul.f32 %v7860_v0, %v7838_v14 }
 0x685   :  { %v7944_v18 = vadd.f32 %v7912_v15, %v7892_v32 }
 0x686   :  { %v7826_v12 = vpop.f32.mrf.mxu2 }
 0x687   :  { %7960 = vst [vmem:[%s19745_s4 + $0x78] sm:$0xff] %v7944_v18 }
 0x688   :  { %v7839_v39 = vpop.f32.mrf.mxu3 }

// kernel: cvae_forward.17
= control target key start
LH: loop header
LB: loop body
LE: loop exit
PB: predicated region body
PF: predicated region fallthrough
CT: control target
= control target key end

     0   :  { %s1096_s15 = smov 0   ;;  %s1414_s0 = inlined_call_operand.vmem [shape: f32[2048,128], index: 0, kind: input, shape index: {}]   ;;  %s1415_s1 = inlined_call_operand.vmem [shape: bf16[128,128], index: 1, kind: input, shape index: {}]   ;;  %s1416_s2 = inlined_call_operand.vmem [shape: f32[1,128], index: 2, kind: input, shape index: {}]   ;;  %s1417_s3 = inlined_call_operand.vmem [shape: f32[1,128], index: 3, kind: input, shape index: {}]   ;;  %s1418_s4 = inlined_call_operand.vmem [shape: f32[2048,128], index: 4, kind: output, shape index: {}]  }
   0x1 LB: > { %s850_s16 = sadd.s32 4294967295, %s1069_s15   ;;  %p854_p0 = scmp.ge.s32.totalorder %s1069_s15, 1  ;;  %s1069_s15 = sphi %s1096_s15, %s14_s15  }
   0x2   : > { %p163_p1 = scmp.lt.s32.totalorder %s1069_s15, 5 }
   0x4   : > { %p164_p2 = pnand %p854_p0, %p163_p1 }
   0x5   : > { %s855_s23 = sshll.u32 (!%p164_p2), %s850_s16, 6 }
   0x6   : > { %167 = sbr.rel (%p164_p2) target bundleno = 309 (0x135), region = 36  ;;  %p190_p3 = scmp.lt.s32.totalorder (!%p164_p2), %s855_s23, 255 }
   0xb   : > { %v900_v0 = vld [vmem:[%s1415_s1 + $0x38] sm:$0xff]  ;;  %v899_v1 = vld [vmem:[%s1415_s1 + $0x30] sm:$0xff]  ;;  %v898_v2 = vld [vmem:[%s1415_s1 + $0x28] sm:$0xff]  ;;  %s1420_s23 = smov (!%p190_p3, %s855_s23), 255 }
   0xc   : > { %361 = vmatpush.bf16.msra.mxu0 %v900_v0  ;;  %901 = vmatpush.bf16.msra.mxu1 %v900_v0  ;;  %v897_v3 = vld [vmem:[%s1415_s1 + $0x20] sm:$0xff]  ;;  %v896_v4 = vld [vmem:[%s1415_s1 + $0x18] sm:$0xff]  ;;  %v895_v5 = vld [vmem:[%s1415_s1 + $0x10] sm:$0xff]  ;;  %s856_s30 = sshll.u32 %s1420_s23, 3 }
   0xd   : > { %902 = vmatpush.bf16.msra.mxu2 %v900_v0  ;;  %903 = vmatpush.bf16.msra.mxu3 %v900_v0  ;;  %v894_v6 = vld [vmem:[%s1415_s1 + $0x8] sm:$0xff]  ;;  %s1133_s9 = scalar_lea.vmem %s1414_s0, %s856_s30  ;;  %v893_v7 = vld [vmem:[%s1415_s1] sm:$0xff]  ;;  %s1223_s19 = scalar_lea.vmem %s1418_s4, %s856_s30 }
   0xe   : > { %v201_v8 = vld [vmem:[%s1133_s9] sm:$0xff]  ;;  %v202_v9 = vld [vmem:[%s1133_s9 + $0x8] sm:$0xff]  ;;  %v203_v20 = vld [vmem:[%s1133_s9 + $0x10] sm:$0xff] }
   0xf   : > { %v217_v10 = vld [vmem:[%s1133_s9 + $0x80] sm:$0xff]  ;;  %v218_v11 = vld [vmem:[%s1133_s9 + $0x88] sm:$0xff]  ;;  %v265_v16 = vpack.c.bf16 %v202_v9, %v201_v8  ;;  %v204_v21 = vld [vmem:[%s1133_s9 + $0x18] sm:$0xff] }
  0x10   : > { %362 = vmatpush.bf16.msra.mxu0 %v899_v1  ;;  %904 = vmatpush.bf16.msra.mxu1 %v899_v1  ;;  %v233_v12 = vld [vmem:[%s1133_s9 + $0x100] sm:$0xff]  ;;  %v234_v13 = vld [vmem:[%s1133_s9 + $0x108] sm:$0xff]  ;;  %v273_v17 = vpack.c.bf16 %v218_v11, %v217_v10  ;;  %v219_v22 = vld [vmem:[%s1133_s9 + $0x90] sm:$0xff]  ;;  %v266_v28 = vpack.c.bf16 %v204_v21, %v203_v20 }
  0x11   : > { %905 = vmatpush.bf16.msra.mxu2 %v899_v1  ;;  %906 = vmatpush.bf16.msra.mxu3 %v899_v1  ;;  %v249_v14 = vld [vmem:[%s1133_s9 + $0x180] sm:$0xff]  ;;  %v250_v15 = vld [vmem:[%s1133_s9 + $0x188] sm:$0xff]  ;;  %v281_v18 = vpack.c.bf16 %v234_v13, %v233_v12  ;;  %v220_v23 = vld [vmem:[%s1133_s9 + $0x98] sm:$0xff] }
  0x12   : > { %v289_v19 = vpack.c.bf16 %v250_v15, %v249_v14  ;;  %v235_v24 = vld [vmem:[%s1133_s9 + $0x110] sm:$0xff]  ;;  %v236_v25 = vld [vmem:[%s1133_s9 + $0x118] sm:$0xff]  ;;  %v274_v29 = vpack.c.bf16 %v220_v23, %v219_v22  ;;  %v205_v32 = vld [vmem:[%s1133_s9 + $0x20] sm:$0xff] }
  0x13   : > { %v251_v26 = vld [vmem:[%s1133_s9 + $0x190] sm:$0xff]  ;;  %v252_v27 = vld [vmem:[%s1133_s9 + $0x198] sm:$0xff]  ;;  %v282_v30 = vpack.c.bf16 %v236_v25, %v235_v24  ;;  %v206_v33 = vld [vmem:[%s1133_s9 + $0x28] sm:$0xff] }
  0x14   : > { %363 = vmatpush.bf16.msra.mxu0 %v898_v2  ;;  %907 = vmatpush.bf16.msra.mxu1 %v898_v2  ;;  %v290_v31 = vpack.c.bf16 %v252_v27, %v251_v26  ;;  %v221_v34 = vld [vmem:[%s1133_s9 + $0xa0] sm:$0xff]  ;;  %v222_v35 = vld [vmem:[%s1133_s9 + $0xa8] sm:$0xff]  ;;  %v267_v40 = vpack.c.bf16 %v206_v33, %v205_v32  ;;  %v207_v44 = vld [vmem:[%s1133_s9 + $0x30] sm:$0xff] }
  0x15   : > { %908 = vmatpush.bf16.msra.mxu2 %v898_v2  ;;  %909 = vmatpush.bf16.msra.mxu3 %v898_v2  ;;  %v237_v36 = vld [vmem:[%s1133_s9 + $0x120] sm:$0xff]  ;;  %v238_v37 = vld [vmem:[%s1133_s9 + $0x128] sm:$0xff]  ;;  %v275_v41 = vpack.c.bf16 %v222_v35, %v221_v34  ;;  %v208_v45 = vld [vmem:[%s1133_s9 + $0x38] sm:$0xff] }
  0x16   : > { %v253_v38 = vld [vmem:[%s1133_s9 + $0x1a0] sm:$0xff]  ;;  %v254_v39 = vld [vmem:[%s1133_s9 + $0x1a8] sm:$0xff]  ;;  %v283_v42 = vpack.c.bf16 %v238_v37, %v237_v36  ;;  %v223_v46 = vld [vmem:[%s1133_s9 + $0xb0] sm:$0xff]  ;;  %v268_v52 = vpack.c.bf16 %v208_v45, %v207_v44 }
  0x17   : > { %v291_v43 = vpack.c.bf16 %v254_v39, %v253_v38  ;;  %v224_v47 = vld [vmem:[%s1133_s9 + $0xb8] sm:$0xff]  ;;  %v239_v48 = vld [vmem:[%s1133_s9 + $0x130] sm:$0xff]  ;;  %v209_v56 = vld [vmem:[%s1133_s9 + $0x40] sm:$0xff] }
  0x18   : > { %364 = vmatpush.bf16.msra.mxu0 %v897_v3  ;;  %910 = vmatpush.bf16.msra.mxu1 %v897_v3  ;;  %v240_v49 = vld [vmem:[%s1133_s9 + $0x138] sm:$0xff]  ;;  %v255_v50 = vld [vmem:[%s1133_s9 + $0x1b0] sm:$0xff]  ;;  %v276_v53 = vpack.c.bf16 %v224_v47, %v223_v46  ;;  %v210_v57 = vld [vmem:[%s1133_s9 + $0x48] sm:$0xff] }
  0x19   : > { %911 = vmatpush.bf16.msra.mxu2 %v897_v3  ;;  %912 = vmatpush.bf16.msra.mxu3 %v897_v3  ;;  %v256_v51 = vld [vmem:[%s1133_s9 + $0x1b8] sm:$0xff]  ;;  %v284_v54 = vpack.c.bf16 %v240_v49, %v239_v48  ;;  %v225_v58 = vld [vmem:[%s1133_s9 + $0xc0] sm:$0xff]  ;;  %v226_v59 = vld [vmem:[%s1133_s9 + $0xc8] sm:$0xff]  ;;  %v269_v0 = vpack.c.bf16 %v210_v57, %v209_v56 }
  0x1a   : > { %v292_v55 = vpack.c.bf16 %v256_v51, %v255_v50  ;;  %v241_v60 = vld [vmem:[%s1133_s9 + $0x140] sm:$0xff]  ;;  %v242_v61 = vld [vmem:[%s1133_s9 + $0x148] sm:$0xff]  ;;  %v277_v1 = vpack.c.bf16 %v226_v59, %v225_v58  ;;  %v243_v8 = vld [vmem:[%s1133_s9 + $0x150] sm:$0xff] }
  0x1b   : > { %v257_v62 = vld [vmem:[%s1133_s9 + $0x1c0] sm:$0xff]  ;;  %v258_v63 = vld [vmem:[%s1133_s9 + $0x1c8] sm:$0xff]  ;;  %v285_v2 = vpack.c.bf16 %v242_v61, %v241_v60  ;;  %v244_v9 = vld [vmem:[%s1133_s9 + $0x158] sm:$0xff] }
  0x1c   : > { %365 = vmatpush.bf16.msra.mxu0 %v896_v4  ;;  %913 = vmatpush.bf16.msra.mxu1 %v896_v4  ;;  %v293_v3 = vpack.c.bf16 %v258_v63, %v257_v62  ;;  %v259_v10 = vld [vmem:[%s1133_s9 + $0x1d0] sm:$0xff]  ;;  %v260_v11 = vld [vmem:[%s1133_s9 + $0x1d8] sm:$0xff]  ;;  %v286_v14 = vpack.c.bf16 %v244_v9, %v243_v8  ;;  %v245_v20 = vld [vmem:[%s1133_s9 + $0x160] sm:$0xff] }
  0x1d   : > { %914 = vmatpush.bf16.msra.mxu2 %v896_v4  ;;  %915 = vmatpush.bf16.msra.mxu3 %v896_v4  ;;  %v211_v4 = vld [vmem:[%s1133_s9 + $0x50] sm:$0xff]  ;;  %v294_v15 = vpack.c.bf16 %v260_v11, %v259_v10  ;;  %v246_v21 = vld [vmem:[%s1133_s9 + $0x168] sm:$0xff]  ;;  %v261_v22 = vld [vmem:[%s1133_s9 + $0x1e0] sm:$0xff] }
  0x1e   : > { %v262_v23 = vld [vmem:[%s1133_s9 + $0x1e8] sm:$0xff]  ;;  %v287_v26 = vpack.c.bf16 %v246_v21, %v245_v20  ;;  %v247_v32 = vld [vmem:[%s1133_s9 + $0x170] sm:$0xff]  ;;  %v248_v33 = vld [vmem:[%s1133_s9 + $0x178] sm:$0xff] }
  0x1f   : > { %v295_v27 = vpack.c.bf16 %v262_v23, %v261_v22  ;;  %v263_v34 = vld [vmem:[%s1133_s9 + $0x1f0] sm:$0xff]  ;;  %v264_v35 = vld [vmem:[%s1133_s9 + $0x1f8] sm:$0xff]  ;;  %v288_v38 = vpack.c.bf16 %v248_v33, %v247_v32 }
  0x20   : > { %366 = vmatpush.bf16.msra.mxu0 %v895_v5  ;;  %916 = vmatpush.bf16.msra.mxu1 %v895_v5  ;;  %v296_v39 = vpack.c.bf16 %v264_v35, %v263_v34 }
  0x21   : > { %917 = vmatpush.bf16.msra.mxu2 %v895_v5  ;;  %918 = vmatpush.bf16.msra.mxu3 %v895_v5  ;;  %v212_v5 = vld [vmem:[%s1133_s9 + $0x58] sm:$0xff] }
  0x22   : > { %v270_v12 = vpack.c.bf16 %v212_v5, %v211_v4 }
  0x24   : > { %367 = vmatpush.bf16.msra.mxu0 %v894_v6  ;;  %919 = vmatpush.bf16.msra.mxu1 %v894_v6 }
  0x25   : > { %920 = vmatpush.bf16.msra.mxu2 %v894_v6  ;;  %921 = vmatpush.bf16.msra.mxu3 %v894_v6  ;;  %v227_v6 = vld [vmem:[%s1133_s9 + $0xd0] sm:$0xff] }
  0x28   : > { %368 = vmatpush.bf16.msra.mxu0 %v893_v7  ;;  %922 = vmatpush.bf16.msra.mxu1 %v893_v7 }
  0x29   : > { %923 = vmatpush.bf16.msra.mxu2 %v893_v7  ;;  %924 = vmatpush.bf16.msra.mxu3 %v893_v7  ;;  %v228_v7 = vld [vmem:[%s1133_s9 + $0xd8] sm:$0xff] }
  0x2a   : > { %v278_v13 = vpack.c.bf16 %v228_v7, %v227_v6 }
  0x2b   : > { %369 = vmatmul.bf16.vlgmr.msra.gmra.mxu0 %v265_v16  ;;  %409 = vmatmul.bf16.vlgmr.msra.gmra.mxu1 %v273_v17  ;;  %v213_v16 = vld [vmem:[%s1133_s9 + $0x60] sm:$0xff]  ;;  %v214_v17 = vld [vmem:[%s1133_s9 + $0x68] sm:$0xff] }
  0x2c   : > { %449 = vmatmul.bf16.vlgmr.msra.gmra.mxu2 %v281_v18  ;;  %489 = vmatmul.bf16.vlgmr.msra.gmra.mxu3 %v289_v19  ;;  %v229_v18 = vld [vmem:[%s1133_s9 + $0xe0] sm:$0xff]  ;;  %v230_v19 = vld [vmem:[%s1133_s9 + $0xe8] sm:$0xff]  ;;  %v271_v24 = vpack.c.bf16 %v214_v17, %v213_v16 }
  0x2d   : > { %v279_v25 = vpack.c.bf16 %v230_v19, %v229_v18 }
  0x3b   : > { %374 = vmatmul.bf16.gmra.mxu0 %v266_v28  ;;  %414 = vmatmul.bf16.gmra.mxu1 %v274_v29  ;;  %v215_v28 = vld [vmem:[%s1133_s9 + $0x70] sm:$0xff]  ;;  %v216_v29 = vld [vmem:[%s1133_s9 + $0x78] sm:$0xff] }
  0x3c   : > { %454 = vmatmul.bf16.gmra.mxu2 %v282_v30  ;;  %494 = vmatmul.bf16.gmra.mxu3 %v290_v31  ;;  %v231_v30 = vld [vmem:[%s1133_s9 + $0xf0] sm:$0xff]  ;;  %v232_v31 = vld [vmem:[%s1133_s9 + $0xf8] sm:$0xff]  ;;  %v272_v36 = vpack.c.bf16 %v216_v29, %v215_v28 }
  0x3d   : > { %v280_v37 = vpack.c.bf16 %v232_v31, %v231_v30 }
  0x4b   : > { %379 = vmatmul.bf16.gmra.mxu0 %v267_v40  ;;  %419 = vmatmul.bf16.gmra.mxu1 %v275_v41  ;;  %v1205_v40 = vld [vmem:[%s1416_s2] ss:$0 sm:$0xff] }
  0x4c   : > { %459 = vmatmul.bf16.gmra.mxu2 %v283_v42  ;;  %499 = vmatmul.bf16.gmra.mxu3 %v291_v43  ;;  %v1210_v41 = vld [vmem:[%s1417_s3] ss:$0 sm:$0xff] }
  0x5b   : > { %384 = vmatmul.bf16.gmra.mxu0 %v268_v52  ;;  %424 = vmatmul.bf16.gmra.mxu1 %v276_v53 }
  0x5c   : > { %464 = vmatmul.bf16.gmra.mxu2 %v284_v54  ;;  %504 = vmatmul.bf16.gmra.mxu3 %v292_v55 }
  0x6b   : > { %389 = vmatmul.bf16.gmra.mxu0 %v269_v0  ;;  %429 = vmatmul.bf16.gmra.mxu1 %v277_v1 }
  0x6c   : > { %469 = vmatmul.bf16.gmra.mxu2 %v285_v2  ;;  %509 = vmatmul.bf16.gmra.mxu3 %v293_v3 }
  0x7b   : > { %394 = vmatmul.bf16.gmra.mxu0 %v270_v12  ;;  %434 = vmatmul.bf16.gmra.mxu1 %v278_v13 }
  0x7c   : > { %474 = vmatmul.bf16.gmra.mxu2 %v286_v14  ;;  %514 = vmatmul.bf16.gmra.mxu3 %v294_v15 }
  0x8b   : > { %399 = vmatmul.bf16.gmra.mxu0 %v271_v24  ;;  %439 = vmatmul.bf16.gmra.mxu1 %v279_v25 }
  0x8c   : > { %479 = vmatmul.bf16.gmra.mxu2 %v287_v26  ;;  %519 = vmatmul.bf16.gmra.mxu3 %v295_v27 }
  0x9b   : > { %404 = vmatmul.bf16.gmra.mxu0 %v272_v36  ;;  %444 = vmatmul.bf16.gmra.mxu1 %v280_v37 }
  0x9c   : > { %484 = vmatmul.bf16.gmra.mxu2 %v288_v38  ;;  %524 = vmatmul.bf16.gmra.mxu3 %v296_v39 }
  0xa8   : > { %v370_v42 = vpop.f32.mrf.mxu0  ;;  %v410_v43 = vpop.f32.mrf.mxu1 }
  0xa9   : > { %v534_v44 = vmul.f32 %v1205_v40, %v370_v42  ;;  %v550_v45 = vmul.f32 %v1205_v40, %v410_v43 }
  0xab   : > { %v602_v46 = vadd.f32 %v1210_v41, %v534_v44  ;;  %v618_v47 = vadd.f32 %v1210_v41, %v550_v45 }
  0xad   : > { %935 = vtanh.f32 %v602_v46 }
  0xae   : > { %937 = vtanh.f32 %v618_v47 }
  0xaf   : > { %v450_v48 = vpop.f32.mrf.mxu2  ;;  %v490_v49 = vpop.f32.mrf.mxu3 }
  0xb0   : > { %v566_v50 = vmul.f32 %v1205_v40, %v450_v48  ;;  %v582_v51 = vmul.f32 %v1205_v40, %v490_v49  ;;  %v372_v52 = vpop.f32.mrf.mxu0  ;;  %v412_v53 = vpop.f32.mrf.mxu1 }
  0xb1   : > { %v535_v54 = vmul.f32 %v1205_v40, %v372_v52  ;;  %v551_v55 = vmul.f32 %v1205_v40, %v412_v53 }
  0xb2   : > { %v634_v56 = vadd.f32 %v1210_v41, %v566_v50  ;;  %v650_v57 = vadd.f32 %v1210_v41, %v582_v51 }
  0xb3   : > { %v936_v58 = vpop.eup %935  ;;  %v603_v59 = vadd.f32 %v1210_v41, %v535_v54  ;;  %v619_v60 = vadd.f32 %v1210_v41, %v551_v55 }
  0xb4   : > { %v938_v61 = vpop.eup %937  ;;  %730 = vst [vmem:[%s1223_s19] sm:$0xff] %v936_v58  ;;  %939 = vtanh.f32 %v634_v56 }
  0xb5   : > { %746 = vst [vmem:[%s1223_s19 + $0x80] sm:$0xff] %v938_v61  ;;  %941 = vtanh.f32 %v650_v57 }
  0xb6   : > { %943 = vtanh.f32 %v603_v59 }
  0xb7   : > { %945 = vtanh.f32 %v619_v60  ;;  %v452_v62 = vpop.f32.mrf.mxu2  ;;  %v492_v63 = vpop.f32.mrf.mxu3 }
  0xb8   : > { %v567_v0 = vmul.f32 %v1205_v40, %v452_v62  ;;  %v583_v1 = vmul.f32 %v1205_v40, %v492_v63  ;;  %v375_v2 = vpop.f32.mrf.mxu0  ;;  %v415_v3 = vpop.f32.mrf.mxu1 }
  0xb9   : > { %v536_v4 = vmul.f32 %v1205_v40, %v375_v2  ;;  %v552_v5 = vmul.f32 %v1205_v40, %v415_v3 }
  0xba   : > { %v940_v6 = vpop.eup %939  ;;  %v635_v7 = vadd.f32 %v1210_v41, %v567_v0  ;;  %v651_v8 = vadd.f32 %v1210_v41, %v583_v1 }
  0xbb   : > { %v942_v9 = vpop.eup %941  ;;  %762 = vst [vmem:[%s1223_s19 + $0x100] sm:$0xff] %v940_v6  ;;  %v604_v10 = vadd.f32 %v1210_v41, %v536_v4  ;;  %v620_v11 = vadd.f32 %v1210_v41, %v552_v5 }
  0xbc   : > { %v944_v12 = vpop.eup %943  ;;  %778 = vst [vmem:[%s1223_s19 + $0x180] sm:$0xff] %v942_v9  ;;  %947 = vtanh.f32 %v635_v7 }
  0xbd   : > { %v946_v13 = vpop.eup %945  ;;  %731 = vst [vmem:[%s1223_s19 + $0x8] sm:$0xff] %v944_v12  ;;  %949 = vtanh.f32 %v651_v8 }
  0xbe   : > { %747 = vst [vmem:[%s1223_s19 + $0x88] sm:$0xff] %v946_v13  ;;  %951 = vtanh.f32 %v604_v10 }
  0xbf   : > { %953 = vtanh.f32 %v620_v11  ;;  %v455_v14 = vpop.f32.mrf.mxu2  ;;  %v495_v15 = vpop.f32.mrf.mxu3 }
  0xc0   : > { %v568_v16 = vmul.f32 %v1205_v40, %v455_v14  ;;  %v584_v17 = vmul.f32 %v1205_v40, %v495_v15  ;;  %v377_v18 = vpop.f32.mrf.mxu0  ;;  %v417_v19 = vpop.f32.mrf.mxu1 }
  0xc1   : > { %v537_v20 = vmul.f32 %v1205_v40, %v377_v18  ;;  %v553_v21 = vmul.f32 %v1205_v40, %v417_v19 }
  0xc2   : > { %v948_v22 = vpop.eup %947  ;;  %v636_v23 = vadd.f32 %v1210_v41, %v568_v16  ;;  %v652_v24 = vadd.f32 %v1210_v41, %v584_v17 }
  0xc3   : > { %v950_v25 = vpop.eup %949  ;;  %763 = vst [vmem:[%s1223_s19 + $0x108] sm:$0xff] %v948_v22  ;;  %v605_v26 = vadd.f32 %v1210_v41, %v537_v20  ;;  %v621_v27 = vadd.f32 %v1210_v41, %v553_v21 }
  0xc4   : > { %v952_v28 = vpop.eup %951  ;;  %779 = vst [vmem:[%s1223_s19 + $0x188] sm:$0xff] %v950_v25  ;;  %955 = vtanh.f32 %v636_v23 }
  0xc5   : > { %v954_v29 = vpop.eup %953  ;;  %732 = vst [vmem:[%s1223_s19 + $0x10] sm:$0xff] %v952_v28  ;;  %957 = vtanh.f32 %v652_v24 }
  0xc6   : > { %748 = vst [vmem:[%s1223_s19 + $0x90] sm:$0xff] %v954_v29  ;;  %959 = vtanh.f32 %v605_v26 }
  0xc7   : > { %961 = vtanh.f32 %v621_v27  ;;  %v457_v30 = vpop.f32.mrf.mxu2  ;;  %v497_v31 = vpop.f32.mrf.mxu3 }
  0xc8   : > { %v569_v32 = vmul.f32 %v1205_v40, %v457_v30  ;;  %v585_v33 = vmul.f32 %v1205_v40, %v497_v31  ;;  %v380_v34 = vpop.f32.mrf.mxu0  ;;  %v420_v35 = vpop.f32.mrf.mxu1 }
  0xc9   : > { %v538_v36 = vmul.f32 %v1205_v40, %v380_v34  ;;  %v554_v37 = vmul.f32 %v1205_v40, %v420_v35 }
  0xca   : > { %v956_v38 = vpop.eup %955  ;;  %v637_v39 = vadd.f32 %v1210_v41, %v569_v32  ;;  %v653_v42 = vadd.f32 %v1210_v41, %v585_v33 }
  0xcb   : > { %v958_v43 = vpop.eup %957  ;;  %764 = vst [vmem:[%s1223_s19 + $0x110] sm:$0xff] %v956_v38  ;;  %v606_v44 = vadd.f32 %v1210_v41, %v538_v36  ;;  %v622_v45 = vadd.f32 %v1210_v41, %v554_v37 }
  0xcc   : > { %v960_v46 = vpop.eup %959  ;;  %780 = vst [vmem:[%s1223_s19 + $0x190] sm:$0xff] %v958_v43  ;;  %963 = vtanh.f32 %v637_v39 }
  0xcd   : > { %v962_v47 = vpop.eup %961  ;;  %733 = vst [vmem:[%s1223_s19 + $0x18] sm:$0xff] %v960_v46  ;;  %965 = vtanh.f32 %v653_v42 }
  0xce   : > { %749 = vst [vmem:[%s1223_s19 + $0x98] sm:$0xff] %v962_v47  ;;  %967 = vtanh.f32 %v606_v44 }
  0xcf   : > { %969 = vtanh.f32 %v622_v45  ;;  %v460_v48 = vpop.f32.mrf.mxu2  ;;  %v500_v49 = vpop.f32.mrf.mxu3 }
  0xd0   : > { %v570_v50 = vmul.f32 %v1205_v40, %v460_v48  ;;  %v586_v51 = vmul.f32 %v1205_v40, %v500_v49  ;;  %v382_v52 = vpop.f32.mrf.mxu0  ;;  %v422_v53 = vpop.f32.mrf.mxu1 }
  0xd1   : > { %v539_v54 = vmul.f32 %v1205_v40, %v382_v52  ;;  %v555_v55 = vmul.f32 %v1205_v40, %v422_v53 }
  0xd2   : > { %v964_v56 = vpop.eup %963  ;;  %v638_v57 = vadd.f32 %v1210_v41, %v570_v50  ;;  %v654_v58 = vadd.f32 %v1210_v41, %v586_v51 }
  0xd3   : > { %v966_v59 = vpop.eup %965  ;;  %765 = vst [vmem:[%s1223_s19 + $0x118] sm:$0xff] %v964_v56  ;;  %v607_v60 = vadd.f32 %v1210_v41, %v539_v54  ;;  %v623_v61 = vadd.f32 %v1210_v41, %v555_v55 }
  0xd4   : > { %v968_v62 = vpop.eup %967  ;;  %781 = vst [vmem:[%s1223_s19 + $0x198] sm:$0xff] %v966_v59  ;;  %971 = vtanh.f32 %v638_v57 }
  0xd5   : > { %v970_v63 = vpop.eup %969  ;;  %734 = vst [vmem:[%s1223_s19 + $0x20] sm:$0xff] %v968_v62  ;;  %973 = vtanh.f32 %v654_v58 }
  0xd6   : > { %750 = vst [vmem:[%s1223_s19 + $0xa0] sm:$0xff] %v970_v63  ;;  %975 = vtanh.f32 %v607_v60 }
  0xd7   : > { %977 = vtanh.f32 %v623_v61  ;;  %v462_v0 = vpop.f32.mrf.mxu2  ;;  %v502_v1 = vpop.f32.mrf.mxu3 }
  0xd8   : > { %v571_v2 = vmul.f32 %v1205_v40, %v462_v0  ;;  %v587_v3 = vmul.f32 %v1205_v40, %v502_v1  ;;  %v385_v4 = vpop.f32.mrf.mxu0  ;;  %v425_v5 = vpop.f32.mrf.mxu1 }
  0xd9   : > { %v540_v6 = vmul.f32 %v1205_v40, %v385_v4  ;;  %v556_v7 = vmul.f32 %v1205_v40, %v425_v5 }
  0xda   : > { %v972_v8 = vpop.eup %971  ;;  %v639_v9 = vadd.f32 %v1210_v41, %v571_v2  ;;  %v655_v10 = vadd.f32 %v1210_v41, %v587_v3 }
  0xdb   : > { %v974_v11 = vpop.eup %973  ;;  %766 = vst [vmem:[%s1223_s19 + $0x120] sm:$0xff] %v972_v8  ;;  %v608_v12 = vadd.f32 %v1210_v41, %v540_v6  ;;  %v624_v13 = vadd.f32 %v1210_v41, %v556_v7 }
  0xdc   : > { %v976_v14 = vpop.eup %975  ;;  %782 = vst [vmem:[%s1223_s19 + $0x1a0] sm:$0xff] %v974_v11  ;;  %979 = vtanh.f32 %v639_v9 }
  0xdd   : > { %v978_v15 = vpop.eup %977  ;;  %735 = vst [vmem:[%s1223_s19 + $0x28] sm:$0xff] %v976_v14  ;;  %981 = vtanh.f32 %v655_v10 }
  0xde   : > { %751 = vst [vmem:[%s1223_s19 + $0xa8] sm:$0xff] %v978_v15  ;;  %983 = vtanh.f32 %v608_v12 }
  0xdf   : > { %985 = vtanh.f32 %v624_v13  ;;  %v465_v16 = vpop.f32.mrf.mxu2  ;;  %v505_v17 = vpop.f32.mrf.mxu3 }
  0xe0   : > { %v572_v18 = vmul.f32 %v1205_v40, %v465_v16  ;;  %v588_v19 = vmul.f32 %v1205_v40, %v505_v17  ;;  %v387_v20 = vpop.f32.mrf.mxu0  ;;  %v427_v21 = vpop.f32.mrf.mxu1 }
  0xe1   : > { %v541_v22 = vmul.f32 %v1205_v40, %v387_v20  ;;  %v557_v23 = vmul.f32 %v1205_v40, %v427_v21 }
  0xe2   : > { %v980_v24 = vpop.eup %979  ;;  %v640_v25 = vadd.f32 %v1210_v41, %v572_v18  ;;  %v656_v26 = vadd.f32 %v1210_v41, %v588_v19 }
  0xe3   : > { %v982_v27 = vpop.eup %981  ;;  %767 = vst [vmem:[%s1223_s19 + $0x128] sm:$0xff] %v980_v24  ;;  %v609_v28 = vadd.f32 %v1210_v41, %v541_v22  ;;  %v625_v29 = vadd.f32 %v1210_v41, %v557_v23 }
  0xe4   : > { %v984_v30 = vpop.eup %983  ;;  %783 = vst [vmem:[%s1223_s19 + $0x1a8] sm:$0xff] %v982_v27  ;;  %987 = vtanh.f32 %v640_v25 }
  0xe5   : > { %v986_v31 = vpop.eup %985  ;;  %736 = vst [vmem:[%s1223_s19 + $0x30] sm:$0xff] %v984_v30  ;;  %989 = vtanh.f32 %v656_v26 }
  0xe6   : > { %752 = vst [vmem:[%s1223_s19 + $0xb0] sm:$0xff] %v986_v31  ;;  %991 = vtanh.f32 %v609_v28 }
  0xe7   : > { %993 = vtanh.f32 %v625_v29  ;;  %v467_v32 = vpop.f32.mrf.mxu2  ;;  %v507_v33 = vpop.f32.mrf.mxu3 }
  0xe8   : > { %v573_v34 = vmul.f32 %v1205_v40, %v467_v32  ;;  %v589_v35 = vmul.f32 %v1205_v40, %v507_v33  ;;  %v390_v36 = vpop.f32.mrf.mxu0  ;;  %v430_v37 = vpop.f32.mrf.mxu1 }
  0xe9   : > { %v542_v38 = vmul.f32 %v1205_v40, %v390_v36  ;;  %v558_v39 = vmul.f32 %v1205_v40, %v430_v37 }
  0xea   : > { %v988_v42 = vpop.eup %987  ;;  %v641_v43 = vadd.f32 %v1210_v41, %v573_v34  ;;  %v657_v44 = vadd.f32 %v1210_v41, %v589_v35 }
  0xeb   : > { %v990_v45 = vpop.eup %989  ;;  %768 = vst [vmem:[%s1223_s19 + $0x130] sm:$0xff] %v988_v42  ;;  %v610_v46 = vadd.f32 %v1210_v41, %v542_v38  ;;  %v626_v47 = vadd.f32 %v1210_v41, %v558_v39 }
  0xec   : > { %v992_v48 = vpop.eup %991  ;;  %784 = vst [vmem:[%s1223_s19 + $0x1b0] sm:$0xff] %v990_v45  ;;  %995 = vtanh.f32 %v641_v43 }
  0xed   : > { %v994_v49 = vpop.eup %993  ;;  %737 = vst [vmem:[%s1223_s19 + $0x38] sm:$0xff] %v992_v48  ;;  %997 = vtanh.f32 %v657_v44 }
  0xee   : > { %753 = vst [vmem:[%s1223_s19 + $0xb8] sm:$0xff] %v994_v49  ;;  %999 = vtanh.f32 %v610_v46 }
  0xef   : > { %1001 = vtanh.f32 %v626_v47  ;;  %v470_v50 = vpop.f32.mrf.mxu2  ;;  %v510_v51 = vpop.f32.mrf.mxu3 }
  0xf0   : > { %v574_v52 = vmul.f32 %v1205_v40, %v470_v50  ;;  %v590_v53 = vmul.f32 %v1205_v40, %v510_v51  ;;  %v392_v54 = vpop.f32.mrf.mxu0  ;;  %v432_v55 = vpop.f32.mrf.mxu1 }
  0xf1   : > { %v543_v56 = vmul.f32 %v1205_v40, %v392_v54  ;;  %v559_v57 = vmul.f32 %v1205_v40, %v432_v55 }
  0xf2   : > { %v996_v58 = vpop.eup %995  ;;  %v642_v59 = vadd.f32 %v1210_v41, %v574_v52  ;;  %v658_v60 = vadd.f32 %v1210_v41, %v590_v53 }
  0xf3   : > { %v998_v61 = vpop.eup %997  ;;  %769 = vst [vmem:[%s1223_s19 + $0x138] sm:$0xff] %v996_v58  ;;  %v611_v62 = vadd.f32 %v1210_v41, %v543_v56  ;;  %v627_v63 = vadd.f32 %v1210_v41, %v559_v57 }
  0xf4   : > { %v1000_v0 = vpop.eup %999  ;;  %785 = vst [vmem:[%s1223_s19 + $0x1b8] sm:$0xff] %v998_v61  ;;  %1003 = vtanh.f32 %v642_v59 }
  0xf5   : > { %v1002_v1 = vpop.eup %1001  ;;  %738 = vst [vmem:[%s1223_s19 + $0x40] sm:$0xff] %v1000_v0  ;;  %1005 = vtanh.f32 %v658_v60 }
  0xf6   : > { %754 = vst [vmem:[%s1223_s19 + $0xc0] sm:$0xff] %v1002_v1  ;;  %1007 = vtanh.f32 %v611_v62 }
  0xf7   : > { %1009 = vtanh.f32 %v627_v63  ;;  %v472_v2 = vpop.f32.mrf.mxu2  ;;  %v512_v3 = vpop.f32.mrf.mxu3 }
  0xf8   : > { %v575_v4 = vmul.f32 %v1205_v40, %v472_v2  ;;  %v591_v5 = vmul.f32 %v1205_v40, %v512_v3  ;;  %v395_v6 = vpop.f32.mrf.mxu0  ;;  %v435_v7 = vpop.f32.mrf.mxu1 }
  0xf9   : > { %v544_v8 = vmul.f32 %v1205_v40, %v395_v6  ;;  %v560_v9 = vmul.f32 %v1205_v40, %v435_v7 }
  0xfa   : > { %v1004_v10 = vpop.eup %1003  ;;  %v643_v11 = vadd.f32 %v1210_v41, %v575_v4  ;;  %v659_v12 = vadd.f32 %v1210_v41, %v591_v5 }
  0xfb   : > { %v1006_v13 = vpop.eup %1005  ;;  %770 = vst [vmem:[%s1223_s19 + $0x140] sm:$0xff] %v1004_v10  ;;  %v612_v14 = vadd.f32 %v1210_v41, %v544_v8  ;;  %v628_v15 = vadd.f32 %v1210_v41, %v560_v9 }
  0xfc   : > { %v1008_v16 = vpop.eup %1007  ;;  %786 = vst [vmem:[%s1223_s19 + $0x1c0] sm:$0xff] %v1006_v13  ;;  %1011 = vtanh.f32 %v643_v11 }
  0xfd   : > { %v1010_v17 = vpop.eup %1009  ;;  %739 = vst [vmem:[%s1223_s19 + $0x48] sm:$0xff] %v1008_v16  ;;  %1013 = vtanh.f32 %v659_v12 }
  0xfe   : > { %755 = vst [vmem:[%s1223_s19 + $0xc8] sm:$0xff] %v1010_v17  ;;  %1015 = vtanh.f32 %v612_v14 }
  0xff   : > { %1017 = vtanh.f32 %v628_v15  ;;  %v475_v18 = vpop.f32.mrf.mxu2  ;;  %v515_v19 = vpop.f32.mrf.mxu3 }
 0x100   : > { %v576_v20 = vmul.f32 %v1205_v40, %v475_v18  ;;  %v592_v21 = vmul.f32 %v1205_v40, %v515_v19  ;;  %v397_v22 = vpop.f32.mrf.mxu0  ;;  %v437_v23 = vpop.f32.mrf.mxu1 }
 0x101   : > { %v545_v24 = vmul.f32 %v1205_v40, %v397_v22  ;;  %v561_v25 = vmul.f32 %v1205_v40, %v437_v23 }
 0x102   : > { %v1012_v26 = vpop.eup %1011  ;;  %v644_v27 = vadd.f32 %v1210_v41, %v576_v20  ;;  %v660_v28 = vadd.f32 %v1210_v41, %v592_v21 }
 0x103   : > { %v1014_v29 = vpop.eup %1013  ;;  %771 = vst [vmem:[%s1223_s19 + $0x148] sm:$0xff] %v1012_v26  ;;  %v613_v30 = vadd.f32 %v1210_v41, %v545_v24  ;;  %v629_v31 = vadd.f32 %v1210_v41, %v561_v25 }
 0x104   : > { %v1016_v32 = vpop.eup %1015  ;;  %787 = vst [vmem:[%s1223_s19 + $0x1c8] sm:$0xff] %v1014_v29  ;;  %1019 = vtanh.f32 %v644_v27 }
 0x105   : > { %v1018_v33 = vpop.eup %1017  ;;  %740 = vst [vmem:[%s1223_s19 + $0x50] sm:$0xff] %v1016_v32  ;;  %1021 = vtanh.f32 %v660_v28 }
 0x106   : > { %756 = vst [vmem:[%s1223_s19 + $0xd0] sm:$0xff] %v1018_v33  ;;  %1023 = vtanh.f32 %v613_v30 }
 0x107   : > { %1025 = vtanh.f32 %v629_v31  ;;  %v477_v34 = vpop.f32.mrf.mxu2  ;;  %v517_v35 = vpop.f32.mrf.mxu3 }
 0x108   : > { %v577_v36 = vmul.f32 %v1205_v40, %v477_v34  ;;  %v593_v37 = vmul.f32 %v1205_v40, %v517_v35  ;;  %v400_v38 = vpop.f32.mrf.mxu0  ;;  %v440_v39 = vpop.f32.mrf.mxu1 }
 0x109   : > { %v546_v42 = vmul.f32 %v1205_v40, %v400_v38  ;;  %v562_v43 = vmul.f32 %v1205_v40, %v440_v39 }
 0x10a   : > { %v1020_v44 = vpop.eup %1019  ;;  %v645_v45 = vadd.f32 %v1210_v41, %v577_v36  ;;  %v661_v46 = vadd.f32 %v1210_v41, %v593_v37 }
 0x10b   : > { %v1022_v47 = vpop.eup %1021  ;;  %772 = vst [vmem:[%s1223_s19 + $0x150] sm:$0xff] %v1020_v44  ;;  %v614_v48 = vadd.f32 %v1210_v41, %v546_v42  ;;  %v630_v49 = vadd.f32 %v1210_v41, %v562_v43 }
 0x10c   : > { %v1024_v50 = vpop.eup %1023  ;;  %788 = vst [vmem:[%s1223_s19 + $0x1d0] sm:$0xff] %v1022_v47  ;;  %1027 = vtanh.f32 %v645_v45 }
 0x10d   : > { %v1026_v51 = vpop.eup %1025  ;;  %741 = vst [vmem:[%s1223_s19 + $0x58] sm:$0xff] %v1024_v50  ;;  %1029 = vtanh.f32 %v661_v46 }
 0x10e   : > { %757 = vst [vmem:[%s1223_s19 + $0xd8] sm:$0xff] %v1026_v51  ;;  %1031 = vtanh.f32 %v614_v48 }
 0x10f   : > { %1033 = vtanh.f32 %v630_v49  ;;  %v480_v52 = vpop.f32.mrf.mxu2  ;;  %v520_v53 = vpop.f32.mrf.mxu3 }
 0x110   : > { %v578_v54 = vmul.f32 %v1205_v40, %v480_v52  ;;  %v594_v55 = vmul.f32 %v1205_v40, %v520_v53  ;;  %v402_v56 = vpop.f32.mrf.mxu0  ;;  %v442_v57 = vpop.f32.mrf.mxu1 }
 0x111   : > { %v547_v58 = vmul.f32 %v1205_v40, %v402_v56  ;;  %v563_v59 = vmul.f32 %v1205_v40, %v442_v57 }
 0x112   : > { %v1028_v60 = vpop.eup %1027  ;;  %v646_v61 = vadd.f32 %v1210_v41, %v578_v54  ;;  %v662_v62 = vadd.f32 %v1210_v41, %v594_v55 }
 0x113   : > { %v1030_v63 = vpop.eup %1029  ;;  %773 = vst [vmem:[%s1223_s19 + $0x158] sm:$0xff] %v1028_v60  ;;  %v615_v0 = vadd.f32 %v1210_v41, %v547_v58  ;;  %v631_v1 = vadd.f32 %v1210_v41, %v563_v59 }
 0x114   : > { %v1032_v2 = vpop.eup %1031  ;;  %789 = vst [vmem:[%s1223_s19 + $0x1d8] sm:$0xff] %v1030_v63  ;;  %1035 = vtanh.f32 %v646_v61 }
 0x115   : > { %v1034_v3 = vpop.eup %1033  ;;  %742 = vst [vmem:[%s1223_s19 + $0x60] sm:$0xff] %v1032_v2  ;;  %1037 = vtanh.f32 %v662_v62 }
 0x116   : > { %758 = vst [vmem:[%s1223_s19 + $0xe0] sm:$0xff] %v1034_v3  ;;  %1039 = vtanh.f32 %v615_v0 }
 0x117   : > { %1041 = vtanh.f32 %v631_v1  ;;  %v482_v4 = vpop.f32.mrf.mxu2  ;;  %v522_v5 = vpop.f32.mrf.mxu3 }
 0x118   : > { %v579_v6 = vmul.f32 %v1205_v40, %v482_v4  ;;  %v595_v7 = vmul.f32 %v1205_v40, %v522_v5  ;;  %v405_v8 = vpop.f32.mrf.mxu0  ;;  %v445_v9 = vpop.f32.mrf.mxu1 }
 0x119   : > { %v548_v10 = vmul.f32 %v1205_v40, %v405_v8  ;;  %v564_v11 = vmul.f32 %v1205_v40, %v445_v9 }
 0x11a   : > { %v1036_v12 = vpop.eup %1035  ;;  %v647_v13 = vadd.f32 %v1210_v41, %v579_v6  ;;  %v663_v14 = vadd.f32 %v1210_v41, %v595_v7 }
 0x11b   : > { %v1038_v15 = vpop.eup %1037  ;;  %774 = vst [vmem:[%s1223_s19 + $0x160] sm:$0xff] %v1036_v12  ;;  %v616_v16 = vadd.f32 %v1210_v41, %v548_v10  ;;  %v632_v17 = vadd.f32 %v1210_v41, %v564_v11 }
 0x11c   : > { %v1040_v18 = vpop.eup %1039  ;;  %790 = vst [vmem:[%s1223_s19 + $0x1e0] sm:$0xff] %v1038_v15  ;;  %1043 = vtanh.f32 %v647_v13 }
 0x11d   : > { %v1042_v19 = vpop.eup %1041  ;;  %743 = vst [vmem:[%s1223_s19 + $0x68] sm:$0xff] %v1040_v18  ;;  %1045 = vtanh.f32 %v663_v14 }
 0x11e   : > { %759 = vst [vmem:[%s1223_s19 + $0xe8] sm:$0xff] %v1042_v19  ;;  %1047 = vtanh.f32 %v616_v16 }
 0x11f   : > { %1049 = vtanh.f32 %v632_v17  ;;  %v485_v20 = vpop.f32.mrf.mxu2  ;;  %v525_v21 = vpop.f32.mrf.mxu3 }
 0x120   : > { %v580_v22 = vmul.f32 %v1205_v40, %v485_v20  ;;  %v596_v23 = vmul.f32 %v1205_v40, %v525_v21  ;;  %v407_v24 = vpop.f32.mrf.mxu0  ;;  %v447_v25 = vpop.f32.mrf.mxu1 }
 0x121   : > { %v549_v26 = vmul.f32 %v1205_v40, %v407_v24  ;;  %v565_v27 = vmul.f32 %v1205_v40, %v447_v25 }
 0x122   : > { %v1044_v28 = vpop.eup %1043  ;;  %v648_v29 = vadd.f32 %v1210_v41, %v580_v22  ;;  %v664_v30 = vadd.f32 %v1210_v41, %v596_v23 }
 0x123   : > { %v1046_v31 = vpop.eup %1045  ;;  %775 = vst [vmem:[%s1223_s19 + $0x168] sm:$0xff] %v1044_v28  ;;  %v617_v32 = vadd.f32 %v1210_v41, %v549_v26  ;;  %v633_v33 = vadd.f32 %v1210_v41, %v565_v27 }
 0x124   : > { %v1048_v34 = vpop.eup %1047  ;;  %791 = vst [vmem:[%s1223_s19 + $0x1e8] sm:$0xff] %v1046_v31  ;;  %1051 = vtanh.f32 %v648_v29 }
 0x125   : > { %v1050_v35 = vpop.eup %1049  ;;  %744 = vst [vmem:[%s1223_s19 + $0x70] sm:$0xff] %v1048_v34  ;;  %1053 = vtanh.f32 %v664_v30 }
 0x126   : > { %760 = vst [vmem:[%s1223_s19 + $0xf0] sm:$0xff] %v1050_v35  ;;  %1055 = vtanh.f32 %v617_v32 }
 0x127   : > { %1057 = vtanh.f32 %v633_v33  ;;  %v487_v36 = vpop.f32.mrf.mxu2  ;;  %v527_v37 = vpop.f32.mrf.mxu3 }
 0x128   : > { %v581_v38 = vmul.f32 %v1205_v40, %v487_v36  ;;  %v597_v39 = vmul.f32 %v1205_v40, %v527_v37 }
 0x12a   : > { %v1052_v42 = vpop.eup %1051  ;;  %v649_v43 = vadd.f32 %v1210_v41, %v581_v38  ;;  %v665_v44 = vadd.f32 %v1210_v41, %v597_v39 }
 0x12b   : > { %v1054_v45 = vpop.eup %1053  ;;  %776 = vst [vmem:[%s1223_s19 + $0x170] sm:$0xff] %v1052_v42 }
 0x12c   : > { %v1056_v46 = vpop.eup %1055  ;;  %792 = vst [vmem:[%s1223_s19 + $0x1f0] sm:$0xff] %v1054_v45  ;;  %1059 = vtanh.f32 %v649_v43 }
 0x12d   : > { %v1058_v47 = vpop.eup %1057  ;;  %745 = vst [vmem:[%s1223_s19 + $0x78] sm:$0xff] %v1056_v46  ;;  %1061 = vtanh.f32 %v665_v44 }
 0x12e   : > { %761 = vst [vmem:[%s1223_s19 + $0xf8] sm:$0xff] %v1058_v47 }
 0x132   : > { %v1060_v48 = vpop.eup %1059 }
 0x133   : > { %v1062_v49 = vpop.eup %1061  ;;  %777 = vst [vmem:[%s1223_s19 + $0x178] sm:$0xff] %v1060_v48 }
 0x134   : > { %793 = vst [vmem:[%s1223_s19 + $0x1f8] sm:$0xff] %v1062_v49 }
 0x135 PF: > { %s14_s15 = sadd.s32 1, %s1069_s15  }
 0x136   : > { %p11_p4 = scmp.ge.s32.totalorder %s14_s15, 6  }
 0x138   :  { %13 = sbr.rel (!%p11_p4) target bundleno = 1 (0x1), region = 66 }

</bundles_post_ra>
